<compile_context>
chip_gen: v5e
topology: v5e:2x2
jax: 0.10.0
libtpu: 0.0.40
codegen_flags: <defaults>
</compile_context>

<pallas_src>
import numpy as np
import jax
import jax.numpy as jnp
from jax.experimental import pallas as pl
from jax.experimental.pallas import tpu as pltpu

BN_EPS = 1e-5
LANE = 128            # padded channel width (lane dim)
KROWS = 9 * LANE      # rows of one BN-folded 3x3 weight matrix (9 taps x 128 padded cin)


def _conv_hw(h, k, s, p):
    return (h + 2 * p - k) // s + 1


# --------------------------------------------------------------------------- #
# Trace-time constants: 0/1 selection ("gather") operators and im2col for conv1
# --------------------------------------------------------------------------- #
def _sel_stack(h, w, k, stride, pad):
    """Per-tap gather operators, stacked: row (t*oh*ow + oi*ow + oj) selects flattened
    input row (ii*w + jj) for tap t=(di,dj), or is all-zero when that position falls in
    the conv zero padding.  Shape (k*k*oh*ow, h*w) float32."""
    oh = _conv_hw(h, k, stride, pad)
    ow = _conv_hw(w, k, stride, pad)
    sel = np.zeros((k * k, oh * ow, h * w), np.float32)
    for di in range(k):
        for dj in range(k):
            t = di * k + dj
            for oi in range(oh):
                ii = oi * stride + di - pad
                if ii < 0 or ii >= h:
                    continue
                for oj in range(ow):
                    jj = oj * stride + dj - pad
                    if 0 <= jj < w:
                        sel[t, oi * ow + oj, ii * w + jj] = 1.0
    return sel.reshape(k * k * oh * ow, h * w)


def _im2col(x_nhwc, kh, kw, stride, pad):
    n, h, w, c = x_nhwc.shape
    oh = _conv_hw(h, kh, stride, pad)
    ow = _conv_hw(w, kw, stride, pad)
    xp = jnp.pad(x_nhwc, ((0, 0), (pad, pad), (pad, pad), (0, 0)))
    cols = []
    for i in range(kh):
        for j in range(kw):
            cols.append(xp[:, i:i + stride * oh:stride, j:j + stride * ow:stride, :])
    # (n, oh, ow, kh*kw, c) -> (n, oh*ow, kh*kw*c); element order = (kh, kw, cin)
    return jnp.stack(cols, axis=-2).reshape(n, oh * ow, kh * kw * c)


# --------------------------------------------------------------------------- #
# The fused whole-backbone Pallas kernel (one grid step = one image)
# --------------------------------------------------------------------------- #
def _backbone_kernel(patch_ref, selp_ref, sel1_ref, sel2_ref, sel3_ref,
                     w1_ref, b1_ref, w3_ref, b3_ref, wm_ref, bm_ref, out_ref):
    f32, bf16 = jnp.float32, jnp.bfloat16

    def conv(x, sel_ref, w_ref, w_off, b_ref, b_row,
             residual=None, relu=True, out_dtype=bf16):
        """3x3 conv as implicit GEMM over 9 taps + folded-BN bias [+ residual] [+ ReLU]."""
        m_out = sel_ref.shape[0] // 9
        acc = None
        for t in range(9):
            # exact row-gather of this tap's receptive-field positions (0/1 matmul)
            g = jnp.dot(sel_ref[t * m_out:(t + 1) * m_out, :], x,
                        preferred_element_type=f32).astype(bf16)
            wt = w_ref[w_off + t * LANE: w_off + (t + 1) * LANE, :]
            part = jnp.dot(g, wt, preferred_element_type=f32)
            acc = part if acc is None else acc + part
        y = acc + b_ref[b_row:b_row + 1, :]
        if residual is not None:
            y = y + residual.astype(f32)
        if relu:
            y = jnp.maximum(y, 0.0)
        return y.astype(out_dtype)

    # --- stem: conv1 (7x7/s2, patches prebuilt, K=49 padded to 128) + BN + ReLU ----------
    a1 = jnp.dot(patch_ref[...], w1_ref[...], preferred_element_type=f32)
    a1 = jnp.maximum(a1 + b1_ref[...], 0.0).astype(bf16)             # (m1, 128)

    # --- maxpool 3x3/s2/p1: elementwise max over 9 exact row-gathers (inputs >= 0) -------
    mp = selp_ref.shape[0] // 9
    pooled = None
    for t in range(9):
        g = jnp.dot(selp_ref[t * mp:(t + 1) * mp, :], a1, preferred_element_type=f32)
        pooled = g if pooled is None else jnp.maximum(pooled, g)
    x = pooled.astype(bf16)                                          # (mp, 128)

    # --- layer1: two BasicBlocks, 64ch (padded to 128), stride 1, identity shortcuts -----
    y = conv(x, sel1_ref, w3_ref, 0 * KROWS, b3_ref, 0)
    x = conv(y, sel1_ref, w3_ref, 1 * KROWS, b3_ref, 1, residual=x)
    y = conv(x, sel1_ref, w3_ref, 2 * KROWS, b3_ref, 2)
    x = conv(y, sel1_ref, w3_ref, 3 * KROWS, b3_ref, 3, residual=x)

    # --- layer2 block0: merged [3x3/s2 conv | 1x1/s2 BN downsample] -> Cout=256 tile -----
    ym = conv(x, sel2_ref, wm_ref, 0, bm_ref, 0, relu=False)         # (m2, 256) bf16
    y = jnp.maximum(ym[:, 0:LANE], 0.0)                              # conv branch + ReLU
    shortcut = ym[:, LANE:2 * LANE]                                  # BN'd shortcut (no ReLU)
    x = conv(y, sel3_ref, w3_ref, 4 * KROWS, b3_ref, 4, residual=shortcut)

    # --- layer2 block1: 128ch, stride 1, identity shortcut --------------------------------
    y = conv(x, sel3_ref, w3_ref, 5 * KROWS, b3_ref, 5)
    x = conv(y, sel3_ref, w3_ref, 6 * KROWS, b3_ref, 6, residual=x,
             out_dtype=jnp.float32)

    out_ref[...] = x                                                 # (m2, 128) f32


# --------------------------------------------------------------------------- #
# One-time parameter preparation (outside the jitted forward)
# --------------------------------------------------------------------------- #
def prepare_params(p, input_hw=(32, 32)):
    h, w = input_hw
    h1, w1 = _conv_hw(h, 7, 2, 3), _conv_hw(w, 7, 2, 3)
    hp, wp = _conv_hw(h1, 3, 2, 1), _conv_hw(w1, 3, 2, 1)
    h2, w2 = _conv_hw(hp, 3, 2, 1), _conv_hw(wp, 3, 2, 1)

    def fold(wname, bnname):
        weight = p[wname]
        gamma, beta, mean, var = p[bnname]
        scale = gamma / jnp.sqrt(var + BN_EPS)
        bias = beta - mean * scale
        cout, cin, kh, kw = weight.shape
        wm = jnp.transpose(weight, (2, 3, 1, 0)).reshape(kh * kw, cin, cout) * scale
        return wm, bias                                   # (taps, cin, cout), (cout,)

    def pad_taps(wm, bias, cout_p=LANE):
        taps, cin, cout = wm.shape
        wf = jnp.zeros((taps, LANE, cout_p), jnp.float32).at[:, :cin, :cout].set(wm)
        bf = jnp.zeros((cout_p,), jnp.float32).at[:cout].set(bias)
        return wf.reshape(taps * LANE, cout_p), bf

    # stem conv1: cin=1, K = 49 padded to 128, cout 64 padded to 128
    wm1, b1v = fold('conv1_w', 'bn1')                                # (49,1,64), (64,)
    w1m = jnp.zeros((LANE, LANE), jnp.float32).at[:49, :64].set(wm1.reshape(49, 64))
    b1m = jnp.zeros((1, LANE), jnp.float32).at[0, :64].set(b1v)

    # stacked 3x3 convs (all except layer2-block0's first conv / downsample)
    names = [('l1b0_c1_w', 'l1b0_bn1'), ('l1b0_c2_w', 'l1b0_bn2'),
             ('l1b1_c1_w', 'l1b1_bn1'), ('l1b1_c2_w', 'l1b1_bn2'),
             ('l2b0_c2_w', 'l2b0_bn2'),
             ('l2b1_c1_w', 'l2b1_bn1'), ('l2b1_c2_w', 'l2b1_bn2')]
    w3, b3 = [], []
    for wn, bn in names:
        wf, bf = pad_taps(*fold(wn, bn))
        w3.append(wf)
        b3.append(bf)
    w3 = jnp.concatenate(w3, axis=0).astype(jnp.bfloat16)            # (7*1152, 128)
    b3 = jnp.stack(b3)                                               # (7, 128) f32

    # merged layer2-block0: 3x3/s2 conv -> cols 0:128, 1x1/s2 downsample at centre tap -> 128:256
    wc1, bc1 = fold('l2b0_c1_w', 'l2b0_bn1')                         # (9, 64, 128)
    wds, bds = fold('l2b0_ds_w', 'l2b0_dsbn')                        # (1, 64, 128)
    wm_full = jnp.zeros((9, LANE, 2 * LANE), jnp.float32)
    wm_full = wm_full.at[:, :64, 0:LANE].set(wc1)
    wm_full = wm_full.at[4, :64, LANE:2 * LANE].set(wds[0])          # centre tap == 1x1/s2
    wm_full = wm_full.reshape(KROWS, 2 * LANE)
    bm_full = jnp.concatenate([bc1, bds]).reshape(1, 2 * LANE)

    return {
        'selp': jnp.asarray(_sel_stack(h1, w1, 3, 2, 1), jnp.bfloat16),   # maxpool taps
        'sel1': jnp.asarray(_sel_stack(hp, wp, 3, 1, 1), jnp.bfloat16),   # layer1 convs
        'sel2': jnp.asarray(_sel_stack(hp, wp, 3, 2, 1), jnp.bfloat16),   # layer2 stride-2 conv
        'sel3': jnp.asarray(_sel_stack(h2, w2, 3, 1, 1), jnp.bfloat16),   # layer2 stride-1 convs
        'w1': w1m.astype(jnp.bfloat16), 'b1': b1m,
        'w3': w3, 'b3': b3,
        'wm': wm_full.astype(jnp.bfloat16), 'bm': bm_full,
    }


# --------------------------------------------------------------------------- #
# Forward pass: one fused pallas_call, gridded over the batch
# --------------------------------------------------------------------------- #
def backbone_forward(x_nchw, prep):
    n, cin, h, w = x_nchw.shape
    assert cin == 1, "grayscale input expected"
    x = jnp.transpose(x_nchw, (0, 2, 3, 1)).astype(jnp.float32)      # NCHW -> NHWC

    h1, w1 = _conv_hw(h, 7, 2, 3), _conv_hw(w, 7, 2, 3)
    hp, wp = _conv_hw(h1, 3, 2, 1), _conv_hw(w1, 3, 2, 1)
    h2, w2 = _conv_hw(hp, 3, 2, 1), _conv_hw(wp, 3, 2, 1)
    m1, m2 = h1 * w1, h2 * w2
    assert prep['selp'].shape[1] == m1, "prep was built for a different input size"

    # conv1's 7x7/s2/p3 im2col on the tiny raw input (K=49 padded to 128, bf16)
    patches = _im2col(x, 7, 7, 2, 3)                                 # (n, m1, 49)
    patches = jnp.pad(patches, ((0, 0), (0, 0), (0, LANE - 49))).astype(jnp.bfloat16)

    in_specs = [
        pl.BlockSpec((None, m1, LANE), lambda b: (b, 0, 0)),         # per-image conv1 patches
        pl.BlockSpec(prep['selp'].shape, lambda b: (0, 0)),          # resident constants
        pl.BlockSpec(prep['sel1'].shape, lambda b: (0, 0)),
        pl.BlockSpec(prep['sel2'].shape, lambda b: (0, 0)),
        pl.BlockSpec(prep['sel3'].shape, lambda b: (0, 0)),
        pl.BlockSpec(prep['w1'].shape, lambda b: (0, 0)),
        pl.BlockSpec(prep['b1'].shape, lambda b: (0, 0)),
        pl.BlockSpec(prep['w3'].shape, lambda b: (0, 0)),
        pl.BlockSpec(prep['b3'].shape, lambda b: (0, 0)),
        pl.BlockSpec(prep['wm'].shape, lambda b: (0, 0)),
        pl.BlockSpec(prep['bm'].shape, lambda b: (0, 0)),
    ]

    out = pl.pallas_call(
        _backbone_kernel,
        grid=(n,),
        in_specs=in_specs,
        out_specs=pl.BlockSpec((None, m2, LANE), lambda b: (b, 0, 0)),
        out_shape=jax.ShapeDtypeStruct((n, m2, LANE), jnp.float32),
        compiler_params=pltpu.CompilerParams(
            dimension_semantics=("parallel",),        # v7x: one image per TensorCore
            vmem_limit_bytes=32 * 1024 * 1024,
        ),
    )(patches, prep['selp'], prep['sel1'], prep['sel2'], prep['sel3'],
      prep['w1'], prep['b1'], prep['w3'], prep['b3'], prep['wm'], prep['bm'])

    y = out.reshape(n, h2, w2, LANE)                                 # all 128 channels real
    return jnp.transpose(y, (0, 3, 1, 2))                            # NHWC -> NCHW


# --------------------------------------------------------------------------- #
# Parameters (deterministic, module-default init; no checkpoint load)
# --------------------------------------------------------------------------- #
def init_params(key):
    def conv_init(kk, shape):
        fan_out = shape[0] * shape[2] * shape[3]          # kaiming_normal_(fan_out, relu)
        std = (2.0 / fan_out) ** 0.5
        return std * jax.random.normal(kk, shape, dtype=jnp.float32)

    def bn_init(c):  # (gamma, beta, running_mean, running_var) — nn.BatchNorm2d defaults
        return (jnp.ones((c,), jnp.float32), jnp.zeros((c,), jnp.float32),
                jnp.zeros((c,), jnp.float32), jnp.ones((c,), jnp.float32))

    keys = iter(jax.random.split(key, 16))
    p = {}
    # conv1: original (64,3,7,7) weight summed over the RGB dim -> (64,1,7,7)
    w_rgb = conv_init(next(keys), (64, 3, 7, 7))
    p['conv1_w'] = jnp.sum(w_rgb, axis=1, keepdims=True)
    p['bn1'] = bn_init(64)
    for blk in ('l1b0', 'l1b1'):
        p[blk + '_c1_w'] = conv_init(next(keys), (64, 64, 3, 3)); p[blk + '_bn1'] = bn_init(64)
        p[blk + '_c2_w'] = conv_init(next(keys), (64, 64, 3, 3)); p[blk + '_bn2'] = bn_init(64)
    p['l2b0_c1_w'] = conv_init(next(keys), (128, 64, 3, 3));  p['l2b0_bn1'] = bn_init(128)
    p['l2b0_c2_w'] = conv_init(next(keys), (128, 128, 3, 3)); p['l2b0_bn2'] = bn_init(128)
    p['l2b0_ds_w'] = conv_init(next(keys), (128, 64, 1, 1));  p['l2b0_dsbn'] = bn_init(128)
    p['l2b1_c1_w'] = conv_init(next(keys), (128, 128, 3, 3)); p['l2b1_bn1'] = bn_init(128)
    p['l2b1_c2_w'] = conv_init(next(keys), (128, 128, 3, 3)); p['l2b1_bn2'] = bn_init(128)
    return p


# --------------------------------------------------------------------------- #
if __name__ == "__main__":
    key = jax.random.PRNGKey(0)
    pkey, xkey = jax.random.split(key)
    params = init_params(pkey)
    prep = prepare_params(params, input_hw=(32, 32))     # one-time BN fold / pad / bf16 / sels

    # grayscale input, PyTorch NCHW convention: (batch=2, channels=1, 32, 32)
    x = jax.random.normal(xkey, (2, 1, 32, 32), dtype=jnp.float32)

    fwd = jax.jit(backbone_forward)
    out = jax.block_until_ready(fwd(x, prep))

    assert out.shape == (2, 128, 4, 4), out.shape        # N, 128, H/8, W/8
    assert out.dtype == jnp.float32
    assert bool(jnp.all(jnp.isfinite(out)))
    print("KERNEL_OK")
</pallas_src>

<mosaic_0001>
module attributes {stable_mosaic.version = 11 : i64} {
  func.func @_backbone_kernel(%arg0: i32, %arg1: memref<1x256x128xbf16, #tpu.memory_space<vmem>>, %arg2: memref<576x256xbf16, #tpu.memory_space<vmem>>, %arg3: memref<576x64xbf16, #tpu.memory_space<vmem>>, %arg4: memref<144x64xbf16, #tpu.memory_space<vmem>>, %arg5: memref<144x16xbf16, #tpu.memory_space<vmem>>, %arg6: memref<128x128xbf16, #tpu.memory_space<vmem>>, %arg7: memref<1x128xf32, #tpu.memory_space<vmem>>, %arg8: memref<8064x128xbf16, #tpu.memory_space<vmem>>, %arg9: memref<7x128xf32, #tpu.memory_space<vmem>>, %arg10: memref<1152x256xbf16, #tpu.memory_space<vmem>>, %arg11: memref<1x256xf32, #tpu.memory_space<vmem>>, %arg12: memref<1x16x128xf32, #tpu.memory_space<vmem>>) attributes {dimension_semantics = [#tpu.dimension_semantics<parallel>], iteration_bounds = array<i64: 2>, scalar_prefetch = 0 : i64, scratch_operands = 0 : i64, tpu.core_type = #tpu.core_type<tc>, window_params = [{transform_indices = @transform_0, window_bounds = array<i64: 1, 256, 128>}, {pipeline_mode = #tpu.pipeline_mode<synchronous>, transform_indices = @transform_1, window_bounds = array<i64: 576, 256>}, {pipeline_mode = #tpu.pipeline_mode<synchronous>, transform_indices = @transform_2, window_bounds = array<i64: 576, 64>}, {pipeline_mode = #tpu.pipeline_mode<synchronous>, transform_indices = @transform_3, window_bounds = array<i64: 144, 64>}, {pipeline_mode = #tpu.pipeline_mode<synchronous>, transform_indices = @transform_4, window_bounds = array<i64: 144, 16>}, {pipeline_mode = #tpu.pipeline_mode<synchronous>, transform_indices = @transform_5, window_bounds = array<i64: 128, 128>}, {pipeline_mode = #tpu.pipeline_mode<synchronous>, transform_indices = @transform_6, window_bounds = array<i64: 1, 128>}, {pipeline_mode = #tpu.pipeline_mode<synchronous>, transform_indices = @transform_7, window_bounds = array<i64: 8064, 128>}, {pipeline_mode = #tpu.pipeline_mode<synchronous>, transform_indices = @transform_8, window_bounds = array<i64: 7, 128>}, {pipeline_mode = #tpu.pipeline_mode<synchronous>, transform_indices = @transform_9, window_bounds = array<i64: 1152, 256>}, {pipeline_mode = #tpu.pipeline_mode<synchronous>, transform_indices = @transform_10, window_bounds = array<i64: 1, 256>}, {transform_indices = @transform_11, window_bounds = array<i64: 1, 16, 128>}]} {
    %c0 = arith.constant 0 : index
    %c0_0 = arith.constant 0 : index
    %c0_1 = arith.constant 0 : index
    %0 = vector.load %arg1[%c0, %c0_0, %c0_1] : memref<1x256x128xbf16, #tpu.memory_space<vmem>>, vector<1x256x128xbf16>
    %1 = vector.shape_cast %0 : vector<1x256x128xbf16> to vector<256x128xbf16>
    %c0_2 = arith.constant 0 : index
    %c0_3 = arith.constant 0 : index
    %2 = vector.load %arg6[%c0_2, %c0_3] : memref<128x128xbf16, #tpu.memory_space<vmem>>, vector<128x128xbf16>
    %cst = arith.constant dense<0.000000e+00> : vector<256x128xf32>
    %3 = tpu.matmul %1, %2, %cst {dimension_numbers = #tpu.dot_dimension_numbers<[1], [0], [0], [1], [0, 0, 1, 1], [], []>} : vector<256x128xbf16>, vector<128x128xbf16>, vector<256x128xf32> -> vector<256x128xf32>
    %c0_4 = arith.constant 0 : index
    %c0_5 = arith.constant 0 : index
    %4 = vector.load %arg7[%c0_4, %c0_5] : memref<1x128xf32, #tpu.memory_space<vmem>>, vector<1x128xf32>
    %5 = vector.broadcast %4 : vector<1x128xf32> to vector<256x128xf32>
    %6 = arith.addf %3, %5 : vector<256x128xf32>
    %cst_6 = arith.constant 0.000000e+00 : f32
    %7 = vector.broadcast %cst_6 : f32 to vector<256x128xf32>
    %8 = arith.maximumf %6, %7 : vector<256x128xf32>
    %9 = arith.truncf %8 : vector<256x128xf32> to vector<256x128xbf16>
    %c0_7 = arith.constant 0 : index
    %c0_8 = arith.constant 0 : index
    %10 = vector.load %arg2[%c0_7, %c0_8] : memref<576x256xbf16, #tpu.memory_space<vmem>>, vector<64x256xbf16>
    %cst_9 = arith.constant dense<0.000000e+00> : vector<64x128xf32>
    %11 = tpu.matmul %10, %9, %cst_9 {dimension_numbers = #tpu.dot_dimension_numbers<[1], [0], [0], [1], [0, 0, 1, 1], [], []>} : vector<64x256xbf16>, vector<256x128xbf16>, vector<64x128xf32> -> vector<64x128xf32>
    %c64 = arith.constant 64 : index
    %c0_10 = arith.constant 0 : index
    %12 = vector.load %arg2[%c64, %c0_10] : memref<576x256xbf16, #tpu.memory_space<vmem>>, vector<64x256xbf16>
    %cst_11 = arith.constant dense<0.000000e+00> : vector<64x128xf32>
    %13 = tpu.matmul %12, %9, %cst_11 {dimension_numbers = #tpu.dot_dimension_numbers<[1], [0], [0], [1], [0, 0, 1, 1], [], []>} : vector<64x256xbf16>, vector<256x128xbf16>, vector<64x128xf32> -> vector<64x128xf32>
    %14 = arith.maximumf %11, %13 : vector<64x128xf32>
    %c128 = arith.constant 128 : index
    %c0_12 = arith.constant 0 : index
    %15 = vector.load %arg2[%c128, %c0_12] : memref<576x256xbf16, #tpu.memory_space<vmem>>, vector<64x256xbf16>
    %cst_13 = arith.constant dense<0.000000e+00> : vector<64x128xf32>
    %16 = tpu.matmul %15, %9, %cst_13 {dimension_numbers = #tpu.dot_dimension_numbers<[1], [0], [0], [1], [0, 0, 1, 1], [], []>} : vector<64x256xbf16>, vector<256x128xbf16>, vector<64x128xf32> -> vector<64x128xf32>
    %17 = arith.maximumf %14, %16 : vector<64x128xf32>
    %c192 = arith.constant 192 : index
    %c0_14 = arith.constant 0 : index
    %18 = vector.load %arg2[%c192, %c0_14] : memref<576x256xbf16, #tpu.memory_space<vmem>>, vector<64x256xbf16>
    %cst_15 = arith.constant dense<0.000000e+00> : vector<64x128xf32>
    %19 = tpu.matmul %18, %9, %cst_15 {dimension_numbers = #tpu.dot_dimension_numbers<[1], [0], [0], [1], [0, 0, 1, 1], [], []>} : vector<64x256xbf16>, vector<256x128xbf16>, vector<64x128xf32> -> vector<64x128xf32>
    %20 = arith.maximumf %17, %19 : vector<64x128xf32>
    %c256 = arith.constant 256 : index
    %c0_16 = arith.constant 0 : index
    %21 = vector.load %arg2[%c256, %c0_16] : memref<576x256xbf16, #tpu.memory_space<vmem>>, vector<64x256xbf16>
    %cst_17 = arith.constant dense<0.000000e+00> : vector<64x128xf32>
    %22 = tpu.matmul %21, %9, %cst_17 {dimension_numbers = #tpu.dot_dimension_numbers<[1], [0], [0], [1], [0, 0, 1, 1], [], []>} : vector<64x256xbf16>, vector<256x128xbf16>, vector<64x128xf32> -> vector<64x128xf32>
    %23 = arith.maximumf %20, %22 : vector<64x128xf32>
    %c320 = arith.constant 320 : index
    %c0_18 = arith.constant 0 : index
    %24 = vector.load %arg2[%c320, %c0_18] : memref<576x256xbf16, #tpu.memory_space<vmem>>, vector<64x256xbf16>
    %cst_19 = arith.constant dense<0.000000e+00> : vector<64x128xf32>
    %25 = tpu.matmul %24, %9, %cst_19 {dimension_numbers = #tpu.dot_dimension_numbers<[1], [0], [0], [1], [0, 0, 1, 1], [], []>} : vector<64x256xbf16>, vector<256x128xbf16>, vector<64x128xf32> -> vector<64x128xf32>
    %26 = arith.maximumf %23, %25 : vector<64x128xf32>
    %c384 = arith.constant 384 : index
    %c0_20 = arith.constant 0 : index
    %27 = vector.load %arg2[%c384, %c0_20] : memref<576x256xbf16, #tpu.memory_space<vmem>>, vector<64x256xbf16>
    %cst_21 = arith.constant dense<0.000000e+00> : vector<64x128xf32>
    %28 = tpu.matmul %27, %9, %cst_21 {dimension_numbers = #tpu.dot_dimension_numbers<[1], [0], [0], [1], [0, 0, 1, 1], [], []>} : vector<64x256xbf16>, vector<256x128xbf16>, vector<64x128xf32> -> vector<64x128xf32>
    %29 = arith.maximumf %26, %28 : vector<64x128xf32>
    %c448 = arith.constant 448 : index
    %c0_22 = arith.constant 0 : index
    %30 = vector.load %arg2[%c448, %c0_22] : memref<576x256xbf16, #tpu.memory_space<vmem>>, vector<64x256xbf16>
    %cst_23 = arith.constant dense<0.000000e+00> : vector<64x128xf32>
    %31 = tpu.matmul %30, %9, %cst_23 {dimension_numbers = #tpu.dot_dimension_numbers<[1], [0], [0], [1], [0, 0, 1, 1], [], []>} : vector<64x256xbf16>, vector<256x128xbf16>, vector<64x128xf32> -> vector<64x128xf32>
    %32 = arith.maximumf %29, %31 : vector<64x128xf32>
    %c512 = arith.constant 512 : index
    %c0_24 = arith.constant 0 : index
    %33 = vector.load %arg2[%c512, %c0_24] : memref<576x256xbf16, #tpu.memory_space<vmem>>, vector<64x256xbf16>
    %cst_25 = arith.constant dense<0.000000e+00> : vector<64x128xf32>
    %34 = tpu.matmul %33, %9, %cst_25 {dimension_numbers = #tpu.dot_dimension_numbers<[1], [0], [0], [1], [0, 0, 1, 1], [], []>} : vector<64x256xbf16>, vector<256x128xbf16>, vector<64x128xf32> -> vector<64x128xf32>
    %35 = arith.maximumf %32, %34 : vector<64x128xf32>
    %36 = arith.truncf %35 : vector<64x128xf32> to vector<64x128xbf16>
    %c0_26 = arith.constant 0 : index
    %c0_27 = arith.constant 0 : index
    %37 = vector.load %arg3[%c0_26, %c0_27] : memref<576x64xbf16, #tpu.memory_space<vmem>>, vector<64x64xbf16>
    %cst_28 = arith.constant dense<0.000000e+00> : vector<64x128xf32>
    %38 = tpu.matmul %37, %36, %cst_28 {dimension_numbers = #tpu.dot_dimension_numbers<[1], [0], [0], [1], [0, 0, 1, 1], [], []>} : vector<64x64xbf16>, vector<64x128xbf16>, vector<64x128xf32> -> vector<64x128xf32>
    %39 = arith.truncf %38 : vector<64x128xf32> to vector<64x128xbf16>
    %c0_29 = arith.constant 0 : index
    %c0_30 = arith.constant 0 : index
    %40 = vector.load %arg8[%c0_29, %c0_30] : memref<8064x128xbf16, #tpu.memory_space<vmem>>, vector<128x128xbf16>
    %cst_31 = arith.constant dense<0.000000e+00> : vector<64x128xf32>
    %41 = tpu.matmul %39, %40, %cst_31 {dimension_numbers = #tpu.dot_dimension_numbers<[1], [0], [0], [1], [0, 0, 1, 1], [], []>} : vector<64x128xbf16>, vector<128x128xbf16>, vector<64x128xf32> -> vector<64x128xf32>
    %c64_32 = arith.constant 64 : index
    %c0_33 = arith.constant 0 : index
    %42 = vector.load %arg3[%c64_32, %c0_33] : memref<576x64xbf16, #tpu.memory_space<vmem>>, vector<64x64xbf16>
    %cst_34 = arith.constant dense<0.000000e+00> : vector<64x128xf32>
    %43 = tpu.matmul %42, %36, %cst_34 {dimension_numbers = #tpu.dot_dimension_numbers<[1], [0], [0], [1], [0, 0, 1, 1], [], []>} : vector<64x64xbf16>, vector<64x128xbf16>, vector<64x128xf32> -> vector<64x128xf32>
    %44 = arith.truncf %43 : vector<64x128xf32> to vector<64x128xbf16>
    %c128_35 = arith.constant 128 : index
    %c0_36 = arith.constant 0 : index
    %45 = vector.load %arg8[%c128_35, %c0_36] : memref<8064x128xbf16, #tpu.memory_space<vmem>>, vector<128x128xbf16>
    %cst_37 = arith.constant dense<0.000000e+00> : vector<64x128xf32>
    %46 = tpu.matmul %44, %45, %cst_37 {dimension_numbers = #tpu.dot_dimension_numbers<[1], [0], [0], [1], [0, 0, 1, 1], [], []>} : vector<64x128xbf16>, vector<128x128xbf16>, vector<64x128xf32> -> vector<64x128xf32>
    %47 = arith.addf %41, %46 : vector<64x128xf32>
    %c128_38 = arith.constant 128 : index
    %c0_39 = arith.constant 0 : index
    %48 = vector.load %arg3[%c128_38, %c0_39] : memref<576x64xbf16, #tpu.memory_space<vmem>>, vector<64x64xbf16>
    %cst_40 = arith.constant dense<0.000000e+00> : vector<64x128xf32>
    %49 = tpu.matmul %48, %36, %cst_40 {dimension_numbers = #tpu.dot_dimension_numbers<[1], [0], [0], [1], [0, 0, 1, 1], [], []>} : vector<64x64xbf16>, vector<64x128xbf16>, vector<64x128xf32> -> vector<64x128xf32>
    %50 = arith.truncf %49 : vector<64x128xf32> to vector<64x128xbf16>
    %c256_41 = arith.constant 256 : index
    %c0_42 = arith.constant 0 : index
    %51 = vector.load %arg8[%c256_41, %c0_42] : memref<8064x128xbf16, #tpu.memory_space<vmem>>, vector<128x128xbf16>
    %cst_43 = arith.constant dense<0.000000e+00> : vector<64x128xf32>
    %52 = tpu.matmul %50, %51, %cst_43 {dimension_numbers = #tpu.dot_dimension_numbers<[1], [0], [0], [1], [0, 0, 1, 1], [], []>} : vector<64x128xbf16>, vector<128x128xbf16>, vector<64x128xf32> -> vector<64x128xf32>
    %53 = arith.addf %47, %52 : vector<64x128xf32>
    %c192_44 = arith.constant 192 : index
    %c0_45 = arith.constant 0 : index
    %54 = vector.load %arg3[%c192_44, %c0_45] : memref<576x64xbf16, #tpu.memory_space<vmem>>, vector<64x64xbf16>
    %cst_46 = arith.constant dense<0.000000e+00> : vector<64x128xf32>
    %55 = tpu.matmul %54, %36, %cst_46 {dimension_numbers = #tpu.dot_dimension_numbers<[1], [0], [0], [1], [0, 0, 1, 1], [], []>} : vector<64x64xbf16>, vector<64x128xbf16>, vector<64x128xf32> -> vector<64x128xf32>
    %56 = arith.truncf %55 : vector<64x128xf32> to vector<64x128xbf16>
    %c384_47 = arith.constant 384 : index
    %c0_48 = arith.constant 0 : index
    %57 = vector.load %arg8[%c384_47, %c0_48] : memref<8064x128xbf16, #tpu.memory_space<vmem>>, vector<128x128xbf16>
    %cst_49 = arith.constant dense<0.000000e+00> : vector<64x128xf32>
    %58 = tpu.matmul %56, %57, %cst_49 {dimension_numbers = #tpu.dot_dimension_numbers<[1], [0], [0], [1], [0, 0, 1, 1], [], []>} : vector<64x128xbf16>, vector<128x128xbf16>, vector<64x128xf32> -> vector<64x128xf32>
    %59 = arith.addf %53, %58 : vector<64x128xf32>
    %c256_50 = arith.constant 256 : index
    %c0_51 = arith.constant 0 : index
    %60 = vector.load %arg3[%c256_50, %c0_51] : memref<576x64xbf16, #tpu.memory_space<vmem>>, vector<64x64xbf16>
    %cst_52 = arith.constant dense<0.000000e+00> : vector<64x128xf32>
    %61 = tpu.matmul %60, %36, %cst_52 {dimension_numbers = #tpu.dot_dimension_numbers<[1], [0], [0], [1], [0, 0, 1, 1], [], []>} : vector<64x64xbf16>, vector<64x128xbf16>, vector<64x128xf32> -> vector<64x128xf32>
    %62 = arith.truncf %61 : vector<64x128xf32> to vector<64x128xbf16>
    %c512_53 = arith.constant 512 : index
    %c0_54 = arith.constant 0 : index
    %63 = vector.load %arg8[%c512_53, %c0_54] : memref<8064x128xbf16, #tpu.memory_space<vmem>>, vector<128x128xbf16>
    %cst_55 = arith.constant dense<0.000000e+00> : vector<64x128xf32>
    %64 = tpu.matmul %62, %63, %cst_55 {dimension_numbers = #tpu.dot_dimension_numbers<[1], [0], [0], [1], [0, 0, 1, 1], [], []>} : vector<64x128xbf16>, vector<128x128xbf16>, vector<64x128xf32> -> vector<64x128xf32>
    %65 = arith.addf %59, %64 : vector<64x128xf32>
    %c320_56 = arith.constant 320 : index
    %c0_57 = arith.constant 0 : index
    %66 = vector.load %arg3[%c320_56, %c0_57] : memref<576x64xbf16, #tpu.memory_space<vmem>>, vector<64x64xbf16>
    %cst_58 = arith.constant dense<0.000000e+00> : vector<64x128xf32>
    %67 = tpu.matmul %66, %36, %cst_58 {dimension_numbers = #tpu.dot_dimension_numbers<[1], [0], [0], [1], [0, 0, 1, 1], [], []>} : vector<64x64xbf16>, vector<64x128xbf16>, vector<64x128xf32> -> vector<64x128xf32>
    %68 = arith.truncf %67 : vector<64x128xf32> to vector<64x128xbf16>
    %c640 = arith.constant 640 : index
    %c0_59 = arith.constant 0 : index
    %69 = vector.load %arg8[%c640, %c0_59] : memref<8064x128xbf16, #tpu.memory_space<vmem>>, vector<128x128xbf16>
    %cst_60 = arith.constant dense<0.000000e+00> : vector<64x128xf32>
    %70 = tpu.matmul %68, %69, %cst_60 {dimension_numbers = #tpu.dot_dimension_numbers<[1], [0], [0], [1], [0, 0, 1, 1], [], []>} : vector<64x128xbf16>, vector<128x128xbf16>, vector<64x128xf32> -> vector<64x128xf32>
    %71 = arith.addf %65, %70 : vector<64x128xf32>
    %c384_61 = arith.constant 384 : index
    %c0_62 = arith.constant 0 : index
    %72 = vector.load %arg3[%c384_61, %c0_62] : memref<576x64xbf16, #tpu.memory_space<vmem>>, vector<64x64xbf16>
    %cst_63 = arith.constant dense<0.000000e+00> : vector<64x128xf32>
    %73 = tpu.matmul %72, %36, %cst_63 {dimension_numbers = #tpu.dot_dimension_numbers<[1], [0], [0], [1], [0, 0, 1, 1], [], []>} : vector<64x64xbf16>, vector<64x128xbf16>, vector<64x128xf32> -> vector<64x128xf32>
    %74 = arith.truncf %73 : vector<64x128xf32> to vector<64x128xbf16>
    %c768 = arith.constant 768 : index
    %c0_64 = arith.constant 0 : index
    %75 = vector.load %arg8[%c768, %c0_64] : memref<8064x128xbf16, #tpu.memory_space<vmem>>, vector<128x128xbf16>
    %cst_65 = arith.constant dense<0.000000e+00> : vector<64x128xf32>
    %76 = tpu.matmul %74, %75, %cst_65 {dimension_numbers = #tpu.dot_dimension_numbers<[1], [0], [0], [1], [0, 0, 1, 1], [], []>} : vector<64x128xbf16>, vector<128x128xbf16>, vector<64x128xf32> -> vector<64x128xf32>
    %77 = arith.addf %71, %76 : vector<64x128xf32>
    %c448_66 = arith.constant 448 : index
    %c0_67 = arith.constant 0 : index
    %78 = vector.load %arg3[%c448_66, %c0_67] : memref<576x64xbf16, #tpu.memory_space<vmem>>, vector<64x64xbf16>
    %cst_68 = arith.constant dense<0.000000e+00> : vector<64x128xf32>
    %79 = tpu.matmul %78, %36, %cst_68 {dimension_numbers = #tpu.dot_dimension_numbers<[1], [0], [0], [1], [0, 0, 1, 1], [], []>} : vector<64x64xbf16>, vector<64x128xbf16>, vector<64x128xf32> -> vector<64x128xf32>
    %80 = arith.truncf %79 : vector<64x128xf32> to vector<64x128xbf16>
    %c896 = arith.constant 896 : index
    %c0_69 = arith.constant 0 : index
    %81 = vector.load %arg8[%c896, %c0_69] : memref<8064x128xbf16, #tpu.memory_space<vmem>>, vector<128x128xbf16>
    %cst_70 = arith.constant dense<0.000000e+00> : vector<64x128xf32>
    %82 = tpu.matmul %80, %81, %cst_70 {dimension_numbers = #tpu.dot_dimension_numbers<[1], [0], [0], [1], [0, 0, 1, 1], [], []>} : vector<64x128xbf16>, vector<128x128xbf16>, vector<64x128xf32> -> vector<64x128xf32>
    %83 = arith.addf %77, %82 : vector<64x128xf32>
    %c512_71 = arith.constant 512 : index
    %c0_72 = arith.constant 0 : index
    %84 = vector.load %arg3[%c512_71, %c0_72] : memref<576x64xbf16, #tpu.memory_space<vmem>>, vector<64x64xbf16>
    %cst_73 = arith.constant dense<0.000000e+00> : vector<64x128xf32>
    %85 = tpu.matmul %84, %36, %cst_73 {dimension_numbers = #tpu.dot_dimension_numbers<[1], [0], [0], [1], [0, 0, 1, 1], [], []>} : vector<64x64xbf16>, vector<64x128xbf16>, vector<64x128xf32> -> vector<64x128xf32>
    %86 = arith.truncf %85 : vector<64x128xf32> to vector<64x128xbf16>
    %c1024 = arith.constant 1024 : index
    %c0_74 = arith.constant 0 : index
    %87 = vector.load %arg8[%c1024, %c0_74] : memref<8064x128xbf16, #tpu.memory_space<vmem>>, vector<128x128xbf16>
    %cst_75 = arith.constant dense<0.000000e+00> : vector<64x128xf32>
    %88 = tpu.matmul %86, %87, %cst_75 {dimension_numbers = #tpu.dot_dimension_numbers<[1], [0], [0], [1], [0, 0, 1, 1], [], []>} : vector<64x128xbf16>, vector<128x128xbf16>, vector<64x128xf32> -> vector<64x128xf32>
    %89 = arith.addf %83, %88 : vector<64x128xf32>
    %c0_76 = arith.constant 0 : index
    %c0_77 = arith.constant 0 : index
    %90 = vector.load %arg9[%c0_76, %c0_77] : memref<7x128xf32, #tpu.memory_space<vmem>>, vector<1x128xf32>
    %91 = vector.broadcast %90 : vector<1x128xf32> to vector<64x128xf32>
    %92 = arith.addf %89, %91 : vector<64x128xf32>
    %cst_78 = arith.constant 0.000000e+00 : f32
    %93 = vector.broadcast %cst_78 : f32 to vector<64x128xf32>
    %94 = arith.maximumf %92, %93 : vector<64x128xf32>
    %95 = arith.truncf %94 : vector<64x128xf32> to vector<64x128xbf16>
    %c0_79 = arith.constant 0 : index
    %c0_80 = arith.constant 0 : index
    %96 = vector.load %arg3[%c0_79, %c0_80] : memref<576x64xbf16, #tpu.memory_space<vmem>>, vector<64x64xbf16>
    %cst_81 = arith.constant dense<0.000000e+00> : vector<64x128xf32>
    %97 = tpu.matmul %96, %95, %cst_81 {dimension_numbers = #tpu.dot_dimension_numbers<[1], [0], [0], [1], [0, 0, 1, 1], [], []>} : vector<64x64xbf16>, vector<64x128xbf16>, vector<64x128xf32> -> vector<64x128xf32>
    %98 = arith.truncf %97 : vector<64x128xf32> to vector<64x128xbf16>
    %c1152 = arith.constant 1152 : index
    %c0_82 = arith.constant 0 : index
    %99 = vector.load %arg8[%c1152, %c0_82] : memref<8064x128xbf16, #tpu.memory_space<vmem>>, vector<128x128xbf16>
    %cst_83 = arith.constant dense<0.000000e+00> : vector<64x128xf32>
    %100 = tpu.matmul %98, %99, %cst_83 {dimension_numbers = #tpu.dot_dimension_numbers<[1], [0], [0], [1], [0, 0, 1, 1], [], []>} : vector<64x128xbf16>, vector<128x128xbf16>, vector<64x128xf32> -> vector<64x128xf32>
    %c64_84 = arith.constant 64 : index
    %c0_85 = arith.constant 0 : index
    %101 = vector.load %arg3[%c64_84, %c0_85] : memref<576x64xbf16, #tpu.memory_space<vmem>>, vector<64x64xbf16>
    %cst_86 = arith.constant dense<0.000000e+00> : vector<64x128xf32>
    %102 = tpu.matmul %101, %95, %cst_86 {dimension_numbers = #tpu.dot_dimension_numbers<[1], [0], [0], [1], [0, 0, 1, 1], [], []>} : vector<64x64xbf16>, vector<64x128xbf16>, vector<64x128xf32> -> vector<64x128xf32>
    %103 = arith.truncf %102 : vector<64x128xf32> to vector<64x128xbf16>
    %c1280 = arith.constant 1280 : index
    %c0_87 = arith.constant 0 : index
    %104 = vector.load %arg8[%c1280, %c0_87] : memref<8064x128xbf16, #tpu.memory_space<vmem>>, vector<128x128xbf16>
    %cst_88 = arith.constant dense<0.000000e+00> : vector<64x128xf32>
    %105 = tpu.matmul %103, %104, %cst_88 {dimension_numbers = #tpu.dot_dimension_numbers<[1], [0], [0], [1], [0, 0, 1, 1], [], []>} : vector<64x128xbf16>, vector<128x128xbf16>, vector<64x128xf32> -> vector<64x128xf32>
    %106 = arith.addf %100, %105 : vector<64x128xf32>
    %c128_89 = arith.constant 128 : index
    %c0_90 = arith.constant 0 : index
    %107 = vector.load %arg3[%c128_89, %c0_90] : memref<576x64xbf16, #tpu.memory_space<vmem>>, vector<64x64xbf16>
    %cst_91 = arith.constant dense<0.000000e+00> : vector<64x128xf32>
    %108 = tpu.matmul %107, %95, %cst_91 {dimension_numbers = #tpu.dot_dimension_numbers<[1], [0], [0], [1], [0, 0, 1, 1], [], []>} : vector<64x64xbf16>, vector<64x128xbf16>, vector<64x128xf32> -> vector<64x128xf32>
    %109 = arith.truncf %108 : vector<64x128xf32> to vector<64x128xbf16>
    %c1408 = arith.constant 1408 : index
    %c0_92 = arith.constant 0 : index
    %110 = vector.load %arg8[%c1408, %c0_92] : memref<8064x128xbf16, #tpu.memory_space<vmem>>, vector<128x128xbf16>
    %cst_93 = arith.constant dense<0.000000e+00> : vector<64x128xf32>
    %111 = tpu.matmul %109, %110, %cst_93 {dimension_numbers = #tpu.dot_dimension_numbers<[1], [0], [0], [1], [0, 0, 1, 1], [], []>} : vector<64x128xbf16>, vector<128x128xbf16>, vector<64x128xf32> -> vector<64x128xf32>
    %112 = arith.addf %106, %111 : vector<64x128xf32>
    %c192_94 = arith.constant 192 : index
    %c0_95 = arith.constant 0 : index
    %113 = vector.load %arg3[%c192_94, %c0_95] : memref<576x64xbf16, #tpu.memory_space<vmem>>, vector<64x64xbf16>
    %cst_96 = arith.constant dense<0.000000e+00> : vector<64x128xf32>
    %114 = tpu.matmul %113, %95, %cst_96 {dimension_numbers = #tpu.dot_dimension_numbers<[1], [0], [0], [1], [0, 0, 1, 1], [], []>} : vector<64x64xbf16>, vector<64x128xbf16>, vector<64x128xf32> -> vector<64x128xf32>
    %115 = arith.truncf %114 : vector<64x128xf32> to vector<64x128xbf16>
    %c1536 = arith.constant 1536 : index
    %c0_97 = arith.constant 0 : index
    %116 = vector.load %arg8[%c1536, %c0_97] : memref<8064x128xbf16, #tpu.memory_space<vmem>>, vector<128x128xbf16>
    %cst_98 = arith.constant dense<0.000000e+00> : vector<64x128xf32>
    %117 = tpu.matmul %115, %116, %cst_98 {dimension_numbers = #tpu.dot_dimension_numbers<[1], [0], [0], [1], [0, 0, 1, 1], [], []>} : vector<64x128xbf16>, vector<128x128xbf16>, vector<64x128xf32> -> vector<64x128xf32>
    %118 = arith.addf %112, %117 : vector<64x128xf32>
    %c256_99 = arith.constant 256 : index
    %c0_100 = arith.constant 0 : index
    %119 = vector.load %arg3[%c256_99, %c0_100] : memref<576x64xbf16, #tpu.memory_space<vmem>>, vector<64x64xbf16>
    %cst_101 = arith.constant dense<0.000000e+00> : vector<64x128xf32>
    %120 = tpu.matmul %119, %95, %cst_101 {dimension_numbers = #tpu.dot_dimension_numbers<[1], [0], [0], [1], [0, 0, 1, 1], [], []>} : vector<64x64xbf16>, vector<64x128xbf16>, vector<64x128xf32> -> vector<64x128xf32>
    %121 = arith.truncf %120 : vector<64x128xf32> to vector<64x128xbf16>
    %c1664 = arith.constant 1664 : index
    %c0_102 = arith.constant 0 : index
    %122 = vector.load %arg8[%c1664, %c0_102] : memref<8064x128xbf16, #tpu.memory_space<vmem>>, vector<128x128xbf16>
    %cst_103 = arith.constant dense<0.000000e+00> : vector<64x128xf32>
    %123 = tpu.matmul %121, %122, %cst_103 {dimension_numbers = #tpu.dot_dimension_numbers<[1], [0], [0], [1], [0, 0, 1, 1], [], []>} : vector<64x128xbf16>, vector<128x128xbf16>, vector<64x128xf32> -> vector<64x128xf32>
    %124 = arith.addf %118, %123 : vector<64x128xf32>
    %c320_104 = arith.constant 320 : index
    %c0_105 = arith.constant 0 : index
    %125 = vector.load %arg3[%c320_104, %c0_105] : memref<576x64xbf16, #tpu.memory_space<vmem>>, vector<64x64xbf16>
    %cst_106 = arith.constant dense<0.000000e+00> : vector<64x128xf32>
    %126 = tpu.matmul %125, %95, %cst_106 {dimension_numbers = #tpu.dot_dimension_numbers<[1], [0], [0], [1], [0, 0, 1, 1], [], []>} : vector<64x64xbf16>, vector<64x128xbf16>, vector<64x128xf32> -> vector<64x128xf32>
    %127 = arith.truncf %126 : vector<64x128xf32> to vector<64x128xbf16>
    %c1792 = arith.constant 1792 : index
    %c0_107 = arith.constant 0 : index
    %128 = vector.load %arg8[%c1792, %c0_107] : memref<8064x128xbf16, #tpu.memory_space<vmem>>, vector<128x128xbf16>
    %cst_108 = arith.constant dense<0.000000e+00> : vector<64x128xf32>
    %129 = tpu.matmul %127, %128, %cst_108 {dimension_numbers = #tpu.dot_dimension_numbers<[1], [0], [0], [1], [0, 0, 1, 1], [], []>} : vector<64x128xbf16>, vector<128x128xbf16>, vector<64x128xf32> -> vector<64x128xf32>
    %130 = arith.addf %124, %129 : vector<64x128xf32>
    %c384_109 = arith.constant 384 : index
    %c0_110 = arith.constant 0 : index
    %131 = vector.load %arg3[%c384_109, %c0_110] : memref<576x64xbf16, #tpu.memory_space<vmem>>, vector<64x64xbf16>
    %cst_111 = arith.constant dense<0.000000e+00> : vector<64x128xf32>
    %132 = tpu.matmul %131, %95, %cst_111 {dimension_numbers = #tpu.dot_dimension_numbers<[1], [0], [0], [1], [0, 0, 1, 1], [], []>} : vector<64x64xbf16>, vector<64x128xbf16>, vector<64x128xf32> -> vector<64x128xf32>
    %133 = arith.truncf %132 : vector<64x128xf32> to vector<64x128xbf16>
    %c1920 = arith.constant 1920 : index
    %c0_112 = arith.constant 0 : index
    %134 = vector.load %arg8[%c1920, %c0_112] : memref<8064x128xbf16, #tpu.memory_space<vmem>>, vector<128x128xbf16>
    %cst_113 = arith.constant dense<0.000000e+00> : vector<64x128xf32>
    %135 = tpu.matmul %133, %134, %cst_113 {dimension_numbers = #tpu.dot_dimension_numbers<[1], [0], [0], [1], [0, 0, 1, 1], [], []>} : vector<64x128xbf16>, vector<128x128xbf16>, vector<64x128xf32> -> vector<64x128xf32>
    %136 = arith.addf %130, %135 : vector<64x128xf32>
    %c448_114 = arith.constant 448 : index
    %c0_115 = arith.constant 0 : index
    %137 = vector.load %arg3[%c448_114, %c0_115] : memref<576x64xbf16, #tpu.memory_space<vmem>>, vector<64x64xbf16>
    %cst_116 = arith.constant dense<0.000000e+00> : vector<64x128xf32>
    %138 = tpu.matmul %137, %95, %cst_116 {dimension_numbers = #tpu.dot_dimension_numbers<[1], [0], [0], [1], [0, 0, 1, 1], [], []>} : vector<64x64xbf16>, vector<64x128xbf16>, vector<64x128xf32> -> vector<64x128xf32>
    %139 = arith.truncf %138 : vector<64x128xf32> to vector<64x128xbf16>
    %c2048 = arith.constant 2048 : index
    %c0_117 = arith.constant 0 : index
    %140 = vector.load %arg8[%c2048, %c0_117] : memref<8064x128xbf16, #tpu.memory_space<vmem>>, vector<128x128xbf16>
    %cst_118 = arith.constant dense<0.000000e+00> : vector<64x128xf32>
    %141 = tpu.matmul %139, %140, %cst_118 {dimension_numbers = #tpu.dot_dimension_numbers<[1], [0], [0], [1], [0, 0, 1, 1], [], []>} : vector<64x128xbf16>, vector<128x128xbf16>, vector<64x128xf32> -> vector<64x128xf32>
    %142 = arith.addf %136, %141 : vector<64x128xf32>
    %c512_119 = arith.constant 512 : index
    %c0_120 = arith.constant 0 : index
    %143 = vector.load %arg3[%c512_119, %c0_120] : memref<576x64xbf16, #tpu.memory_space<vmem>>, vector<64x64xbf16>
    %cst_121 = arith.constant dense<0.000000e+00> : vector<64x128xf32>
    %144 = tpu.matmul %143, %95, %cst_121 {dimension_numbers = #tpu.dot_dimension_numbers<[1], [0], [0], [1], [0, 0, 1, 1], [], []>} : vector<64x64xbf16>, vector<64x128xbf16>, vector<64x128xf32> -> vector<64x128xf32>
    %145 = arith.truncf %144 : vector<64x128xf32> to vector<64x128xbf16>
    %c2176 = arith.constant 2176 : index
    %c0_122 = arith.constant 0 : index
    %146 = vector.load %arg8[%c2176, %c0_122] : memref<8064x128xbf16, #tpu.memory_space<vmem>>, vector<128x128xbf16>
    %cst_123 = arith.constant dense<0.000000e+00> : vector<64x128xf32>
    %147 = tpu.matmul %145, %146, %cst_123 {dimension_numbers = #tpu.dot_dimension_numbers<[1], [0], [0], [1], [0, 0, 1, 1], [], []>} : vector<64x128xbf16>, vector<128x128xbf16>, vector<64x128xf32> -> vector<64x128xf32>
    %148 = arith.addf %142, %147 : vector<64x128xf32>
    %c1 = arith.constant 1 : index
    %c0_124 = arith.constant 0 : index
    %149 = vector.load %arg9[%c1, %c0_124] : memref<7x128xf32, #tpu.memory_space<vmem>>, vector<1x128xf32>
    %150 = vector.broadcast %149 : vector<1x128xf32> to vector<64x128xf32>
    %151 = arith.addf %148, %150 : vector<64x128xf32>
    %152 = arith.extf %36 : vector<64x128xbf16> to vector<64x128xf32>
    %153 = arith.addf %151, %152 : vector<64x128xf32>
    %cst_125 = arith.constant 0.000000e+00 : f32
    %154 = vector.broadcast %cst_125 : f32 to vector<64x128xf32>
    %155 = arith.maximumf %153, %154 : vector<64x128xf32>
    %156 = arith.truncf %155 : vector<64x128xf32> to vector<64x128xbf16>
    %c0_126 = arith.constant 0 : index
    %c0_127 = arith.constant 0 : index
    %157 = vector.load %arg3[%c0_126, %c0_127] : memref<576x64xbf16, #tpu.memory_space<vmem>>, vector<64x64xbf16>
    %cst_128 = arith.constant dense<0.000000e+00> : vector<64x128xf32>
    %158 = tpu.matmul %157, %156, %cst_128 {dimension_numbers = #tpu.dot_dimension_numbers<[1], [0], [0], [1], [0, 0, 1, 1], [], []>} : vector<64x64xbf16>, vector<64x128xbf16>, vector<64x128xf32> -> vector<64x128xf32>
    %159 = arith.truncf %158 : vector<64x128xf32> to vector<64x128xbf16>
    %c2304 = arith.constant 2304 : index
    %c0_129 = arith.constant 0 : index
    %160 = vector.load %arg8[%c2304, %c0_129] : memref<8064x128xbf16, #tpu.memory_space<vmem>>, vector<128x128xbf16>
    %cst_130 = arith.constant dense<0.000000e+00> : vector<64x128xf32>
    %161 = tpu.matmul %159, %160, %cst_130 {dimension_numbers = #tpu.dot_dimension_numbers<[1], [0], [0], [1], [0, 0, 1, 1], [], []>} : vector<64x128xbf16>, vector<128x128xbf16>, vector<64x128xf32> -> vector<64x128xf32>
    %c64_131 = arith.constant 64 : index
    %c0_132 = arith.constant 0 : index
    %162 = vector.load %arg3[%c64_131, %c0_132] : memref<576x64xbf16, #tpu.memory_space<vmem>>, vector<64x64xbf16>
    %cst_133 = arith.constant dense<0.000000e+00> : vector<64x128xf32>
    %163 = tpu.matmul %162, %156, %cst_133 {dimension_numbers = #tpu.dot_dimension_numbers<[1], [0], [0], [1], [0, 0, 1, 1], [], []>} : vector<64x64xbf16>, vector<64x128xbf16>, vector<64x128xf32> -> vector<64x128xf32>
    %164 = arith.truncf %163 : vector<64x128xf32> to vector<64x128xbf16>
    %c2432 = arith.constant 2432 : index
    %c0_134 = arith.constant 0 : index
    %165 = vector.load %arg8[%c2432, %c0_134] : memref<8064x128xbf16, #tpu.memory_space<vmem>>, vector<128x128xbf16>
    %cst_135 = arith.constant dense<0.000000e+00> : vector<64x128xf32>
    %166 = tpu.matmul %164, %165, %cst_135 {dimension_numbers = #tpu.dot_dimension_numbers<[1], [0], [0], [1], [0, 0, 1, 1], [], []>} : vector<64x128xbf16>, vector<128x128xbf16>, vector<64x128xf32> -> vector<64x128xf32>
    %167 = arith.addf %161, %166 : vector<64x128xf32>
    %c128_136 = arith.constant 128 : index
    %c0_137 = arith.constant 0 : index
    %168 = vector.load %arg3[%c128_136, %c0_137] : memref<576x64xbf16, #tpu.memory_space<vmem>>, vector<64x64xbf16>
    %cst_138 = arith.constant dense<0.000000e+00> : vector<64x128xf32>
    %169 = tpu.matmul %168, %156, %cst_138 {dimension_numbers = #tpu.dot_dimension_numbers<[1], [0], [0], [1], [0, 0, 1, 1], [], []>} : vector<64x64xbf16>, vector<64x128xbf16>, vector<64x128xf32> -> vector<64x128xf32>
    %170 = arith.truncf %169 : vector<64x128xf32> to vector<64x128xbf16>
    %c2560 = arith.constant 2560 : index
    %c0_139 = arith.constant 0 : index
    %171 = vector.load %arg8[%c2560, %c0_139] : memref<8064x128xbf16, #tpu.memory_space<vmem>>, vector<128x128xbf16>
    %cst_140 = arith.constant dense<0.000000e+00> : vector<64x128xf32>
    %172 = tpu.matmul %170, %171, %cst_140 {dimension_numbers = #tpu.dot_dimension_numbers<[1], [0], [0], [1], [0, 0, 1, 1], [], []>} : vector<64x128xbf16>, vector<128x128xbf16>, vector<64x128xf32> -> vector<64x128xf32>
    %173 = arith.addf %167, %172 : vector<64x128xf32>
    %c192_141 = arith.constant 192 : index
    %c0_142 = arith.constant 0 : index
    %174 = vector.load %arg3[%c192_141, %c0_142] : memref<576x64xbf16, #tpu.memory_space<vmem>>, vector<64x64xbf16>
    %cst_143 = arith.constant dense<0.000000e+00> : vector<64x128xf32>
    %175 = tpu.matmul %174, %156, %cst_143 {dimension_numbers = #tpu.dot_dimension_numbers<[1], [0], [0], [1], [0, 0, 1, 1], [], []>} : vector<64x64xbf16>, vector<64x128xbf16>, vector<64x128xf32> -> vector<64x128xf32>
    %176 = arith.truncf %175 : vector<64x128xf32> to vector<64x128xbf16>
    %c2688 = arith.constant 2688 : index
    %c0_144 = arith.constant 0 : index
    %177 = vector.load %arg8[%c2688, %c0_144] : memref<8064x128xbf16, #tpu.memory_space<vmem>>, vector<128x128xbf16>
    %cst_145 = arith.constant dense<0.000000e+00> : vector<64x128xf32>
    %178 = tpu.matmul %176, %177, %cst_145 {dimension_numbers = #tpu.dot_dimension_numbers<[1], [0], [0], [1], [0, 0, 1, 1], [], []>} : vector<64x128xbf16>, vector<128x128xbf16>, vector<64x128xf32> -> vector<64x128xf32>
    %179 = arith.addf %173, %178 : vector<64x128xf32>
    %c256_146 = arith.constant 256 : index
    %c0_147 = arith.constant 0 : index
    %180 = vector.load %arg3[%c256_146, %c0_147] : memref<576x64xbf16, #tpu.memory_space<vmem>>, vector<64x64xbf16>
    %cst_148 = arith.constant dense<0.000000e+00> : vector<64x128xf32>
    %181 = tpu.matmul %180, %156, %cst_148 {dimension_numbers = #tpu.dot_dimension_numbers<[1], [0], [0], [1], [0, 0, 1, 1], [], []>} : vector<64x64xbf16>, vector<64x128xbf16>, vector<64x128xf32> -> vector<64x128xf32>
    %182 = arith.truncf %181 : vector<64x128xf32> to vector<64x128xbf16>
    %c2816 = arith.constant 2816 : index
    %c0_149 = arith.constant 0 : index
    %183 = vector.load %arg8[%c2816, %c0_149] : memref<8064x128xbf16, #tpu.memory_space<vmem>>, vector<128x128xbf16>
    %cst_150 = arith.constant dense<0.000000e+00> : vector<64x128xf32>
    %184 = tpu.matmul %182, %183, %cst_150 {dimension_numbers = #tpu.dot_dimension_numbers<[1], [0], [0], [1], [0, 0, 1, 1], [], []>} : vector<64x128xbf16>, vector<128x128xbf16>, vector<64x128xf32> -> vector<64x128xf32>
    %185 = arith.addf %179, %184 : vector<64x128xf32>
    %c320_151 = arith.constant 320 : index
    %c0_152 = arith.constant 0 : index
    %186 = vector.load %arg3[%c320_151, %c0_152] : memref<576x64xbf16, #tpu.memory_space<vmem>>, vector<64x64xbf16>
    %cst_153 = arith.constant dense<0.000000e+00> : vector<64x128xf32>
    %187 = tpu.matmul %186, %156, %cst_153 {dimension_numbers = #tpu.dot_dimension_numbers<[1], [0], [0], [1], [0, 0, 1, 1], [], []>} : vector<64x64xbf16>, vector<64x128xbf16>, vector<64x128xf32> -> vector<64x128xf32>
    %188 = arith.truncf %187 : vector<64x128xf32> to vector<64x128xbf16>
    %c2944 = arith.constant 2944 : index
    %c0_154 = arith.constant 0 : index
    %189 = vector.load %arg8[%c2944, %c0_154] : memref<8064x128xbf16, #tpu.memory_space<vmem>>, vector<128x128xbf16>
    %cst_155 = arith.constant dense<0.000000e+00> : vector<64x128xf32>
    %190 = tpu.matmul %188, %189, %cst_155 {dimension_numbers = #tpu.dot_dimension_numbers<[1], [0], [0], [1], [0, 0, 1, 1], [], []>} : vector<64x128xbf16>, vector<128x128xbf16>, vector<64x128xf32> -> vector<64x128xf32>
    %191 = arith.addf %185, %190 : vector<64x128xf32>
    %c384_156 = arith.constant 384 : index
    %c0_157 = arith.constant 0 : index
    %192 = vector.load %arg3[%c384_156, %c0_157] : memref<576x64xbf16, #tpu.memory_space<vmem>>, vector<64x64xbf16>
    %cst_158 = arith.constant dense<0.000000e+00> : vector<64x128xf32>
    %193 = tpu.matmul %192, %156, %cst_158 {dimension_numbers = #tpu.dot_dimension_numbers<[1], [0], [0], [1], [0, 0, 1, 1], [], []>} : vector<64x64xbf16>, vector<64x128xbf16>, vector<64x128xf32> -> vector<64x128xf32>
    %194 = arith.truncf %193 : vector<64x128xf32> to vector<64x128xbf16>
    %c3072 = arith.constant 3072 : index
    %c0_159 = arith.constant 0 : index
    %195 = vector.load %arg8[%c3072, %c0_159] : memref<8064x128xbf16, #tpu.memory_space<vmem>>, vector<128x128xbf16>
    %cst_160 = arith.constant dense<0.000000e+00> : vector<64x128xf32>
    %196 = tpu.matmul %194, %195, %cst_160 {dimension_numbers = #tpu.dot_dimension_numbers<[1], [0], [0], [1], [0, 0, 1, 1], [], []>} : vector<64x128xbf16>, vector<128x128xbf16>, vector<64x128xf32> -> vector<64x128xf32>
    %197 = arith.addf %191, %196 : vector<64x128xf32>
    %c448_161 = arith.constant 448 : index
    %c0_162 = arith.constant 0 : index
    %198 = vector.load %arg3[%c448_161, %c0_162] : memref<576x64xbf16, #tpu.memory_space<vmem>>, vector<64x64xbf16>
    %cst_163 = arith.constant dense<0.000000e+00> : vector<64x128xf32>
    %199 = tpu.matmul %198, %156, %cst_163 {dimension_numbers = #tpu.dot_dimension_numbers<[1], [0], [0], [1], [0, 0, 1, 1], [], []>} : vector<64x64xbf16>, vector<64x128xbf16>, vector<64x128xf32> -> vector<64x128xf32>
    %200 = arith.truncf %199 : vector<64x128xf32> to vector<64x128xbf16>
    %c3200 = arith.constant 3200 : index
    %c0_164 = arith.constant 0 : index
    %201 = vector.load %arg8[%c3200, %c0_164] : memref<8064x128xbf16, #tpu.memory_space<vmem>>, vector<128x128xbf16>
    %cst_165 = arith.constant dense<0.000000e+00> : vector<64x128xf32>
    %202 = tpu.matmul %200, %201, %cst_165 {dimension_numbers = #tpu.dot_dimension_numbers<[1], [0], [0], [1], [0, 0, 1, 1], [], []>} : vector<64x128xbf16>, vector<128x128xbf16>, vector<64x128xf32> -> vector<64x128xf32>
    %203 = arith.addf %197, %202 : vector<64x128xf32>
    %c512_166 = arith.constant 512 : index
    %c0_167 = arith.constant 0 : index
    %204 = vector.load %arg3[%c512_166, %c0_167] : memref<576x64xbf16, #tpu.memory_space<vmem>>, vector<64x64xbf16>
    %cst_168 = arith.constant dense<0.000000e+00> : vector<64x128xf32>
    %205 = tpu.matmul %204, %156, %cst_168 {dimension_numbers = #tpu.dot_dimension_numbers<[1], [0], [0], [1], [0, 0, 1, 1], [], []>} : vector<64x64xbf16>, vector<64x128xbf16>, vector<64x128xf32> -> vector<64x128xf32>
    %206 = arith.truncf %205 : vector<64x128xf32> to vector<64x128xbf16>
    %c3328 = arith.constant 3328 : index
    %c0_169 = arith.constant 0 : index
    %207 = vector.load %arg8[%c3328, %c0_169] : memref<8064x128xbf16, #tpu.memory_space<vmem>>, vector<128x128xbf16>
    %cst_170 = arith.constant dense<0.000000e+00> : vector<64x128xf32>
    %208 = tpu.matmul %206, %207, %cst_170 {dimension_numbers = #tpu.dot_dimension_numbers<[1], [0], [0], [1], [0, 0, 1, 1], [], []>} : vector<64x128xbf16>, vector<128x128xbf16>, vector<64x128xf32> -> vector<64x128xf32>
    %209 = arith.addf %203, %208 : vector<64x128xf32>
    %c2 = arith.constant 2 : index
    %c0_171 = arith.constant 0 : index
    %210 = vector.load %arg9[%c2, %c0_171] : memref<7x128xf32, #tpu.memory_space<vmem>>, vector<1x128xf32>
    %211 = vector.broadcast %210 : vector<1x128xf32> to vector<64x128xf32>
    %212 = arith.addf %209, %211 : vector<64x128xf32>
    %cst_172 = arith.constant 0.000000e+00 : f32
    %213 = vector.broadcast %cst_172 : f32 to vector<64x128xf32>
    %214 = arith.maximumf %212, %213 : vector<64x128xf32>
    %215 = arith.truncf %214 : vector<64x128xf32> to vector<64x128xbf16>
    %c0_173 = arith.constant 0 : index
    %c0_174 = arith.constant 0 : index
    %216 = vector.load %arg3[%c0_173, %c0_174] : memref<576x64xbf16, #tpu.memory_space<vmem>>, vector<64x64xbf16>
    %cst_175 = arith.constant dense<0.000000e+00> : vector<64x128xf32>
    %217 = tpu.matmul %216, %215, %cst_175 {dimension_numbers = #tpu.dot_dimension_numbers<[1], [0], [0], [1], [0, 0, 1, 1], [], []>} : vector<64x64xbf16>, vector<64x128xbf16>, vector<64x128xf32> -> vector<64x128xf32>
    %218 = arith.truncf %217 : vector<64x128xf32> to vector<64x128xbf16>
    %c3456 = arith.constant 3456 : index
    %c0_176 = arith.constant 0 : index
    %219 = vector.load %arg8[%c3456, %c0_176] : memref<8064x128xbf16, #tpu.memory_space<vmem>>, vector<128x128xbf16>
    %cst_177 = arith.constant dense<0.000000e+00> : vector<64x128xf32>
    %220 = tpu.matmul %218, %219, %cst_177 {dimension_numbers = #tpu.dot_dimension_numbers<[1], [0], [0], [1], [0, 0, 1, 1], [], []>} : vector<64x128xbf16>, vector<128x128xbf16>, vector<64x128xf32> -> vector<64x128xf32>
    %c64_178 = arith.constant 64 : index
    %c0_179 = arith.constant 0 : index
    %221 = vector.load %arg3[%c64_178, %c0_179] : memref<576x64xbf16, #tpu.memory_space<vmem>>, vector<64x64xbf16>
    %cst_180 = arith.constant dense<0.000000e+00> : vector<64x128xf32>
    %222 = tpu.matmul %221, %215, %cst_180 {dimension_numbers = #tpu.dot_dimension_numbers<[1], [0], [0], [1], [0, 0, 1, 1], [], []>} : vector<64x64xbf16>, vector<64x128xbf16>, vector<64x128xf32> -> vector<64x128xf32>
    %223 = arith.truncf %222 : vector<64x128xf32> to vector<64x128xbf16>
    %c3584 = arith.constant 3584 : index
    %c0_181 = arith.constant 0 : index
    %224 = vector.load %arg8[%c3584, %c0_181] : memref<8064x128xbf16, #tpu.memory_space<vmem>>, vector<128x128xbf16>
    %cst_182 = arith.constant dense<0.000000e+00> : vector<64x128xf32>
    %225 = tpu.matmul %223, %224, %cst_182 {dimension_numbers = #tpu.dot_dimension_numbers<[1], [0], [0], [1], [0, 0, 1, 1], [], []>} : vector<64x128xbf16>, vector<128x128xbf16>, vector<64x128xf32> -> vector<64x128xf32>
    %226 = arith.addf %220, %225 : vector<64x128xf32>
    %c128_183 = arith.constant 128 : index
    %c0_184 = arith.constant 0 : index
    %227 = vector.load %arg3[%c128_183, %c0_184] : memref<576x64xbf16, #tpu.memory_space<vmem>>, vector<64x64xbf16>
    %cst_185 = arith.constant dense<0.000000e+00> : vector<64x128xf32>
    %228 = tpu.matmul %227, %215, %cst_185 {dimension_numbers = #tpu.dot_dimension_numbers<[1], [0], [0], [1], [0, 0, 1, 1], [], []>} : vector<64x64xbf16>, vector<64x128xbf16>, vector<64x128xf32> -> vector<64x128xf32>
    %229 = arith.truncf %228 : vector<64x128xf32> to vector<64x128xbf16>
    %c3712 = arith.constant 3712 : index
    %c0_186 = arith.constant 0 : index
    %230 = vector.load %arg8[%c3712, %c0_186] : memref<8064x128xbf16, #tpu.memory_space<vmem>>, vector<128x128xbf16>
    %cst_187 = arith.constant dense<0.000000e+00> : vector<64x128xf32>
    %231 = tpu.matmul %229, %230, %cst_187 {dimension_numbers = #tpu.dot_dimension_numbers<[1], [0], [0], [1], [0, 0, 1, 1], [], []>} : vector<64x128xbf16>, vector<128x128xbf16>, vector<64x128xf32> -> vector<64x128xf32>
    %232 = arith.addf %226, %231 : vector<64x128xf32>
    %c192_188 = arith.constant 192 : index
    %c0_189 = arith.constant 0 : index
    %233 = vector.load %arg3[%c192_188, %c0_189] : memref<576x64xbf16, #tpu.memory_space<vmem>>, vector<64x64xbf16>
    %cst_190 = arith.constant dense<0.000000e+00> : vector<64x128xf32>
    %234 = tpu.matmul %233, %215, %cst_190 {dimension_numbers = #tpu.dot_dimension_numbers<[1], [0], [0], [1], [0, 0, 1, 1], [], []>} : vector<64x64xbf16>, vector<64x128xbf16>, vector<64x128xf32> -> vector<64x128xf32>
    %235 = arith.truncf %234 : vector<64x128xf32> to vector<64x128xbf16>
    %c3840 = arith.constant 3840 : index
    %c0_191 = arith.constant 0 : index
    %236 = vector.load %arg8[%c3840, %c0_191] : memref<8064x128xbf16, #tpu.memory_space<vmem>>, vector<128x128xbf16>
    %cst_192 = arith.constant dense<0.000000e+00> : vector<64x128xf32>
    %237 = tpu.matmul %235, %236, %cst_192 {dimension_numbers = #tpu.dot_dimension_numbers<[1], [0], [0], [1], [0, 0, 1, 1], [], []>} : vector<64x128xbf16>, vector<128x128xbf16>, vector<64x128xf32> -> vector<64x128xf32>
    %238 = arith.addf %232, %237 : vector<64x128xf32>
    %c256_193 = arith.constant 256 : index
    %c0_194 = arith.constant 0 : index
    %239 = vector.load %arg3[%c256_193, %c0_194] : memref<576x64xbf16, #tpu.memory_space<vmem>>, vector<64x64xbf16>
    %cst_195 = arith.constant dense<0.000000e+00> : vector<64x128xf32>
    %240 = tpu.matmul %239, %215, %cst_195 {dimension_numbers = #tpu.dot_dimension_numbers<[1], [0], [0], [1], [0, 0, 1, 1], [], []>} : vector<64x64xbf16>, vector<64x128xbf16>, vector<64x128xf32> -> vector<64x128xf32>
    %241 = arith.truncf %240 : vector<64x128xf32> to vector<64x128xbf16>
    %c3968 = arith.constant 3968 : index
    %c0_196 = arith.constant 0 : index
    %242 = vector.load %arg8[%c3968, %c0_196] : memref<8064x128xbf16, #tpu.memory_space<vmem>>, vector<128x128xbf16>
    %cst_197 = arith.constant dense<0.000000e+00> : vector<64x128xf32>
    %243 = tpu.matmul %241, %242, %cst_197 {dimension_numbers = #tpu.dot_dimension_numbers<[1], [0], [0], [1], [0, 0, 1, 1], [], []>} : vector<64x128xbf16>, vector<128x128xbf16>, vector<64x128xf32> -> vector<64x128xf32>
    %244 = arith.addf %238, %243 : vector<64x128xf32>
    %c320_198 = arith.constant 320 : index
    %c0_199 = arith.constant 0 : index
    %245 = vector.load %arg3[%c320_198, %c0_199] : memref<576x64xbf16, #tpu.memory_space<vmem>>, vector<64x64xbf16>
    %cst_200 = arith.constant dense<0.000000e+00> : vector<64x128xf32>
    %246 = tpu.matmul %245, %215, %cst_200 {dimension_numbers = #tpu.dot_dimension_numbers<[1], [0], [0], [1], [0, 0, 1, 1], [], []>} : vector<64x64xbf16>, vector<64x128xbf16>, vector<64x128xf32> -> vector<64x128xf32>
    %247 = arith.truncf %246 : vector<64x128xf32> to vector<64x128xbf16>
    %c4096 = arith.constant 4096 : index
    %c0_201 = arith.constant 0 : index
    %248 = vector.load %arg8[%c4096, %c0_201] : memref<8064x128xbf16, #tpu.memory_space<vmem>>, vector<128x128xbf16>
    %cst_202 = arith.constant dense<0.000000e+00> : vector<64x128xf32>
    %249 = tpu.matmul %247, %248, %cst_202 {dimension_numbers = #tpu.dot_dimension_numbers<[1], [0], [0], [1], [0, 0, 1, 1], [], []>} : vector<64x128xbf16>, vector<128x128xbf16>, vector<64x128xf32> -> vector<64x128xf32>
    %250 = arith.addf %244, %249 : vector<64x128xf32>
    %c384_203 = arith.constant 384 : index
    %c0_204 = arith.constant 0 : index
    %251 = vector.load %arg3[%c384_203, %c0_204] : memref<576x64xbf16, #tpu.memory_space<vmem>>, vector<64x64xbf16>
    %cst_205 = arith.constant dense<0.000000e+00> : vector<64x128xf32>
    %252 = tpu.matmul %251, %215, %cst_205 {dimension_numbers = #tpu.dot_dimension_numbers<[1], [0], [0], [1], [0, 0, 1, 1], [], []>} : vector<64x64xbf16>, vector<64x128xbf16>, vector<64x128xf32> -> vector<64x128xf32>
    %253 = arith.truncf %252 : vector<64x128xf32> to vector<64x128xbf16>
    %c4224 = arith.constant 4224 : index
    %c0_206 = arith.constant 0 : index
    %254 = vector.load %arg8[%c4224, %c0_206] : memref<8064x128xbf16, #tpu.memory_space<vmem>>, vector<128x128xbf16>
    %cst_207 = arith.constant dense<0.000000e+00> : vector<64x128xf32>
    %255 = tpu.matmul %253, %254, %cst_207 {dimension_numbers = #tpu.dot_dimension_numbers<[1], [0], [0], [1], [0, 0, 1, 1], [], []>} : vector<64x128xbf16>, vector<128x128xbf16>, vector<64x128xf32> -> vector<64x128xf32>
    %256 = arith.addf %250, %255 : vector<64x128xf32>
    %c448_208 = arith.constant 448 : index
    %c0_209 = arith.constant 0 : index
    %257 = vector.load %arg3[%c448_208, %c0_209] : memref<576x64xbf16, #tpu.memory_space<vmem>>, vector<64x64xbf16>
    %cst_210 = arith.constant dense<0.000000e+00> : vector<64x128xf32>
    %258 = tpu.matmul %257, %215, %cst_210 {dimension_numbers = #tpu.dot_dimension_numbers<[1], [0], [0], [1], [0, 0, 1, 1], [], []>} : vector<64x64xbf16>, vector<64x128xbf16>, vector<64x128xf32> -> vector<64x128xf32>
    %259 = arith.truncf %258 : vector<64x128xf32> to vector<64x128xbf16>
    %c4352 = arith.constant 4352 : index
    %c0_211 = arith.constant 0 : index
    %260 = vector.load %arg8[%c4352, %c0_211] : memref<8064x128xbf16, #tpu.memory_space<vmem>>, vector<128x128xbf16>
    %cst_212 = arith.constant dense<0.000000e+00> : vector<64x128xf32>
    %261 = tpu.matmul %259, %260, %cst_212 {dimension_numbers = #tpu.dot_dimension_numbers<[1], [0], [0], [1], [0, 0, 1, 1], [], []>} : vector<64x128xbf16>, vector<128x128xbf16>, vector<64x128xf32> -> vector<64x128xf32>
    %262 = arith.addf %256, %261 : vector<64x128xf32>
    %c512_213 = arith.constant 512 : index
    %c0_214 = arith.constant 0 : index
    %263 = vector.load %arg3[%c512_213, %c0_214] : memref<576x64xbf16, #tpu.memory_space<vmem>>, vector<64x64xbf16>
    %cst_215 = arith.constant dense<0.000000e+00> : vector<64x128xf32>
    %264 = tpu.matmul %263, %215, %cst_215 {dimension_numbers = #tpu.dot_dimension_numbers<[1], [0], [0], [1], [0, 0, 1, 1], [], []>} : vector<64x64xbf16>, vector<64x128xbf16>, vector<64x128xf32> -> vector<64x128xf32>
    %265 = arith.truncf %264 : vector<64x128xf32> to vector<64x128xbf16>
    %c4480 = arith.constant 4480 : index
    %c0_216 = arith.constant 0 : index
    %266 = vector.load %arg8[%c4480, %c0_216] : memref<8064x128xbf16, #tpu.memory_space<vmem>>, vector<128x128xbf16>
    %cst_217 = arith.constant dense<0.000000e+00> : vector<64x128xf32>
    %267 = tpu.matmul %265, %266, %cst_217 {dimension_numbers = #tpu.dot_dimension_numbers<[1], [0], [0], [1], [0, 0, 1, 1], [], []>} : vector<64x128xbf16>, vector<128x128xbf16>, vector<64x128xf32> -> vector<64x128xf32>
    %268 = arith.addf %262, %267 : vector<64x128xf32>
    %c3 = arith.constant 3 : index
    %c0_218 = arith.constant 0 : index
    %269 = vector.load %arg9[%c3, %c0_218] : memref<7x128xf32, #tpu.memory_space<vmem>>, vector<1x128xf32>
    %270 = vector.broadcast %269 : vector<1x128xf32> to vector<64x128xf32>
    %271 = arith.addf %268, %270 : vector<64x128xf32>
    %272 = arith.extf %156 : vector<64x128xbf16> to vector<64x128xf32>
    %273 = arith.addf %271, %272 : vector<64x128xf32>
    %cst_219 = arith.constant 0.000000e+00 : f32
    %274 = vector.broadcast %cst_219 : f32 to vector<64x128xf32>
    %275 = arith.maximumf %273, %274 : vector<64x128xf32>
    %276 = arith.truncf %275 : vector<64x128xf32> to vector<64x128xbf16>
    %c0_220 = arith.constant 0 : index
    %c0_221 = arith.constant 0 : index
    %277 = vector.load %arg4[%c0_220, %c0_221] : memref<144x64xbf16, #tpu.memory_space<vmem>>, vector<16x64xbf16>
    %cst_222 = arith.constant dense<0.000000e+00> : vector<16x128xf32>
    %278 = tpu.matmul %277, %276, %cst_222 {dimension_numbers = #tpu.dot_dimension_numbers<[1], [0], [0], [1], [0, 0, 1, 1], [], []>} : vector<16x64xbf16>, vector<64x128xbf16>, vector<16x128xf32> -> vector<16x128xf32>
    %279 = arith.truncf %278 : vector<16x128xf32> to vector<16x128xbf16>
    %c0_223 = arith.constant 0 : index
    %c0_224 = arith.constant 0 : index
    %280 = vector.load %arg10[%c0_223, %c0_224] : memref<1152x256xbf16, #tpu.memory_space<vmem>>, vector<128x256xbf16>
    %cst_225 = arith.constant dense<0.000000e+00> : vector<16x256xf32>
    %281 = tpu.matmul %279, %280, %cst_225 {dimension_numbers = #tpu.dot_dimension_numbers<[1], [0], [0], [1], [0, 0, 1, 1], [], []>} : vector<16x128xbf16>, vector<128x256xbf16>, vector<16x256xf32> -> vector<16x256xf32>
    %c16 = arith.constant 16 : index
    %c0_226 = arith.constant 0 : index
    %282 = vector.load %arg4[%c16, %c0_226] : memref<144x64xbf16, #tpu.memory_space<vmem>>, vector<16x64xbf16>
    %cst_227 = arith.constant dense<0.000000e+00> : vector<16x128xf32>
    %283 = tpu.matmul %282, %276, %cst_227 {dimension_numbers = #tpu.dot_dimension_numbers<[1], [0], [0], [1], [0, 0, 1, 1], [], []>} : vector<16x64xbf16>, vector<64x128xbf16>, vector<16x128xf32> -> vector<16x128xf32>
    %284 = arith.truncf %283 : vector<16x128xf32> to vector<16x128xbf16>
    %c128_228 = arith.constant 128 : index
    %c0_229 = arith.constant 0 : index
    %285 = vector.load %arg10[%c128_228, %c0_229] : memref<1152x256xbf16, #tpu.memory_space<vmem>>, vector<128x256xbf16>
    %cst_230 = arith.constant dense<0.000000e+00> : vector<16x256xf32>
    %286 = tpu.matmul %284, %285, %cst_230 {dimension_numbers = #tpu.dot_dimension_numbers<[1], [0], [0], [1], [0, 0, 1, 1], [], []>} : vector<16x128xbf16>, vector<128x256xbf16>, vector<16x256xf32> -> vector<16x256xf32>
    %287 = arith.addf %281, %286 : vector<16x256xf32>
    %c32 = arith.constant 32 : index
    %c0_231 = arith.constant 0 : index
    %288 = vector.load %arg4[%c32, %c0_231] : memref<144x64xbf16, #tpu.memory_space<vmem>>, vector<16x64xbf16>
    %cst_232 = arith.constant dense<0.000000e+00> : vector<16x128xf32>
    %289 = tpu.matmul %288, %276, %cst_232 {dimension_numbers = #tpu.dot_dimension_numbers<[1], [0], [0], [1], [0, 0, 1, 1], [], []>} : vector<16x64xbf16>, vector<64x128xbf16>, vector<16x128xf32> -> vector<16x128xf32>
    %290 = arith.truncf %289 : vector<16x128xf32> to vector<16x128xbf16>
    %c256_233 = arith.constant 256 : index
    %c0_234 = arith.constant 0 : index
    %291 = vector.load %arg10[%c256_233, %c0_234] : memref<1152x256xbf16, #tpu.memory_space<vmem>>, vector<128x256xbf16>
    %cst_235 = arith.constant dense<0.000000e+00> : vector<16x256xf32>
    %292 = tpu.matmul %290, %291, %cst_235 {dimension_numbers = #tpu.dot_dimension_numbers<[1], [0], [0], [1], [0, 0, 1, 1], [], []>} : vector<16x128xbf16>, vector<128x256xbf16>, vector<16x256xf32> -> vector<16x256xf32>
    %293 = arith.addf %287, %292 : vector<16x256xf32>
    %c48 = arith.constant 48 : index
    %c0_236 = arith.constant 0 : index
    %294 = vector.load %arg4[%c48, %c0_236] : memref<144x64xbf16, #tpu.memory_space<vmem>>, vector<16x64xbf16>
    %cst_237 = arith.constant dense<0.000000e+00> : vector<16x128xf32>
    %295 = tpu.matmul %294, %276, %cst_237 {dimension_numbers = #tpu.dot_dimension_numbers<[1], [0], [0], [1], [0, 0, 1, 1], [], []>} : vector<16x64xbf16>, vector<64x128xbf16>, vector<16x128xf32> -> vector<16x128xf32>
    %296 = arith.truncf %295 : vector<16x128xf32> to vector<16x128xbf16>
    %c384_238 = arith.constant 384 : index
    %c0_239 = arith.constant 0 : index
    %297 = vector.load %arg10[%c384_238, %c0_239] : memref<1152x256xbf16, #tpu.memory_space<vmem>>, vector<128x256xbf16>
    %cst_240 = arith.constant dense<0.000000e+00> : vector<16x256xf32>
    %298 = tpu.matmul %296, %297, %cst_240 {dimension_numbers = #tpu.dot_dimension_numbers<[1], [0], [0], [1], [0, 0, 1, 1], [], []>} : vector<16x128xbf16>, vector<128x256xbf16>, vector<16x256xf32> -> vector<16x256xf32>
    %299 = arith.addf %293, %298 : vector<16x256xf32>
    %c64_241 = arith.constant 64 : index
    %c0_242 = arith.constant 0 : index
    %300 = vector.load %arg4[%c64_241, %c0_242] : memref<144x64xbf16, #tpu.memory_space<vmem>>, vector<16x64xbf16>
    %cst_243 = arith.constant dense<0.000000e+00> : vector<16x128xf32>
    %301 = tpu.matmul %300, %276, %cst_243 {dimension_numbers = #tpu.dot_dimension_numbers<[1], [0], [0], [1], [0, 0, 1, 1], [], []>} : vector<16x64xbf16>, vector<64x128xbf16>, vector<16x128xf32> -> vector<16x128xf32>
    %302 = arith.truncf %301 : vector<16x128xf32> to vector<16x128xbf16>
    %c512_244 = arith.constant 512 : index
    %c0_245 = arith.constant 0 : index
    %303 = vector.load %arg10[%c512_244, %c0_245] : memref<1152x256xbf16, #tpu.memory_space<vmem>>, vector<128x256xbf16>
    %cst_246 = arith.constant dense<0.000000e+00> : vector<16x256xf32>
    %304 = tpu.matmul %302, %303, %cst_246 {dimension_numbers = #tpu.dot_dimension_numbers<[1], [0], [0], [1], [0, 0, 1, 1], [], []>} : vector<16x128xbf16>, vector<128x256xbf16>, vector<16x256xf32> -> vector<16x256xf32>
    %305 = arith.addf %299, %304 : vector<16x256xf32>
    %c80 = arith.constant 80 : index
    %c0_247 = arith.constant 0 : index
    %306 = vector.load %arg4[%c80, %c0_247] : memref<144x64xbf16, #tpu.memory_space<vmem>>, vector<16x64xbf16>
    %cst_248 = arith.constant dense<0.000000e+00> : vector<16x128xf32>
    %307 = tpu.matmul %306, %276, %cst_248 {dimension_numbers = #tpu.dot_dimension_numbers<[1], [0], [0], [1], [0, 0, 1, 1], [], []>} : vector<16x64xbf16>, vector<64x128xbf16>, vector<16x128xf32> -> vector<16x128xf32>
    %308 = arith.truncf %307 : vector<16x128xf32> to vector<16x128xbf16>
    %c640_249 = arith.constant 640 : index
    %c0_250 = arith.constant 0 : index
    %309 = vector.load %arg10[%c640_249, %c0_250] : memref<1152x256xbf16, #tpu.memory_space<vmem>>, vector<128x256xbf16>
    %cst_251 = arith.constant dense<0.000000e+00> : vector<16x256xf32>
    %310 = tpu.matmul %308, %309, %cst_251 {dimension_numbers = #tpu.dot_dimension_numbers<[1], [0], [0], [1], [0, 0, 1, 1], [], []>} : vector<16x128xbf16>, vector<128x256xbf16>, vector<16x256xf32> -> vector<16x256xf32>
    %311 = arith.addf %305, %310 : vector<16x256xf32>
    %c96 = arith.constant 96 : index
    %c0_252 = arith.constant 0 : index
    %312 = vector.load %arg4[%c96, %c0_252] : memref<144x64xbf16, #tpu.memory_space<vmem>>, vector<16x64xbf16>
    %cst_253 = arith.constant dense<0.000000e+00> : vector<16x128xf32>
    %313 = tpu.matmul %312, %276, %cst_253 {dimension_numbers = #tpu.dot_dimension_numbers<[1], [0], [0], [1], [0, 0, 1, 1], [], []>} : vector<16x64xbf16>, vector<64x128xbf16>, vector<16x128xf32> -> vector<16x128xf32>
    %314 = arith.truncf %313 : vector<16x128xf32> to vector<16x128xbf16>
    %c768_254 = arith.constant 768 : index
    %c0_255 = arith.constant 0 : index
    %315 = vector.load %arg10[%c768_254, %c0_255] : memref<1152x256xbf16, #tpu.memory_space<vmem>>, vector<128x256xbf16>
    %cst_256 = arith.constant dense<0.000000e+00> : vector<16x256xf32>
    %316 = tpu.matmul %314, %315, %cst_256 {dimension_numbers = #tpu.dot_dimension_numbers<[1], [0], [0], [1], [0, 0, 1, 1], [], []>} : vector<16x128xbf16>, vector<128x256xbf16>, vector<16x256xf32> -> vector<16x256xf32>
    %317 = arith.addf %311, %316 : vector<16x256xf32>
    %c112 = arith.constant 112 : index
    %c0_257 = arith.constant 0 : index
    %318 = vector.load %arg4[%c112, %c0_257] : memref<144x64xbf16, #tpu.memory_space<vmem>>, vector<16x64xbf16>
    %cst_258 = arith.constant dense<0.000000e+00> : vector<16x128xf32>
    %319 = tpu.matmul %318, %276, %cst_258 {dimension_numbers = #tpu.dot_dimension_numbers<[1], [0], [0], [1], [0, 0, 1, 1], [], []>} : vector<16x64xbf16>, vector<64x128xbf16>, vector<16x128xf32> -> vector<16x128xf32>
    %320 = arith.truncf %319 : vector<16x128xf32> to vector<16x128xbf16>
    %c896_259 = arith.constant 896 : index
    %c0_260 = arith.constant 0 : index
    %321 = vector.load %arg10[%c896_259, %c0_260] : memref<1152x256xbf16, #tpu.memory_space<vmem>>, vector<128x256xbf16>
    %cst_261 = arith.constant dense<0.000000e+00> : vector<16x256xf32>
    %322 = tpu.matmul %320, %321, %cst_261 {dimension_numbers = #tpu.dot_dimension_numbers<[1], [0], [0], [1], [0, 0, 1, 1], [], []>} : vector<16x128xbf16>, vector<128x256xbf16>, vector<16x256xf32> -> vector<16x256xf32>
    %323 = arith.addf %317, %322 : vector<16x256xf32>
    %c128_262 = arith.constant 128 : index
    %c0_263 = arith.constant 0 : index
    %324 = vector.load %arg4[%c128_262, %c0_263] : memref<144x64xbf16, #tpu.memory_space<vmem>>, vector<16x64xbf16>
    %cst_264 = arith.constant dense<0.000000e+00> : vector<16x128xf32>
    %325 = tpu.matmul %324, %276, %cst_264 {dimension_numbers = #tpu.dot_dimension_numbers<[1], [0], [0], [1], [0, 0, 1, 1], [], []>} : vector<16x64xbf16>, vector<64x128xbf16>, vector<16x128xf32> -> vector<16x128xf32>
    %326 = arith.truncf %325 : vector<16x128xf32> to vector<16x128xbf16>
    %c1024_265 = arith.constant 1024 : index
    %c0_266 = arith.constant 0 : index
    %327 = vector.load %arg10[%c1024_265, %c0_266] : memref<1152x256xbf16, #tpu.memory_space<vmem>>, vector<128x256xbf16>
    %cst_267 = arith.constant dense<0.000000e+00> : vector<16x256xf32>
    %328 = tpu.matmul %326, %327, %cst_267 {dimension_numbers = #tpu.dot_dimension_numbers<[1], [0], [0], [1], [0, 0, 1, 1], [], []>} : vector<16x128xbf16>, vector<128x256xbf16>, vector<16x256xf32> -> vector<16x256xf32>
    %329 = arith.addf %323, %328 : vector<16x256xf32>
    %c0_268 = arith.constant 0 : index
    %c0_269 = arith.constant 0 : index
    %330 = vector.load %arg11[%c0_268, %c0_269] : memref<1x256xf32, #tpu.memory_space<vmem>>, vector<1x256xf32>
    %331 = vector.broadcast %330 : vector<1x256xf32> to vector<16x256xf32>
    %332 = arith.addf %329, %331 : vector<16x256xf32>
    %333 = arith.truncf %332 : vector<16x256xf32> to vector<16x256xbf16>
    %334 = vector.extract_strided_slice %333 {offsets = [0, 0], sizes = [16, 128], strides = [1, 1]} : vector<16x256xbf16> to vector<16x128xbf16>
    %cst_270 = arith.constant 0.000000e+00 : bf16
    %335 = vector.broadcast %cst_270 : bf16 to vector<16x128xbf16>
    %336 = arith.maximumf %334, %335 : vector<16x128xbf16>
    %337 = vector.extract_strided_slice %333 {offsets = [0, 128], sizes = [16, 128], strides = [1, 1]} : vector<16x256xbf16> to vector<16x128xbf16>
    %c0_271 = arith.constant 0 : index
    %c0_272 = arith.constant 0 : index
    %338 = vector.load %arg5[%c0_271, %c0_272] : memref<144x16xbf16, #tpu.memory_space<vmem>>, vector<16x16xbf16>
    %cst_273 = arith.constant dense<0.000000e+00> : vector<16x128xf32>
    %339 = tpu.matmul %338, %336, %cst_273 {dimension_numbers = #tpu.dot_dimension_numbers<[1], [0], [0], [1], [0, 0, 1, 1], [], []>} : vector<16x16xbf16>, vector<16x128xbf16>, vector<16x128xf32> -> vector<16x128xf32>
    %340 = arith.truncf %339 : vector<16x128xf32> to vector<16x128xbf16>
    %c4608 = arith.constant 4608 : index
    %c0_274 = arith.constant 0 : index
    %341 = vector.load %arg8[%c4608, %c0_274] : memref<8064x128xbf16, #tpu.memory_space<vmem>>, vector<128x128xbf16>
    %cst_275 = arith.constant dense<0.000000e+00> : vector<16x128xf32>
    %342 = tpu.matmul %340, %341, %cst_275 {dimension_numbers = #tpu.dot_dimension_numbers<[1], [0], [0], [1], [0, 0, 1, 1], [], []>} : vector<16x128xbf16>, vector<128x128xbf16>, vector<16x128xf32> -> vector<16x128xf32>
    %c16_276 = arith.constant 16 : index
    %c0_277 = arith.constant 0 : index
    %343 = vector.load %arg5[%c16_276, %c0_277] : memref<144x16xbf16, #tpu.memory_space<vmem>>, vector<16x16xbf16>
    %cst_278 = arith.constant dense<0.000000e+00> : vector<16x128xf32>
    %344 = tpu.matmul %343, %336, %cst_278 {dimension_numbers = #tpu.dot_dimension_numbers<[1], [0], [0], [1], [0, 0, 1, 1], [], []>} : vector<16x16xbf16>, vector<16x128xbf16>, vector<16x128xf32> -> vector<16x128xf32>
    %345 = arith.truncf %344 : vector<16x128xf32> to vector<16x128xbf16>
    %c4736 = arith.constant 4736 : index
    %c0_279 = arith.constant 0 : index
    %346 = vector.load %arg8[%c4736, %c0_279] : memref<8064x128xbf16, #tpu.memory_space<vmem>>, vector<128x128xbf16>
    %cst_280 = arith.constant dense<0.000000e+00> : vector<16x128xf32>
    %347 = tpu.matmul %345, %346, %cst_280 {dimension_numbers = #tpu.dot_dimension_numbers<[1], [0], [0], [1], [0, 0, 1, 1], [], []>} : vector<16x128xbf16>, vector<128x128xbf16>, vector<16x128xf32> -> vector<16x128xf32>
    %348 = arith.addf %342, %347 : vector<16x128xf32>
    %c32_281 = arith.constant 32 : index
    %c0_282 = arith.constant 0 : index
    %349 = vector.load %arg5[%c32_281, %c0_282] : memref<144x16xbf16, #tpu.memory_space<vmem>>, vector<16x16xbf16>
    %cst_283 = arith.constant dense<0.000000e+00> : vector<16x128xf32>
    %350 = tpu.matmul %349, %336, %cst_283 {dimension_numbers = #tpu.dot_dimension_numbers<[1], [0], [0], [1], [0, 0, 1, 1], [], []>} : vector<16x16xbf16>, vector<16x128xbf16>, vector<16x128xf32> -> vector<16x128xf32>
    %351 = arith.truncf %350 : vector<16x128xf32> to vector<16x128xbf16>
    %c4864 = arith.constant 4864 : index
    %c0_284 = arith.constant 0 : index
    %352 = vector.load %arg8[%c4864, %c0_284] : memref<8064x128xbf16, #tpu.memory_space<vmem>>, vector<128x128xbf16>
    %cst_285 = arith.constant dense<0.000000e+00> : vector<16x128xf32>
    %353 = tpu.matmul %351, %352, %cst_285 {dimension_numbers = #tpu.dot_dimension_numbers<[1], [0], [0], [1], [0, 0, 1, 1], [], []>} : vector<16x128xbf16>, vector<128x128xbf16>, vector<16x128xf32> -> vector<16x128xf32>
    %354 = arith.addf %348, %353 : vector<16x128xf32>
    %c48_286 = arith.constant 48 : index
    %c0_287 = arith.constant 0 : index
    %355 = vector.load %arg5[%c48_286, %c0_287] : memref<144x16xbf16, #tpu.memory_space<vmem>>, vector<16x16xbf16>
    %cst_288 = arith.constant dense<0.000000e+00> : vector<16x128xf32>
    %356 = tpu.matmul %355, %336, %cst_288 {dimension_numbers = #tpu.dot_dimension_numbers<[1], [0], [0], [1], [0, 0, 1, 1], [], []>} : vector<16x16xbf16>, vector<16x128xbf16>, vector<16x128xf32> -> vector<16x128xf32>
    %357 = arith.truncf %356 : vector<16x128xf32> to vector<16x128xbf16>
    %c4992 = arith.constant 4992 : index
    %c0_289 = arith.constant 0 : index
    %358 = vector.load %arg8[%c4992, %c0_289] : memref<8064x128xbf16, #tpu.memory_space<vmem>>, vector<128x128xbf16>
    %cst_290 = arith.constant dense<0.000000e+00> : vector<16x128xf32>
    %359 = tpu.matmul %357, %358, %cst_290 {dimension_numbers = #tpu.dot_dimension_numbers<[1], [0], [0], [1], [0, 0, 1, 1], [], []>} : vector<16x128xbf16>, vector<128x128xbf16>, vector<16x128xf32> -> vector<16x128xf32>
    %360 = arith.addf %354, %359 : vector<16x128xf32>
    %c64_291 = arith.constant 64 : index
    %c0_292 = arith.constant 0 : index
    %361 = vector.load %arg5[%c64_291, %c0_292] : memref<144x16xbf16, #tpu.memory_space<vmem>>, vector<16x16xbf16>
    %cst_293 = arith.constant dense<0.000000e+00> : vector<16x128xf32>
    %362 = tpu.matmul %361, %336, %cst_293 {dimension_numbers = #tpu.dot_dimension_numbers<[1], [0], [0], [1], [0, 0, 1, 1], [], []>} : vector<16x16xbf16>, vector<16x128xbf16>, vector<16x128xf32> -> vector<16x128xf32>
    %363 = arith.truncf %362 : vector<16x128xf32> to vector<16x128xbf16>
    %c5120 = arith.constant 5120 : index
    %c0_294 = arith.constant 0 : index
    %364 = vector.load %arg8[%c5120, %c0_294] : memref<8064x128xbf16, #tpu.memory_space<vmem>>, vector<128x128xbf16>
    %cst_295 = arith.constant dense<0.000000e+00> : vector<16x128xf32>
    %365 = tpu.matmul %363, %364, %cst_295 {dimension_numbers = #tpu.dot_dimension_numbers<[1], [0], [0], [1], [0, 0, 1, 1], [], []>} : vector<16x128xbf16>, vector<128x128xbf16>, vector<16x128xf32> -> vector<16x128xf32>
    %366 = arith.addf %360, %365 : vector<16x128xf32>
    %c80_296 = arith.constant 80 : index
    %c0_297 = arith.constant 0 : index
    %367 = vector.load %arg5[%c80_296, %c0_297] : memref<144x16xbf16, #tpu.memory_space<vmem>>, vector<16x16xbf16>
    %cst_298 = arith.constant dense<0.000000e+00> : vector<16x128xf32>
    %368 = tpu.matmul %367, %336, %cst_298 {dimension_numbers = #tpu.dot_dimension_numbers<[1], [0], [0], [1], [0, 0, 1, 1], [], []>} : vector<16x16xbf16>, vector<16x128xbf16>, vector<16x128xf32> -> vector<16x128xf32>
    %369 = arith.truncf %368 : vector<16x128xf32> to vector<16x128xbf16>
    %c5248 = arith.constant 5248 : index
    %c0_299 = arith.constant 0 : index
    %370 = vector.load %arg8[%c5248, %c0_299] : memref<8064x128xbf16, #tpu.memory_space<vmem>>, vector<128x128xbf16>
    %cst_300 = arith.constant dense<0.000000e+00> : vector<16x128xf32>
    %371 = tpu.matmul %369, %370, %cst_300 {dimension_numbers = #tpu.dot_dimension_numbers<[1], [0], [0], [1], [0, 0, 1, 1], [], []>} : vector<16x128xbf16>, vector<128x128xbf16>, vector<16x128xf32> -> vector<16x128xf32>
    %372 = arith.addf %366, %371 : vector<16x128xf32>
    %c96_301 = arith.constant 96 : index
    %c0_302 = arith.constant 0 : index
    %373 = vector.load %arg5[%c96_301, %c0_302] : memref<144x16xbf16, #tpu.memory_space<vmem>>, vector<16x16xbf16>
    %cst_303 = arith.constant dense<0.000000e+00> : vector<16x128xf32>
    %374 = tpu.matmul %373, %336, %cst_303 {dimension_numbers = #tpu.dot_dimension_numbers<[1], [0], [0], [1], [0, 0, 1, 1], [], []>} : vector<16x16xbf16>, vector<16x128xbf16>, vector<16x128xf32> -> vector<16x128xf32>
    %375 = arith.truncf %374 : vector<16x128xf32> to vector<16x128xbf16>
    %c5376 = arith.constant 5376 : index
    %c0_304 = arith.constant 0 : index
    %376 = vector.load %arg8[%c5376, %c0_304] : memref<8064x128xbf16, #tpu.memory_space<vmem>>, vector<128x128xbf16>
    %cst_305 = arith.constant dense<0.000000e+00> : vector<16x128xf32>
    %377 = tpu.matmul %375, %376, %cst_305 {dimension_numbers = #tpu.dot_dimension_numbers<[1], [0], [0], [1], [0, 0, 1, 1], [], []>} : vector<16x128xbf16>, vector<128x128xbf16>, vector<16x128xf32> -> vector<16x128xf32>
    %378 = arith.addf %372, %377 : vector<16x128xf32>
    %c112_306 = arith.constant 112 : index
    %c0_307 = arith.constant 0 : index
    %379 = vector.load %arg5[%c112_306, %c0_307] : memref<144x16xbf16, #tpu.memory_space<vmem>>, vector<16x16xbf16>
    %cst_308 = arith.constant dense<0.000000e+00> : vector<16x128xf32>
    %380 = tpu.matmul %379, %336, %cst_308 {dimension_numbers = #tpu.dot_dimension_numbers<[1], [0], [0], [1], [0, 0, 1, 1], [], []>} : vector<16x16xbf16>, vector<16x128xbf16>, vector<16x128xf32> -> vector<16x128xf32>
    %381 = arith.truncf %380 : vector<16x128xf32> to vector<16x128xbf16>
    %c5504 = arith.constant 5504 : index
    %c0_309 = arith.constant 0 : index
    %382 = vector.load %arg8[%c5504, %c0_309] : memref<8064x128xbf16, #tpu.memory_space<vmem>>, vector<128x128xbf16>
    %cst_310 = arith.constant dense<0.000000e+00> : vector<16x128xf32>
    %383 = tpu.matmul %381, %382, %cst_310 {dimension_numbers = #tpu.dot_dimension_numbers<[1], [0], [0], [1], [0, 0, 1, 1], [], []>} : vector<16x128xbf16>, vector<128x128xbf16>, vector<16x128xf32> -> vector<16x128xf32>
    %384 = arith.addf %378, %383 : vector<16x128xf32>
    %c128_311 = arith.constant 128 : index
    %c0_312 = arith.constant 0 : index
    %385 = vector.load %arg5[%c128_311, %c0_312] : memref<144x16xbf16, #tpu.memory_space<vmem>>, vector<16x16xbf16>
    %cst_313 = arith.constant dense<0.000000e+00> : vector<16x128xf32>
    %386 = tpu.matmul %385, %336, %cst_313 {dimension_numbers = #tpu.dot_dimension_numbers<[1], [0], [0], [1], [0, 0, 1, 1], [], []>} : vector<16x16xbf16>, vector<16x128xbf16>, vector<16x128xf32> -> vector<16x128xf32>
    %387 = arith.truncf %386 : vector<16x128xf32> to vector<16x128xbf16>
    %c5632 = arith.constant 5632 : index
    %c0_314 = arith.constant 0 : index
    %388 = vector.load %arg8[%c5632, %c0_314] : memref<8064x128xbf16, #tpu.memory_space<vmem>>, vector<128x128xbf16>
    %cst_315 = arith.constant dense<0.000000e+00> : vector<16x128xf32>
    %389 = tpu.matmul %387, %388, %cst_315 {dimension_numbers = #tpu.dot_dimension_numbers<[1], [0], [0], [1], [0, 0, 1, 1], [], []>} : vector<16x128xbf16>, vector<128x128xbf16>, vector<16x128xf32> -> vector<16x128xf32>
    %390 = arith.addf %384, %389 : vector<16x128xf32>
    %c4 = arith.constant 4 : index
    %c0_316 = arith.constant 0 : index
    %391 = vector.load %arg9[%c4, %c0_316] : memref<7x128xf32, #tpu.memory_space<vmem>>, vector<1x128xf32>
    %392 = vector.broadcast %391 : vector<1x128xf32> to vector<16x128xf32>
    %393 = arith.addf %390, %392 : vector<16x128xf32>
    %394 = arith.extf %337 : vector<16x128xbf16> to vector<16x128xf32>
    %395 = arith.addf %393, %394 : vector<16x128xf32>
    %cst_317 = arith.constant 0.000000e+00 : f32
    %396 = vector.broadcast %cst_317 : f32 to vector<16x128xf32>
    %397 = arith.maximumf %395, %396 : vector<16x128xf32>
    %398 = arith.truncf %397 : vector<16x128xf32> to vector<16x128xbf16>
    %c0_318 = arith.constant 0 : index
    %c0_319 = arith.constant 0 : index
    %399 = vector.load %arg5[%c0_318, %c0_319] : memref<144x16xbf16, #tpu.memory_space<vmem>>, vector<16x16xbf16>
    %cst_320 = arith.constant dense<0.000000e+00> : vector<16x128xf32>
    %400 = tpu.matmul %399, %398, %cst_320 {dimension_numbers = #tpu.dot_dimension_numbers<[1], [0], [0], [1], [0, 0, 1, 1], [], []>} : vector<16x16xbf16>, vector<16x128xbf16>, vector<16x128xf32> -> vector<16x128xf32>
    %401 = arith.truncf %400 : vector<16x128xf32> to vector<16x128xbf16>
    %c5760 = arith.constant 5760 : index
    %c0_321 = arith.constant 0 : index
    %402 = vector.load %arg8[%c5760, %c0_321] : memref<8064x128xbf16, #tpu.memory_space<vmem>>, vector<128x128xbf16>
    %cst_322 = arith.constant dense<0.000000e+00> : vector<16x128xf32>
    %403 = tpu.matmul %401, %402, %cst_322 {dimension_numbers = #tpu.dot_dimension_numbers<[1], [0], [0], [1], [0, 0, 1, 1], [], []>} : vector<16x128xbf16>, vector<128x128xbf16>, vector<16x128xf32> -> vector<16x128xf32>
    %c16_323 = arith.constant 16 : index
    %c0_324 = arith.constant 0 : index
    %404 = vector.load %arg5[%c16_323, %c0_324] : memref<144x16xbf16, #tpu.memory_space<vmem>>, vector<16x16xbf16>
    %cst_325 = arith.constant dense<0.000000e+00> : vector<16x128xf32>
    %405 = tpu.matmul %404, %398, %cst_325 {dimension_numbers = #tpu.dot_dimension_numbers<[1], [0], [0], [1], [0, 0, 1, 1], [], []>} : vector<16x16xbf16>, vector<16x128xbf16>, vector<16x128xf32> -> vector<16x128xf32>
    %406 = arith.truncf %405 : vector<16x128xf32> to vector<16x128xbf16>
    %c5888 = arith.constant 5888 : index
    %c0_326 = arith.constant 0 : index
    %407 = vector.load %arg8[%c5888, %c0_326] : memref<8064x128xbf16, #tpu.memory_space<vmem>>, vector<128x128xbf16>
    %cst_327 = arith.constant dense<0.000000e+00> : vector<16x128xf32>
    %408 = tpu.matmul %406, %407, %cst_327 {dimension_numbers = #tpu.dot_dimension_numbers<[1], [0], [0], [1], [0, 0, 1, 1], [], []>} : vector<16x128xbf16>, vector<128x128xbf16>, vector<16x128xf32> -> vector<16x128xf32>
    %409 = arith.addf %403, %408 : vector<16x128xf32>
    %c32_328 = arith.constant 32 : index
    %c0_329 = arith.constant 0 : index
    %410 = vector.load %arg5[%c32_328, %c0_329] : memref<144x16xbf16, #tpu.memory_space<vmem>>, vector<16x16xbf16>
    %cst_330 = arith.constant dense<0.000000e+00> : vector<16x128xf32>
    %411 = tpu.matmul %410, %398, %cst_330 {dimension_numbers = #tpu.dot_dimension_numbers<[1], [0], [0], [1], [0, 0, 1, 1], [], []>} : vector<16x16xbf16>, vector<16x128xbf16>, vector<16x128xf32> -> vector<16x128xf32>
    %412 = arith.truncf %411 : vector<16x128xf32> to vector<16x128xbf16>
    %c6016 = arith.constant 6016 : index
    %c0_331 = arith.constant 0 : index
    %413 = vector.load %arg8[%c6016, %c0_331] : memref<8064x128xbf16, #tpu.memory_space<vmem>>, vector<128x128xbf16>
    %cst_332 = arith.constant dense<0.000000e+00> : vector<16x128xf32>
    %414 = tpu.matmul %412, %413, %cst_332 {dimension_numbers = #tpu.dot_dimension_numbers<[1], [0], [0], [1], [0, 0, 1, 1], [], []>} : vector<16x128xbf16>, vector<128x128xbf16>, vector<16x128xf32> -> vector<16x128xf32>
    %415 = arith.addf %409, %414 : vector<16x128xf32>
    %c48_333 = arith.constant 48 : index
    %c0_334 = arith.constant 0 : index
    %416 = vector.load %arg5[%c48_333, %c0_334] : memref<144x16xbf16, #tpu.memory_space<vmem>>, vector<16x16xbf16>
    %cst_335 = arith.constant dense<0.000000e+00> : vector<16x128xf32>
    %417 = tpu.matmul %416, %398, %cst_335 {dimension_numbers = #tpu.dot_dimension_numbers<[1], [0], [0], [1], [0, 0, 1, 1], [], []>} : vector<16x16xbf16>, vector<16x128xbf16>, vector<16x128xf32> -> vector<16x128xf32>
    %418 = arith.truncf %417 : vector<16x128xf32> to vector<16x128xbf16>
    %c6144 = arith.constant 6144 : index
    %c0_336 = arith.constant 0 : index
    %419 = vector.load %arg8[%c6144, %c0_336] : memref<8064x128xbf16, #tpu.memory_space<vmem>>, vector<128x128xbf16>
    %cst_337 = arith.constant dense<0.000000e+00> : vector<16x128xf32>
    %420 = tpu.matmul %418, %419, %cst_337 {dimension_numbers = #tpu.dot_dimension_numbers<[1], [0], [0], [1], [0, 0, 1, 1], [], []>} : vector<16x128xbf16>, vector<128x128xbf16>, vector<16x128xf32> -> vector<16x128xf32>
    %421 = arith.addf %415, %420 : vector<16x128xf32>
    %c64_338 = arith.constant 64 : index
    %c0_339 = arith.constant 0 : index
    %422 = vector.load %arg5[%c64_338, %c0_339] : memref<144x16xbf16, #tpu.memory_space<vmem>>, vector<16x16xbf16>
    %cst_340 = arith.constant dense<0.000000e+00> : vector<16x128xf32>
    %423 = tpu.matmul %422, %398, %cst_340 {dimension_numbers = #tpu.dot_dimension_numbers<[1], [0], [0], [1], [0, 0, 1, 1], [], []>} : vector<16x16xbf16>, vector<16x128xbf16>, vector<16x128xf32> -> vector<16x128xf32>
    %424 = arith.truncf %423 : vector<16x128xf32> to vector<16x128xbf16>
    %c6272 = arith.constant 6272 : index
    %c0_341 = arith.constant 0 : index
    %425 = vector.load %arg8[%c6272, %c0_341] : memref<8064x128xbf16, #tpu.memory_space<vmem>>, vector<128x128xbf16>
    %cst_342 = arith.constant dense<0.000000e+00> : vector<16x128xf32>
    %426 = tpu.matmul %424, %425, %cst_342 {dimension_numbers = #tpu.dot_dimension_numbers<[1], [0], [0], [1], [0, 0, 1, 1], [], []>} : vector<16x128xbf16>, vector<128x128xbf16>, vector<16x128xf32> -> vector<16x128xf32>
    %427 = arith.addf %421, %426 : vector<16x128xf32>
    %c80_343 = arith.constant 80 : index
    %c0_344 = arith.constant 0 : index
    %428 = vector.load %arg5[%c80_343, %c0_344] : memref<144x16xbf16, #tpu.memory_space<vmem>>, vector<16x16xbf16>
    %cst_345 = arith.constant dense<0.000000e+00> : vector<16x128xf32>
    %429 = tpu.matmul %428, %398, %cst_345 {dimension_numbers = #tpu.dot_dimension_numbers<[1], [0], [0], [1], [0, 0, 1, 1], [], []>} : vector<16x16xbf16>, vector<16x128xbf16>, vector<16x128xf32> -> vector<16x128xf32>
    %430 = arith.truncf %429 : vector<16x128xf32> to vector<16x128xbf16>
    %c6400 = arith.constant 6400 : index
    %c0_346 = arith.constant 0 : index
    %431 = vector.load %arg8[%c6400, %c0_346] : memref<8064x128xbf16, #tpu.memory_space<vmem>>, vector<128x128xbf16>
    %cst_347 = arith.constant dense<0.000000e+00> : vector<16x128xf32>
    %432 = tpu.matmul %430, %431, %cst_347 {dimension_numbers = #tpu.dot_dimension_numbers<[1], [0], [0], [1], [0, 0, 1, 1], [], []>} : vector<16x128xbf16>, vector<128x128xbf16>, vector<16x128xf32> -> vector<16x128xf32>
    %433 = arith.addf %427, %432 : vector<16x128xf32>
    %c96_348 = arith.constant 96 : index
    %c0_349 = arith.constant 0 : index
    %434 = vector.load %arg5[%c96_348, %c0_349] : memref<144x16xbf16, #tpu.memory_space<vmem>>, vector<16x16xbf16>
    %cst_350 = arith.constant dense<0.000000e+00> : vector<16x128xf32>
    %435 = tpu.matmul %434, %398, %cst_350 {dimension_numbers = #tpu.dot_dimension_numbers<[1], [0], [0], [1], [0, 0, 1, 1], [], []>} : vector<16x16xbf16>, vector<16x128xbf16>, vector<16x128xf32> -> vector<16x128xf32>
    %436 = arith.truncf %435 : vector<16x128xf32> to vector<16x128xbf16>
    %c6528 = arith.constant 6528 : index
    %c0_351 = arith.constant 0 : index
    %437 = vector.load %arg8[%c6528, %c0_351] : memref<8064x128xbf16, #tpu.memory_space<vmem>>, vector<128x128xbf16>
    %cst_352 = arith.constant dense<0.000000e+00> : vector<16x128xf32>
    %438 = tpu.matmul %436, %437, %cst_352 {dimension_numbers = #tpu.dot_dimension_numbers<[1], [0], [0], [1], [0, 0, 1, 1], [], []>} : vector<16x128xbf16>, vector<128x128xbf16>, vector<16x128xf32> -> vector<16x128xf32>
    %439 = arith.addf %433, %438 : vector<16x128xf32>
    %c112_353 = arith.constant 112 : index
    %c0_354 = arith.constant 0 : index
    %440 = vector.load %arg5[%c112_353, %c0_354] : memref<144x16xbf16, #tpu.memory_space<vmem>>, vector<16x16xbf16>
    %cst_355 = arith.constant dense<0.000000e+00> : vector<16x128xf32>
    %441 = tpu.matmul %440, %398, %cst_355 {dimension_numbers = #tpu.dot_dimension_numbers<[1], [0], [0], [1], [0, 0, 1, 1], [], []>} : vector<16x16xbf16>, vector<16x128xbf16>, vector<16x128xf32> -> vector<16x128xf32>
    %442 = arith.truncf %441 : vector<16x128xf32> to vector<16x128xbf16>
    %c6656 = arith.constant 6656 : index
    %c0_356 = arith.constant 0 : index
    %443 = vector.load %arg8[%c6656, %c0_356] : memref<8064x128xbf16, #tpu.memory_space<vmem>>, vector<128x128xbf16>
    %cst_357 = arith.constant dense<0.000000e+00> : vector<16x128xf32>
    %444 = tpu.matmul %442, %443, %cst_357 {dimension_numbers = #tpu.dot_dimension_numbers<[1], [0], [0], [1], [0, 0, 1, 1], [], []>} : vector<16x128xbf16>, vector<128x128xbf16>, vector<16x128xf32> -> vector<16x128xf32>
    %445 = arith.addf %439, %444 : vector<16x128xf32>
    %c128_358 = arith.constant 128 : index
    %c0_359 = arith.constant 0 : index
    %446 = vector.load %arg5[%c128_358, %c0_359] : memref<144x16xbf16, #tpu.memory_space<vmem>>, vector<16x16xbf16>
    %cst_360 = arith.constant dense<0.000000e+00> : vector<16x128xf32>
    %447 = tpu.matmul %446, %398, %cst_360 {dimension_numbers = #tpu.dot_dimension_numbers<[1], [0], [0], [1], [0, 0, 1, 1], [], []>} : vector<16x16xbf16>, vector<16x128xbf16>, vector<16x128xf32> -> vector<16x128xf32>
    %448 = arith.truncf %447 : vector<16x128xf32> to vector<16x128xbf16>
    %c6784 = arith.constant 6784 : index
    %c0_361 = arith.constant 0 : index
    %449 = vector.load %arg8[%c6784, %c0_361] : memref<8064x128xbf16, #tpu.memory_space<vmem>>, vector<128x128xbf16>
    %cst_362 = arith.constant dense<0.000000e+00> : vector<16x128xf32>
    %450 = tpu.matmul %448, %449, %cst_362 {dimension_numbers = #tpu.dot_dimension_numbers<[1], [0], [0], [1], [0, 0, 1, 1], [], []>} : vector<16x128xbf16>, vector<128x128xbf16>, vector<16x128xf32> -> vector<16x128xf32>
    %451 = arith.addf %445, %450 : vector<16x128xf32>
    %c5 = arith.constant 5 : index
    %c0_363 = arith.constant 0 : index
    %452 = vector.load %arg9[%c5, %c0_363] : memref<7x128xf32, #tpu.memory_space<vmem>>, vector<1x128xf32>
    %453 = vector.broadcast %452 : vector<1x128xf32> to vector<16x128xf32>
    %454 = arith.addf %451, %453 : vector<16x128xf32>
    %cst_364 = arith.constant 0.000000e+00 : f32
    %455 = vector.broadcast %cst_364 : f32 to vector<16x128xf32>
    %456 = arith.maximumf %454, %455 : vector<16x128xf32>
    %457 = arith.truncf %456 : vector<16x128xf32> to vector<16x128xbf16>
    %c0_365 = arith.constant 0 : index
    %c0_366 = arith.constant 0 : index
    %458 = vector.load %arg5[%c0_365, %c0_366] : memref<144x16xbf16, #tpu.memory_space<vmem>>, vector<16x16xbf16>
    %cst_367 = arith.constant dense<0.000000e+00> : vector<16x128xf32>
    %459 = tpu.matmul %458, %457, %cst_367 {dimension_numbers = #tpu.dot_dimension_numbers<[1], [0], [0], [1], [0, 0, 1, 1], [], []>} : vector<16x16xbf16>, vector<16x128xbf16>, vector<16x128xf32> -> vector<16x128xf32>
    %460 = arith.truncf %459 : vector<16x128xf32> to vector<16x128xbf16>
    %c6912 = arith.constant 6912 : index
    %c0_368 = arith.constant 0 : index
    %461 = vector.load %arg8[%c6912, %c0_368] : memref<8064x128xbf16, #tpu.memory_space<vmem>>, vector<128x128xbf16>
    %cst_369 = arith.constant dense<0.000000e+00> : vector<16x128xf32>
    %462 = tpu.matmul %460, %461, %cst_369 {dimension_numbers = #tpu.dot_dimension_numbers<[1], [0], [0], [1], [0, 0, 1, 1], [], []>} : vector<16x128xbf16>, vector<128x128xbf16>, vector<16x128xf32> -> vector<16x128xf32>
    %c16_370 = arith.constant 16 : index
    %c0_371 = arith.constant 0 : index
    %463 = vector.load %arg5[%c16_370, %c0_371] : memref<144x16xbf16, #tpu.memory_space<vmem>>, vector<16x16xbf16>
    %cst_372 = arith.constant dense<0.000000e+00> : vector<16x128xf32>
    %464 = tpu.matmul %463, %457, %cst_372 {dimension_numbers = #tpu.dot_dimension_numbers<[1], [0], [0], [1], [0, 0, 1, 1], [], []>} : vector<16x16xbf16>, vector<16x128xbf16>, vector<16x128xf32> -> vector<16x128xf32>
    %465 = arith.truncf %464 : vector<16x128xf32> to vector<16x128xbf16>
    %c7040 = arith.constant 7040 : index
    %c0_373 = arith.constant 0 : index
    %466 = vector.load %arg8[%c7040, %c0_373] : memref<8064x128xbf16, #tpu.memory_space<vmem>>, vector<128x128xbf16>
    %cst_374 = arith.constant dense<0.000000e+00> : vector<16x128xf32>
    %467 = tpu.matmul %465, %466, %cst_374 {dimension_numbers = #tpu.dot_dimension_numbers<[1], [0], [0], [1], [0, 0, 1, 1], [], []>} : vector<16x128xbf16>, vector<128x128xbf16>, vector<16x128xf32> -> vector<16x128xf32>
    %468 = arith.addf %462, %467 : vector<16x128xf32>
    %c32_375 = arith.constant 32 : index
    %c0_376 = arith.constant 0 : index
    %469 = vector.load %arg5[%c32_375, %c0_376] : memref<144x16xbf16, #tpu.memory_space<vmem>>, vector<16x16xbf16>
    %cst_377 = arith.constant dense<0.000000e+00> : vector<16x128xf32>
    %470 = tpu.matmul %469, %457, %cst_377 {dimension_numbers = #tpu.dot_dimension_numbers<[1], [0], [0], [1], [0, 0, 1, 1], [], []>} : vector<16x16xbf16>, vector<16x128xbf16>, vector<16x128xf32> -> vector<16x128xf32>
    %471 = arith.truncf %470 : vector<16x128xf32> to vector<16x128xbf16>
    %c7168 = arith.constant 7168 : index
    %c0_378 = arith.constant 0 : index
    %472 = vector.load %arg8[%c7168, %c0_378] : memref<8064x128xbf16, #tpu.memory_space<vmem>>, vector<128x128xbf16>
    %cst_379 = arith.constant dense<0.000000e+00> : vector<16x128xf32>
    %473 = tpu.matmul %471, %472, %cst_379 {dimension_numbers = #tpu.dot_dimension_numbers<[1], [0], [0], [1], [0, 0, 1, 1], [], []>} : vector<16x128xbf16>, vector<128x128xbf16>, vector<16x128xf32> -> vector<16x128xf32>
    %474 = arith.addf %468, %473 : vector<16x128xf32>
    %c48_380 = arith.constant 48 : index
    %c0_381 = arith.constant 0 : index
    %475 = vector.load %arg5[%c48_380, %c0_381] : memref<144x16xbf16, #tpu.memory_space<vmem>>, vector<16x16xbf16>
    %cst_382 = arith.constant dense<0.000000e+00> : vector<16x128xf32>
    %476 = tpu.matmul %475, %457, %cst_382 {dimension_numbers = #tpu.dot_dimension_numbers<[1], [0], [0], [1], [0, 0, 1, 1], [], []>} : vector<16x16xbf16>, vector<16x128xbf16>, vector<16x128xf32> -> vector<16x128xf32>
    %477 = arith.truncf %476 : vector<16x128xf32> to vector<16x128xbf16>
    %c7296 = arith.constant 7296 : index
    %c0_383 = arith.constant 0 : index
    %478 = vector.load %arg8[%c7296, %c0_383] : memref<8064x128xbf16, #tpu.memory_space<vmem>>, vector<128x128xbf16>
    %cst_384 = arith.constant dense<0.000000e+00> : vector<16x128xf32>
    %479 = tpu.matmul %477, %478, %cst_384 {dimension_numbers = #tpu.dot_dimension_numbers<[1], [0], [0], [1], [0, 0, 1, 1], [], []>} : vector<16x128xbf16>, vector<128x128xbf16>, vector<16x128xf32> -> vector<16x128xf32>
    %480 = arith.addf %474, %479 : vector<16x128xf32>
    %c64_385 = arith.constant 64 : index
    %c0_386 = arith.constant 0 : index
    %481 = vector.load %arg5[%c64_385, %c0_386] : memref<144x16xbf16, #tpu.memory_space<vmem>>, vector<16x16xbf16>
    %cst_387 = arith.constant dense<0.000000e+00> : vector<16x128xf32>
    %482 = tpu.matmul %481, %457, %cst_387 {dimension_numbers = #tpu.dot_dimension_numbers<[1], [0], [0], [1], [0, 0, 1, 1], [], []>} : vector<16x16xbf16>, vector<16x128xbf16>, vector<16x128xf32> -> vector<16x128xf32>
    %483 = arith.truncf %482 : vector<16x128xf32> to vector<16x128xbf16>
    %c7424 = arith.constant 7424 : index
    %c0_388 = arith.constant 0 : index
    %484 = vector.load %arg8[%c7424, %c0_388] : memref<8064x128xbf16, #tpu.memory_space<vmem>>, vector<128x128xbf16>
    %cst_389 = arith.constant dense<0.000000e+00> : vector<16x128xf32>
    %485 = tpu.matmul %483, %484, %cst_389 {dimension_numbers = #tpu.dot_dimension_numbers<[1], [0], [0], [1], [0, 0, 1, 1], [], []>} : vector<16x128xbf16>, vector<128x128xbf16>, vector<16x128xf32> -> vector<16x128xf32>
    %486 = arith.addf %480, %485 : vector<16x128xf32>
    %c80_390 = arith.constant 80 : index
    %c0_391 = arith.constant 0 : index
    %487 = vector.load %arg5[%c80_390, %c0_391] : memref<144x16xbf16, #tpu.memory_space<vmem>>, vector<16x16xbf16>
    %cst_392 = arith.constant dense<0.000000e+00> : vector<16x128xf32>
    %488 = tpu.matmul %487, %457, %cst_392 {dimension_numbers = #tpu.dot_dimension_numbers<[1], [0], [0], [1], [0, 0, 1, 1], [], []>} : vector<16x16xbf16>, vector<16x128xbf16>, vector<16x128xf32> -> vector<16x128xf32>
    %489 = arith.truncf %488 : vector<16x128xf32> to vector<16x128xbf16>
    %c7552 = arith.constant 7552 : index
    %c0_393 = arith.constant 0 : index
    %490 = vector.load %arg8[%c7552, %c0_393] : memref<8064x128xbf16, #tpu.memory_space<vmem>>, vector<128x128xbf16>
    %cst_394 = arith.constant dense<0.000000e+00> : vector<16x128xf32>
    %491 = tpu.matmul %489, %490, %cst_394 {dimension_numbers = #tpu.dot_dimension_numbers<[1], [0], [0], [1], [0, 0, 1, 1], [], []>} : vector<16x128xbf16>, vector<128x128xbf16>, vector<16x128xf32> -> vector<16x128xf32>
    %492 = arith.addf %486, %491 : vector<16x128xf32>
    %c96_395 = arith.constant 96 : index
    %c0_396 = arith.constant 0 : index
    %493 = vector.load %arg5[%c96_395, %c0_396] : memref<144x16xbf16, #tpu.memory_space<vmem>>, vector<16x16xbf16>
    %cst_397 = arith.constant dense<0.000000e+00> : vector<16x128xf32>
    %494 = tpu.matmul %493, %457, %cst_397 {dimension_numbers = #tpu.dot_dimension_numbers<[1], [0], [0], [1], [0, 0, 1, 1], [], []>} : vector<16x16xbf16>, vector<16x128xbf16>, vector<16x128xf32> -> vector<16x128xf32>
    %495 = arith.truncf %494 : vector<16x128xf32> to vector<16x128xbf16>
    %c7680 = arith.constant 7680 : index
    %c0_398 = arith.constant 0 : index
    %496 = vector.load %arg8[%c7680, %c0_398] : memref<8064x128xbf16, #tpu.memory_space<vmem>>, vector<128x128xbf16>
    %cst_399 = arith.constant dense<0.000000e+00> : vector<16x128xf32>
    %497 = tpu.matmul %495, %496, %cst_399 {dimension_numbers = #tpu.dot_dimension_numbers<[1], [0], [0], [1], [0, 0, 1, 1], [], []>} : vector<16x128xbf16>, vector<128x128xbf16>, vector<16x128xf32> -> vector<16x128xf32>
    %498 = arith.addf %492, %497 : vector<16x128xf32>
    %c112_400 = arith.constant 112 : index
    %c0_401 = arith.constant 0 : index
    %499 = vector.load %arg5[%c112_400, %c0_401] : memref<144x16xbf16, #tpu.memory_space<vmem>>, vector<16x16xbf16>
    %cst_402 = arith.constant dense<0.000000e+00> : vector<16x128xf32>
    %500 = tpu.matmul %499, %457, %cst_402 {dimension_numbers = #tpu.dot_dimension_numbers<[1], [0], [0], [1], [0, 0, 1, 1], [], []>} : vector<16x16xbf16>, vector<16x128xbf16>, vector<16x128xf32> -> vector<16x128xf32>
    %501 = arith.truncf %500 : vector<16x128xf32> to vector<16x128xbf16>
    %c7808 = arith.constant 7808 : index
    %c0_403 = arith.constant 0 : index
    %502 = vector.load %arg8[%c7808, %c0_403] : memref<8064x128xbf16, #tpu.memory_space<vmem>>, vector<128x128xbf16>
    %cst_404 = arith.constant dense<0.000000e+00> : vector<16x128xf32>
    %503 = tpu.matmul %501, %502, %cst_404 {dimension_numbers = #tpu.dot_dimension_numbers<[1], [0], [0], [1], [0, 0, 1, 1], [], []>} : vector<16x128xbf16>, vector<128x128xbf16>, vector<16x128xf32> -> vector<16x128xf32>
    %504 = arith.addf %498, %503 : vector<16x128xf32>
    %c128_405 = arith.constant 128 : index
    %c0_406 = arith.constant 0 : index
    %505 = vector.load %arg5[%c128_405, %c0_406] : memref<144x16xbf16, #tpu.memory_space<vmem>>, vector<16x16xbf16>
    %cst_407 = arith.constant dense<0.000000e+00> : vector<16x128xf32>
    %506 = tpu.matmul %505, %457, %cst_407 {dimension_numbers = #tpu.dot_dimension_numbers<[1], [0], [0], [1], [0, 0, 1, 1], [], []>} : vector<16x16xbf16>, vector<16x128xbf16>, vector<16x128xf32> -> vector<16x128xf32>
    %507 = arith.truncf %506 : vector<16x128xf32> to vector<16x128xbf16>
    %c7936 = arith.constant 7936 : index
    %c0_408 = arith.constant 0 : index
    %508 = vector.load %arg8[%c7936, %c0_408] : memref<8064x128xbf16, #tpu.memory_space<vmem>>, vector<128x128xbf16>
    %cst_409 = arith.constant dense<0.000000e+00> : vector<16x128xf32>
    %509 = tpu.matmul %507, %508, %cst_409 {dimension_numbers = #tpu.dot_dimension_numbers<[1], [0], [0], [1], [0, 0, 1, 1], [], []>} : vector<16x128xbf16>, vector<128x128xbf16>, vector<16x128xf32> -> vector<16x128xf32>
    %510 = arith.addf %504, %509 : vector<16x128xf32>
    %c6 = arith.constant 6 : index
    %c0_410 = arith.constant 0 : index
    %511 = vector.load %arg9[%c6, %c0_410] : memref<7x128xf32, #tpu.memory_space<vmem>>, vector<1x128xf32>
    %512 = vector.broadcast %511 : vector<1x128xf32> to vector<16x128xf32>
    %513 = arith.addf %510, %512 : vector<16x128xf32>
    %514 = arith.extf %398 : vector<16x128xbf16> to vector<16x128xf32>
    %515 = arith.addf %513, %514 : vector<16x128xf32>
    %cst_411 = arith.constant 0.000000e+00 : f32
    %516 = vector.broadcast %cst_411 : f32 to vector<16x128xf32>
    %517 = arith.maximumf %515, %516 : vector<16x128xf32>
    %c0_412 = arith.constant 0 : index
    %c0_413 = arith.constant 0 : index
    %c0_414 = arith.constant 0 : index
    %518 = vector.load %arg12[%c0_412, %c0_413, %c0_414] : memref<1x16x128xf32, #tpu.memory_space<vmem>>, vector<1x16x128xf32>
    %519 = vector.shape_cast %518 : vector<1x16x128xf32> to vector<16x128xf32>
    %520 = vector.shape_cast %517 : vector<16x128xf32> to vector<1x16x128xf32>
    tpu.vector_store %arg12[%c0_412, %c0_413, %c0_414], %520 {strides = array<i32>} : memref<1x16x128xf32, #tpu.memory_space<vmem>>, vector<1x16x128xf32>,
    return
  }
  func.func @transform_0(%arg0: i32) -> (i32, i32, i32) {
    %c0_i32 = arith.constant 0 : i32
    %c0_i32_0 = arith.constant 0 : i32
    %c0_i32_1 = arith.constant 0 : i32
    return %arg0, %c0_i32, %c0_i32_0 : i32, i32, i32
  }
  func.func @transform_1(%arg0: i32) -> (i32, i32) {
    %c0_i32 = arith.constant 0 : i32
    %c0_i32_0 = arith.constant 0 : i32
    %c0_i32_1 = arith.constant 0 : i32
    return %c0_i32, %c0_i32_0 : i32, i32
  }
  func.func @transform_2(%arg0: i32) -> (i32, i32) {
    %c0_i32 = arith.constant 0 : i32
    %c0_i32_0 = arith.constant 0 : i32
    %c0_i32_1 = arith.constant 0 : i32
    return %c0_i32, %c0_i32_0 : i32, i32
  }
  func.func @transform_3(%arg0: i32) -> (i32, i32) {
    %c0_i32 = arith.constant 0 : i32
    %c0_i32_0 = arith.constant 0 : i32
    %c0_i32_1 = arith.constant 0 : i32
    return %c0_i32, %c0_i32_0 : i32, i32
  }
  func.func @transform_4(%arg0: i32) -> (i32, i32) {
    %c0_i32 = arith.constant 0 : i32
    %c0_i32_0 = arith.constant 0 : i32
    %c0_i32_1 = arith.constant 0 : i32
    return %c0_i32, %c0_i32_0 : i32, i32
  }
  func.func @transform_5(%arg0: i32) -> (i32, i32) {
    %c0_i32 = arith.constant 0 : i32
    %c0_i32_0 = arith.constant 0 : i32
    %c0_i32_1 = arith.constant 0 : i32
    return %c0_i32, %c0_i32_0 : i32, i32
  }
  func.func @transform_6(%arg0: i32) -> (i32, i32) {
    %c0_i32 = arith.constant 0 : i32
    %c0_i32_0 = arith.constant 0 : i32
    %c0_i32_1 = arith.constant 0 : i32
    return %c0_i32, %c0_i32_0 : i32, i32
  }
  func.func @transform_7(%arg0: i32) -> (i32, i32) {
    %c0_i32 = arith.constant 0 : i32
    %c0_i32_0 = arith.constant 0 : i32
    %c0_i32_1 = arith.constant 0 : i32
    return %c0_i32, %c0_i32_0 : i32, i32
  }
  func.func @transform_8(%arg0: i32) -> (i32, i32) {
    %c0_i32 = arith.constant 0 : i32
    %c0_i32_0 = arith.constant 0 : i32
    %c0_i32_1 = arith.constant 0 : i32
    return %c0_i32, %c0_i32_0 : i32, i32
  }
  func.func @transform_9(%arg0: i32) -> (i32, i32) {
    %c0_i32 = arith.constant 0 : i32
    %c0_i32_0 = arith.constant 0 : i32
    %c0_i32_1 = arith.constant 0 : i32
    return %c0_i32, %c0_i32_0 : i32, i32
  }
  func.func @transform_10(%arg0: i32) -> (i32, i32) {
    %c0_i32 = arith.constant 0 : i32
    %c0_i32_0 = arith.constant 0 : i32
    %c0_i32_1 = arith.constant 0 : i32
    return %c0_i32, %c0_i32_0 : i32, i32
  }
  func.func @transform_11(%arg0: i32) -> (i32, i32, i32) {
    %c0_i32 = arith.constant 0 : i32
    %c0_i32_0 = arith.constant 0 : i32
    %c0_i32_1 = arith.constant 0 : i32
    return %arg0, %c0_i32, %c0_i32_0 : i32, i32, i32
  }
}

</mosaic_0001>

<bundles_post_ra>
// kernel: backbone_forward.1
= control target key start
LH: loop header
LB: loop body
LE: loop exit
PB: predicated region body
PF: predicated region fallthrough
CT: control target
= control target key end

     0   :  { %16 = vsyncpa [#allocation3], 0  ;;  %s19595_s0 = inlined_call_operand.vmem [shape: bf16[2,256,128], index: 0, kind: input, shape index: {}]   ;;  %s19596_s1 = inlined_call_operand.hbm [shape: bf16[576,256], index: 1, kind: input, shape index: {}]   ;;  %s19597_s2 = inlined_call_operand.vmem [shape: bf16[576,64], index: 2, kind: input, shape index: {}]   ;;  %s19598_s3 = inlined_call_operand.vmem [shape: bf16[144,64], index: 3, kind: input, shape index: {}]   ;;  %s19599_s4 = inlined_call_operand.vmem [shape: bf16[144,16], index: 4, kind: input, shape index: {}]   ;;  %s19600_s5 = inlined_call_operand.vmem [shape: bf16[128,128], index: 5, kind: input, shape index: {}]   ;;  %s19601_s6 = inlined_call_operand.vmem [shape: f32[1,128], index: 6, kind: input, shape index: {}]   ;;  %s19602_s7 = inlined_call_operand.vmem [shape: bf16[8064,128], index: 7, kind: input, shape index: {}]   ;;  %s19603_s8 = inlined_call_operand.vmem [shape: f32[7,128], index: 8, kind: input, shape index: {}]   ;;  %s19604_s9 = inlined_call_operand.hbm [shape: bf16[1152,256], index: 9, kind: input, shape index: {}]   ;;  %s19605_s10 = inlined_call_operand.vmem [shape: f32[1,256], index: 10, kind: input, shape index: {}]   ;;  %s19606_s11 = inlined_call_operand.hbm [shape: f32[2,16,128], index: 11, kind: output, shape index: {}]  }
   0x1   :  { %17 = vsyncpa [#allocation6], 0 }
   0x2   :  { %18 = vsyncpa [#allocation4], 0 }
   0x3   :  { %20 = vsyncpa [#allocation4 + $0x1], 0  ;;  %s15807_s17 = smov 0   ;;  %s15809_s18 = smov 0  }
   0x4   :  { %s15811_s19 = smov 0   ;;  %s15813_s20 = smov 0  }
   0x5 LB: > { %19608 = sst [smem:[#allocation11_spill]] %s15735_s19  ;;  %s15828_s21 = sadd.s32 4294967295, %s15739_s20   ;;  %s15739_s20 = sphi %s15813_s20, %s19617_s20   ;;  %s15735_s19 = sphi %s15811_s19, %s19614_s19   ;;  %s15731_s18 = sphi %s15809_s18, %s19616_s18   ;;  %s15727_s17 = sphi %s15807_s17, %s19615_s17  }
   0x6   : > { %s11245_s22 = sadd.s32 4294967294, %s15739_s20   ;;  %s15832_s23 = sadd.s32 1, %s15739_s20  }
   0x7   : > { %s269_s24 = sadd.s32 1, %s15735_s19  ;;  %s266_s25 = ssub.s32 %s15739_s20, %s15832_s23 }
   0x8   : > { %p279_p0 = scmp.ne.s32.totalorder %s15735_s19, %s15731_s18  ;;  %p267_p1 = scmp.eq.s32.totalorder %s266_s25, 0 }
   0x9   : > { %p280_p2 = scmp.eq.s32.totalorder %s15828_s21, 1  ;;  %p285_p3 = scmp.ne.s32.totalorder %s15731_s18, %s15727_s17 }
   0xa   : > { %p286_p4 = scmp.eq.s32.totalorder %s11245_s22, 1  ;;  %p11246_p7 = scmp.ge.s32.totalorder %s15739_s20, 1 }
   0xb   : > { %s15843_s26 = scalar_select %p267_p1, %s15735_s19, %s269_s24  }
   0xc   : > { %p15845_p5 = por %p280_p2, %p279_p0  ;;  %p15849_p6 = por %p286_p4, %p285_p3 }
   0xd   : > { %19609 = sst [smem:[#allocation12_spill]] %s15843_s26  ;;  %p293_p8 = scmp.lt.s32.totalorder %s15739_s20, 3 }
   0xe   : > { %p15462_p9 = scmp.eq.s32.totalorder %s15828_s21, 0  ;;  %s304_s13 = sshll.u32 %s19596_s1, 4  ;;  %s305_s13 = int_to_ptr.hbm [resolvable:$true] %s304_s13 }
   0xf   : > { %p15856_p10 = pnand %p11246_p7, %p293_p8  ;;  %s15741_s14 = smov [#allocation2]  }
  0x10   : > { %s306_s15 = sshll.u32 %s15741_s14, 4  ;;  %s339_s24 = sshll.u32 %s19604_s9, 4  ;;  %s307_s15 = int_to_ptr.vmem [resolvable:$true] %s306_s15  ;;  %s340_s24 = int_to_ptr.hbm [resolvable:$true] %s339_s24 }
  0x11   : > { %p15451_p11 = pneg %p15856_p10  ;;  %s15742_s25 = smov 128  }
  0x12   : > { %s15743_s26 = smov 8   ;;  %s15744_s19 = smov [#allocation5]  }
  0x13   : > { %p15452_p12 = pnand %p15462_p9, %p15451_p11  ;;  %s341_s30 = sshll.u32 %s15744_s19, 4  ;;  %s342_s30 = int_to_ptr.vmem [resolvable:$true] %s341_s30 }
  0x14   : > { %368 = sbr.rel (%p15856_p10) target bundleno = 6299 (0x189b), region = 64 }
  0x15   : > { %15454 = dma.hbm_to_vmem [thread:$0]  (!%p15452_p12), %s305_s13, 9216, %s307_s15, [#allocation3], %s15742_s25, %s15742_s25, %s15743_s26  }
  0x16   : > { %15457 = dma.hbm_to_vmem [thread:$0]  (!%p15452_p12), %s340_s24, 18432, %s342_s30, [#allocation6], %s15742_s25, %s15742_s25, %s15743_s26  }
  0x19   : > { %15714 = dma.done.wait (%p15462_p9), [#allocation3], 9216  }
  0x1a   : > { %15716 = vsyncadd (%p15462_p9), [#allocation3], 4294958080 }
  0x1b   : > { %15718 = dma.done.wait (%p15462_p9), [#allocation6], 18432  }
  0x1c   : > { %15720 = vsyncadd (%p15462_p9), [#allocation6], 4294948864  ;;  %v14657_v0 = vld [vmem:[%s19600_s5 + $0x38] sm:$0xff]  ;;  %v14656_v1 = vld [vmem:[%s19600_s5 + $0x30] sm:$0xff]  ;;  %p414_p13 = scmp.lt.s32.totalorder %s15828_s21, 1  ;;  %vm1831_vm0 = vcmask 523264  }
  0x1d   : > { %616 = vmatpush.bf16.msra.mxu0 %v14657_v0  ;;  %v14655_v2 = vld [vmem:[%s19600_s5 + $0x28] sm:$0xff]  ;;  %v14654_v3 = vld [vmem:[%s19600_s5 + $0x20] sm:$0xff]  ;;  %v14653_v4 = vld [vmem:[%s19600_s5 + $0x18] sm:$0xff]  ;;  %vm8465_vm1 = vcmask 130048   ;;  %s15432_s14 = sshll.u32 %s15828_s21, 4 }
  0x1e   : > { %v14652_v5 = vld [vmem:[%s19600_s5 + $0x10] sm:$0xff]  ;;  %s415_s12 = scalar_select %p414_p13, %s15828_s21, 1  ;;  %v14651_v6 = vld [vmem:[%s19600_s5 + $0x8] sm:$0xff]  ;;  %v14650_v7 = vld [vmem:[%s19600_s5] sm:$0xff] }
  0x1f   : > { %v15923_v18 = vld [vmem:[%s19601_s6] ss:$0 sm:$0xff]  ;;  %s11157_s24 = scalar_lea.hbm %s19606_s11, %s15432_s14  ;;  %s15689_s14 = scalar_lea.hbm %s19606_s11, 32 }
  0x20   : > { %s14633_s26 = sshll.u32 %s415_s12, 7  ;;  %s11160_s30 = sshll.u32 %s11157_s24, 4  ;;  %s11161_s30 = int_to_ptr.hbm [resolvable:$true] %s11160_s30 }
  0x21   : > { %617 = vmatpush.bf16.msra.mxu0 %v14656_v1  ;;  %s15909_s22 = scalar_lea.vmem %s19595_s0, %s14633_s26  ;;  %s411_s26 = sand.u32 1, %s15731_s18  }
  0x22   : > { %v14634_v8 = vld [vmem:[%s15909_s22] sm:$0xff]  ;;  %v14635_v9 = vld [vmem:[%s15909_s22 + $0x8] sm:$0xff]  ;;  %v14636_v10 = vld [vmem:[%s15909_s22 + $0x10] sm:$0xff]  ;;  %s11253_s29 = sshll.u32 %s411_s26, 4  ;;  %s11146_s21 = scalar_lea.sflag [#allocation4], %s411_s26 }
  0x23   : > { %v14637_v11 = vld [vmem:[%s15909_s22 + $0x18] sm:$0xff]  ;;  %v14638_v12 = vld [vmem:[%s15909_s22 + $0x20] sm:$0xff]  ;;  %v14639_v13 = vld [vmem:[%s15909_s22 + $0x28] sm:$0xff]  ;;  %s413_s15 = scalar_lea.vmem [#allocation7], %s11253_s29  ;;  %s15683_s12 = sshra.s32 %s11161_s30, 4  ;;  %s15684_s12 = int_to_ptr.hbm [resolvable:$true] %s15683_s12 }
  0x24   : > { %v14640_v14 = vld [vmem:[%s15909_s22 + $0x30] sm:$0xff]  ;;  %v14641_v15 = vld [vmem:[%s15909_s22 + $0x38] sm:$0xff]  ;;  %v14642_v16 = vld [vmem:[%s15909_s22 + $0x40] sm:$0xff]  ;;  %s11158_s25 = sshll.u32 %s413_s15, 4  ;;  %s15685_s13 = scalar_lea.hbm %s15684_s12, 16  ;;  %s11159_s25 = int_to_ptr.vmem [resolvable:$true] %s11158_s25 }
  0x25   : > { %618 = vmatpush.bf16.msra.mxu0 %v14655_v2  ;;  %v14643_v25 = vld [vmem:[%s15909_s22 + $0x48] sm:$0xff]  ;;  %v14644_v33 = vld [vmem:[%s15909_s22 + $0x50] sm:$0xff]  ;;  %v14645_v41 = vld [vmem:[%s15909_s22 + $0x58] sm:$0xff]  ;;  %p15686_p0 = scmp.ne.s32.totalorder %s15684_s12, %s15685_s13  ;;  %p15690_p3 = scmp.lt.s32.totalorder %s15684_s12, %s19606_s11 }
  0x26   : > { %v14646_v49 = vld [vmem:[%s15909_s22 + $0x60] sm:$0xff]  ;;  %v14647_v52 = vld [vmem:[%s15909_s22 + $0x68] sm:$0xff]  ;;  %v14648_v55 = vld [vmem:[%s15909_s22 + $0x70] sm:$0xff]  ;;  %p15691_p4 = scmp.lt.s32.totalorder %s15689_s14, %s15685_s13 }
  0x27   : > { %v14649_v58 = vld [vmem:[%s15909_s22 + $0x78] sm:$0xff]  ;;  %p15687_p1 = pnand %p15686_p0, %p15845_p5 }
  0x28   : > { %p15692_p7 = por %p15691_p4, %p15690_p3 }
  0x29   : > { %619 = vmatpush.bf16.msra.mxu0 %v14654_v3  ;;  %p15688_p2 = pneg %p15687_p1 }
  0x2b   : > { %p15693_p8 = pnand %p15692_p7, %p15688_p2 }
  0x2d   : > { %620 = vmatpush.bf16.msra.mxu0 %v14653_v4 }
  0x31   : > { %621 = vmatpush.bf16.msra.mxu0 %v14652_v5 }
  0x35   : > { %622 = vmatpush.bf16.msra.mxu0 %v14651_v6 }
  0x39   : > { %623 = vmatpush.bf16.msra.mxu0 %v14650_v7 }
  0x3c   : > { %624 = vmatmul.bf16.vlgmr.msra.gmra.mxu0 %v14634_v8 }
  0x4c   : > { %629 = vmatmul.bf16.gmra.mxu0 %v14635_v9 }
  0x5c   : > { %634 = vmatmul.bf16.gmra.mxu0 %v14636_v10 }
  0x6c   : > { %639 = vmatmul.bf16.gmra.mxu0 %v14637_v11 }
  0x7c   : > { %644 = vmatmul.bf16.gmra.mxu0 %v14638_v12 }
  0x8c   : > { %649 = vmatmul.bf16.gmra.mxu0 %v14639_v13 }
  0x9c   : > { %654 = vmatmul.bf16.gmra.mxu0 %v14640_v14 }
  0xac   : > { %659 = vmatmul.bf16.gmra.mxu0 %v14641_v15 }
  0xb9   : > { %v625_v17 = vpop.f32.mrf.mxu0 }
  0xba   : > { %v626_v19 = vadd.f32 %v15923_v18, %v625_v17 }
  0xbc   : > { %664 = vmatmul.bf16.gmra.mxu0 %v14642_v16  ;;  %v705_v22 = vmax.f32 %v626_v19, 0.0 }
  0xc1   : > { %v627_v20 = vpop.f32.mrf.mxu0 }
  0xc2   : > { %v628_v21 = vadd.f32 %v15923_v18, %v627_v20 }
  0xc4   : > { %v706_v23 = vmax.f32 %v628_v21, 0.0 }
  0xc6   : > { %v15927_v24 = vpack.c.bf16 %v706_v23, %v705_v22 }
  0xc9   : > { %v630_v26 = vpop.f32.mrf.mxu0 }
  0xca   : > { %v631_v27 = vadd.f32 %v15923_v18, %v630_v26 }
  0xcc   : > { %669 = vmatmul.bf16.gmra.mxu0 %v14643_v25  ;;  %v707_v30 = vmax.f32 %v631_v27, 0.0  ;;  %v11354_v27 = vld [vmem:[#allocation2] sm:$0xf] }
  0xd1   : > { %v632_v28 = vpop.f32.mrf.mxu0 }
  0xd2   : > { %v633_v29 = vadd.f32 %v15923_v18, %v632_v28  ;;  %v14659_v28 = vld [vmem:[#allocation2 + $0x4] sm:$0xf0] }
  0xd4   : > { %v708_v31 = vmax.f32 %v633_v29, 0.0  ;;  %v11386_v29 = vld [vmem:[#allocation2 + $0x40] sm:$0xf] }
  0xd6   : > { %v15932_v32 = vpack.c.bf16 %v708_v31, %v707_v30  ;;  %v11355_v30 = vor.u32 %v14659_v28, %v11354_v27  ;;  %v14667_v31 = vld [vmem:[#allocation2 + $0x44] sm:$0xf0] }
  0xd9   : > { %v635_v34 = vpop.f32.mrf.mxu0 }
  0xda   : > { %v636_v35 = vadd.f32 %v15923_v18, %v635_v34 }
  0xdc   : > { %674 = vmatmul.bf16.gmra.mxu0 %v14644_v33  ;;  %v709_v38 = vmax.f32 %v636_v35, 0.0  ;;  %v11387_v33 = vor.u32 %v14667_v31, %v11386_v29 }
  0xe1   : > { %v637_v36 = vpop.f32.mrf.mxu0 }
  0xe2   : > { %v638_v37 = vadd.f32 %v15923_v18, %v637_v36  ;;  %v11362_v36 = vld [vmem:[#allocation2 + $0x10] sm:$0xf] }
  0xe4   : > { %v710_v39 = vmax.f32 %v638_v37, 0.0  ;;  %v14661_v37 = vld [vmem:[#allocation2 + $0x14] sm:$0xf0] }
  0xe6   : > { %v15937_v40 = vpack.c.bf16 %v710_v39, %v709_v38  ;;  %v11394_v38 = vld [vmem:[#allocation2 + $0x50] sm:$0xf]  ;;  %v11363_v39 = vor.u32 %v14661_v37, %v11362_v36 }
  0xe9   : > { %v640_v42 = vpop.f32.mrf.mxu0 }
  0xea   : > { %v641_v43 = vadd.f32 %v15923_v18, %v640_v42 }
  0xec   : > { %679 = vmatmul.bf16.gmra.mxu0 %v14645_v41  ;;  %v711_v46 = vmax.f32 %v641_v43, 0.0  ;;  %v14669_v41 = vld [vmem:[#allocation2 + $0x54] sm:$0xf0] }
  0xed   : > { %v11395_v42 = vor.u32 %v14669_v41, %v11394_v38 }
  0xf1   : > { %v642_v44 = vpop.f32.mrf.mxu0 }
  0xf2   : > { %v643_v45 = vadd.f32 %v15923_v18, %v642_v44 }
  0xf4   : > { %v712_v47 = vmax.f32 %v643_v45, 0.0  ;;  %v11370_v45 = vld [vmem:[#allocation2 + $0x20] sm:$0xf] }
  0xf6   : > { %v15942_v48 = vpack.c.bf16 %v712_v47, %v711_v46  ;;  %v14663_v46 = vld [vmem:[#allocation2 + $0x24] sm:$0xf0]  ;;  %v11402_v47 = vld [vmem:[#allocation2 + $0x60] sm:$0xf] }
  0xf9   : > { %v645_v50 = vpop.f32.mrf.mxu0 }
  0xfa   : > { %v646_v12 = vadd.f32 %v15923_v18, %v645_v50  ;;  %v14671_v50 = vld [vmem:[#allocation2 + $0x64] sm:$0xf0] }
  0xfc   : > { %684 = vmatmul.bf16.gmra.mxu0 %v14646_v49  ;;  %v713_v16 = vmax.f32 %v646_v12, 0.0  ;;  %v11371_v49 = vor.u32 %v14663_v46, %v11370_v45 }
 0x101   : > { %v647_v51 = vpop.f32.mrf.mxu0 }
 0x102   : > { %v648_v9 = vadd.f32 %v15923_v18, %v647_v51  ;;  %v11403_v51 = vor.u32 %v14671_v50, %v11402_v47  ;;  %v14658_v47 = vld [vmem:[#allocation2 + $0x4] sm:$0xf]  ;;  %v11388_v50 = vld [vmem:[#allocation2 + $0x48] sm:$0xf0] }
 0x104   : > { %v714_v14 = vmax.f32 %v648_v9, 0.0 }
 0x106   : > { %v15975_v19 = vpack.c.bf16 %v714_v14, %v713_v16 }
 0x109   : > { %v650_v53 = vpop.f32.mrf.mxu0 }
 0x10a   : > { %v651_v6 = vadd.f32 %v15923_v18, %v650_v53 }
 0x10c   : > { %689 = vmatmul.bf16.gmra.mxu0 %v14647_v52  ;;  %v715_v13 = vmax.f32 %v651_v6, 0.0 }
 0x111   : > { %v652_v54 = vpop.f32.mrf.mxu0 }
 0x112   : > { %v653_v3 = vadd.f32 %v15923_v18, %v652_v54  ;;  %v11378_v54 = vld [vmem:[#allocation2 + $0x30] sm:$0xf] }
 0x114   : > { %v716_v10 = vmax.f32 %v653_v3, 0.0 }
 0x116   : > { %v15968_v15 = vpack.c.bf16 %v716_v10, %v715_v13 }
 0x119   : > { %v655_v56 = vpop.f32.mrf.mxu0 }
 0x11a   : > { %v656_v0 = vadd.f32 %v15923_v18, %v655_v56  ;;  %v11410_v56 = vld [vmem:[#allocation2 + $0x70] sm:$0xf] }
 0x11c   : > { %694 = vmatmul.bf16.gmra.mxu0 %v14648_v55  ;;  %v717_v7 = vmax.f32 %v656_v0, 0.0  ;;  %v14665_v55 = vld [vmem:[#allocation2 + $0x34] sm:$0xf0] }
 0x121   : > { %v657_v57 = vpop.f32.mrf.mxu0 }
 0x122   : > { %v658_v62 = vadd.f32 %v15923_v18, %v657_v57  ;;  %v11379_v57 = vor.u32 %v14665_v55, %v11378_v54  ;;  %v14660_v55 = vld [vmem:[#allocation2 + $0x14] sm:$0xf] }
 0x124   : > { %v718_v4 = vmax.f32 %v658_v62, 0.0 }
 0x126   : > { %v15962_v11 = vpack.c.bf16 %v718_v4, %v717_v7 }
 0x129   : > { %v660_v59 = vpop.f32.mrf.mxu0 }
 0x12a   : > { %v661_v60 = vadd.f32 %v15923_v18, %v660_v59 }
 0x12c   : > { %699 = vmatmul.bf16.gmra.mxu0 %v14649_v58  ;;  %v719_v1 = vmax.f32 %v661_v60, 0.0  ;;  %v14673_v58 = vld [vmem:[#allocation2 + $0x74] sm:$0xf0] }
 0x12d   : > { %v11411_v59 = vor.u32 %v14673_v58, %v11410_v56  ;;  %v11364_v56 = vld [vmem:[#allocation2 + $0x18] sm:$0xf0] }
 0x12e   : > { %v11396_v58 = vld [vmem:[#allocation2 + $0x58] sm:$0xf0] }
 0x131   : > { %v662_v61 = vpop.f32.mrf.mxu0 }
 0x132   : > { %v663_v63 = vadd.f32 %v15923_v18, %v662_v61 }
 0x134   : > { %v720_v2 = vmax.f32 %v663_v63, 0.0 }
 0x136   : > { %v15953_v5 = vpack.c.bf16 %v720_v2, %v719_v1 }
 0x138   : > { %801 = vmatpush.bf16.msra.mxu1 %v15953_v5  ;;  %907 = vmatpush.bf16.msra.mxu3 %v15953_v5 }
 0x139   : > { %1477 = vmatpush.bf16.msrb.mxu0 %v15953_v5  ;;  %v15959_v8 = vpop.f32.mrf.mxu0 }
 0x13c   : > { %802 = vmatpush.bf16.msra.mxu1 %v15962_v11  ;;  %908 = vmatpush.bf16.msra.mxu3 %v15962_v11 }
 0x13d   : > { %1478 = vmatpush.bf16.msrb.mxu0 %v15962_v11 }
 0x140   : > { %803 = vmatpush.bf16.msra.mxu1 %v15968_v15  ;;  %909 = vmatpush.bf16.msra.mxu3 %v15968_v15 }
 0x141   : > { %1479 = vmatpush.bf16.msrb.mxu0 %v15968_v15  ;;  %v15973_v17 = vpop.f32.mrf.mxu0 }
 0x144   : > { %804 = vmatpush.bf16.msra.mxu1 %v15975_v19  ;;  %910 = vmatpush.bf16.msra.mxu3 %v15975_v19 }
 0x145   : > { %1480 = vmatpush.bf16.msrb.mxu0 %v15975_v19 }
 0x148   : > { %805 = vmatpush.bf16.msra.mxu1 %v15942_v48  ;;  %911 = vmatpush.bf16.msra.mxu3 %v15942_v48 }
 0x149   : > { %1481 = vmatpush.bf16.msrb.mxu0 %v15942_v48  ;;  %v15983_v20 = vpop.f32.mrf.mxu0 }
 0x14c   : > { %806 = vmatpush.bf16.msra.mxu1 %v15937_v40  ;;  %912 = vmatpush.bf16.msra.mxu3 %v15937_v40 }
 0x14d   : > { %1482 = vmatpush.bf16.msrb.mxu0 %v15937_v40 }
 0x150   : > { %807 = vmatpush.bf16.msra.mxu1 %v15932_v32  ;;  %913 = vmatpush.bf16.msra.mxu3 %v15932_v32 }
 0x151   : > { %1483 = vmatpush.bf16.msrb.mxu0 %v15932_v32  ;;  %v15991_v21 = vpop.f32.mrf.mxu0 }
 0x154   : > { %808 = vmatpush.bf16.msra.mxu1 %v15927_v24  ;;  %914 = vmatpush.bf16.msra.mxu3 %v15927_v24 }
 0x155   : > { %1484 = vmatpush.bf16.msrb.mxu0 %v15927_v24 }
 0x157   : > { %809 = vmatmul.bf16.vlgmr.msra.gmra.mxu1 %v11355_v30  ;;  %915 = vmatmul.bf16.vlgmr.msra.gmra.mxu3 %v11387_v33 }
 0x159   : > { %1705 = vmatpush.bf16.msra.mxu0 %v15953_v5  ;;  %v15997_v22 = vpop.f32.mrf.mxu0 }
 0x15d   : > { %1706 = vmatpush.bf16.msra.mxu0 %v15962_v11 }
 0x161   : > { %1707 = vmatpush.bf16.msra.mxu0 %v15968_v15  ;;  %v16001_v23 = vpop.f32.mrf.mxu0 }
 0x165   : > { %1708 = vmatpush.bf16.msra.mxu0 %v15975_v19 }
 0x167   : > { %814 = vmatmul.bf16.gmra.mxu1 %v11363_v39  ;;  %920 = vmatmul.bf16.gmra.mxu3 %v11395_v42 }
 0x169   : > { %1709 = vmatpush.bf16.msra.mxu0 %v15942_v48  ;;  %v16005_v25 = vpop.f32.mrf.mxu0 }
 0x16a   : > { %v681_v31 = vadd.f32 %v15923_v18, %v16005_v25  ;;  %v673_v25 = vadd.f32 %v15923_v18, %v15991_v21  ;;  %v666_v21 = vadd.f32 %v15923_v18, %v15959_v8  ;;  %v11420_v8 = vld [vmem:[#allocation2 + $0x88] sm:$0xf0] }
 0x16c   : > { %v727_v37 = vmax.f32 %v681_v31, 0.0  ;;  %v724_v42 = vmax.f32 %v673_v25, 0.0  ;;  %v721_v46 = vmax.f32 %v666_v21, 0.0  ;;  %v11444_v31 = vld [vmem:[#allocation2 + $0xb8] sm:$0xf0] }
 0x16d   : > { %1710 = vmatpush.bf16.msra.mxu0 %v15937_v40  ;;  %v11418_v25 = vld [vmem:[#allocation2 + $0x80] sm:$0xf] }
 0x171   : > { %1711 = vmatpush.bf16.msra.mxu0 %v15932_v32  ;;  %v16009_v26 = vpop.f32.mrf.mxu0 }
 0x172   : > { %v683_v28 = vadd.f32 %v15923_v18, %v16009_v26  ;;  %v676_v26 = vadd.f32 %v15923_v18, %v15997_v22  ;;  %v668_v22 = vadd.f32 %v15923_v18, %v15973_v17  ;;  %v11356_v17 = vld [vmem:[#allocation2 + $0x8] sm:$0xf0] }
 0x174   : > { %v725_v41 = vmax.f32 %v676_v26, 0.0 }
 0x175   : > { %1712 = vmatpush.bf16.msra.mxu0 %v15927_v24 }
 0x177   : > { %819 = vmatmul.bf16.gmra.mxu1 %v11371_v49  ;;  %925 = vmatmul.bf16.gmra.mxu3 %v11403_v51  ;;  %v14666_v49 = vld [vmem:[#allocation2 + $0x44] sm:$0xf] }
 0x179   : > { %v685_v34 = vpop.f32.mrf.mxu0 }
 0x17a   : > { %v686_v16 = vadd.f32 %v15923_v18, %v685_v34  ;;  %v678_v34 = vadd.f32 %v15923_v18, %v16001_v23  ;;  %v671_v23 = vadd.f32 %v15923_v18, %v15983_v20  ;;  %v722_v20 = vmax.f32 %v668_v22, 0.0  ;;  %v11482_v22 = vld [vmem:[#allocation2 + $0x100] sm:$0xf] }
 0x17c   : > { %v729_v33 = vmax.f32 %v686_v16, 0.0  ;;  %v726_v38 = vmax.f32 %v678_v34, 0.0  ;;  %v16071_v51 = vpack.c.bf16 %v722_v20, %v721_v46  ;;  %v11380_v16 = vld [vmem:[#allocation2 + $0x38] sm:$0xf0] }
 0x181   : > { %v687_v35 = vpop.f32.mrf.mxu0 }
 0x182   : > { %v688_v12 = vadd.f32 %v15923_v18, %v687_v35  ;;  %v728_v35 = vmax.f32 %v683_v28, 0.0  ;;  %v11412_v28 = vld [vmem:[#allocation2 + $0x78] sm:$0xf0] }
 0x184   : > { %v730_v29 = vmax.f32 %v688_v12, 0.0  ;;  %v16050_v39 = vpack.c.bf16 %v728_v35, %v727_v37 }
 0x186   : > { %v16041_v36 = vpack.c.bf16 %v730_v29, %v729_v33  ;;  %v14680_v29 = vld [vmem:[#allocation2 + $0xb4] sm:$0xf] }
 0x187   : > { %824 = vmatmul.bf16.gmra.mxu1 %v11379_v57  ;;  %930 = vmatmul.bf16.gmra.mxu3 %v11411_v59  ;;  %v14668_v57 = vld [vmem:[#allocation2 + $0x54] sm:$0xf]  ;;  %v11447_v26 = vor.u32 %v14680_v29, %v11444_v31  ;;  %v14697_v29 = vld [vmem:[#allocation2 + $0x134] sm:$0xf0] }
 0x188   : > { %v14676_v59 = vld [vmem:[#allocation2 + $0x94] sm:$0xf] }
 0x189   : > { %v690_v43 = vpop.f32.mrf.mxu0 }
 0x18a   : > { %v691_v9 = vadd.f32 %v15923_v18, %v690_v43  ;;  %v16059_v43 = vpack.c.bf16 %v726_v38, %v725_v41  ;;  %v14675_v38 = vld [vmem:[#allocation2 + $0x84] sm:$0xf0] }
 0x18b   : > { %v14683_v41 = vld [vmem:[#allocation2 + $0xc4] sm:$0xf0]  ;;  %v11419_v21 = vor.u32 %v14675_v38, %v11418_v25 }
 0x18c   : > { %v731_v27 = vmax.f32 %v691_v9, 0.0 }
 0x191   : > { %v692_v44 = vpop.f32.mrf.mxu0 }
 0x192   : > { %v693_v4 = vadd.f32 %v15923_v18, %v692_v44  ;;  %v723_v44 = vmax.f32 %v671_v23, 0.0  ;;  %v11450_v23 = vld [vmem:[#allocation2 + $0xc0] sm:$0xf] }
 0x194   : > { %v732_v13 = vmax.f32 %v693_v4, 0.0  ;;  %v16066_v45 = vpack.c.bf16 %v724_v42, %v723_v44  ;;  %v14678_v4 = vld [vmem:[#allocation2 + $0xa4] sm:$0xf]  ;;  %v14691_v42 = vld [vmem:[#allocation2 + $0x104] sm:$0xf0]  ;;  %v11451_v44 = vor.u32 %v14683_v41, %v11450_v23 }
 0x195   : > { %v11483_v20 = vor.u32 %v14691_v42, %v11482_v22  ;;  %v14682_v23 = vld [vmem:[#allocation2 + $0xc4] sm:$0xf]  ;;  %v11452_v41 = vld [vmem:[#allocation2 + $0xc8] sm:$0xf0] }
 0x196   : > { %v16032_v30 = vpack.c.bf16 %v732_v13, %v731_v27  ;;  %v14664_v13 = vld [vmem:[#allocation2 + $0x34] sm:$0xf]  ;;  %v14690_v22 = vld [vmem:[#allocation2 + $0x104] sm:$0xf]  ;;  %v11484_v42 = vld [vmem:[#allocation2 + $0x108] sm:$0xf0] }
 0x197   : > { %v14672_v27 = vld [vmem:[#allocation2 + $0x74] sm:$0xf]  ;;  %v11383_v33 = vor.u32 %v14664_v13, %v11380_v16  ;;  %v14681_v13 = vld [vmem:[#allocation2 + $0xb4] sm:$0xf0]  ;;  %v11474_v16 = vld [vmem:[#allocation2 + $0xf0] sm:$0xf] }
 0x198   : > { %v11415_v35 = vor.u32 %v14672_v27, %v11412_v28  ;;  %v14689_v27 = vld [vmem:[#allocation2 + $0xf4] sm:$0xf0]  ;;  %v11506_v28 = vld [vmem:[#allocation2 + $0x130] sm:$0xf] }
 0x199   : > { %v695_v52 = vpop.f32.mrf.mxu0 }
 0x19a   : > { %v696_v1 = vadd.f32 %v15923_v18, %v695_v52  ;;  %v11359_v52 = vor.u32 %v14658_v47, %v11356_v17  ;;  %v11426_v47 = vld [vmem:[#allocation2 + $0x90] sm:$0xf]  ;;  %v14677_v17 = vld [vmem:[#allocation2 + $0x94] sm:$0xf0] }
 0x19c   : > { %v733_v10 = vmax.f32 %v696_v1, 0.0  ;;  %v11372_v1 = vld [vmem:[#allocation2 + $0x28] sm:$0xf0] }
 0x1a1   : > { %v697_v53 = vpop.f32.mrf.mxu0 }
 0x1a2   : > { %v698_v63 = vadd.f32 %v15923_v18, %v697_v53  ;;  %v11391_v53 = vor.u32 %v14666_v49, %v11388_v50  ;;  %v11458_v49 = vld [vmem:[#allocation2 + $0xd0] sm:$0xf] }
 0x1a4   : > { %v734_v6 = vmax.f32 %v698_v63, 0.0 }
 0x1a6   : > { %v16024_v14 = vpack.c.bf16 %v734_v6, %v733_v10  ;;  %v11436_v6 = vld [vmem:[#allocation2 + $0xa8] sm:$0xf0] }
 0x1a7   : > { %v11439_v12 = vor.u32 %v14678_v4, %v11436_v6 }
 0x1a9   : > { %v700_v60 = vpop.f32.mrf.mxu0 }
 0x1aa   : > { %v701_v61 = vadd.f32 %v15923_v18, %v700_v60  ;;  %v11428_v60 = vld [vmem:[#allocation2 + $0x98] sm:$0xf0] }
 0x1ab   : > { %v11431_v63 = vor.u32 %v14676_v59, %v11428_v60  ;;  %v11434_v59 = vld [vmem:[#allocation2 + $0xa0] sm:$0xf]  ;;  %v14679_v60 = vld [vmem:[#allocation2 + $0xa4] sm:$0xf0] }
 0x1ac   : > { %v735_v2 = vmax.f32 %v701_v61, 0.0  ;;  %v11367_v61 = vor.u32 %v14660_v55, %v11364_v56 }
 0x1b1   : > { %v702_v62 = vpop.f32.mrf.mxu0 }
 0x1b2   : > { %v703_v0 = vadd.f32 %v15923_v18, %v702_v62  ;;  %v14674_v18 = vld [vmem:[#allocation2 + $0x84] sm:$0xf]  ;;  %v11399_v62 = vor.u32 %v14668_v57, %v11396_v58 }
 0x1b3   : > { %v11423_v54 = vor.u32 %v14674_v18, %v11420_v8  ;;  %v14685_v18 = vld [vmem:[#allocation2 + $0xd4] sm:$0xf0]  ;;  %v11490_v8 = vld [vmem:[#allocation2 + $0x110] sm:$0xf] }
 0x1b4   : > { %v736_v3 = vmax.f32 %v703_v0, 0.0  ;;  %v14662_v0 = vld [vmem:[#allocation2 + $0x24] sm:$0xf]  ;;  %v11459_v55 = vor.u32 %v14685_v18, %v11458_v49  ;;  %v11487_v49 = vor.u32 %v14690_v22, %v11484_v42 }
 0x1b5   : > { %v11375_v9 = vor.u32 %v14662_v0, %v11372_v1  ;;  %v14695_v0 = vld [vmem:[#allocation2 + $0x124] sm:$0xf0]  ;;  %v11435_v1 = vor.u32 %v14679_v60, %v11434_v59  ;;  %v14684_v59 = vld [vmem:[#allocation2 + $0xd4] sm:$0xf] }
 0x1b6   : > { %v16017_v7 = vpack.c.bf16 %v736_v3, %v735_v2  ;;  %v14670_v2 = vld [vmem:[#allocation2 + $0x64] sm:$0xf]  ;;  %v11404_v3 = vld [vmem:[#allocation2 + $0x68] sm:$0xf0]  ;;  %v14692_v60 = vld [vmem:[#allocation2 + $0x114] sm:$0xf] }
 0x1b7   : > { %v11407_v10 = vor.u32 %v14670_v2, %v11404_v3 }
 0x1b8   : > { %830 = vmatpush.bf16.msra.mxu2 %v16017_v7  ;;  %936 = vmatpush.bf16.msrb.mxu1 %v16017_v7 }
 0x1b9   : > { %1050 = vmatpush.bf16.msrb.mxu3 %v16017_v7 }
 0x1bc   : > { %831 = vmatpush.bf16.msra.mxu2 %v16024_v14  ;;  %937 = vmatpush.bf16.msrb.mxu1 %v16024_v14 }
 0x1bd   : > { %1051 = vmatpush.bf16.msrb.mxu3 %v16024_v14 }
 0x1c0   : > { %832 = vmatpush.bf16.msra.mxu2 %v16032_v30  ;;  %938 = vmatpush.bf16.msrb.mxu1 %v16032_v30 }
 0x1c1   : > { %1052 = vmatpush.bf16.msrb.mxu3 %v16032_v30 }
 0x1c4   : > { %833 = vmatpush.bf16.msra.mxu2 %v16041_v36  ;;  %939 = vmatpush.bf16.msrb.mxu1 %v16041_v36 }
 0x1c5   : > { %1053 = vmatpush.bf16.msrb.mxu3 %v16041_v36 }
 0x1c8   : > { %834 = vmatpush.bf16.msra.mxu2 %v16050_v39  ;;  %940 = vmatpush.bf16.msrb.mxu1 %v16050_v39 }
 0x1c9   : > { %1054 = vmatpush.bf16.msrb.mxu3 %v16050_v39 }
 0x1cc   : > { %835 = vmatpush.bf16.msra.mxu2 %v16059_v43  ;;  %941 = vmatpush.bf16.msrb.mxu1 %v16059_v43 }
 0x1cd   : > { %1055 = vmatpush.bf16.msrb.mxu3 %v16059_v43 }
 0x1d0   : > { %836 = vmatpush.bf16.msra.mxu2 %v16066_v45  ;;  %942 = vmatpush.bf16.msrb.mxu1 %v16066_v45 }
 0x1d1   : > { %1056 = vmatpush.bf16.msrb.mxu3 %v16066_v45 }
 0x1d4   : > { %837 = vmatpush.bf16.msra.mxu2 %v16071_v51  ;;  %943 = vmatpush.bf16.msrb.mxu1 %v16071_v51  ;;  %v16115_v34 = vpop.f32.mrf.mxu1 }
 0x1d5   : > { %1057 = vmatpush.bf16.msrb.mxu3 %v16071_v51 }
 0x1d7   : > { %838 = vmatmul.bf16.vlgmr.msra.gmra.mxu2 %v11359_v52  ;;  %944 = vmatmul.bf16.vlgmr.msrb.gmra.mxu1 %v11391_v53  ;;  %v14693_v52 = vld [vmem:[#allocation2 + $0x114] sm:$0xf0] }
 0x1d8   : > { %1021 = vmatpush.bf16.msrb.mxu2 %v15953_v5  ;;  %1135 = vmatpush.bf16.msra.mxu1 %v15953_v5  ;;  %v11491_v56 = vor.u32 %v14693_v52, %v11490_v8 }
 0x1d9   : > { %1249 = vmatpush.bf16.msra.mxu3 %v15953_v5 }
 0x1da   : > { %1058 = vmatmul.bf16.vlgmr.msrb.gmra.mxu3 %v11423_v54  ;;  %v16136_v50 = vpop.f32.mrf.mxu3  ;;  %v11427_v54 = vor.u32 %v14677_v17, %v11426_v47  ;;  %v11455_v47 = vor.u32 %v14682_v23, %v11452_v41  ;;  %v11532_v41 = vld [vmem:[#allocation2 + $0x168] sm:$0xf0] }
 0x1dc   : > { %1022 = vmatpush.bf16.msrb.mxu2 %v15962_v11  ;;  %1136 = vmatpush.bf16.msra.mxu1 %v15962_v11  ;;  %v16123_v37 = vpop.f32.mrf.mxu1 }
 0x1dd   : > { %1250 = vmatpush.bf16.msra.mxu3 %v15962_v11 }
 0x1e0   : > { %1023 = vmatpush.bf16.msrb.mxu2 %v15968_v15  ;;  %1137 = vmatpush.bf16.msra.mxu1 %v15968_v15 }
 0x1e1   : > { %1251 = vmatpush.bf16.msra.mxu3 %v15968_v15 }
 0x1e2   : > { %v16149_v57 = vpop.f32.mrf.mxu3 }
 0x1e4   : > { %1024 = vmatpush.bf16.msrb.mxu2 %v15975_v19  ;;  %1138 = vmatpush.bf16.msra.mxu1 %v15975_v19  ;;  %v16128_v46 = vpop.f32.mrf.mxu1 }
 0x1e5   : > { %1252 = vmatpush.bf16.msra.mxu3 %v15975_v19 }
 0x1e7   : > { %843 = vmatmul.bf16.gmra.mxu2 %v11367_v61  ;;  %949 = vmatmul.bf16.gmra.mxu1 %v11399_v62  ;;  %v11466_v61 = vld [vmem:[#allocation2 + $0xe0] sm:$0xf]  ;;  %v14687_v62 = vld [vmem:[#allocation2 + $0xe4] sm:$0xf0] }
 0x1e8   : > { %1025 = vmatpush.bf16.msrb.mxu2 %v15942_v48  ;;  %1139 = vmatpush.bf16.msra.mxu1 %v15942_v48  ;;  %v11467_v2 = vor.u32 %v14687_v62, %v11466_v61  ;;  %v11492_v61 = vld [vmem:[#allocation2 + $0x118] sm:$0xf0] }
 0x1e9   : > { %1253 = vmatpush.bf16.msra.mxu3 %v15942_v48 }
 0x1ea   : > { %1063 = vmatmul.bf16.gmra.mxu3 %v11431_v63  ;;  %v11498_v63 = vld [vmem:[#allocation2 + $0x120] sm:$0xf]  ;;  %v16159_v4 = vpop.f32.mrf.mxu3 }
 0x1eb   : > { %v11499_v3 = vor.u32 %v14695_v0, %v11498_v63  ;;  %v11495_v0 = vor.u32 %v14692_v60, %v11492_v61  ;;  %v14709_v60 = vld [vmem:[#allocation2 + $0x194] sm:$0xf0] }
 0x1ec   : > { %1026 = vmatpush.bf16.msrb.mxu2 %v15937_v40  ;;  %1140 = vmatpush.bf16.msra.mxu1 %v15937_v40  ;;  %v16140_v53 = vpop.f32.mrf.mxu1 }
 0x1ed   : > { %1254 = vmatpush.bf16.msra.mxu3 %v15937_v40 }
 0x1f0   : > { %1027 = vmatpush.bf16.msrb.mxu2 %v15932_v32  ;;  %1141 = vmatpush.bf16.msra.mxu1 %v15932_v32 }
 0x1f1   : > { %1255 = vmatpush.bf16.msra.mxu3 %v15932_v32 }
 0x1f4   : > { %1028 = vmatpush.bf16.msrb.mxu2 %v15927_v24  ;;  %1142 = vmatpush.bf16.msra.mxu1 %v15927_v24  ;;  %v16151_v58 = vpop.f32.mrf.mxu1 }
 0x1f5   : > { %1256 = vmatpush.bf16.msra.mxu3 %v15927_v24 }
 0x1f7   : > { %848 = vmatmul.bf16.gmra.mxu2 %v11375_v9  ;;  %954 = vmatmul.bf16.gmra.mxu1 %v11407_v10  ;;  %v16166_v9 = vpop.f32.mrf.mxu3 }
 0x1f8   : > { %1164 = vmatpush.bf16.msra.mxu2 %v16017_v7  ;;  %1278 = vmatpush.bf16.msrb.mxu1 %v16017_v7 }
 0x1f9   : > { %1392 = vmatpush.bf16.msrb.mxu3 %v16017_v7 }
 0x1fa   : > { %1068 = vmatmul.bf16.gmra.mxu3 %v11439_v12  ;;  %v11442_v12 = vld [vmem:[#allocation2 + $0xb0] sm:$0xf] }
 0x1fb   : > { %v11443_v31 = vor.u32 %v14681_v13, %v11442_v12  ;;  %v11500_v13 = vld [vmem:[#allocation2 + $0x128] sm:$0xf0] }
 0x1fc   : > { %1165 = vmatpush.bf16.msra.mxu2 %v16024_v14  ;;  %1279 = vmatpush.bf16.msrb.mxu1 %v16024_v14  ;;  %v16163_v6 = vpop.f32.mrf.mxu1 }
 0x1fd   : > { %1393 = vmatpush.bf16.msrb.mxu3 %v16024_v14 }
 0x200   : > { %1166 = vmatpush.bf16.msra.mxu2 %v16032_v30  ;;  %1280 = vmatpush.bf16.msrb.mxu1 %v16032_v30 }
 0x201   : > { %1394 = vmatpush.bf16.msrb.mxu3 %v16032_v30 }
 0x204   : > { %1167 = vmatpush.bf16.msra.mxu2 %v16041_v36  ;;  %1281 = vmatpush.bf16.msrb.mxu1 %v16041_v36  ;;  %v16168_v10 = vpop.f32.mrf.mxu1 }
 0x205   : > { %1395 = vmatpush.bf16.msrb.mxu3 %v16041_v36 }
 0x207   : > { %853 = vmatmul.bf16.gmra.mxu2 %v11383_v33  ;;  %959 = vmatmul.bf16.gmra.mxu1 %v11415_v35  ;;  %v11475_v33 = vor.u32 %v14689_v27, %v11474_v16  ;;  %v11507_v35 = vor.u32 %v14697_v29, %v11506_v28  ;;  %v14707_v29 = vld [vmem:[#allocation2 + $0x184] sm:$0xf0] }
 0x208   : > { %1168 = vmatpush.bf16.msra.mxu2 %v16050_v39  ;;  %1282 = vmatpush.bf16.msrb.mxu1 %v16050_v39 }
 0x209   : > { %1396 = vmatpush.bf16.msrb.mxu3 %v16050_v39 }
 0x20a   : > { %1073 = vmatmul.bf16.gmra.mxu3 %v11447_v26  ;;  %v16170_v26 = vpop.f32.mrf.mxu3 }
 0x20c   : > { %1169 = vmatpush.bf16.msra.mxu2 %v16059_v43  ;;  %1283 = vmatpush.bf16.msrb.mxu1 %v16059_v43  ;;  %v16172_v25 = vpop.f32.mrf.mxu1 }
 0x20d   : > { %1397 = vmatpush.bf16.msrb.mxu3 %v16059_v43 }
 0x210   : > { %1170 = vmatpush.bf16.msra.mxu2 %v16066_v45  ;;  %1284 = vmatpush.bf16.msrb.mxu1 %v16066_v45 }
 0x211   : > { %1398 = vmatpush.bf16.msrb.mxu3 %v16066_v45 }
 0x212   : > { %v16174_v38 = vpop.f32.mrf.mxu3 }
 0x214   : > { %1171 = vmatpush.bf16.msra.mxu2 %v16071_v51  ;;  %1285 = vmatpush.bf16.msrb.mxu1 %v16071_v51 }
 0x215   : > { %1399 = vmatpush.bf16.msrb.mxu3 %v16071_v51 }
 0x217   : > { %1029 = vmatmul.bf16.vlgmr.msrb.gmra.mxu2 %v11419_v21  ;;  %1143 = vmatmul.bf16.vlgmr.msra.gmra.mxu1 %v11451_v44  ;;  %v14698_v21 = vld [vmem:[#allocation2 + $0x144] sm:$0xf]  ;;  %v11516_v44 = vld [vmem:[#allocation2 + $0x148] sm:$0xf0] }
 0x218   : > { %1363 = vmatpush.bf16.msrb.mxu2 %v15953_v5  ;;  %1506 = vmatpush.bf16.msra.mxu1 %v16017_v7  ;;  %v11519_v18 = vor.u32 %v14698_v21, %v11516_v44  ;;  %v14688_v21 = vld [vmem:[#allocation2 + $0xf4] sm:$0xf]  ;;  %v11476_v44 = vld [vmem:[#allocation2 + $0xf8] sm:$0xf0] }
 0x21a   : > { %1257 = vmatmul.bf16.vlgmr.msra.gmra.mxu3 %v11483_v20  ;;  %v16179_v8 = vpop.f32.mrf.mxu3 }
 0x21b   : > { %1620 = vmatpush.bf16.msra.mxu3 %v16017_v7 }
 0x21c   : > { %1364 = vmatpush.bf16.msrb.mxu2 %v15962_v11  ;;  %1507 = vmatpush.bf16.msra.mxu1 %v16024_v14 }
 0x21f   : > { %1621 = vmatpush.bf16.msra.mxu3 %v16024_v14 }
 0x220   : > { %1365 = vmatpush.bf16.msrb.mxu2 %v15968_v15  ;;  %1508 = vmatpush.bf16.msra.mxu1 %v16032_v30 }
 0x223   : > { %1622 = vmatpush.bf16.msra.mxu3 %v16032_v30 }
 0x224   : > { %1366 = vmatpush.bf16.msrb.mxu2 %v15975_v19  ;;  %1509 = vmatpush.bf16.msra.mxu1 %v16041_v36 }
 0x227   : > { %1623 = vmatpush.bf16.msra.mxu3 %v16041_v36  ;;  %1034 = vmatmul.bf16.gmra.mxu2 %v11427_v54 }
 0x228   : > { %1148 = vmatmul.bf16.gmra.mxu1 %v11459_v55  ;;  %1367 = vmatpush.bf16.msrb.mxu2 %v15942_v48 }
 0x229   : > { %1510 = vmatpush.bf16.msra.mxu1 %v16050_v39 }
 0x22a   : > { %1262 = vmatmul.bf16.gmra.mxu3 %v11491_v56 }
 0x22b   : > { %1624 = vmatpush.bf16.msra.mxu3 %v16050_v39 }
 0x22c   : > { %1368 = vmatpush.bf16.msrb.mxu2 %v15937_v40 }
 0x22d   : > { %1511 = vmatpush.bf16.msra.mxu1 %v16059_v43 }
 0x22f   : > { %1625 = vmatpush.bf16.msra.mxu3 %v16059_v43 }
 0x230   : > { %1369 = vmatpush.bf16.msrb.mxu2 %v15932_v32 }
 0x231   : > { %1512 = vmatpush.bf16.msra.mxu1 %v16066_v45 }
 0x233   : > { %1626 = vmatpush.bf16.msra.mxu3 %v16066_v45 }
 0x234   : > { %1370 = vmatpush.bf16.msrb.mxu2 %v15927_v24 }
 0x235   : > { %1513 = vmatpush.bf16.msra.mxu1 %v16071_v51 }
 0x237   : > { %1627 = vmatpush.bf16.msra.mxu3 %v16071_v51  ;;  %1039 = vmatmul.bf16.gmra.mxu2 %v11435_v1 }
 0x238   : > { %1153 = vmatmul.bf16.gmra.mxu1 %v11467_v2  ;;  %v14700_v2 = vld [vmem:[#allocation2 + $0x154] sm:$0xf] }
 0x23a   : > { %1267 = vmatmul.bf16.gmra.mxu3 %v11499_v3 }
 0x247   : > { %1044 = vmatmul.bf16.gmra.mxu2 %v11443_v31 }
 0x248   : > { %1158 = vmatmul.bf16.gmra.mxu1 %v11475_v33 }
 0x24a   : > { %1272 = vmatmul.bf16.gmra.mxu3 %v11507_v35 }
 0x254   : > { %v945_v20 = vpop.f32.mrf.mxu1 }
 0x255   : > { %v16177_v17 = vadd.f32 %v945_v20, %v16136_v50  ;;  %v14696_v20 = vld [vmem:[#allocation2 + $0x134] sm:$0xf] }
 0x257   : > { %1172 = vmatmul.bf16.vlgmr.msra.gmra.mxu2 %v11455_v47  ;;  %v11508_v47 = vld [vmem:[#allocation2 + $0x138] sm:$0xf0] }
 0x258   : > { %1286 = vmatmul.bf16.vlgmr.msrb.gmra.mxu1 %v11487_v49  ;;  %1591 = vmatpush.bf16.msra.mxu2 %v15953_v5  ;;  %v16195_v5 = vpop.f32.mrf.mxu3 }
 0x259   : > { %1734 = vmatpush.bf16.msrb.mxu1 %v16017_v7 }
 0x25a   : > { %1400 = vmatmul.bf16.vlgmr.msrb.gmra.mxu3 %v11519_v18  ;;  %v839_v52 = vpop.f32.mrf.mxu2  ;;  %v11479_v18 = vor.u32 %v14688_v21, %v11476_v44 }
 0x25b   : > { %15433 = vmatpush.bf16.msrb.mxu3 %v16017_v7  ;;  %v16185_v54 = vadd.f32 %v839_v52, %v16115_v34  ;;  %v11460_v7 = vld [vmem:[#allocation2 + $0xd8] sm:$0xf0]  ;;  %v11511_v52 = vor.u32 %v14696_v20, %v11508_v47  ;;  %v11522_v20 = vld [vmem:[#allocation2 + $0x150] sm:$0xf]  ;;  %v14701_v47 = vld [vmem:[#allocation2 + $0x154] sm:$0xf0] }
 0x25c   : > { %v947_v55 = vpop.f32.mrf.mxu1  ;;  %1592 = vmatpush.bf16.msra.mxu2 %v15962_v11  ;;  %v11463_v62 = vor.u32 %v14684_v59, %v11460_v7 }
 0x25d   : > { %v965_v50 = vmax.f32 %v16185_v54, %v16177_v17  ;;  %v16190_v56 = vadd.f32 %v947_v55, %v16149_v57  ;;  %1735 = vmatpush.bf16.msrb.mxu1 %v16024_v14 }
 0x25f   : > { %15434 = vmatpush.bf16.msrb.mxu3 %v16024_v14 }
 0x260   : > { %1593 = vmatpush.bf16.msra.mxu2 %v15968_v15  ;;  %v16211_v15 = vpop.f32.mrf.mxu3 }
 0x261   : > { %1736 = vmatpush.bf16.msrb.mxu1 %v16032_v30 }
 0x262   : > { %v841_v34 = vpop.f32.mrf.mxu2 }
 0x263   : > { %15435 = vmatpush.bf16.msrb.mxu3 %v16032_v30  ;;  %v16201_v57 = vadd.f32 %v841_v34, %v16123_v37  ;;  %v11554_v34 = vld [vmem:[#allocation2 + $0x190] sm:$0xf] }
 0x264   : > { %v950_v11 = vpop.f32.mrf.mxu1  ;;  %1594 = vmatpush.bf16.msra.mxu2 %v15975_v19  ;;  %v11555_v61 = vor.u32 %v14709_v60, %v11554_v34  ;;  %v11570_v60 = vld [vmem:[#allocation2 + $0x1b0] sm:$0xf] }
 0x265   : > { %v966_v14 = vmax.f32 %v16201_v57, %v16190_v56  ;;  %v16206_v63 = vadd.f32 %v950_v11, %v16159_v4  ;;  %1737 = vmatpush.bf16.msrb.mxu1 %v16041_v36  ;;  %v11468_v4 = vld [vmem:[#allocation2 + $0xe8] sm:$0xf0]  ;;  %v14716_v57 = vld [vmem:[#allocation2 + $0x1d4] sm:$0xf] }
 0x267   : > { %15436 = vmatpush.bf16.msrb.mxu3 %v16041_v36  ;;  %1177 = vmatmul.bf16.gmra.mxu2 %v11463_v62 }
 0x268   : > { %1291 = vmatmul.bf16.gmra.mxu1 %v11495_v0  ;;  %1595 = vmatpush.bf16.msra.mxu2 %v15942_v48  ;;  %v16227_v48 = vpop.f32.mrf.mxu3 }
 0x269   : > { %1738 = vmatpush.bf16.msrb.mxu1 %v16050_v39 }
 0x26a   : > { %v844_v30 = vpop.f32.mrf.mxu2 }
 0x26b   : > { %15437 = vmatpush.bf16.msrb.mxu3 %v16050_v39  ;;  %v16217_v37 = vadd.f32 %v844_v30, %v16128_v46  ;;  %v11524_v39 = vld [vmem:[#allocation2 + $0x158] sm:$0xf0]  ;;  %v14686_v46 = vld [vmem:[#allocation2 + $0xe4] sm:$0xf]  ;;  %v14704_v30 = vld [vmem:[#allocation2 + $0x174] sm:$0xf] }
 0x26c   : > { %v952_v1 = vpop.f32.mrf.mxu1  ;;  %1596 = vmatpush.bf16.msra.mxu2 %v15937_v40  ;;  %v11527_v3 = vor.u32 %v14700_v2, %v11524_v39 }
 0x26d   : > { %v967_v19 = vmax.f32 %v16217_v37, %v16206_v63  ;;  %v16222_v36 = vadd.f32 %v952_v1, %v16166_v9  ;;  %1739 = vmatpush.bf16.msrb.mxu1 %v16059_v43  ;;  %v14694_v9 = vld [vmem:[#allocation2 + $0x124] sm:$0xf]  ;;  %v11540_v1 = vld [vmem:[#allocation2 + $0x178] sm:$0xf0] }
 0x26e   : > { %1405 = vmatmul.bf16.gmra.mxu3 %v11527_v3  ;;  %v11503_v27 = vor.u32 %v14694_v9, %v11500_v13  ;;  %v11543_v39 = vor.u32 %v14704_v30, %v11540_v1  ;;  %v11514_v3 = vld [vmem:[#allocation2 + $0x140] sm:$0xf] }
 0x26f   : > { %15438 = vmatpush.bf16.msrb.mxu3 %v16059_v43  ;;  %v11471_v43 = vor.u32 %v14686_v46, %v11468_v4  ;;  %v14699_v46 = vld [vmem:[#allocation2 + $0x144] sm:$0xf0]  ;;  %v14706_v4 = vld [vmem:[#allocation2 + $0x184] sm:$0xf] }
 0x270   : > { %1597 = vmatpush.bf16.msra.mxu2 %v15932_v32  ;;  %v11515_v13 = vor.u32 %v14699_v46, %v11514_v3  ;;  %v11530_v3 = vld [vmem:[#allocation2 + $0x160] sm:$0xf]  ;;  %v14703_v46 = vld [vmem:[#allocation2 + $0x164] sm:$0xf0] }
 0x271   : > { %1740 = vmatpush.bf16.msrb.mxu1 %v16066_v45 }
 0x272   : > { %v846_v12 = vpop.f32.mrf.mxu2 }
 0x273   : > { %15439 = vmatpush.bf16.msrb.mxu3 %v16066_v45  ;;  %v16233_v40 = vadd.f32 %v846_v12, %v16140_v53  ;;  %v16243_v45 = vpop.f32.mrf.mxu3  ;;  %v11546_v53 = vld [vmem:[#allocation2 + $0x180] sm:$0xf]  ;;  %v11548_v12 = vld [vmem:[#allocation2 + $0x188] sm:$0xf0] }
 0x274   : > { %1598 = vmatpush.bf16.msra.mxu2 %v15927_v24  ;;  %v955_v32 = vpop.f32.mrf.mxu1  ;;  %v11547_v31 = vor.u32 %v14707_v29, %v11546_v53  ;;  %v11562_v53 = vld [vmem:[#allocation2 + $0x1a0] sm:$0xf]  ;;  %v14711_v29 = vld [vmem:[#allocation2 + $0x1a4] sm:$0xf0] }
 0x275   : > { %v968_v16 = vmax.f32 %v16233_v40, %v16222_v36  ;;  %1741 = vmatpush.bf16.msrb.mxu1 %v16071_v51  ;;  %v16241_v28 = vadd.f32 %v955_v32, %v16170_v26 }
 0x276   : > { %1485 = vmatmul.bf16.vlgmr.msrb.gmra.mxu0 %v11547_v31  ;;  %v11563_v31 = vor.u32 %v14711_v29, %v11562_v53  ;;  %v11610_v53 = vld [vmem:[#allocation2 + $0x200] sm:$0xf]  ;;  %v14723_v29 = vld [vmem:[#allocation2 + $0x204] sm:$0xf0] }
 0x277   : > { %15440 = vmatpush.bf16.msrb.mxu3 %v16071_v51  ;;  %1182 = vmatmul.bf16.gmra.mxu2 %v11471_v43  ;;  %v14702_v51 = vld [vmem:[#allocation2 + $0x164] sm:$0xf]  ;;  %v11551_v43 = vor.u32 %v14706_v4, %v11548_v12  ;;  %v11564_v12 = vld [vmem:[#allocation2 + $0x1a8] sm:$0xf0] }
 0x278   : > { %1296 = vmatmul.bf16.gmra.mxu1 %v11503_v27  ;;  %v11535_v42 = vor.u32 %v14702_v51, %v11532_v41  ;;  %v14714_v41 = vld [vmem:[#allocation2 + $0x1c4] sm:$0xf] }
 0x279   : > { %v14710_v4 = vld [vmem:[#allocation2 + $0x1a4] sm:$0xf] }
 0x27a   : > { %v849_v33 = vpop.f32.mrf.mxu2 }
 0x27b   : > { %v16246_v35 = vadd.f32 %v849_v33, %v16151_v58  ;;  %v16253_v22 = vpop.f32.mrf.mxu3 }
 0x27c   : > { %v957_v23 = vpop.f32.mrf.mxu1 }
 0x27d   : > { %v969_v24 = vmax.f32 %v16246_v35, %v16241_v28  ;;  %v16251_v26 = vadd.f32 %v957_v23, %v16174_v38 }
 0x27e   : > { %1410 = vmatmul.bf16.gmra.mxu3 %v11535_v42  ;;  %v11580_v42 = vld [vmem:[#allocation2 + $0x1c8] sm:$0xf0] }
 0x27f   : > { %v11583_v44 = vor.u32 %v14714_v41, %v11580_v42  ;;  %v11596_v41 = vld [vmem:[#allocation2 + $0x1e8] sm:$0xf0] }
 0x282   : > { %v851_v49 = vpop.f32.mrf.mxu2 }
 0x283   : > { %v16256_v58 = vadd.f32 %v851_v49, %v16163_v6  ;;  %v16263_v7 = vpop.f32.mrf.mxu3  ;;  %v14708_v49 = vld [vmem:[#allocation2 + $0x194] sm:$0xf] }
 0x284   : > { %v960_v59 = vpop.f32.mrf.mxu1 }
 0x285   : > { %v970_v55 = vmax.f32 %v16256_v58, %v16251_v26  ;;  %v16261_v38 = vadd.f32 %v960_v59, %v16179_v8 }
 0x286   : > { %1490 = vmatmul.bf16.gmra.mxu0 %v11555_v61  ;;  %v14713_v61 = vld [vmem:[#allocation2 + $0x1b4] sm:$0xf0] }
 0x287   : > { %1187 = vmatmul.bf16.gmra.mxu2 %v11479_v18  ;;  %v11556_v18 = vld [vmem:[#allocation2 + $0x198] sm:$0xf0] }
 0x288   : > { %1301 = vmatmul.bf16.gmra.mxu1 %v11511_v52  ;;  %v11559_v34 = vor.u32 %v14708_v49, %v11556_v18  ;;  %v11572_v49 = vld [vmem:[#allocation2 + $0x1b8] sm:$0xf0] }
 0x28a   : > { %v854_v11 = vpop.f32.mrf.mxu2 }
 0x28b   : > { %v16266_v6 = vadd.f32 %v854_v11, %v16168_v10  ;;  %v16273_v2 = vpop.f32.mrf.mxu3  ;;  %v11571_v11 = vor.u32 %v14713_v61, %v11570_v60 }
 0x28c   : > { %v962_v0 = vpop.f32.mrf.mxu1 }
 0x28d   : > { %v971_v62 = vmax.f32 %v16266_v6, %v16261_v38  ;;  %v16271_v8 = vadd.f32 %v962_v0, %v16195_v5 }
 0x28e   : > { %1415 = vmatmul.bf16.gmra.mxu3 %v11543_v39 }
 0x292   : > { %v856_v9 = vpop.f32.mrf.mxu2 }
 0x293   : > { %v16276_v10 = vadd.f32 %v856_v9, %v16172_v25  ;;  %v16282_v5 = vpop.f32.mrf.mxu3 }
 0x294   : > { %v16280_v32 = vpop.f32.mrf.mxu1 }
 0x295   : > { %v972_v27 = vmax.f32 %v16276_v10, %v16271_v8  ;;  %v14728_v10 = vld [vmem:[#allocation2 + $0x234] sm:$0xf] }
 0x296   : > { %1495 = vmatmul.bf16.gmra.mxu0 %v11563_v31  ;;  %v11611_v31 = vor.u32 %v14723_v29, %v11610_v53 }
 0x297   : > { %1371 = vmatmul.bf16.vlgmr.msrb.gmra.mxu2 %v11515_v13 }
 0x298   : > { %1514 = vmatmul.bf16.vlgmr.msra.gmra.mxu1 %v11551_v43  ;;  %v11567_v43 = vor.u32 %v14710_v4, %v11564_v12 }
 0x29a   : > { %v1030_v33 = vpop.f32.mrf.mxu2 }
 0x29b   : > { %v1060_v25 = vadd.f32 %v16211_v15, %v1030_v33  ;;  %v16292_v21 = vpop.f32.mrf.mxu3  ;;  %v11523_v15 = vor.u32 %v14701_v47, %v11522_v20  ;;  %v14705_v20 = vld [vmem:[#allocation2 + $0x174] sm:$0xf0]  ;;  %v14712_v47 = vld [vmem:[#allocation2 + $0x1b4] sm:$0xf] }
 0x29c   : > { %v16290_v51 = vpop.f32.mrf.mxu1 }
 0x29d   : > { %v16288_v23 = vmax.f32 %v965_v50, %v1060_v25 }
 0x29e   : > { %1628 = vmatmul.bf16.vlgmr.msra.gmra.mxu3 %v11583_v44  ;;  %v11538_v44 = vld [vmem:[#allocation2 + $0x170] sm:$0xf] }
 0x2a2   : > { %v1032_v52 = vpop.f32.mrf.mxu2 }
 0x2a3   : > { %v1062_v59 = vadd.f32 %v16227_v48, %v1032_v52  ;;  %v16302_v50 = vpop.f32.mrf.mxu3 }
 0x2a5   : > { %v16298_v17 = vmax.f32 %v966_v14, %v1062_v59  ;;  %v16300_v54 = vpop.f32.mrf.mxu1  ;;  %v11588_v14 = vld [vmem:[#allocation2 + $0x1d8] sm:$0xf0]  ;;  %v11575_v59 = vor.u32 %v14712_v47, %v11572_v49 }
 0x2a6   : > { %1500 = vmatmul.bf16.gmra.mxu0 %v11571_v11  ;;  %v11591_v39 = vor.u32 %v14716_v57, %v11588_v14  ;;  %v11578_v57 = vld [vmem:[#allocation2 + $0x1c0] sm:$0xf]  ;;  %v14715_v14 = vld [vmem:[#allocation2 + $0x1c4] sm:$0xf0] }
 0x2a7   : > { %1376 = vmatmul.bf16.gmra.mxu2 %v11523_v15  ;;  %v11618_v15 = vld [vmem:[#allocation2 + $0x210] sm:$0xf] }
 0x2a8   : > { %1519 = vmatmul.bf16.gmra.mxu1 %v11559_v34  ;;  %v14725_v34 = vld [vmem:[#allocation2 + $0x214] sm:$0xf0] }
 0x2a9   : > { %v11619_v60 = vor.u32 %v14725_v34, %v11618_v15 }
 0x2aa   : > { %v1035_v0 = vpop.f32.mrf.mxu2 }
 0x2ab   : > { %v1065_v48 = vadd.f32 %v16243_v45, %v1035_v0  ;;  %v16312_v1 = vpop.f32.mrf.mxu3  ;;  %v11531_v45 = vor.u32 %v14703_v46, %v11530_v3  ;;  %v11604_v0 = vld [vmem:[#allocation2 + $0x1f8] sm:$0xf0]  ;;  %v11612_v3 = vld [vmem:[#allocation2 + $0x208] sm:$0xf0] }
 0x2ad   : > { %v16308_v30 = vmax.f32 %v967_v19, %v1065_v48  ;;  %v16310_v56 = vpop.f32.mrf.mxu1 }
 0x2ae   : > { %1633 = vmatmul.bf16.gmra.mxu3 %v11591_v39  ;;  %v14722_v39 = vld [vmem:[#allocation2 + $0x204] sm:$0xf] }
 0x2af   : > { %v11615_v12 = vor.u32 %v14722_v39, %v11612_v3 }
 0x2b2   : > { %v1037_v9 = vpop.f32.mrf.mxu2 }
 0x2b3   : > { %v1067_v13 = vadd.f32 %v16253_v22, %v1037_v9  ;;  %v16322_v19 = vpop.f32.mrf.mxu3 }
 0x2b5   : > { %v16318_v63 = vmax.f32 %v968_v16, %v1067_v13  ;;  %v16320_v37 = vpop.f32.mrf.mxu1  ;;  %v14718_v16 = vld [vmem:[#allocation2 + $0x1e4] sm:$0xf]  ;;  %v11626_v13 = vld [vmem:[#allocation2 + $0x220] sm:$0xf] }
 0x2b6   : > { %1713 = vmatmul.bf16.vlgmr.msra.gmra.mxu0 %v11611_v31  ;;  %v11599_v42 = vor.u32 %v14718_v16, %v11596_v41  ;;  %v14717_v16 = vld [vmem:[#allocation2 + $0x1d4] sm:$0xf0]  ;;  %v14724_v41 = vld [vmem:[#allocation2 + $0x214] sm:$0xf] }
 0x2b7   : > { %1381 = vmatmul.bf16.gmra.mxu2 %v11531_v45  ;;  %v14727_v45 = vld [vmem:[#allocation2 + $0x224] sm:$0xf0] }
 0x2b8   : > { %1524 = vmatmul.bf16.gmra.mxu1 %v11567_v43  ;;  %v11627_v43 = vor.u32 %v14727_v45, %v11626_v13 }
 0x2ba   : > { %v1040_v33 = vpop.f32.mrf.mxu2 }
 0x2bb   : > { %v1070_v22 = vadd.f32 %v16263_v7, %v1040_v33  ;;  %v16332_v40 = vpop.f32.mrf.mxu3  ;;  %v11539_v7 = vor.u32 %v14705_v20, %v11538_v44 }
 0x2bd   : > { %v16328_v25 = vmax.f32 %v969_v24, %v1070_v22  ;;  %v16330_v36 = vpop.f32.mrf.mxu1  ;;  %v11586_v22 = vld [vmem:[#allocation2 + $0x1d0] sm:$0xf] }
 0x2be   : > { %1638 = vmatmul.bf16.gmra.mxu3 %v11599_v42  ;;  %v11620_v42 = vld [vmem:[#allocation2 + $0x218] sm:$0xf0]  ;;  %v11587_v47 = vor.u32 %v14717_v16, %v11586_v22 }
 0x2c2   : > { %v1042_v18 = vpop.f32.mrf.mxu2 }
 0x2c3   : > { %v1072_v52 = vadd.f32 %v16273_v2, %v1042_v18  ;;  %v16342_v24 = vpop.f32.mrf.mxu3 }
 0x2c5   : > { %v16338_v28 = vmax.f32 %v970_v55, %v1072_v52  ;;  %v16340_v35 = vpop.f32.mrf.mxu1  ;;  %v14720_v55 = vld [vmem:[#allocation2 + $0x1f4] sm:$0xf] }
 0x2c6   : > { %1718 = vmatmul.bf16.gmra.mxu0 %v11619_v60  ;;  %v11607_v48 = vor.u32 %v14720_v55, %v11604_v0  ;;  %v11594_v55 = vld [vmem:[#allocation2 + $0x1e0] sm:$0xf]  ;;  %v14719_v0 = vld [vmem:[#allocation2 + $0x1e4] sm:$0xf0] }
 0x2c7   : > { %1386 = vmatmul.bf16.gmra.mxu2 %v11539_v7  ;;  %v11634_v7 = vld [vmem:[#allocation2 + $0x230] sm:$0xf]  ;;  %v11595_v3 = vor.u32 %v14719_v0, %v11594_v55 }
 0x2c8   : > { %1529 = vmatmul.bf16.gmra.mxu1 %v11575_v59  ;;  %v14729_v59 = vld [vmem:[#allocation2 + $0x234] sm:$0xf0] }
 0x2c9   : > { %v11635_v60 = vor.u32 %v14729_v59, %v11634_v7 }
 0x2ca   : > { %v1045_v61 = vpop.f32.mrf.mxu2 }
 0x2cb   : > { %v1075_v2 = vadd.f32 %v16282_v5, %v1045_v61  ;;  %v16352_v58 = vpop.f32.mrf.mxu3  ;;  %v11579_v5 = vor.u32 %v14715_v14, %v11578_v57 }
 0x2cd   : > { %v16348_v11 = vmax.f32 %v971_v62, %v1075_v2  ;;  %v16350_v26 = vpop.f32.mrf.mxu1 }
 0x2ce   : > { %1643 = vmatmul.bf16.gmra.mxu3 %v11607_v48  ;;  %v11628_v48 = vld [vmem:[#allocation2 + $0x228] sm:$0xf0] }
 0x2d2   : > { %v1047_v46 = vpop.f32.mrf.mxu2 }
 0x2d3   : > { %v1077_v4 = vadd.f32 %v16292_v21, %v1047_v46  ;;  %v16361_v9 = vpop.f32.mrf.mxu3 }
 0x2d5   : > { %v16358_v38 = vmax.f32 %v972_v27, %v1077_v4  ;;  %v1287_v6 = vpop.f32.mrf.mxu1  ;;  %v11636_v27 = vld [vmem:[#allocation2 + $0x238] sm:$0xf0] }
 0x2d6   : > { %v1288_v62 = vadd.f32 %v1287_v6, %v16302_v50  ;;  %1723 = vmatmul.bf16.gmra.mxu0 %v11627_v43  ;;  %v11639_v33 = vor.u32 %v14728_v10, %v11636_v27  ;;  %v11602_v43 = vld [vmem:[#allocation2 + $0x1f0] sm:$0xf] }
 0x2d7   : > { %1599 = vmatmul.bf16.vlgmr.msra.gmra.mxu2 %v11579_v5 }
 0x2d8   : > { %1742 = vmatmul.bf16.vlgmr.msrb.gmra.mxu1 %v11615_v12 }
 0x2da   : > { %v1173_v53 = vpop.f32.mrf.mxu2 }
 0x2db   : > { %v1174_v21 = vadd.f32 %v1173_v53, %v16280_v32  ;;  %v16365_v8 = vpop.f32.mrf.mxu3  ;;  %v11623_v32 = vor.u32 %v14724_v41, %v11620_v42  ;;  %v14721_v53 = vld [vmem:[#allocation2 + $0x1f4] sm:$0xf0] }
 0x2dd   : > { %v1193_v29 = vmax.f32 %v16288_v23, %v1174_v21  ;;  %v1289_v31 = vpop.f32.mrf.mxu1 }
 0x2de   : > { %1757 = vmatmul.bf16.vlgmr.msrb.gmra.mxu3 %v11639_v33  ;;  %v1290_v23 = vadd.f32 %v1289_v31, %v16312_v1  ;;  %v11603_v31 = vor.u32 %v14721_v53, %v11602_v43 }
 0x2df   : > { %v16367_v50 = vmax.f32 %v1193_v29, %v1288_v62 }
 0x2e2   : > { %v1175_v44 = vpop.f32.mrf.mxu2 }
 0x2e3   : > { %v1176_v20 = vadd.f32 %v1175_v44, %v16290_v51  ;;  %v1401_v34 = vpop.f32.mrf.mxu3 }
 0x2e5   : > { %v1194_v49 = vmax.f32 %v16298_v17, %v1176_v20  ;;  %v1292_v18 = vpop.f32.mrf.mxu1 }
 0x2e6   : > { %v1293_v52 = vadd.f32 %v1292_v18, %v16322_v19  ;;  %1728 = vmatmul.bf16.gmra.mxu0 %v11635_v60  ;;  %v14726_v19 = vld [vmem:[#allocation2 + $0x224] sm:$0xf] }
 0x2e7   : > { %1604 = vmatmul.bf16.gmra.mxu2 %v11587_v47  ;;  %v16373_v15 = vmax.f32 %v1194_v49, %v1290_v23  ;;  %v11631_v46 = vor.u32 %v14726_v19, %v11628_v48 }
 0x2e8   : > { %1747 = vmatmul.bf16.gmra.mxu1 %v11623_v32 }
 0x2ea   : > { %v1178_v61 = vpop.f32.mrf.mxu2 }
 0x2eb   : > { %v1179_v51 = vadd.f32 %v1178_v61, %v16300_v54  ;;  %v16379_v14 = vpop.f32.mrf.mxu3 }
 0x2ed   : > { %v1195_v2 = vmax.f32 %v16308_v30, %v1179_v51  ;;  %v16377_v1 = vpop.f32.mrf.mxu1 }
 0x2ef   : > { %v1309_v17 = vmax.f32 %v1195_v2, %v1293_v52 }
 0x2f2   : > { %v1180_v57 = vpop.f32.mrf.mxu2 }
 0x2f3   : > { %v16382_v39 = vadd.f32 %v1180_v57, %v16310_v56  ;;  %v1486_v6 = vpop.f32.mrf.mxu0  ;;  %v1406_v62 = vpop.f32.mrf.mxu3 }
 0x2f5   : > { %v1196_v54 = vmax.f32 %v16318_v63, %v16382_v39  ;;  %v1297_v4 = vpop.f32.mrf.mxu1 }
 0x2f6   : > { %v1298_v30 = vadd.f32 %v1297_v4, %v16342_v24 }
 0x2f7   : > { %1609 = vmatmul.bf16.gmra.mxu2 %v11595_v3 }
 0x2f8   : > { %1752 = vmatmul.bf16.gmra.mxu1 %v11631_v46 }
 0x2fa   : > { %v1183_v5 = vpop.f32.mrf.mxu2 }
 0x2fb   : > { %v1184_v12 = vadd.f32 %v1183_v5, %v16320_v37  ;;  %v16396_v27 = vpop.f32.mrf.mxu0  ;;  %v16399_v33 = vpop.f32.mrf.mxu3 }
 0x2fd   : > { %v1197_v13 = vmax.f32 %v16328_v25, %v1184_v12  ;;  %v16389_v45 = vpop.f32.mrf.mxu1 }
 0x2ff   : > { %v1311_v56 = vmax.f32 %v1197_v13, %v1298_v30 }
 0x302   : > { %v1185_v21 = vpop.f32.mrf.mxu2 }
 0x303   : > { %v16392_v29 = vadd.f32 %v1185_v21, %v16330_v36  ;;  %v1491_v36 = vpop.f32.mrf.mxu0  ;;  %v1411_v44 = vpop.f32.mrf.mxu3 }
 0x305   : > { %v1198_v24 = vmax.f32 %v16338_v28, %v16392_v29  ;;  %v1302_v10 = vpop.f32.mrf.mxu1 }
 0x306   : > { %v1303_v37 = vadd.f32 %v1302_v10, %v16361_v9 }
 0x307   : > { %1614 = vmatmul.bf16.gmra.mxu2 %v11603_v31 }
 0x30a   : > { %v1188_v25 = vpop.f32.mrf.mxu2 }
 0x30b   : > { %v1189_v22 = vadd.f32 %v1188_v25, %v16340_v35  ;;  %v16407_v23 = vpop.f32.mrf.mxu0  ;;  %v16409_v49 = vpop.f32.mrf.mxu3 }
 0x30d   : > { %v1199_v16 = vmax.f32 %v16348_v11, %v1189_v22  ;;  %v16403_v41 = vpop.f32.mrf.mxu1 }
 0x30f   : > { %v1313_v42 = vmax.f32 %v1199_v16, %v1303_v37 }
 0x312   : > { %v16405_v20 = vpop.f32.mrf.mxu2 }
 0x313   : > { %v1496_v59 = vpop.f32.mrf.mxu0  ;;  %v1416_v60 = vpop.f32.mrf.mxu3 }
 0x315   : > { %v1515_v47 = vpop.f32.mrf.mxu1 }
 0x316   : > { %v1516_v32 = vadd.f32 %v1515_v47, %v1486_v6 }
 0x31a   : > { %v1372_v9 = vpop.f32.mrf.mxu2 }
 0x31b   : > { %v1402_v18 = vadd.f32 %v1401_v34, %v1372_v9  ;;  %v16414_v48 = vpop.f32.mrf.mxu0  ;;  %v16416_v57 = vpop.f32.mrf.mxu3 }
 0x31d   : > { %v1421_v52 = vmax.f32 %v16367_v50, %v1402_v18  ;;  %v1517_v35 = vpop.f32.mrf.mxu1 }
 0x31f   : > { %v1535_v7 = vmax.f32 %v1421_v52, %v1516_v32 }
 0x322   : > { %v1374_v11 = vpop.f32.mrf.mxu2 }
 0x323   : > { %v1501_v4 = vpop.f32.mrf.mxu0  ;;  %v1629_v30 = vpop.f32.mrf.mxu3  ;;  %v1404_v52 = vadd.f32 %v16379_v14, %v1374_v11 }
 0x325   : > { %v1520_v61 = vpop.f32.mrf.mxu1 }
 0x326   : > { %v1521_v51 = vadd.f32 %v1520_v61, %v1491_v36 }
 0x32a   : > { %v1377_v2 = vpop.f32.mrf.mxu2 }
 0x32b   : > { %v1407_v55 = vadd.f32 %v1406_v62, %v1377_v2  ;;  %v1631_v53 = vpop.f32.mrf.mxu3 }
 0x32d   : > { %v1423_v0 = vmax.f32 %v1309_v17, %v1407_v55  ;;  %v16412_v19 = vpop.f32.mrf.mxu1  ;;  %v16424_v17 = vpop.f32.mrf.mxu0 }
 0x32f   : > { %v16418_v3 = vmax.f32 %v1423_v0, %v1521_v51 }
 0x332   : > { %v1379_v34 = vpop.f32.mrf.mxu2 }
 0x333   : > { %v1634_v22 = vpop.f32.mrf.mxu3 }
 0x335   : > { %v1525_v50 = vpop.f32.mrf.mxu1  ;;  %v1714_v25 = vpop.f32.mrf.mxu0 }
 0x336   : > { %v1526_v46 = vadd.f32 %v1525_v50, %v1496_v59  ;;  %v1518_v50 = vadd.f32 %v1517_v35, %v16396_v27  ;;  %v1295_v35 = vadd.f32 %v16377_v1, %v16332_v40 }
 0x33a   : > { %v1382_v5 = vpop.f32.mrf.mxu2 }
 0x33b   : > { %v1412_v12 = vadd.f32 %v1411_v44, %v1382_v5  ;;  %v1636_v9 = vpop.f32.mrf.mxu3 }
 0x33d   : > { %v1425_v6 = vmax.f32 %v1311_v56, %v1412_v12  ;;  %v16420_v13 = vpop.f32.mrf.mxu1  ;;  %v1716_v32 = vpop.f32.mrf.mxu0  ;;  %v14753_v12 = vld [vmem:[%s19602_s7 + $0x78] sm:$0xff] }
 0x33e   : > { %2030 = vmatpush.bf16.msrb.mxu0 %v14753_v12 }
 0x33f   : > { %v16422_v62 = vmax.f32 %v1425_v6, %v1526_v46 }
 0x342   : > { %v16426_v43 = vpop.f32.mrf.mxu2 }
 0x343   : > { %v1639_v0 = vpop.f32.mrf.mxu3 }
 0x345   : > { %v1530_v21 = vpop.f32.mrf.mxu1 }
 0x346   : > { %v1531_v10 = vadd.f32 %v1530_v21, %v1501_v4 }
 0x34a   : > { %v1387_v31 = vpop.f32.mrf.mxu2 }
 0x34b   : > { %v1417_v37 = vadd.f32 %v1416_v60, %v1387_v31  ;;  %v1422_v60 = vmax.f32 %v16373_v15, %v1404_v52  ;;  %v14752_v15 = vld [vmem:[%s19602_s7 + $0x70] sm:$0xff]  ;;  %v1641_v31 = vpop.f32.mrf.mxu3 }
 0x34c   : > { %2031 = vmatpush.bf16.msrb.mxu0 %v14752_v15 }
 0x34d   : > { %v1427_v16 = vmax.f32 %v1313_v42, %v1417_v37  ;;  %v16428_v36 = vpop.f32.mrf.mxu1  ;;  %v1719_v42 = vpop.f32.mrf.mxu0  ;;  %v1536_v4 = vmax.f32 %v1422_v60, %v1518_v50 }
 0x34f   : > { %v16430_v44 = vmax.f32 %v1427_v16, %v1531_v10  ;;  %v1409_v10 = vadd.f32 %v16399_v33, %v1379_v34  ;;  %v14750_v34 = vld [vmem:[%s19602_s7 + $0x60] sm:$0xff] }
 0x352   : > { %v16432_v56 = vpop.f32.mrf.mxu2 }
 0x355   : > { %v1743_v47 = vpop.f32.mrf.mxu1  ;;  %v1721_v27 = vpop.f32.mrf.mxu0 }
 0x356   : > { %v1744_v59 = vadd.f32 %v1743_v47, %v1714_v25  ;;  %v14751_v47 = vld [vmem:[%s19602_s7 + $0x68] sm:$0xff] }
 0x357   : > { %2032 = vmatpush.bf16.msrb.mxu0 %v14751_v47 }
 0x35a   : > { %v1600_v18 = vpop.f32.mrf.mxu2 }
 0x35b   : > { %v1630_v61 = vadd.f32 %v1629_v30, %v1600_v18  ;;  %2033 = vmatpush.bf16.msrb.mxu0 %v14750_v34 }
 0x35d   : > { %v1649_v51 = vmax.f32 %v1535_v7, %v1630_v61  ;;  %v1745_v2 = vpop.f32.mrf.mxu1 }
 0x35e   : > { %v1746_v6 = vadd.f32 %v1745_v2, %v1716_v32  ;;  %v1310_v32 = vmax.f32 %v1196_v54, %v1295_v35  ;;  %v1724_v54 = vpop.f32.mrf.mxu0  ;;  %v1644_v2 = vpop.f32.mrf.mxu3 }
 0x35f   : > { %v1763_v55 = vmax.f32 %v1649_v51, %v1744_v59  ;;  %v14749_v51 = vld [vmem:[%s19602_s7 + $0x58] sm:$0xff] }
 0x360   : > { %v1424_v1 = vmax.f32 %v1310_v32, %v1409_v10  ;;  %2034 = vmatpush.bf16.msrb.mxu0 %v14749_v51  ;;  %v1191_v10 = vadd.f32 %v16405_v20, %v16350_v26 }
 0x361   : > { %v16440_v7 = vpack.c.bf16 %v1763_v55, %v1763_v55 }
 0x362   : > { %v1602_v46 = vpop.f32.mrf.mxu2 }
 0x363   : > { %v1632_v5 = vadd.f32 %v1631_v53, %v1602_v46  ;;  %v1815_v37 = vunpack.c.l.b16 %v16440_v7 }
 0x365   : > { %v1650_v14 = vmax.f32 %v1536_v4, %v1632_v5  ;;  %v1748_v11 = vpop.f32.mrf.mxu1  ;;  %v1414_v4 = vadd.f32 %v16409_v49, %v16426_v43 }
 0x366   : > { %v1749_v52 = vadd.f32 %v1748_v11, %v1719_v42  ;;  %v1646_v49 = vpop.f32.mrf.mxu3 }
 0x367   : > { %v1764_v30 = vmax.f32 %v1650_v14, %v1746_v6  ;;  %v14747_v14 = vld [vmem:[%s19602_s7 + $0x48] sm:$0xff] }
 0x369   : > { %v16445_v21 = vpack.c.bf16 %v1764_v30, %v1764_v30 }
 0x36a   : > { %v1605_v53 = vpop.f32.mrf.mxu2 }
 0x36b   : > { %v1816_v25 = vunpack.c.l.b16 %v16445_v21  ;;  %v1635_v16 = vadd.f32 %v1634_v22, %v1605_v53  ;;  %v1523_v22 = vadd.f32 %v16412_v19, %v16407_v23  ;;  %v14748_v23 = vld [vmem:[%s19602_s7 + $0x50] sm:$0xff] }
 0x36c   : > { %2035 = vmatpush.bf16.msrb.mxu0 %v14748_v23 }
 0x36d   : > { %v16458_v18 = vpack.c.b16 %v1816_v25, %v1815_v37  ;;  %v1750_v40 = vpop.f32.mrf.mxu1  ;;  %v1651_v33 = vmax.f32 %v16418_v3, %v1635_v16  ;;  %v1538_v63 = vmax.f32 %v1424_v1, %v1523_v22 }
 0x36e   : > { %v1751_v60 = vadd.f32 %v1750_v40, %v1721_v27  ;;  %v1528_v27 = vadd.f32 %v16420_v13, %v16414_v48  ;;  %v1758_v40 = vpop.f32.mrf.mxu3  ;;  %v1305_v48 = vadd.f32 %v16403_v41, %v16365_v8 }
 0x36f   : > { %v1765_v61 = vmax.f32 %v1651_v33, %v1749_v52 }
 0x370   : > { %2036 = vmatpush.bf16.msrb.mxu0 %v14747_v14  ;;  %v14741_v14 = vld [vmem:[%s19602_s7 + $0x38] sm:$0xff] }
 0x371   : > { %v16469_v55 = vpack.c.bf16 %v1765_v61, %v1765_v61  ;;  %v1533_v61 = vadd.f32 %v16428_v36, %v16424_v17  ;;  %v14730_v17 = vld [vmem:[%s19597_s2] sm:$0xff]  ;;  %2107 = vmatpush.bf16.msra.mxu1 %v14741_v14 }
 0x372   : > { %v1607_v59 = vpop.f32.mrf.mxu2  ;;  %v14742_v36 = vld [vmem:[%s19597_s2 + $0x20] sm:$0xff] }
 0x373   : > { %v1637_v39 = vadd.f32 %v1636_v9, %v1607_v59  ;;  %v1300_v9 = vadd.f32 %v16389_v45, %v16352_v58  ;;  %v1817_v5 = vunpack.c.l.b16 %v16469_v55  ;;  %v1726_v58 = vpop.f32.mrf.mxu0  ;;  %v14746_v45 = vld [vmem:[%s19602_s7 + $0x40] sm:$0xff] }
 0x374   : > { %2037 = vmatpush.bf16.msrb.mxu0 %v14746_v45  ;;  %v14739_v45 = vld [vmem:[%s19602_s7 + $0x28] sm:$0xff]  ;;  %v14802_v14 = vld [vmem:[%s19597_s2 + $0xc0] sm:$0xff] }
 0x375   : > { %v1652_v3 = vmax.f32 %v1538_v63, %v1637_v39  ;;  %v1753_v19 = vpop.f32.mrf.mxu1  ;;  %v1312_v11 = vmax.f32 %v1198_v24, %v1300_v9  ;;  %v14743_v9 = vld [vmem:[%s19597_s2 + $0x28] sm:$0xff] }
 0x376   : > { %v1754_v15 = vadd.f32 %v1753_v19, %v1724_v54  ;;  %v1760_v41 = vpop.f32.mrf.mxu3  ;;  %v14731_v19 = vld [vmem:[%s19597_s2 + $0x8] sm:$0xff] }
 0x377   : > { %v1766_v42 = vmax.f32 %v1652_v3, %v1751_v60  ;;  %v1426_v43 = vmax.f32 %v1312_v11, %v1414_v4  ;;  %v14744_v4 = vld [vmem:[%s19597_s2 + $0x30] sm:$0xff]  ;;  %v14755_v11 = vld [vmem:[%s19597_s2 + $0x48] sm:$0xff] }
 0x379   : > { %v16474_v50 = vpack.c.bf16 %v1766_v42, %v1766_v42  ;;  %v1540_v24 = vmax.f32 %v1426_v43, %v1528_v27  ;;  %v14737_v43 = vld [vmem:[%s19602_s7 + $0x18] sm:$0xff]  ;;  %v14735_v27 = vld [vmem:[%s19602_s7 + $0x8] sm:$0xff] }
 0x37a   : > { %v1610_v46 = vpop.f32.mrf.mxu2 }
 0x37b   : > { %v1818_v12 = vunpack.c.l.b16 %v16474_v50  ;;  %v1640_v6 = vadd.f32 %v1639_v0, %v1610_v46  ;;  %v1729_v32 = vpop.f32.mrf.mxu0  ;;  %v14732_v46 = vld [vmem:[%s19597_s2 + $0x10] sm:$0xff] }
 0x37c   : > { %v1759_v59 = vadd.f32 %v1758_v40, %v1729_v32  ;;  %v14765_v32 = vld [vmem:[%s19602_s7 + $0xb8] sm:$0xff] }
 0x37d   : > { %v16488_v30 = vpack.c.b16 %v1818_v12, %v1817_v5  ;;  %v1653_v0 = vmax.f32 %v16422_v62, %v1640_v6  ;;  %v1755_v35 = vpop.f32.mrf.mxu1  ;;  %v1200_v62 = vmax.f32 %v16358_v38, %v1191_v10  ;;  %v14733_v5 = vld [vmem:[%s19597_s2 + $0x18] sm:$0xff]  ;;  %v14754_v6 = vld [vmem:[%s19597_s2 + $0x40] sm:$0xff] }
 0x37e   : > { %v1756_v37 = vadd.f32 %v1755_v35, %v1726_v58  ;;  %v14745_v12 = vld [vmem:[%s19597_s2 + $0x38] sm:$0xff]  ;;  %v14740_v58 = vld [vmem:[%s19602_s7 + $0x30] sm:$0xff] }
 0x37f   : > { %v1767_v29 = vmax.f32 %v1653_v0, %v1754_v15  ;;  %v1314_v33 = vmax.f32 %v1200_v62, %v1305_v48  ;;  %2108 = vmatpush.bf16.msra.mxu1 %v14740_v58  ;;  %v14756_v15 = vld [vmem:[%s19597_s2 + $0x50] sm:$0xff]  ;;  %v14757_v35 = vld [vmem:[%s19597_s2 + $0x58] sm:$0xff] }
 0x380   : > { %v14736_v0 = vld [vmem:[%s19602_s7 + $0x10] sm:$0xff] }
 0x381   : > { %v16498_v16 = vpack.c.bf16 %v1767_v29, %v1767_v29  ;;  %v14778_v29 = vld [vmem:[%s19597_s2 + $0x80] sm:$0xff]  ;;  %v14764_v48 = vld [vmem:[%s19602_s7 + $0xb0] sm:$0xff] }
 0x382   : > { %v1612_v28 = vpop.f32.mrf.mxu2 }
 0x383   : > { %v1642_v53 = vadd.f32 %v1641_v31, %v1612_v28  ;;  %v1419_v31 = vadd.f32 %v16416_v57, %v16432_v56  ;;  %v1819_v26 = vunpack.c.l.b16 %v16498_v16  ;;  %v1731_v8 = vpop.f32.mrf.mxu0  ;;  %2109 = vmatpush.bf16.msra.mxu1 %v14739_v45  ;;  %v14734_v28 = vld [vmem:[%s19602_s7] sm:$0xff] }
 0x384   : > { %v1761_v54 = vadd.f32 %v1760_v41, %v1731_v8  ;;  %v14779_v8 = vld [vmem:[%s19597_s2 + $0x88] sm:$0xff] }
 0x385   : > { %v1654_v25 = vmax.f32 %v1540_v24, %v1642_v53  ;;  %v1428_v22 = vmax.f32 %v1314_v33, %v1419_v31  ;;  %v14762_v33 = vld [vmem:[%s19602_s7 + $0xa0] sm:$0xff]  ;;  %v14759_v41 = vld [vmem:[%s19602_s7 + $0x88] sm:$0xff] }
 0x387   : > { %v1768_v47 = vmax.f32 %v1654_v25, %v1756_v37  ;;  %v1542_v57 = vmax.f32 %v1428_v22, %v1533_v61  ;;  %v14761_v22 = vld [vmem:[%s19602_s7 + $0x98] sm:$0xff]  ;;  %v14760_v61 = vld [vmem:[%s19602_s7 + $0x90] sm:$0xff] }
 0x389   : > { %v16501_v1 = vpack.c.bf16 %v1768_v47, %v1768_v47 }
 0x38a   : > { %v1615_v13 = vpop.f32.mrf.mxu2 }
 0x38b   : > { %v1820_v20 = vunpack.c.l.b16 %v16501_v1  ;;  %v1645_v52 = vadd.f32 %v1644_v2, %v1615_v13  ;;  %v14763_v13 = vld [vmem:[%s19602_s7 + $0xa8] sm:$0xff] }
 0x38d   : > { %v16509_v34 = vpack.c.b16 %v1820_v20, %v1819_v26  ;;  %v1655_v38 = vmax.f32 %v16430_v44, %v1645_v52 }
 0x38f   : > { %v1769_v39 = vmax.f32 %v1655_v38, %v1759_v59 }
 0x391   : > { %v16514_v60 = vpack.c.bf16 %v1769_v39, %v1769_v39 }
 0x392   : > { %v1617_v63 = vpop.f32.mrf.mxu2 }
 0x393   : > { %v1647_v56 = vadd.f32 %v1646_v49, %v1617_v63  ;;  %v1821_v42 = vunpack.c.l.b16 %v16514_v60  ;;  %v14738_v49 = vld [vmem:[%s19602_s7 + $0x20] sm:$0xff] }
 0x394   : > { %2110 = vmatpush.bf16.msra.mxu1 %v14738_v49 }
 0x395   : > { %v1656_v51 = vmax.f32 %v1542_v57, %v1647_v56 }
 0x397   : > { %v1770_v2 = vmax.f32 %v1656_v51, %v1761_v54  ;;  %v14758_v54 = vld [vmem:[%s19602_s7 + $0x80] sm:$0xff] }
 0x398   : > { %2111 = vmatpush.bf16.msra.mxu1 %v14737_v43 }
 0x399   : > { %v16516_v3 = vpack.c.bf16 %v1770_v2, %v1770_v2 }
 0x39b   : > { %v1822_v44 = vunpack.c.l.b16 %v16516_v3 }
 0x39c   : > { %2112 = vmatpush.bf16.msra.mxu1 %v14736_v0  ;;  %v14769_v0 = vld [vmem:[%s19597_s2 + $0x78] sm:$0xff] }
 0x39d   : > { %v16520_v23 = vpack.c.b16 %v1822_v44, %v1821_v42  ;;  %v14780_v42 = vld [vmem:[%s19597_s2 + $0x90] sm:$0xff] }
 0x39f   : > { %1848 = vmatpush.bf16.msrb.mxu2 %v16520_v23  ;;  %1937 = vmatpush.bf16.msra.mxu3 %v16520_v23 }
 0x3a0   : > { %2354 = vmatpush.bf16.msra.mxu0 %v16520_v23  ;;  %2113 = vmatpush.bf16.msra.mxu1 %v14735_v27 }
 0x3a3   : > { %1849 = vmatpush.bf16.msrb.mxu2 %v16509_v34  ;;  %1938 = vmatpush.bf16.msra.mxu3 %v16509_v34 }
 0x3a4   : > { %2355 = vmatpush.bf16.msra.mxu0 %v16509_v34  ;;  %2114 = vmatpush.bf16.msra.mxu1 %v14734_v28  ;;  %v14789_v28 = vld [vmem:[%s19602_s7 + $0x138] sm:$0xff] }
 0x3a7   : > { %1850 = vmatpush.bf16.msrb.mxu2 %v16488_v30  ;;  %1939 = vmatpush.bf16.msra.mxu3 %v16488_v30 }
 0x3a8   : > { %2356 = vmatpush.bf16.msra.mxu0 %v16488_v30 }
 0x3ab   : > { %1851 = vmatpush.bf16.msrb.mxu2 %v16458_v18  ;;  %1940 = vmatpush.bf16.msra.mxu3 %v16458_v18 }
 0x3ac   : > { %2357 = vmatpush.bf16.msra.mxu0 %v16458_v18 }
 0x3ae   : > { %11656 = vmatmul.msk.bf16.vlgmr.msrb.gmra.mxu2 %vm1831_vm0, %v14730_v17  ;;  %11676 = vmatmul.msk.bf16.vlgmr.msra.gmra.mxu3 %vm1831_vm0, %v14742_v36 }
 0x3af   : > { %2180 = vmatpush.bf16.msra.mxu2 %v16520_v23  ;;  %2273 = vmatpush.bf16.msrb.mxu3 %v14765_v32  ;;  %v14786_v32 = vld [vmem:[%s19602_s7 + $0x120] sm:$0xff] }
 0x3b3   : > { %2181 = vmatpush.bf16.msra.mxu2 %v16509_v34  ;;  %2274 = vmatpush.bf16.msrb.mxu3 %v14764_v48  ;;  %v14785_v48 = vld [vmem:[%s19602_s7 + $0x118] sm:$0xff] }
 0x3b7   : > { %2182 = vmatpush.bf16.msra.mxu2 %v16488_v30  ;;  %2275 = vmatpush.bf16.msrb.mxu3 %v14763_v13  ;;  %v14826_v13 = vld [vmem:[%s19597_s2 + $0x100] sm:$0xff] }
 0x3bb   : > { %2183 = vmatpush.bf16.msra.mxu2 %v16458_v18  ;;  %2276 = vmatpush.bf16.msrb.mxu3 %v14762_v33 }
 0x3be   : > { %11657 = vmatmul.msk.bf16.gmra.mxu2 %vm1831_vm0, %v14731_v19  ;;  %11677 = vmatmul.msk.bf16.gmra.mxu3 %vm1831_vm0, %v14743_v9 }
 0x3bf   : > { %2528 = vmatpush.bf16.msrb.mxu2 %v16520_v23  ;;  %2277 = vmatpush.bf16.msrb.mxu3 %v14761_v22 }
 0x3c3   : > { %2529 = vmatpush.bf16.msrb.mxu2 %v16509_v34  ;;  %2278 = vmatpush.bf16.msrb.mxu3 %v14760_v61  ;;  %v14783_v61 = vld [vmem:[%s19602_s7 + $0x108] sm:$0xff] }
 0x3c7   : > { %2530 = vmatpush.bf16.msrb.mxu2 %v16488_v30  ;;  %2279 = vmatpush.bf16.msrb.mxu3 %v14759_v41 }
 0x3cb   : > { %2531 = vmatpush.bf16.msrb.mxu2 %v16458_v18  ;;  %2280 = vmatpush.bf16.msrb.mxu3 %v14758_v54  ;;  %v14774_v54 = vld [vmem:[%s19602_s7 + $0xe0] sm:$0xff] }
 0x3ce   : > { %11658 = vmatmul.msk.bf16.gmra.mxu2 %vm1831_vm0, %v14732_v46  ;;  %11678 = vmatmul.msk.bf16.gmra.mxu3 %vm1831_vm0, %v14744_v4  ;;  %v14781_v46 = vld [vmem:[%s19597_s2 + $0x98] sm:$0xff]  ;;  %v14766_v4 = vld [vmem:[%s19597_s2 + $0x60] sm:$0xff] }
 0x3cf   : > { %2621 = vmatpush.bf16.msra.mxu3 %v14789_v28  ;;  %v14814_v28 = vld [vmem:[%s19597_s2 + $0xe0] sm:$0xff] }
 0x3de   : > { %11659 = vmatmul.msk.bf16.gmra.mxu2 %vm1831_vm0, %v14733_v5  ;;  %11679 = vmatmul.msk.bf16.gmra.mxu3 %vm1831_vm0, %v14745_v12 }
 0x3ee   : > { %11760 = vmatmul.msk.bf16.vlgmr.msra.gmra.mxu2 %vm1831_vm0, %v14754_v6 }
 0x3ef   : > { %2876 = vmatpush.bf16.msra.mxu2 %v16520_v23 }
 0x3f3   : > { %2877 = vmatpush.bf16.msra.mxu2 %v16509_v34 }
 0x3f7   : > { %2878 = vmatpush.bf16.msra.mxu2 %v16488_v30 }
 0x3fb   : > { %2879 = vmatpush.bf16.msra.mxu2 %v16458_v18 }
 0x3fe   : > { %11761 = vmatmul.msk.bf16.gmra.mxu2 %vm1831_vm0, %v14755_v11  ;;  %v14767_v11 = vld [vmem:[%s19597_s2 + $0x68] sm:$0xff] }
 0x40e   : > { %11762 = vmatmul.msk.bf16.gmra.mxu2 %vm1831_vm0, %v14756_v15  ;;  %v14804_v15 = vld [vmem:[%s19597_s2 + $0xd0] sm:$0xff] }
 0x41e   : > { %11763 = vmatmul.msk.bf16.gmra.mxu2 %vm1831_vm0, %v14757_v35 }
 0x42e   : > { %11864 = vmatmul.msk.bf16.vlgmr.msrb.gmra.mxu2 %vm1831_vm0, %v14778_v29  ;;  %v14805_v29 = vld [vmem:[%s19597_s2 + $0xd8] sm:$0xff] }
 0x42f   : > { %3224 = vmatpush.bf16.msrb.mxu2 %v16520_v23 }
 0x431   : > { %v1853_v24 = vpop.f32.mrf.mxu2  ;;  %v1942_v53 = vpop.f32.mrf.mxu3 }
 0x433   : > { %3225 = vmatpush.bf16.msrb.mxu2 %v16509_v34 }
 0x437   : > { %3226 = vmatpush.bf16.msrb.mxu2 %v16488_v30 }
 0x439   : > { %v1855_v10 = vpop.f32.mrf.mxu2  ;;  %v1944_v37 = vpop.f32.mrf.mxu3 }
 0x43a   : > { %v1873_v25 = vpack.c.bf16 %v1855_v10, %v1853_v24  ;;  %v1962_v47 = vpack.c.bf16 %v1944_v37, %v1942_v53  ;;  %v14788_v24 = vld [vmem:[%s19602_s7 + $0x130] sm:$0xff]  ;;  %v14790_v53 = vld [vmem:[%s19597_s2 + $0xa0] sm:$0xff] }
 0x43b   : > { %3227 = vmatpush.bf16.msrb.mxu2 %v16458_v18  ;;  %2622 = vmatpush.bf16.msra.mxu3 %v14788_v24  ;;  %v14811_v24 = vld [vmem:[%s19602_s7 + $0x1a8] sm:$0xff] }
 0x43c   : > { %2038 = vmatmul.bf16.vlgmr.msrb.gmra.mxu0 %v1962_v47  ;;  %2115 = vmatmul.bf16.vlgmr.msra.gmra.mxu1 %v1873_v25  ;;  %v14787_v47 = vld [vmem:[%s19602_s7 + $0x128] sm:$0xff] }
 0x43d   : > { %2702 = vmatpush.bf16.msrb.mxu0 %v16520_v23 }
 0x43e   : > { %11865 = vmatmul.msk.bf16.gmra.mxu2 %vm1831_vm0, %v14779_v8  ;;  %v14775_v8 = vld [vmem:[%s19602_s7 + $0xe8] sm:$0xff] }
 0x43f   : > { %2623 = vmatpush.bf16.msra.mxu3 %v14787_v47 }
 0x441   : > { %2703 = vmatpush.bf16.msrb.mxu0 %v16509_v34  ;;  %v1858_v40 = vpop.f32.mrf.mxu2  ;;  %v1947_v62 = vpop.f32.mrf.mxu3 }
 0x443   : > { %2624 = vmatpush.bf16.msra.mxu3 %v14786_v32 }
 0x445   : > { %2704 = vmatpush.bf16.msrb.mxu0 %v16488_v30 }
 0x447   : > { %2625 = vmatpush.bf16.msra.mxu3 %v14785_v48 }
 0x449   : > { %2705 = vmatpush.bf16.msrb.mxu0 %v16458_v18  ;;  %v1860_v31 = vpop.f32.mrf.mxu2  ;;  %v1949_v26 = vpop.f32.mrf.mxu3 }
 0x44a   : > { %v1874_v20 = vpack.c.bf16 %v1860_v31, %v1858_v40  ;;  %v1963_v52 = vpack.c.bf16 %v1949_v26, %v1947_v62  ;;  %v14777_v31 = vld [vmem:[%s19602_s7 + $0xf8] sm:$0xff] }
 0x44b   : > { %2447 = vmatpush.bf16.msrb.mxu1 %v14777_v31  ;;  %v14809_v31 = vld [vmem:[%s19602_s7 + $0x198] sm:$0xff] }
 0x44c   : > { %2043 = vmatmul.bf16.gmra.mxu0 %v1963_v52  ;;  %2120 = vmatmul.bf16.gmra.mxu1 %v1874_v20  ;;  %v14784_v20 = vld [vmem:[%s19602_s7 + $0x110] sm:$0xff]  ;;  %v14791_v52 = vld [vmem:[%s19597_s2 + $0xa8] sm:$0xff] }
 0x44d   : > { %2626 = vmatpush.bf16.msra.mxu3 %v14784_v20 }
 0x44e   : > { %11866 = vmatmul.msk.bf16.gmra.mxu2 %vm1831_vm0, %v14780_v42 }
 0x451   : > { %v1863_v59 = vpop.f32.mrf.mxu2  ;;  %v1952_v38 = vpop.f32.mrf.mxu3  ;;  %2627 = vmatpush.bf16.msra.mxu3 %v14783_v61  ;;  %v14807_v61 = vld [vmem:[%s19602_s7 + $0x188] sm:$0xff] }
 0x459   : > { %v1865_v63 = vpop.f32.mrf.mxu2  ;;  %v1954_v39 = vpop.f32.mrf.mxu3 }
 0x45a   : > { %v1875_v57 = vpack.c.bf16 %v1865_v63, %v1863_v59  ;;  %v1964_v56 = vpack.c.bf16 %v1954_v39, %v1952_v38  ;;  %v14776_v38 = vld [vmem:[%s19602_s7 + $0xf0] sm:$0xff]  ;;  %v14782_v63 = vld [vmem:[%s19602_s7 + $0x100] sm:$0xff] }
 0x45b   : > { %2448 = vmatpush.bf16.msrb.mxu1 %v14776_v38  ;;  %2628 = vmatpush.bf16.msra.mxu3 %v14782_v63  ;;  %v14800_v38 = vld [vmem:[%s19602_s7 + $0x170] sm:$0xff] }
 0x45c   : > { %2048 = vmatmul.bf16.gmra.mxu0 %v1964_v56  ;;  %2125 = vmatmul.bf16.gmra.mxu1 %v1875_v57 }
 0x45e   : > { %11867 = vmatmul.msk.bf16.gmra.mxu2 %vm1831_vm0, %v14781_v46  ;;  %v14771_v46 = vld [vmem:[%s19602_s7 + $0xc8] sm:$0xff] }
 0x45f   : > { %2449 = vmatpush.bf16.msrb.mxu1 %v14775_v8  ;;  %v14799_v8 = vld [vmem:[%s19602_s7 + $0x168] sm:$0xff] }
 0x461   : > { %v1868_v51 = vpop.f32.mrf.mxu2  ;;  %v1957_v2 = vpop.f32.mrf.mxu3 }
 0x463   : > { %2450 = vmatpush.bf16.msrb.mxu1 %v14774_v54 }
 0x469   : > { %v1870_v44 = vpop.f32.mrf.mxu2  ;;  %v1959_v17 = vpop.f32.mrf.mxu3 }
 0x46a   : > { %v1876_v36 = vpack.c.bf16 %v1870_v44, %v1868_v51  ;;  %v1965_v19 = vpack.c.bf16 %v1959_v17, %v1957_v2  ;;  %v16765_v51 = vld [vmem:[%s19597_s2 + $0x108] sm:$0xff]  ;;  %v14773_v2 = vld [vmem:[%s19602_s7 + $0xd8] sm:$0xff]  ;;  %v14792_v44 = vld [vmem:[%s19597_s2 + $0xb0] sm:$0xff] }
 0x46b   : > { %2451 = vmatpush.bf16.msrb.mxu1 %v14773_v2 }
 0x46c   : > { %2053 = vmatmul.bf16.gmra.mxu0 %v1965_v19  ;;  %2130 = vmatmul.bf16.gmra.mxu1 %v1876_v36  ;;  %v14772_v19 = vld [vmem:[%s19602_s7 + $0xd0] sm:$0xff] }
 0x46e   : > { %11968 = vmatmul.msk.bf16.vlgmr.msra.gmra.mxu2 %vm1831_vm0, %v14802_v14  ;;  %v14770_v14 = vld [vmem:[%s19602_s7 + $0xc0] sm:$0xff] }
 0x46f   : > { %2452 = vmatpush.bf16.msrb.mxu1 %v14772_v19 }
 0x471   : > { %v2185_v9 = vpop.f32.mrf.mxu2 }
 0x473   : > { %2453 = vmatpush.bf16.msrb.mxu1 %v14771_v46 }
 0x477   : > { %2454 = vmatpush.bf16.msrb.mxu1 %v14770_v14  ;;  %v14795_v14 = vld [vmem:[%s19602_s7 + $0x148] sm:$0xff] }
 0x479   : > { %v2187_v5 = vpop.f32.mrf.mxu2 }
 0x47a   : > { %v2205_v12 = vpack.c.bf16 %v2187_v5, %v2185_v9 }
 0x47c   : > { %2281 = vmatmul.bf16.vlgmr.msrb.gmra.mxu3 %v2205_v12  ;;  %11812 = vmatmul.msk.bf16.vlgmr.msra.gmra.mxu0 %vm1831_vm0, %v14766_v4 }
 0x47d   : > { %3050 = vmatpush.bf16.msra.mxu0 %v16520_v23 }
 0x481   : > { %3051 = vmatpush.bf16.msra.mxu0 %v16509_v34  ;;  %v2190_v6 = vpop.f32.mrf.mxu2  ;;  %v14803_v34 = vld [vmem:[%s19597_s2 + $0xc8] sm:$0xff] }
 0x482   : > { %11969 = vmatmul.msk.bf16.gmra.mxu2 %vm1831_vm0, %v14803_v34 }
 0x485   : > { %3052 = vmatpush.bf16.msra.mxu0 %v16488_v30  ;;  %v14768_v30 = vld [vmem:[%s19597_s2 + $0x70] sm:$0xff] }
 0x489   : > { %3053 = vmatpush.bf16.msra.mxu0 %v16458_v18  ;;  %v2192_v58 = vpop.f32.mrf.mxu2 }
 0x48a   : > { %v2206_v45 = vpack.c.bf16 %v2192_v58, %v2190_v6 }
 0x48c   : > { %2286 = vmatmul.bf16.gmra.mxu3 %v2206_v45  ;;  %11813 = vmatmul.msk.bf16.gmra.mxu0 %vm1831_vm0, %v14767_v11  ;;  %v16794_v11 = vld [vmem:[%s19597_s2 + $0x110] sm:$0xff]  ;;  %v14793_v45 = vld [vmem:[%s19597_s2 + $0xb8] sm:$0xff] }
 0x491   : > { %v2195_v23 = vpop.f32.mrf.mxu2 }
 0x492   : > { %11970 = vmatmul.msk.bf16.gmra.mxu2 %vm1831_vm0, %v14804_v15  ;;  %v14813_v15 = vld [vmem:[%s19602_s7 + $0x1b8] sm:$0xff] }
 0x493   : > { %2969 = vmatpush.bf16.msrb.mxu3 %v14813_v15  ;;  %v14794_v15 = vld [vmem:[%s19602_s7 + $0x140] sm:$0xff] }
 0x499   : > { %v2197_v49 = vpop.f32.mrf.mxu2 }
 0x49a   : > { %v2207_v43 = vpack.c.bf16 %v2197_v49, %v2195_v23 }
 0x49c   : > { %2291 = vmatmul.bf16.gmra.mxu3 %v2207_v43  ;;  %11814 = vmatmul.msk.bf16.gmra.mxu0 %vm1831_vm0, %v14768_v30 }
 0x4a1   : > { %v2200_v18 = vpop.f32.mrf.mxu2 }
 0x4a2   : > { %11971 = vmatmul.msk.bf16.gmra.mxu2 %vm1831_vm0, %v14805_v29 }
 0x4a9   : > { %v2202_v27 = vpop.f32.mrf.mxu2 }
 0x4aa   : > { %v2208_v35 = vpack.c.bf16 %v2202_v27, %v2200_v18  ;;  %v14812_v27 = vld [vmem:[%s19602_s7 + $0x1b0] sm:$0xff] }
 0x4ab   : > { %2970 = vmatpush.bf16.msrb.mxu3 %v14812_v27 }
 0x4ac   : > { %2296 = vmatmul.bf16.gmra.mxu3 %v2208_v35  ;;  %11815 = vmatmul.msk.bf16.gmra.mxu0 %vm1831_vm0, %v14769_v0  ;;  %v16812_v0 = vld [vmem:[%s19597_s2 + $0x118] sm:$0xff] }
 0x4af   : > { %2971 = vmatpush.bf16.msrb.mxu3 %v14811_v24 }
 0x4b1   : > { %v2533_v26 = vpop.f32.mrf.mxu2 }
 0x4b2   : > { %12072 = vmatmul.msk.bf16.vlgmr.msrb.gmra.mxu2 %vm1831_vm0, %v14826_v13 }
 0x4b9   : > { %v2039_v10 = vpop.f32.mrf.mxu0  ;;  %v2116_v37 = vpop.f32.mrf.mxu1 }
 0x4ba   : > { %v16711_v25 = vadd.f32 %v2116_v37, %v2039_v10  ;;  %v2535_v41 = vpop.f32.mrf.mxu2 }
 0x4bb   : > { %v2553_v39 = vpack.c.bf16 %v2535_v41, %v2533_v26  ;;  %v14801_v26 = vld [vmem:[%s19602_s7 + $0x178] sm:$0xff]  ;;  %v14806_v41 = vld [vmem:[%s19602_s7 + $0x180] sm:$0xff] }
 0x4bc   : > { %11916 = vmatmul.msk.bf16.vlgmr.msrb.gmra.mxu0 %vm1831_vm0, %v14790_v53  ;;  %v14810_v53 = vld [vmem:[%s19602_s7 + $0x1a0] sm:$0xff]  ;;  %2795 = vmatpush.bf16.msra.mxu1 %v14801_v26 }
 0x4bd   : > { %2629 = vmatmul.bf16.vlgmr.msra.gmra.mxu3 %v2553_v39 }
 0x4be   : > { %2972 = vmatpush.bf16.msrb.mxu3 %v14810_v53 }
 0x4c0   : > { %2796 = vmatpush.bf16.msra.mxu1 %v14800_v38 }
 0x4c1   : > { %v16720_v40 = vpop.f32.mrf.mxu0  ;;  %v16722_v62 = vpop.f32.mrf.mxu1 }
 0x4c2   : > { %12073 = vmatmul.msk.bf16.gmra.mxu2 %vm1831_vm0, %v16765_v51  ;;  %v2538_v42 = vpop.f32.mrf.mxu2  ;;  %2973 = vmatpush.bf16.msrb.mxu3 %v14809_v31 }
 0x4c4   : > { %2797 = vmatpush.bf16.msra.mxu1 %v14799_v8  ;;  %v14833_v8 = vld [vmem:[%s19602_s7 + $0x218] sm:$0xff] }
 0x4c9   : > { %v2044_v33 = vpop.f32.mrf.mxu0  ;;  %v2121_v22 = vpop.f32.mrf.mxu1 }
 0x4ca   : > { %v16740_v59 = vadd.f32 %v2121_v22, %v2044_v33  ;;  %v2540_v4 = vpop.f32.mrf.mxu2  ;;  %v16846_v33 = vld [vmem:[%s19597_s2 + $0xe8] sm:$0xff] }
 0x4cb   : > { %v2554_v5 = vpack.c.bf16 %v2540_v4, %v2538_v42 }
 0x4cc   : > { %11917 = vmatmul.msk.bf16.gmra.mxu0 %vm1831_vm0, %v14791_v52 }
 0x4cd   : > { %2634 = vmatmul.bf16.gmra.mxu3 %v2554_v5  ;;  %v14796_v5 = vld [vmem:[%s19602_s7 + $0x150] sm:$0xff] }
 0x4d1   : > { %v16755_v57 = vpop.f32.mrf.mxu0  ;;  %v16757_v56 = vpop.f32.mrf.mxu1 }
 0x4d2   : > { %12074 = vmatmul.msk.bf16.gmra.mxu2 %vm1831_vm0, %v16794_v11  ;;  %v2543_v58 = vpop.f32.mrf.mxu2 }
 0x4d9   : > { %v2049_v17 = vpop.f32.mrf.mxu0  ;;  %v2126_v36 = vpop.f32.mrf.mxu1 }
 0x4da   : > { %v16778_v9 = vadd.f32 %v2126_v36, %v2049_v17  ;;  %v2545_v49 = vpop.f32.mrf.mxu2  ;;  %v14798_v17 = vld [vmem:[%s19602_s7 + $0x160] sm:$0xff]  ;;  %v14797_v36 = vld [vmem:[%s19602_s7 + $0x158] sm:$0xff] }
 0x4db   : > { %v2555_v43 = vpack.c.bf16 %v2545_v49, %v2543_v58  ;;  %2798 = vmatpush.bf16.msra.mxu1 %v14798_v17  ;;  %v14823_v17 = vld [vmem:[%s19602_s7 + $0x1e8] sm:$0xff] }
 0x4dc   : > { %11918 = vmatmul.msk.bf16.gmra.mxu0 %vm1831_vm0, %v14792_v44 }
 0x4dd   : > { %2639 = vmatmul.bf16.gmra.mxu3 %v2555_v43 }
 0x4df   : > { %2799 = vmatpush.bf16.msra.mxu1 %v14797_v36  ;;  %v14830_v36 = vld [vmem:[%s19602_s7 + $0x200] sm:$0xff] }
 0x4e1   : > { %v16784_v12 = vpop.f32.mrf.mxu0  ;;  %v16786_v6 = vpop.f32.mrf.mxu1 }
 0x4e2   : > { %12075 = vmatmul.msk.bf16.gmra.mxu2 %vm1831_vm0, %v16812_v0  ;;  %v2548_v35 = vpop.f32.mrf.mxu2 }
 0x4e3   : > { %2800 = vmatpush.bf16.msra.mxu1 %v14796_v5 }
 0x4e7   : > { %2801 = vmatpush.bf16.msra.mxu1 %v14795_v14 }
 0x4e9   : > { %v2054_v34 = vpop.f32.mrf.mxu0  ;;  %v2131_v23 = vpop.f32.mrf.mxu1 }
 0x4ea   : > { %v16801_v30 = vadd.f32 %v2131_v23, %v2054_v34  ;;  %v2550_v10 = vpop.f32.mrf.mxu2 }
 0x4eb   : > { %v2556_v32 = vpack.c.bf16 %v2550_v10, %v2548_v35  ;;  %2802 = vmatpush.bf16.msra.mxu1 %v14794_v15  ;;  %v14820_v15 = vld [vmem:[%s19602_s7 + $0x1d0] sm:$0xff] }
 0x4ec   : > { %11919 = vmatmul.msk.bf16.gmra.mxu0 %vm1831_vm0, %v14793_v45 }
 0x4ed   : > { %2644 = vmatmul.bf16.gmra.mxu3 %v2556_v32 }
 0x4f1   : > { %v16804_v18 = vpop.f32.mrf.mxu0 }
 0x4f2   : > { %v2881_v20 = vpop.f32.mrf.mxu2 }
 0x4f9   : > { %v2359_v29 = vpop.f32.mrf.mxu0 }
 0x4fa   : > { %v2883_v63 = vpop.f32.mrf.mxu2 }
 0x4fb   : > { %v2901_v2 = vpack.c.bf16 %v2883_v63, %v2881_v20  ;;  %v14832_v63 = vld [vmem:[%s19602_s7 + $0x210] sm:$0xff] }
 0x4fc   : > { %12020 = vmatmul.msk.bf16.vlgmr.msra.gmra.mxu0 %vm1831_vm0, %v14814_v28  ;;  %v14817_v28 = vld [vmem:[%s19597_s2 + $0xf8] sm:$0xff] }
 0x4ff   : > { %v2282_v37 = vpop.f32.mrf.mxu3 }
 0x500   : > { %v16830_v47 = vadd.f32 %v2282_v37, %v16711_v25  ;;  %v14808_v25 = vld [vmem:[%s19602_s7 + $0x190] sm:$0xff] }
 0x501   : > { %v2361_v48 = vpop.f32.mrf.mxu0  ;;  %2974 = vmatpush.bf16.msrb.mxu3 %v14808_v25  ;;  %v14834_v25 = vld [vmem:[%s19602_s7 + $0x220] sm:$0xff] }
 0x502   : > { %v2379_v13 = vpack.c.bf16 %v2361_v48, %v2359_v29  ;;  %v14837_v48 = vld [vmem:[%s19602_s7 + $0x238] sm:$0xff] }
 0x504   : > { %2455 = vmatmul.bf16.vlgmr.msrb.gmra.mxu1 %v2379_v13  ;;  %v14836_v13 = vld [vmem:[%s19602_s7 + $0x230] sm:$0xff] }
 0x505   : > { %2975 = vmatpush.bf16.msrb.mxu3 %v14807_v61  ;;  %v2886_v19 = vpop.f32.mrf.mxu2 }
 0x507   : > { %v16841_v52 = vpop.f32.mrf.mxu3 }
 0x509   : > { %v2364_v22 = vpop.f32.mrf.mxu0  ;;  %2976 = vmatpush.bf16.msrb.mxu3 %v14806_v41  ;;  %v14825_v41 = vld [vmem:[%s19602_s7 + $0x1f8] sm:$0xff] }
 0x50a   : > { %3143 = vmatpush.bf16.msrb.mxu1 %v14825_v41 }
 0x50c   : > { %12021 = vmatmul.msk.bf16.gmra.mxu0 %vm1831_vm0, %v16846_v33  ;;  %2977 = vmatmul.bf16.vlgmr.msrb.gmra.mxu3 %v2901_v2 }
 0x50d   : > { %v2888_v58 = vpop.f32.mrf.mxu2  ;;  %3317 = vmatpush.bf16.msra.mxu3 %v14837_v48 }
 0x50e   : > { %v2902_v23 = vpack.c.bf16 %v2888_v58, %v2886_v19  ;;  %v14822_v58 = vld [vmem:[%s19602_s7 + $0x1e0] sm:$0xff] }
 0x50f   : > { %v2287_v39 = vpop.f32.mrf.mxu3 }
 0x510   : > { %v16863_v54 = vadd.f32 %v2287_v39, %v16740_v59  ;;  %v14816_v59 = vld [vmem:[%s19597_s2 + $0xf0] sm:$0xff] }
 0x511   : > { %v2366_v42 = vpop.f32.mrf.mxu0  ;;  %3318 = vmatpush.bf16.msra.mxu3 %v14836_v13 }
 0x512   : > { %v2380_v44 = vpack.c.bf16 %v2366_v42, %v2364_v22  ;;  %v14824_v42 = vld [vmem:[%s19602_s7 + $0x1f0] sm:$0xff] }
 0x513   : > { %3144 = vmatpush.bf16.msrb.mxu1 %v14824_v42 }
 0x514   : > { %2460 = vmatmul.bf16.gmra.mxu1 %v2380_v44  ;;  %v14831_v44 = vld [vmem:[%s19602_s7 + $0x208] sm:$0xff] }
 0x515   : > { %v2891_v35 = vpop.f32.mrf.mxu2 }
 0x517   : > { %v16871_v46 = vpop.f32.mrf.mxu3  ;;  %3145 = vmatpush.bf16.msrb.mxu1 %v14823_v17 }
 0x519   : > { %v2369_v4 = vpop.f32.mrf.mxu0 }
 0x51b   : > { %3146 = vmatpush.bf16.msrb.mxu1 %v14822_v58 }
 0x51c   : > { %12022 = vmatmul.msk.bf16.gmra.mxu0 %vm1831_vm0, %v14816_v59  ;;  %2982 = vmatmul.bf16.gmra.mxu3 %v2902_v23 }
 0x51d   : > { %v2893_v24 = vpop.f32.mrf.mxu2 }
 0x51e   : > { %v2903_v10 = vpack.c.bf16 %v2893_v24, %v2891_v35  ;;  %v14819_v35 = vld [vmem:[%s19602_s7 + $0x1c8] sm:$0xff] }
 0x51f   : > { %v2292_v45 = vpop.f32.mrf.mxu3 }
 0x520   : > { %v16884_v34 = vadd.f32 %v2292_v45, %v16778_v9  ;;  %v14821_v45 = vld [vmem:[%s19602_s7 + $0x1d8] sm:$0xff] }
 0x521   : > { %v2371_v49 = vpop.f32.mrf.mxu0  ;;  %3147 = vmatpush.bf16.msrb.mxu1 %v14821_v45 }
 0x522   : > { %v2381_v43 = vpack.c.bf16 %v2371_v49, %v2369_v4 }
 0x524   : > { %2465 = vmatmul.bf16.gmra.mxu1 %v2381_v43 }
 0x525   : > { %v2896_v31 = vpop.f32.mrf.mxu2  ;;  %3148 = vmatpush.bf16.msrb.mxu1 %v14820_v15 }
 0x527   : > { %v16889_v27 = vpop.f32.mrf.mxu3 }
 0x529   : > { %v2374_v9 = vpop.f32.mrf.mxu0  ;;  %3149 = vmatpush.bf16.msrb.mxu1 %v14819_v35 }
 0x52c   : > { %12023 = vmatmul.msk.bf16.gmra.mxu0 %vm1831_vm0, %v14817_v28  ;;  %2987 = vmatmul.bf16.gmra.mxu3 %v2903_v10 }
 0x52d   : > { %v2898_v20 = vpop.f32.mrf.mxu2 }
 0x52e   : > { %v2904_v22 = vpack.c.bf16 %v2898_v20, %v2896_v31 }
 0x52f   : > { %v2297_v29 = vpop.f32.mrf.mxu3 }
 0x530   : > { %v16896_v53 = vadd.f32 %v2297_v29, %v16801_v30  ;;  %v14835_v30 = vld [vmem:[%s19602_s7 + $0x228] sm:$0xff] }
 0x531   : > { %v2376_v37 = vpop.f32.mrf.mxu0  ;;  %3319 = vmatpush.bf16.msra.mxu3 %v14835_v30 }
 0x532   : > { %v2382_v32 = vpack.c.bf16 %v2376_v37, %v2374_v9  ;;  %v14818_v37 = vld [vmem:[%s19602_s7 + $0x1c0] sm:$0xff] }
 0x533   : > { %3150 = vmatpush.bf16.msrb.mxu1 %v14818_v37 }
 0x534   : > { %2470 = vmatmul.bf16.gmra.mxu1 %v2382_v32 }
 0x535   : > { %3320 = vmatpush.bf16.msra.mxu3 %v14834_v25  ;;  %v3229_v39 = vpop.f32.mrf.mxu2 }
 0x537   : > { %v16931_v19 = vpop.f32.mrf.mxu3 }
 0x539   : > { %v2707_v26 = vpop.f32.mrf.mxu0  ;;  %3321 = vmatpush.bf16.msra.mxu3 %v14833_v8 }
 0x53c   : > { %2992 = vmatmul.bf16.gmra.mxu3 %v2904_v22 }
 0x53d   : > { %3322 = vmatpush.bf16.msra.mxu3 %v14832_v63  ;;  %v3231_v59 = vpop.f32.mrf.mxu2 }
 0x53e   : > { %v3249_v4 = vpack.c.bf16 %v3231_v59, %v3229_v39 }
 0x540   : > { %v2630_v23 = vpop.f32.mrf.mxu3 }
 0x541   : > { %v2709_v38 = vpop.f32.mrf.mxu0  ;;  %3323 = vmatpush.bf16.msra.mxu3 %v14831_v44 }
 0x542   : > { %v2727_v61 = vpack.c.bf16 %v2709_v38, %v2707_v26  ;;  %v16952_v38 = vpop.f32.mrf.mxu1 }
 0x544   : > { %2803 = vmatmul.bf16.vlgmr.msra.gmra.mxu1 %v2727_v61 }
 0x545   : > { %3324 = vmatpush.bf16.msra.mxu3 %v14830_v36  ;;  %v3234_v49 = vpop.f32.mrf.mxu2 }
 0x548   : > { %v16945_v28 = vpop.f32.mrf.mxu3 }
 0x549   : > { %v2712_v2 = vpop.f32.mrf.mxu0 }
 0x54c   : > { %3325 = vmatmul.bf16.vlgmr.msra.gmra.mxu3 %v3249_v4 }
 0x54d   : > { %v3236_v9 = vpop.f32.mrf.mxu2 }
 0x54e   : > { %v3250_v24 = vpack.c.bf16 %v3236_v9, %v3234_v49 }
 0x550   : > { %v2635_v32 = vpop.f32.mrf.mxu3 }
 0x551   : > { %v2714_v5 = vpop.f32.mrf.mxu0 }
 0x552   : > { %v2728_v14 = vpack.c.bf16 %v2714_v5, %v2712_v2 }
 0x554   : > { %2808 = vmatmul.bf16.gmra.mxu1 %v2728_v14 }
 0x555   : > { %v3239_v48 = vpop.f32.mrf.mxu2 }
 0x558   : > { %v16950_v20 = vpop.f32.mrf.mxu3 }
 0x559   : > { %v2717_v43 = vpop.f32.mrf.mxu0 }
 0x55c   : > { %3330 = vmatmul.bf16.gmra.mxu3 %v3250_v24 }
 0x55d   : > { %v3241_v31 = vpop.f32.mrf.mxu2 }
 0x55e   : > { %v3251_v30 = vpack.c.bf16 %v3241_v31, %v3239_v48 }
 0x560   : > { %v2640_v8 = vpop.f32.mrf.mxu3 }
 0x561   : > { %v2719_v29 = vpop.f32.mrf.mxu0 }
 0x562   : > { %v2729_v10 = vpack.c.bf16 %v2719_v29, %v2717_v43 }
 0x564   : > { %2813 = vmatmul.bf16.gmra.mxu1 %v2729_v10 }
 0x565   : > { %v3244_v22 = vpop.f32.mrf.mxu2 }
 0x568   : > { %v16955_v36 = vpop.f32.mrf.mxu3 }
 0x569   : > { %v2722_v13 = vpop.f32.mrf.mxu0 }
 0x56c   : > { %3335 = vmatmul.bf16.gmra.mxu3 %v3251_v30 }
 0x56d   : > { %v3246_v41 = vpop.f32.mrf.mxu2 }
 0x56e   : > { %v3252_v2 = vpack.c.bf16 %v3246_v41, %v3244_v22 }
 0x570   : > { %v2645_v5 = vpop.f32.mrf.mxu3 }
 0x571   : > { %v2724_v26 = vpop.f32.mrf.mxu0 }
 0x572   : > { %v2730_v25 = vpack.c.bf16 %v2724_v26, %v2722_v13 }
 0x574   : > { %2818 = vmatmul.bf16.gmra.mxu1 %v2730_v25 }
 0x579   : > { %v3055_v61 = vpop.f32.mrf.mxu0 }
 0x57c   : > { %3340 = vmatmul.bf16.gmra.mxu3 %v3252_v2 }
 0x581   : > { %v2456_v63 = vpop.f32.mrf.mxu1  ;;  %v3057_v39 = vpop.f32.mrf.mxu0 }
 0x582   : > { %v2476_v42 = vadd.f32 %v2456_v63, %v16830_v47  ;;  %v3075_v44 = vpack.c.bf16 %v3057_v39, %v3055_v61  ;;  %v16960_v47 = vpop.f32.mrf.mxu3 }
 0x584   : > { %3151 = vmatmul.bf16.vlgmr.msrb.gmra.mxu1 %v3075_v44  ;;  %v2650_v17 = vadd.f32 %v2630_v23, %v2476_v42 }
 0x589   : > { %v2458_v59 = vpop.f32.mrf.mxu1  ;;  %v3060_v4 = vpop.f32.mrf.mxu0 }
 0x58f   : > { %v2978_v37 = vpop.f32.mrf.mxu3 }
 0x591   : > { %v2461_v14 = vpop.f32.mrf.mxu1  ;;  %v3062_v58 = vpop.f32.mrf.mxu0 }
 0x592   : > { %v2478_v45 = vadd.f32 %v2461_v14, %v16863_v54  ;;  %v3076_v49 = vpack.c.bf16 %v3062_v58, %v3060_v4 }
 0x594   : > { %3156 = vmatmul.bf16.gmra.mxu1 %v3076_v49  ;;  %v2652_v43 = vadd.f32 %v2635_v32, %v2478_v45 }
 0x597   : > { %v2980_v54 = vpop.f32.mrf.mxu3 }
 0x599   : > { %v16958_v15 = vpop.f32.mrf.mxu1  ;;  %v3065_v35 = vpop.f32.mrf.mxu0 }
 0x59f   : > { %v2983_v61 = vpop.f32.mrf.mxu3 }
 0x5a1   : > { %v2466_v9 = vpop.f32.mrf.mxu1  ;;  %v3067_v29 = vpop.f32.mrf.mxu0 }
 0x5a2   : > { %v2480_v23 = vadd.f32 %v2466_v9, %v16884_v34  ;;  %v3077_v24 = vpack.c.bf16 %v3067_v29, %v3065_v35 }
 0x5a4   : > { %3161 = vmatmul.bf16.gmra.mxu1 %v3077_v24  ;;  %v2654_v10 = vadd.f32 %v2640_v8, %v2480_v23 }
 0x5a7   : > { %v2985_v63 = vpop.f32.mrf.mxu3 }
 0x5a9   : > { %v16963_v48 = vpop.f32.mrf.mxu1  ;;  %v3070_v13 = vpop.f32.mrf.mxu0 }
 0x5af   : > { %v2988_v2 = vpop.f32.mrf.mxu3 }
 0x5b1   : > { %v2471_v31 = vpop.f32.mrf.mxu1  ;;  %v3072_v26 = vpop.f32.mrf.mxu0 }
 0x5b2   : > { %v2482_v32 = vadd.f32 %v2471_v31, %v16896_v53  ;;  %v3078_v30 = vpack.c.bf16 %v3072_v26, %v3070_v13 }
 0x5b4   : > { %3166 = vmatmul.bf16.gmra.mxu1 %v3078_v30  ;;  %v2656_v25 = vadd.f32 %v2645_v5, %v2482_v32 }
 0x5b7   : > { %v16968_v14 = vpop.f32.mrf.mxu3 }
 0x5b9   : > { %v16966_v22 = vpop.f32.mrf.mxu1 }
 0x5bf   : > { %v2993_v53 = vpop.f32.mrf.mxu3 }
 0x5c1   : > { %v2804_v41 = vpop.f32.mrf.mxu1 }
 0x5c2   : > { %v2824_v34 = vadd.f32 %v2804_v41, %v2650_v17 }
 0x5c4   : > { %v2998_v39 = vadd.f32 %v2978_v37, %v2824_v34 }
 0x5c7   : > { %v16974_v9 = vpop.f32.mrf.mxu3 }
 0x5c9   : > { %v2806_v8 = vpop.f32.mrf.mxu1 }
 0x5cf   : > { %v3326_v24 = vpop.f32.mrf.mxu3 }
 0x5d1   : > { %v2809_v42 = vpop.f32.mrf.mxu1 }
 0x5d2   : > { %v2826_v44 = vadd.f32 %v2809_v42, %v2652_v43  ;;  %v2119_v43 = vadd.f32 %v16722_v62, %v16720_v40  ;;  %v14853_v40 = vld [vmem:[%s19602_s7 + $0x2b8] sm:$0xff] }
 0x5d3   : > { %3522 = vmatpush.bf16.msra.mxu2 %v14853_v40 }
 0x5d4   : > { %v3000_v4 = vadd.f32 %v2983_v61, %v2826_v44  ;;  %v2303_v13 = vadd.f32 %v16841_v52, %v2119_v43 }
 0x5d6   : > { %v2477_v31 = vadd.f32 %v2458_v59, %v2303_v13  ;;  %v2124_v59 = vadd.f32 %v16757_v56, %v16755_v57  ;;  %v14851_v57 = vld [vmem:[%s19602_s7 + $0x2a8] sm:$0xff] }
 0x5d8   : > { %v2651_v32 = vadd.f32 %v16945_v28, %v2477_v31  ;;  %v2305_v28 = vadd.f32 %v16871_v46, %v2124_v59  ;;  %v14849_v31 = vld [vmem:[%s19602_s7 + $0x298] sm:$0xff] }
 0x5d9   : > { %v2811_v58 = vpop.f32.mrf.mxu1 }
 0x5da   : > { %v2825_v61 = vadd.f32 %v2806_v8, %v2651_v32  ;;  %v2479_v42 = vadd.f32 %v16958_v15, %v2305_v28  ;;  %v14850_v15 = vld [vmem:[%s19602_s7 + $0x2a0] sm:$0xff] }
 0x5dc   : > { %v2999_v34 = vadd.f32 %v2980_v54, %v2825_v61  ;;  %v14852_v54 = vld [vmem:[%s19602_s7 + $0x2b0] sm:$0xff]  ;;  %v2653_v46 = vadd.f32 %v16950_v20, %v2479_v42  ;;  %v2129_v20 = vadd.f32 %v16786_v6, %v16784_v12  ;;  %v14847_v12 = vld [vmem:[%s19602_s7 + $0x288] sm:$0xff] }
 0x5dd   : > { %3523 = vmatpush.bf16.msra.mxu2 %v14852_v54 }
 0x5e1   : > { %v2814_v45 = vpop.f32.mrf.mxu1  ;;  %3524 = vmatpush.bf16.msra.mxu2 %v14851_v57 }
 0x5e2   : > { %v2828_v49 = vadd.f32 %v2814_v45, %v2654_v10  ;;  %v3328_v10 = vpop.f32.mrf.mxu3 }
 0x5e4   : > { %v16970_v35 = vadd.f32 %v2988_v2, %v2828_v49 }
 0x5e5   : > { %3525 = vmatpush.bf16.msra.mxu2 %v14850_v15 }
 0x5e9   : > { %v16972_v5 = vpop.f32.mrf.mxu1  ;;  %3526 = vmatpush.bf16.msra.mxu2 %v14849_v31 }
 0x5ea   : > { %v3331_v62 = vpop.f32.mrf.mxu3 }
 0x5f1   : > { %v2819_v17 = vpop.f32.mrf.mxu1 }
 0x5f2   : > { %v2830_v29 = vadd.f32 %v2819_v17, %v2656_v25  ;;  %v16987_v25 = vld [vmem:[%s19603_s8] ss:$0 sm:$0xff]  ;;  %v3333_v17 = vpop.f32.mrf.mxu3 }
 0x5f4   : > { %v16976_v23 = vadd.f32 %v2993_v53, %v2830_v29  ;;  %v2827_v29 = vadd.f32 %v2811_v58, %v2653_v46  ;;  %v2307_v58 = vadd.f32 %v16889_v27, %v2129_v20 }
 0x5f6   : > { %v3001_v13 = vadd.f32 %v2985_v63, %v2827_v29  ;;  %v2481_v61 = vadd.f32 %v16963_v48, %v2307_v58  ;;  %v15518_v58 = vld [vmem:[%s19597_s2 + $0x30] sm:$0xff] }
 0x5f8   : > { %v2655_v27 = vadd.f32 %v16955_v36, %v2481_v61  ;;  %v2134_v36 = vadd.f32 %v16952_v38, %v16804_v18  ;;  %v14844_v61 = vld [vmem:[%s19602_s7 + $0x270] sm:$0xff] }
 0x5f9   : > { %v16978_v37 = vpop.f32.mrf.mxu1 }
 0x5fa   : > { %v3336_v63 = vpop.f32.mrf.mxu3  ;;  %v2829_v48 = vadd.f32 %v16972_v5, %v2655_v27  ;;  %v2309_v42 = vadd.f32 %v16931_v19, %v2134_v36  ;;  %v15523_v27 = vld [vmem:[%s19597_s2 + $0x50] sm:$0xff] }
 0x601   : > { %v3152_v26 = vpop.f32.mrf.mxu1 }
 0x602   : > { %v3172_v30 = vadd.f32 %v3152_v26, %v2998_v39 }
 0x604   : > { %v3346_v41 = vadd.f32 %v3326_v24, %v3172_v30  ;;  %v14848_v30 = vld [vmem:[%s19602_s7 + $0x290] sm:$0xff] }
 0x605   : > { %3527 = vmatpush.bf16.msra.mxu2 %v14848_v30  ;;  %v15521_v30 = vld [vmem:[%s19597_s2 + $0x40] sm:$0xff] }
 0x606   : > { %v3356_v39 = vadd.f32 %v16987_v25, %v3346_v41 }
 0x608   : > { %v3364_v45 = vmax.f32 %v3356_v39, 0.0  ;;  %v3003_v39 = vadd.f32 %v16968_v14, %v2829_v48  ;;  %v14838_v48 = vld [vmem:[%s19602_s7 + $0x240] sm:$0xff] }
 0x609   : > { %v3154_v52 = vpop.f32.mrf.mxu1  ;;  %3528 = vmatpush.bf16.msra.mxu2 %v14847_v12  ;;  %v14841_v12 = vld [vmem:[%s19602_s7 + $0x258] sm:$0xff] }
 0x60a   : > { %v3173_v2 = vadd.f32 %v3154_v52, %v2999_v34  ;;  %v14846_v52 = vld [vmem:[%s19602_s7 + $0x280] sm:$0xff] }
 0x60c   : > { %v3347_v8 = vadd.f32 %v3328_v10, %v3173_v2  ;;  %v3338_v2 = vpop.f32.mrf.mxu3 }
 0x60d   : > { %3529 = vmatpush.bf16.msra.mxu2 %v14846_v52  ;;  %v14839_v52 = vld [vmem:[%s19602_s7 + $0x248] sm:$0xff] }
 0x60e   : > { %v3357_v44 = vadd.f32 %v16987_v25, %v3347_v8 }
 0x610   : > { %v3365_v53 = vmax.f32 %v3357_v44, 0.0 }
 0x611   : > { %v3157_v56 = vpop.f32.mrf.mxu1 }
 0x612   : > { %v17005_v49 = vpack.c.bf16 %v3365_v53, %v3364_v45  ;;  %v3174_v24 = vadd.f32 %v3157_v56, %v3000_v4  ;;  %v2483_v53 = vadd.f32 %v16966_v22, %v2309_v42 }
 0x614   : > { %v3348_v43 = vadd.f32 %v3331_v62, %v3174_v24  ;;  %v3341_v56 = vpop.f32.mrf.mxu3  ;;  %v2657_v14 = vadd.f32 %v16960_v47, %v2483_v53 }
 0x616   : > { %v3358_v4 = vadd.f32 %v16987_v25, %v3348_v43  ;;  %v2831_v18 = vadd.f32 %v16978_v37, %v2657_v14  ;;  %v15515_v37 = vld [vmem:[%s19597_s2 + $0x8] sm:$0xff] }
 0x618   : > { %v3366_v34 = vmax.f32 %v3358_v4, 0.0  ;;  %v3005_v29 = vadd.f32 %v16974_v9, %v2831_v18  ;;  %v15513_v9 = vld [vmem:[%s19597_s2] sm:$0xff]  ;;  %v15519_v4 = vld [vmem:[%s19597_s2 + $0x18] sm:$0xff] }
 0x619   : > { %v3159_v10 = vpop.f32.mrf.mxu1 }
 0x61a   : > { %v3175_v26 = vadd.f32 %v3159_v10, %v3001_v13 }
 0x61c   : > { %v3349_v32 = vadd.f32 %v3333_v17, %v3175_v26  ;;  %v3343_v22 = vpop.f32.mrf.mxu3  ;;  %v15517_v26 = vld [vmem:[%s19597_s2 + $0x10] sm:$0xff] }
 0x61e   : > { %v3359_v41 = vadd.f32 %v16987_v25, %v3349_v32  ;;  %v15520_v32 = vld [vmem:[%s19597_s2 + $0x38] sm:$0xff] }
 0x620   : > { %v3367_v40 = vmax.f32 %v3359_v41, 0.0  ;;  %v15522_v41 = vld [vmem:[%s19597_s2 + $0x48] sm:$0xff] }
 0x621   : > { %v3162_v6 = vpop.f32.mrf.mxu1 }
 0x622   : > { %v17026_v62 = vpack.c.bf16 %v3367_v40, %v3366_v34  ;;  %v3176_v59 = vadd.f32 %v3162_v6, %v16970_v35  ;;  %v14843_v34 = vld [vmem:[%s19602_s7 + $0x268] sm:$0xff]  ;;  %v14842_v40 = vld [vmem:[%s19602_s7 + $0x260] sm:$0xff]  ;;  %v14840_v6 = vld [vmem:[%s19602_s7 + $0x250] sm:$0xff] }
 0x624   : > { %v3350_v28 = vadd.f32 %v3336_v63, %v3176_v59  ;;  %v14845_v63 = vld [vmem:[%s19602_s7 + $0x278] sm:$0xff] }
 0x625   : > { %3599 = vmatpush.bf16.msrb.mxu3 %v14845_v63  ;;  %v15524_v59 = vld [vmem:[%s19597_s2 + $0x58] sm:$0xff]  ;;  %v15529_v63 = vld [vmem:[%s19597_s2 + $0xc0] sm:$0xff] }
 0x626   : > { %v3360_v44 = vadd.f32 %v16987_v25, %v3350_v28 }
 0x628   : > { %v3368_v35 = vmax.f32 %v3360_v44, 0.0  ;;  %v14861_v44 = vld [vmem:[%s19602_s7 + $0x2f8] sm:$0xff] }
 0x629   : > { %v3164_v8 = vpop.f32.mrf.mxu1  ;;  %3600 = vmatpush.bf16.msrb.mxu3 %v14844_v61 }
 0x62a   : > { %v3177_v54 = vadd.f32 %v3164_v8, %v3003_v39  ;;  %v15525_v39 = vld [vmem:[%s19597_s2 + $0x80] sm:$0xff] }
 0x62c   : > { %v3351_v45 = vadd.f32 %v3338_v2, %v3177_v54 }
 0x62d   : > { %3601 = vmatpush.bf16.msrb.mxu3 %v14843_v34  ;;  %v15530_v34 = vld [vmem:[%s19597_s2 + $0x60] sm:$0xff] }
 0x62e   : > { %v3361_v5 = vadd.f32 %v16987_v25, %v3351_v45 }
 0x630   : > { %v3369_v57 = vmax.f32 %v3361_v5, 0.0  ;;  %v14860_v5 = vld [vmem:[%s19602_s7 + $0x2f0] sm:$0xff] }
 0x631   : > { %v3167_v46 = vpop.f32.mrf.mxu1  ;;  %3602 = vmatpush.bf16.msrb.mxu3 %v14842_v40 }
 0x632   : > { %v17041_v17 = vpack.c.bf16 %v3369_v57, %v3368_v35  ;;  %v3178_v38 = vadd.f32 %v3167_v46, %v16976_v23  ;;  %v15514_v23 = vld [vmem:[%s19597_s2 + $0x20] sm:$0xff]  ;;  %v14859_v35 = vld [vmem:[%s19602_s7 + $0x2e8] sm:$0xff] }
 0x633   : > { %v15526_v57 = vld [vmem:[%s19597_s2 + $0x88] sm:$0xff] }
 0x634   : > { %v3352_v19 = vadd.f32 %v3341_v56, %v3178_v38  ;;  %v14858_v38 = vld [vmem:[%s19602_s7 + $0x2e0] sm:$0xff] }
 0x635   : > { %3603 = vmatpush.bf16.msrb.mxu3 %v14841_v12  ;;  %v15531_v12 = vld [vmem:[%s19597_s2 + $0xc8] sm:$0xff] }
 0x636   : > { %v3362_v43 = vadd.f32 %v16987_v25, %v3352_v19  ;;  %v14857_v19 = vld [vmem:[%s19602_s7 + $0x2d8] sm:$0xff] }
 0x638   : > { %v3370_v10 = vmax.f32 %v3362_v43, 0.0  ;;  %v14855_v43 = vld [vmem:[%s19602_s7 + $0x2c8] sm:$0xff] }
 0x639   : > { %v3169_v24 = vpop.f32.mrf.mxu1  ;;  %3604 = vmatpush.bf16.msrb.mxu3 %v14840_v6 }
 0x63a   : > { %v3179_v15 = vadd.f32 %v3169_v24, %v3005_v29 }
 0x63c   : > { %v3353_v13 = vadd.f32 %v3343_v22, %v3179_v15  ;;  %v14856_v15 = vld [vmem:[%s19602_s7 + $0x2d0] sm:$0xff] }
 0x63d   : > { %3605 = vmatpush.bf16.msrb.mxu3 %v14839_v52  ;;  %v15527_v22 = vld [vmem:[%s19597_s2 + $0x90] sm:$0xff] }
 0x63e   : > { %v3363_v31 = vadd.f32 %v16987_v25, %v3353_v13  ;;  %v15516_v25 = vld [vmem:[%s19597_s2 + $0x28] sm:$0xff]  ;;  %v15533_v52 = vld [vmem:[%s19597_s2 + $0xd0] sm:$0xff] }
 0x640   : > { %v3371_v20 = vmax.f32 %v3363_v31, 0.0 }
 0x641   : > { %3606 = vmatpush.bf16.msrb.mxu3 %v14838_v48 }
 0x642   : > { %v17048_v47 = vpack.c.bf16 %v3371_v20, %v3370_v10 }
 0x644   : > { %3380 = vmatpush.bf16.msrb.mxu0 %v17048_v47  ;;  %3429 = vmatpush.bf16.msra.mxu1 %v17048_v47 }
 0x645   : > { %3766 = vmatpush.bf16.msrb.mxu2 %v17048_v47 }
 0x648   : > { %3381 = vmatpush.bf16.msrb.mxu0 %v17041_v17  ;;  %3430 = vmatpush.bf16.msra.mxu1 %v17041_v17 }
 0x649   : > { %3767 = vmatpush.bf16.msrb.mxu2 %v17041_v17 }
 0x64c   : > { %3382 = vmatpush.bf16.msrb.mxu0 %v17026_v62  ;;  %3431 = vmatpush.bf16.msra.mxu1 %v17026_v62 }
 0x64d   : > { %3768 = vmatpush.bf16.msrb.mxu2 %v17026_v62 }
 0x650   : > { %3383 = vmatpush.bf16.msrb.mxu0 %v17005_v49  ;;  %3432 = vmatpush.bf16.msra.mxu1 %v17005_v49 }
 0x651   : > { %3769 = vmatpush.bf16.msrb.mxu2 %v17005_v49 }
 0x653   : > { %12108 = vmatmul.msk.bf16.vlgmr.msrb.gmra.mxu0 %vm1831_vm0, %v15513_v9  ;;  %12112 = vmatmul.msk.bf16.vlgmr.msra.gmra.mxu1 %vm1831_vm0, %v15514_v23  ;;  %v14854_v9 = vld [vmem:[%s19602_s7 + $0x2c0] sm:$0xff] }
 0x654   : > { %3632 = vmatpush.bf16.msra.mxu0 %v17048_v47  ;;  %3725 = vmatpush.bf16.msrb.mxu1 %v14861_v44 }
 0x658   : > { %3633 = vmatpush.bf16.msra.mxu0 %v17041_v17  ;;  %3726 = vmatpush.bf16.msrb.mxu1 %v14860_v5 }
 0x65c   : > { %3634 = vmatpush.bf16.msra.mxu0 %v17026_v62  ;;  %3727 = vmatpush.bf16.msrb.mxu1 %v14859_v35 }
 0x660   : > { %3635 = vmatpush.bf16.msra.mxu0 %v17005_v49  ;;  %3728 = vmatpush.bf16.msrb.mxu1 %v14858_v38 }
 0x663   : > { %12109 = vmatmul.msk.bf16.gmra.mxu0 %vm1831_vm0, %v15515_v37  ;;  %12113 = vmatmul.msk.bf16.gmra.mxu1 %vm1831_vm0, %v15516_v25  ;;  %v15528_v25 = vld [vmem:[%s19597_s2 + $0x98] sm:$0xff] }
 0x664   : > { %3900 = vmatpush.bf16.msrb.mxu0 %v17048_v47  ;;  %3729 = vmatpush.bf16.msrb.mxu1 %v14857_v19  ;;  %v14868_v19 = vld [vmem:[%s19602_s7 + $0x330] sm:$0xff] }
 0x668   : > { %3901 = vmatpush.bf16.msrb.mxu0 %v17041_v17  ;;  %3730 = vmatpush.bf16.msrb.mxu1 %v14856_v15  ;;  %v14873_v15 = vld [vmem:[%s19602_s7 + $0x358] sm:$0xff] }
 0x66c   : > { %3902 = vmatpush.bf16.msrb.mxu0 %v17026_v62  ;;  %3731 = vmatpush.bf16.msrb.mxu1 %v14855_v43 }
 0x670   : > { %3903 = vmatpush.bf16.msrb.mxu0 %v17005_v49  ;;  %3732 = vmatpush.bf16.msrb.mxu1 %v14854_v9  ;;  %v15540_v9 = vld [vmem:[%s19597_s2 + $0xb0] sm:$0xff] }
 0x673   : > { %12110 = vmatmul.msk.bf16.gmra.mxu0 %vm1831_vm0, %v15517_v26  ;;  %12114 = vmatmul.msk.bf16.gmra.mxu1 %vm1831_vm0, %v15518_v58 }
 0x683   : > { %12111 = vmatmul.msk.bf16.gmra.mxu0 %vm1831_vm0, %v15519_v4  ;;  %12115 = vmatmul.msk.bf16.gmra.mxu1 %vm1831_vm0, %v15520_v32 }
 0x693   : > { %12180 = vmatmul.msk.bf16.vlgmr.msra.gmra.mxu0 %vm1831_vm0, %v15521_v30 }
 0x694   : > { %4168 = vmatpush.bf16.msra.mxu0 %v17048_v47 }
 0x698   : > { %4169 = vmatpush.bf16.msra.mxu0 %v17041_v17 }
 0x69c   : > { %4170 = vmatpush.bf16.msra.mxu0 %v17026_v62 }
 0x6a0   : > { %4171 = vmatpush.bf16.msra.mxu0 %v17005_v49 }
 0x6a3   : > { %12181 = vmatmul.msk.bf16.gmra.mxu0 %vm1831_vm0, %v15522_v41 }
 0x6b3   : > { %12182 = vmatmul.msk.bf16.gmra.mxu0 %vm1831_vm0, %v15523_v27 }
 0x6c3   : > { %12183 = vmatmul.msk.bf16.gmra.mxu0 %vm1831_vm0, %v15524_v59 }
 0x6d0   : > { %v3385_v2 = vpop.f32.mrf.mxu0  ;;  %v3434_v28 = vpop.f32.mrf.mxu1 }
 0x6d3   : > { %12252 = vmatmul.msk.bf16.vlgmr.msrb.gmra.mxu0 %vm1831_vm0, %v15525_v39 }
 0x6d4   : > { %4436 = vmatpush.bf16.msrb.mxu0 %v17048_v47 }
 0x6d8   : > { %4437 = vmatpush.bf16.msrb.mxu0 %v17041_v17  ;;  %v3387_v8 = vpop.f32.mrf.mxu0  ;;  %v3436_v36 = vpop.f32.mrf.mxu1 }
 0x6d9   : > { %v3405_v54 = vpack.c.bf16 %v3387_v8, %v3385_v2  ;;  %v3454_v42 = vpack.c.bf16 %v3436_v36, %v3434_v28  ;;  %v15535_v2 = vld [vmem:[%s19597_s2 + $0xd8] sm:$0xff]  ;;  %v15537_v36 = vld [vmem:[%s19597_s2 + $0x100] sm:$0xff] }
 0x6da   : > { %v15536_v8 = vld [vmem:[%s19597_s2 + $0x78] sm:$0xff] }
 0x6db   : > { %3530 = vmatmul.bf16.vlgmr.msra.gmra.mxu2 %v3454_v42  ;;  %3607 = vmatmul.bf16.vlgmr.msrb.gmra.mxu3 %v3405_v54  ;;  %v15538_v54 = vld [vmem:[%s19597_s2 + $0xa0] sm:$0xff] }
 0x6dc   : > { %4034 = vmatpush.bf16.msra.mxu2 %v17048_v47  ;;  %4438 = vmatpush.bf16.msrb.mxu0 %v17026_v62 }
 0x6e0   : > { %4035 = vmatpush.bf16.msra.mxu2 %v17041_v17  ;;  %4439 = vmatpush.bf16.msrb.mxu0 %v17005_v49  ;;  %v3390_v45 = vpop.f32.mrf.mxu0  ;;  %v3439_v53 = vpop.f32.mrf.mxu1 }
 0x6e3   : > { %12253 = vmatmul.msk.bf16.gmra.mxu0 %vm1831_vm0, %v15526_v57  ;;  %v14876_v57 = vld [vmem:[%s19602_s7 + $0x370] sm:$0xff] }
 0x6e4   : > { %4036 = vmatpush.bf16.msra.mxu2 %v17026_v62 }
 0x6e8   : > { %4037 = vmatpush.bf16.msra.mxu2 %v17005_v49  ;;  %v3392_v56 = vpop.f32.mrf.mxu0  ;;  %v3441_v46 = vpop.f32.mrf.mxu1 }
 0x6e9   : > { %v3406_v14 = vpack.c.bf16 %v3392_v56, %v3390_v45  ;;  %v3455_v18 = vpack.c.bf16 %v3441_v46, %v3439_v53  ;;  %v14877_v53 = vld [vmem:[%s19602_s7 + $0x378] sm:$0xff]  ;;  %v14875_v46 = vld [vmem:[%s19602_s7 + $0x368] sm:$0xff] }
 0x6ea   : > { %3993 = vmatpush.bf16.msra.mxu1 %v14877_v53  ;;  %v14869_v56 = vld [vmem:[%s19602_s7 + $0x338] sm:$0xff] }
 0x6eb   : > { %3535 = vmatmul.bf16.gmra.mxu2 %v3455_v18  ;;  %3612 = vmatmul.bf16.gmra.mxu3 %v3406_v14 }
 0x6ec   : > { %3859 = vmatpush.bf16.msra.mxu3 %v14869_v56  ;;  %v14891_v56 = vld [vmem:[%s19602_s7 + $0x3e8] sm:$0xff] }
 0x6ee   : > { %3994 = vmatpush.bf16.msra.mxu1 %v14876_v57  ;;  %v14885_v57 = vld [vmem:[%s19602_s7 + $0x3b8] sm:$0xff] }
 0x6f0   : > { %v3395_v29 = vpop.f32.mrf.mxu0  ;;  %v3444_v24 = vpop.f32.mrf.mxu1  ;;  %3860 = vmatpush.bf16.msra.mxu3 %v14868_v19 }
 0x6f2   : > { %3995 = vmatpush.bf16.msra.mxu1 %v14875_v46 }
 0x6f3   : > { %12254 = vmatmul.msk.bf16.gmra.mxu0 %vm1831_vm0, %v15527_v22 }
 0x6f8   : > { %v3397_v13 = vpop.f32.mrf.mxu0  ;;  %v3446_v31 = vpop.f32.mrf.mxu1 }
 0x6f9   : > { %v3407_v10 = vpack.c.bf16 %v3397_v13, %v3395_v29  ;;  %v3456_v20 = vpack.c.bf16 %v3446_v31, %v3444_v24  ;;  %v14874_v29 = vld [vmem:[%s19602_s7 + $0x360] sm:$0xff]  ;;  %v14867_v24 = vld [vmem:[%s19602_s7 + $0x328] sm:$0xff] }
 0x6fa   : > { %3996 = vmatpush.bf16.msra.mxu1 %v14874_v29  ;;  %3861 = vmatpush.bf16.msra.mxu3 %v14867_v24  ;;  %v14866_v13 = vld [vmem:[%s19602_s7 + $0x320] sm:$0xff]  ;;  %v14889_v29 = vld [vmem:[%s19602_s7 + $0x3d8] sm:$0xff] }
 0x6fb   : > { %3540 = vmatmul.bf16.gmra.mxu2 %v3456_v20  ;;  %3617 = vmatmul.bf16.gmra.mxu3 %v3407_v10  ;;  %v14872_v10 = vld [vmem:[%s19602_s7 + $0x350] sm:$0xff]  ;;  %v14871_v20 = vld [vmem:[%s19602_s7 + $0x348] sm:$0xff] }
 0x6fe   : > { %3997 = vmatpush.bf16.msra.mxu1 %v14873_v15  ;;  %3862 = vmatpush.bf16.msra.mxu3 %v14866_v13  ;;  %v14882_v13 = vld [vmem:[%s19602_s7 + $0x3a0] sm:$0xff] }
 0x700   : > { %v3400_v23 = vpop.f32.mrf.mxu0  ;;  %v3449_v37 = vpop.f32.mrf.mxu1 }
 0x702   : > { %3998 = vmatpush.bf16.msra.mxu1 %v14872_v10  ;;  %v14888_v10 = vld [vmem:[%s19602_s7 + $0x3d0] sm:$0xff] }
 0x703   : > { %12255 = vmatmul.msk.bf16.gmra.mxu0 %vm1831_vm0, %v15528_v25  ;;  %v14864_v25 = vld [vmem:[%s19602_s7 + $0x310] sm:$0xff] }
 0x706   : > { %3999 = vmatpush.bf16.msra.mxu1 %v14871_v20 }
 0x708   : > { %v3402_v26 = vpop.f32.mrf.mxu0  ;;  %v3451_v58 = vpop.f32.mrf.mxu1 }
 0x709   : > { %v3408_v4 = vpack.c.bf16 %v3402_v26, %v3400_v23  ;;  %v3457_v32 = vpack.c.bf16 %v3451_v58, %v3449_v37  ;;  %v14870_v26 = vld [vmem:[%s19602_s7 + $0x340] sm:$0xff] }
 0x70a   : > { %4000 = vmatpush.bf16.msra.mxu1 %v14870_v26  ;;  %v14880_v26 = vld [vmem:[%s19602_s7 + $0x390] sm:$0xff] }
 0x70b   : > { %3545 = vmatmul.bf16.gmra.mxu2 %v3457_v32  ;;  %3622 = vmatmul.bf16.gmra.mxu3 %v3408_v4 }
 0x710   : > { %v3637_v30 = vpop.f32.mrf.mxu0 }
 0x713   : > { %12324 = vmatmul.msk.bf16.vlgmr.msra.gmra.mxu0 %vm1831_vm0, %v15529_v63 }
 0x718   : > { %v3639_v61 = vpop.f32.mrf.mxu0 }
 0x719   : > { %v3657_v41 = vpack.c.bf16 %v3639_v61, %v3637_v30  ;;  %v14863_v30 = vld [vmem:[%s19602_s7 + $0x308] sm:$0xff] }
 0x71b   : > { %3733 = vmatmul.bf16.vlgmr.msrb.gmra.mxu1 %v3657_v41  ;;  %12216 = vmatmul.msk.bf16.vlgmr.msrb.gmra.mxu2 %vm1831_vm0, %v15530_v34  ;;  %v14862_v41 = vld [vmem:[%s19602_s7 + $0x300] sm:$0xff] }
 0x71c   : > { %4302 = vmatpush.bf16.msrb.mxu2 %v17048_v47  ;;  %v15532_v47 = vld [vmem:[%s19597_s2 + $0x68] sm:$0xff] }
 0x720   : > { %4303 = vmatpush.bf16.msrb.mxu2 %v17041_v17  ;;  %v3642_v40 = vpop.f32.mrf.mxu0 }
 0x723   : > { %12325 = vmatmul.msk.bf16.gmra.mxu0 %vm1831_vm0, %v15531_v12 }
 0x724   : > { %4304 = vmatpush.bf16.msrb.mxu2 %v17026_v62 }
 0x728   : > { %4305 = vmatpush.bf16.msrb.mxu2 %v17005_v49  ;;  %v3644_v6 = vpop.f32.mrf.mxu0  ;;  %v15534_v49 = vld [vmem:[%s19597_s2 + $0x70] sm:$0xff] }
 0x729   : > { %v3658_v27 = vpack.c.bf16 %v3644_v6, %v3642_v40  ;;  %v15541_v40 = vld [vmem:[%s19597_s2 + $0xb8] sm:$0xff] }
 0x72b   : > { %3738 = vmatmul.bf16.gmra.mxu1 %v3658_v27  ;;  %12217 = vmatmul.msk.bf16.gmra.mxu2 %vm1831_vm0, %v15532_v47 }
 0x730   : > { %v3647_v17 = vpop.f32.mrf.mxu0 }
 0x733   : > { %12326 = vmatmul.msk.bf16.gmra.mxu0 %vm1831_vm0, %v15533_v52 }
 0x738   : > { %v3649_v48 = vpop.f32.mrf.mxu0 }
 0x739   : > { %v3659_v62 = vpack.c.bf16 %v3649_v48, %v3647_v17 }
 0x73b   : > { %3743 = vmatmul.bf16.gmra.mxu1 %v3659_v62  ;;  %12218 = vmatmul.msk.bf16.gmra.mxu2 %vm1831_vm0, %v15534_v49  ;;  %v15542_v49 = vld [vmem:[%s19597_s2 + $0xe0] sm:$0xff] }
 0x740   : > { %v3652_v59 = vpop.f32.mrf.mxu0 }
 0x743   : > { %12327 = vmatmul.msk.bf16.gmra.mxu0 %vm1831_vm0, %v15535_v2 }
 0x748   : > { %v3654_v28 = vpop.f32.mrf.mxu0 }
 0x749   : > { %v3660_v39 = vpack.c.bf16 %v3654_v28, %v3652_v59 }
 0x74b   : > { %3748 = vmatmul.bf16.gmra.mxu1 %v3660_v39  ;;  %12219 = vmatmul.msk.bf16.gmra.mxu2 %vm1831_vm0, %v15536_v8  ;;  %v14893_v8 = vld [vmem:[%s19602_s7 + $0x3f8] sm:$0xff] }
 0x74c   : > { %4261 = vmatpush.bf16.msrb.mxu1 %v14893_v8 }
 0x750   : > { %v3905_v31 = vpop.f32.mrf.mxu0 }
 0x753   : > { %12396 = vmatmul.msk.bf16.vlgmr.msrb.gmra.mxu0 %vm1831_vm0, %v15537_v36 }
 0x758   : > { %v3907_v4 = vpop.f32.mrf.mxu0 }
 0x759   : > { %v3925_v32 = vpack.c.bf16 %v3907_v4, %v3905_v31 }
 0x75b   : > { %12288 = vmatmul.msk.bf16.vlgmr.msra.gmra.mxu2 %vm1831_vm0, %v15538_v54  ;;  %4001 = vmatmul.bf16.vlgmr.msra.gmra.mxu1 %v3925_v32 }
 0x75e   : > { %v3531_v42 = vpop.f32.mrf.mxu2  ;;  %v3608_v44 = vpop.f32.mrf.mxu3 }
 0x75f   : > { %v17238_v45 = vadd.f32 %v3608_v44, %v3531_v42  ;;  %v14892_v44 = vld [vmem:[%s19602_s7 + $0x3f0] sm:$0xff] }
 0x760   : > { %v3910_v34 = vpop.f32.mrf.mxu0  ;;  %4262 = vmatpush.bf16.msrb.mxu1 %v14892_v44 }
 0x763   : > { %12397 = vmatmul.msk.bf16.gmra.mxu0 %vm1831_vm0, %v16765_v51  ;;  %v15539_v51 = vld [vmem:[%s19597_s2 + $0xa8] sm:$0xff] }
 0x764   : > { %4263 = vmatpush.bf16.msrb.mxu1 %v14891_v56  ;;  %v14908_v56 = vld [vmem:[%s19602_s7 + $0x470] sm:$0xff] }
 0x766   : > { %v17245_v5 = vpop.f32.mrf.mxu2  ;;  %v17247_v35 = vpop.f32.mrf.mxu3 }
 0x768   : > { %v3912_v27 = vpop.f32.mrf.mxu0 }
 0x769   : > { %v3926_v47 = vpack.c.bf16 %v3912_v27, %v3910_v34 }
 0x76b   : > { %12289 = vmatmul.msk.bf16.gmra.mxu2 %vm1831_vm0, %v15539_v51  ;;  %4006 = vmatmul.bf16.gmra.mxu1 %v3926_v47  ;;  %v14884_v51 = vld [vmem:[%s19602_s7 + $0x3b0] sm:$0xff] }
 0x76e   : > { %v3536_v14 = vpop.f32.mrf.mxu2  ;;  %v3613_v18 = vpop.f32.mrf.mxu3 }
 0x76f   : > { %v17262_v38 = vadd.f32 %v3613_v18, %v3536_v14  ;;  %v14890_v14 = vld [vmem:[%s19602_s7 + $0x3e0] sm:$0xff] }
 0x770   : > { %v3915_v52 = vpop.f32.mrf.mxu0  ;;  %4264 = vmatpush.bf16.msrb.mxu1 %v14890_v14 }
 0x773   : > { %12398 = vmatmul.msk.bf16.gmra.mxu0 %vm1831_vm0, %v16794_v11  ;;  %v14865_v11 = vld [vmem:[%s19602_s7 + $0x318] sm:$0xff] }
 0x774   : > { %3863 = vmatpush.bf16.msra.mxu3 %v14865_v11  ;;  %4265 = vmatpush.bf16.msrb.mxu1 %v14889_v29 }
 0x776   : > { %v17278_v22 = vpop.f32.mrf.mxu2  ;;  %v17280_v43 = vpop.f32.mrf.mxu3 }
 0x778   : > { %3864 = vmatpush.bf16.msra.mxu3 %v14864_v25  ;;  %v3917_v2 = vpop.f32.mrf.mxu0  ;;  %4266 = vmatpush.bf16.msrb.mxu1 %v14888_v10  ;;  %v14898_v10 = vld [vmem:[%s19602_s7 + $0x420] sm:$0xff] }
 0x779   : > { %v3927_v39 = vpack.c.bf16 %v3917_v2, %v3915_v52  ;;  %v15544_v52 = vld [vmem:[%s19597_s2 + $0xf8] sm:$0xff] }
 0x77b   : > { %12290 = vmatmul.msk.bf16.gmra.mxu2 %vm1831_vm0, %v15540_v9  ;;  %4011 = vmatmul.bf16.gmra.mxu1 %v3927_v39  ;;  %v14887_v9 = vld [vmem:[%s19602_s7 + $0x3c8] sm:$0xff] }
 0x77c   : > { %3865 = vmatpush.bf16.msra.mxu3 %v14863_v30  ;;  %4267 = vmatpush.bf16.msrb.mxu1 %v14887_v9  ;;  %v14904_v9 = vld [vmem:[%s19602_s7 + $0x450] sm:$0xff] }
 0x77e   : > { %v3541_v23 = vpop.f32.mrf.mxu2  ;;  %v3618_v37 = vpop.f32.mrf.mxu3 }
 0x77f   : > { %v17304_v58 = vadd.f32 %v3618_v37, %v3541_v23  ;;  %v14881_v23 = vld [vmem:[%s19602_s7 + $0x398] sm:$0xff]  ;;  %v15543_v37 = vld [vmem:[%s19597_s2 + $0xf0] sm:$0xff] }
 0x780   : > { %3866 = vmatpush.bf16.msra.mxu3 %v14862_v41  ;;  %v3920_v42 = vpop.f32.mrf.mxu0  ;;  %v14879_v41 = vld [vmem:[%s19602_s7 + $0x388] sm:$0xff] }
 0x783   : > { %12399 = vmatmul.msk.bf16.gmra.mxu0 %vm1831_vm0, %v16812_v0 }
 0x784   : > { %4127 = vmatpush.bf16.msrb.mxu3 %v14885_v57 }
 0x786   : > { %v17311_v63 = vpop.f32.mrf.mxu2  ;;  %v17313_v61 = vpop.f32.mrf.mxu3 }
 0x788   : > { %v3922_v18 = vpop.f32.mrf.mxu0  ;;  %4128 = vmatpush.bf16.msrb.mxu3 %v14884_v51  ;;  %v14907_v51 = vld [vmem:[%s19602_s7 + $0x468] sm:$0xff] }
 0x789   : > { %v3928_v19 = vpack.c.bf16 %v3922_v18, %v3920_v42  ;;  %v14900_v18 = vld [vmem:[%s19602_s7 + $0x430] sm:$0xff] }
 0x78b   : > { %12291 = vmatmul.msk.bf16.gmra.mxu2 %vm1831_vm0, %v15541_v40  ;;  %4016 = vmatmul.bf16.gmra.mxu1 %v3928_v19  ;;  %v14906_v19 = vld [vmem:[%s19602_s7 + $0x460] sm:$0xff] }
 0x78e   : > { %v3546_v12 = vpop.f32.mrf.mxu2  ;;  %v3623_v0 = vpop.f32.mrf.mxu3 }
 0x78f   : > { %v17322_v6 = vadd.f32 %v3623_v0, %v3546_v12  ;;  %v14878_v12 = vld [vmem:[%s19602_s7 + $0x380] sm:$0xff] }
 0x790   : > { %v4173_v31 = vpop.f32.mrf.mxu0 }
 0x796   : > { %v17324_v17 = vpop.f32.mrf.mxu2 }
 0x798   : > { %v3734_v48 = vpop.f32.mrf.mxu1  ;;  %v4175_v4 = vpop.f32.mrf.mxu0 }
 0x799   : > { %v17327_v62 = vadd.f32 %v3734_v48, %v17238_v45  ;;  %v4193_v30 = vpack.c.bf16 %v4175_v4, %v4173_v31  ;;  %v14902_v4 = vld [vmem:[%s19602_s7 + $0x440] sm:$0xff] }
 0x79b   : > { %12360 = vmatmul.msk.bf16.vlgmr.msrb.gmra.mxu2 %vm1831_vm0, %v15542_v49 }
 0x79e   : > { %v3771_v59 = vpop.f32.mrf.mxu2 }
 0x7a0   : > { %v17333_v28 = vpop.f32.mrf.mxu1  ;;  %v4178_v0 = vpop.f32.mrf.mxu0 }
 0x7a6   : > { %v3773_v36 = vpop.f32.mrf.mxu2 }
 0x7a7   : > { %v3791_v54 = vpack.c.bf16 %v3773_v36, %v3771_v59 }
 0x7a8   : > { %v3739_v45 = vpop.f32.mrf.mxu1  ;;  %v4180_v49 = vpop.f32.mrf.mxu0 }
 0x7a9   : > { %v17342_v53 = vadd.f32 %v3739_v45, %v17262_v38  ;;  %3867 = vmatmul.bf16.vlgmr.msra.gmra.mxu3 %v3791_v54  ;;  %v4194_v59 = vpack.c.bf16 %v4180_v49, %v4178_v0 }
 0x7ab   : > { %12361 = vmatmul.msk.bf16.gmra.mxu2 %vm1831_vm0, %v16846_v33  ;;  %v14883_v33 = vld [vmem:[%s19602_s7 + $0x3a8] sm:$0xff] }
 0x7ac   : > { %4129 = vmatpush.bf16.msrb.mxu3 %v14883_v33 }
 0x7ae   : > { %v3776_v46 = vpop.f32.mrf.mxu2 }
 0x7b0   : > { %v17358_v38 = vpop.f32.mrf.mxu1  ;;  %4130 = vmatpush.bf16.msrb.mxu3 %v14882_v13  ;;  %v4183_v8 = vpop.f32.mrf.mxu0 }
 0x7b4   : > { %4131 = vmatpush.bf16.msrb.mxu3 %v14881_v23 }
 0x7b6   : > { %v3778_v24 = vpop.f32.mrf.mxu2 }
 0x7b7   : > { %v3792_v15 = vpack.c.bf16 %v3778_v24, %v3776_v46  ;;  %v14901_v46 = vld [vmem:[%s19602_s7 + $0x438] sm:$0xff]  ;;  %v14899_v24 = vld [vmem:[%s19602_s7 + $0x428] sm:$0xff] }
 0x7b8   : > { %v3744_v11 = vpop.f32.mrf.mxu1  ;;  %4132 = vmatpush.bf16.msrb.mxu3 %v14880_v26  ;;  %v4185_v54 = vpop.f32.mrf.mxu0 }
 0x7b9   : > { %v17373_v20 = vadd.f32 %v3744_v11, %v17304_v58  ;;  %3872 = vmatmul.bf16.gmra.mxu3 %v3792_v15  ;;  %v14886_v58 = vld [vmem:[%s19602_s7 + $0x3c0] sm:$0xff]  ;;  %v4195_v42 = vpack.c.bf16 %v4185_v54, %v4183_v8  ;;  %v14905_v15 = vld [vmem:[%s19602_s7 + $0x458] sm:$0xff] }
 0x7ba   : > { %4268 = vmatpush.bf16.msrb.mxu1 %v14886_v58  ;;  %v14896_v58 = vld [vmem:[%s19602_s7 + $0x410] sm:$0xff] }
 0x7bb   : > { %12362 = vmatmul.msk.bf16.gmra.mxu2 %vm1831_vm0, %v15543_v37  ;;  %v14903_v37 = vld [vmem:[%s19602_s7 + $0x448] sm:$0xff] }
 0x7bc   : > { %4133 = vmatpush.bf16.msrb.mxu3 %v14879_v41 }
 0x7bd   : > { %4269 = vmatmul.bf16.vlgmr.msrb.gmra.mxu1 %v4193_v30 }
 0x7be   : > { %v3781_v25 = vpop.f32.mrf.mxu2 }
 0x7c0   : > { %v17391_v32 = vpop.f32.mrf.mxu1  ;;  %4134 = vmatpush.bf16.msrb.mxu3 %v14878_v12  ;;  %v4188_v57 = vpop.f32.mrf.mxu0 }
 0x7c4   : > { %4395 = vmatpush.bf16.msra.mxu3 %v14901_v46 }
 0x7c6   : > { %v3783_v34 = vpop.f32.mrf.mxu2 }
 0x7c7   : > { %v3793_v40 = vpack.c.bf16 %v3783_v34, %v3781_v25  ;;  %v14897_v25 = vld [vmem:[%s19602_s7 + $0x418] sm:$0xff] }
 0x7c8   : > { %v3749_v27 = vpop.f32.mrf.mxu1  ;;  %v4190_v33 = vpop.f32.mrf.mxu0  ;;  %4396 = vmatpush.bf16.msra.mxu3 %v14900_v18 }
 0x7c9   : > { %v17400_v47 = vadd.f32 %v3749_v27, %v17322_v6  ;;  %3877 = vmatmul.bf16.gmra.mxu3 %v3793_v40  ;;  %v14909_v6 = vld [vmem:[%s19602_s7 + $0x478] sm:$0xff]  ;;  %v4196_v29 = vpack.c.bf16 %v4190_v33, %v4188_v57  ;;  %v14895_v40 = vld [vmem:[%s19602_s7 + $0x408] sm:$0xff]  ;;  %v14894_v27 = vld [vmem:[%s19602_s7 + $0x400] sm:$0xff]  ;;  %v17460_v57 = vpop.f32.mrf.mxu3 }
 0x7ca   : > { %4529 = vmatpush.bf16.msra.mxu1 %v14909_v6 }
 0x7cb   : > { %12363 = vmatmul.msk.bf16.gmra.mxu2 %vm1831_vm0, %v15544_v52 }
 0x7cc   : > { %4397 = vmatpush.bf16.msra.mxu3 %v14899_v24 }
 0x7cd   : > { %4274 = vmatmul.bf16.gmra.mxu1 %v4194_v59 }
 0x7ce   : > { %v3786_v48 = vpop.f32.mrf.mxu2  ;;  %4530 = vmatpush.bf16.msra.mxu1 %v14908_v56 }
 0x7d0   : > { %v4441_v11 = vpop.f32.mrf.mxu0  ;;  %v17436_v23 = vpop.f32.mrf.mxu1  ;;  %4398 = vmatpush.bf16.msra.mxu3 %v14898_v10 }
 0x7d2   : > { %4531 = vmatpush.bf16.msra.mxu1 %v14907_v51 }
 0x7d4   : > { %4399 = vmatpush.bf16.msra.mxu3 %v14897_v25 }
 0x7d6   : > { %v3788_v2 = vpop.f32.mrf.mxu2  ;;  %4532 = vmatpush.bf16.msra.mxu1 %v14906_v19 }
 0x7d7   : > { %v3794_v39 = vpack.c.bf16 %v3788_v2, %v3786_v48 }
 0x7d8   : > { %v4443_v30 = vpop.f32.mrf.mxu0  ;;  %v4002_v34 = vpop.f32.mrf.mxu1  ;;  %4400 = vmatpush.bf16.msra.mxu3 %v14896_v58 }
 0x7d9   : > { %3882 = vmatmul.bf16.gmra.mxu3 %v3794_v39  ;;  %v4461_v41 = vpack.c.bf16 %v4443_v30, %v4441_v11 }
 0x7da   : > { %4533 = vmatpush.bf16.msra.mxu1 %v14905_v15 }
 0x7dc   : > { %4401 = vmatpush.bf16.msra.mxu3 %v14895_v40 }
 0x7dd   : > { %4279 = vmatmul.bf16.gmra.mxu1 %v4195_v42 }
 0x7de   : > { %v4039_v36 = vpop.f32.mrf.mxu2  ;;  %4534 = vmatpush.bf16.msra.mxu1 %v14904_v9 }
 0x7e0   : > { %v4446_v52 = vpop.f32.mrf.mxu0  ;;  %v17456_v48 = vpop.f32.mrf.mxu1  ;;  %4402 = vmatpush.bf16.msra.mxu3 %v14894_v27 }
 0x7e2   : > { %4535 = vmatpush.bf16.msra.mxu1 %v14903_v37 }
 0x7e6   : > { %v4041_v44 = vpop.f32.mrf.mxu2  ;;  %4536 = vmatpush.bf16.msra.mxu1 %v14902_v4 }
 0x7e7   : > { %v4059_v45 = vpack.c.bf16 %v4041_v44, %v4039_v36 }
 0x7e8   : > { %v4448_v59 = vpop.f32.mrf.mxu0  ;;  %v4007_v39 = vpop.f32.mrf.mxu1 }
 0x7e9   : > { %4135 = vmatmul.bf16.vlgmr.msrb.gmra.mxu3 %v4059_v45  ;;  %v4462_v2 = vpack.c.bf16 %v4448_v59, %v4446_v52 }
 0x7ed   : > { %4284 = vmatmul.bf16.gmra.mxu1 %v4196_v29 }
 0x7ee   : > { %v4044_v14 = vpop.f32.mrf.mxu2 }
 0x7f0   : > { %v4451_v6 = vpop.f32.mrf.mxu0  ;;  %v17458_v42 = vpop.f32.mrf.mxu1 }
 0x7f6   : > { %v4046_v13 = vpop.f32.mrf.mxu2 }
 0x7f7   : > { %v4060_v31 = vpack.c.bf16 %v4046_v13, %v4044_v14 }
 0x7f8   : > { %v4453_v44 = vpop.f32.mrf.mxu0  ;;  %v4012_v14 = vpop.f32.mrf.mxu1 }
 0x7f9   : > { %4140 = vmatmul.bf16.gmra.mxu3 %v4060_v31  ;;  %v4463_v45 = vpack.c.bf16 %v4453_v44, %v4451_v6 }
 0x7fd   : > { %4537 = vmatmul.bf16.vlgmr.msra.gmra.mxu1 %v4461_v41 }
 0x7fe   : > { %v4049_v26 = vpop.f32.mrf.mxu2 }
 0x800   : > { %v4456_v51 = vpop.f32.mrf.mxu0  ;;  %v17463_v13 = vpop.f32.mrf.mxu1 }
 0x806   : > { %v4051_v12 = vpop.f32.mrf.mxu2 }
 0x807   : > { %v4061_v0 = vpack.c.bf16 %v4051_v12, %v4049_v26 }
 0x808   : > { %v4458_v29 = vpop.f32.mrf.mxu0  ;;  %v4017_v37 = vpop.f32.mrf.mxu1 }
 0x809   : > { %4145 = vmatmul.bf16.gmra.mxu3 %v4061_v0  ;;  %v4464_v15 = vpack.c.bf16 %v4458_v29, %v4456_v51 }
 0x80d   : > { %4542 = vmatmul.bf16.gmra.mxu1 %v4462_v2 }
 0x80e   : > { %v4054_v49 = vpop.f32.mrf.mxu2 }
 0x810   : > { %v17468_v30 = vpop.f32.mrf.mxu1 }
 0x816   : > { %v4056_v8 = vpop.f32.mrf.mxu2 }
 0x817   : > { %v4062_v36 = vpack.c.bf16 %v4056_v8, %v4054_v49 }
 0x819   : > { %4150 = vmatmul.bf16.gmra.mxu3 %v4062_v36 }
 0x81d   : > { %4547 = vmatmul.bf16.gmra.mxu1 %v4463_v45 }
 0x81e   : > { %v4307_v54 = vpop.f32.mrf.mxu2 }
 0x826   : > { %v4309_v56 = vpop.f32.mrf.mxu2 }
 0x827   : > { %v4327_v46 = vpack.c.bf16 %v4309_v56, %v4307_v54 }
 0x829   : > { %4403 = vmatmul.bf16.vlgmr.msra.gmra.mxu3 %v4327_v46 }
 0x82c   : > { %v3868_v18 = vpop.f32.mrf.mxu3 }
 0x82d   : > { %v3888_v19 = vadd.f32 %v3868_v18, %v17327_v62  ;;  %4552 = vmatmul.bf16.gmra.mxu1 %v4464_v15 }
 0x82e   : > { %v4312_v33 = vpop.f32.mrf.mxu2 }
 0x82f   : > { %v4022_v24 = vadd.f32 %v4002_v34, %v3888_v19 }
 0x834   : > { %v3870_v31 = vpop.f32.mrf.mxu3 }
 0x836   : > { %v4314_v10 = vpop.f32.mrf.mxu2 }
 0x837   : > { %v4328_v11 = vpack.c.bf16 %v4314_v10, %v4312_v33 }
 0x839   : > { %4408 = vmatmul.bf16.gmra.mxu3 %v4328_v11 }
 0x83a   : > { %v4270_v27 = vpop.f32.mrf.mxu1 }
 0x83c   : > { %v3873_v9 = vpop.f32.mrf.mxu3 }
 0x83d   : > { %v3890_v25 = vadd.f32 %v3873_v9, %v17342_v53 }
 0x83e   : > { %v4317_v26 = vpop.f32.mrf.mxu2 }
 0x83f   : > { %v4024_v58 = vadd.f32 %v4007_v39, %v3890_v25 }
 0x842   : > { %v4272_v53 = vpop.f32.mrf.mxu1 }
 0x844   : > { %v17466_v4 = vpop.f32.mrf.mxu3 }
 0x846   : > { %v4319_v62 = vpop.f32.mrf.mxu2 }
 0x847   : > { %v4329_v41 = vpack.c.bf16 %v4319_v62, %v4317_v26 }
 0x849   : > { %4413 = vmatmul.bf16.gmra.mxu3 %v4329_v41 }
 0x84a   : > { %v4275_v6 = vpop.f32.mrf.mxu1 }
 0x84c   : > { %v3878_v34 = vpop.f32.mrf.mxu3 }
 0x84d   : > { %v3892_v40 = vadd.f32 %v3878_v34, %v17373_v20 }
 0x84e   : > { %v4322_v12 = vpop.f32.mrf.mxu2 }
 0x84f   : > { %v4026_v0 = vadd.f32 %v4012_v14, %v3892_v40 }
 0x852   : > { %v17476_v45 = vpop.f32.mrf.mxu1 }
 0x854   : > { %v17471_v52 = vpop.f32.mrf.mxu3 }
 0x856   : > { %v4324_v49 = vpop.f32.mrf.mxu2 }
 0x857   : > { %v4330_v59 = vpack.c.bf16 %v4324_v49, %v4322_v12  ;;  %v17497_v49 = vld [vmem:[%s19603_s8 + $0x1] ss:$0 sm:$0xff] }
 0x859   : > { %4418 = vmatmul.bf16.gmra.mxu3 %v4330_v59 }
 0x85a   : > { %v4280_v46 = vpop.f32.mrf.mxu1 }
 0x85c   : > { %v3883_v2 = vpop.f32.mrf.mxu3 }
 0x85d   : > { %v3894_v39 = vadd.f32 %v3883_v2, %v17400_v47 }
 0x85f   : > { %v4028_v8 = vadd.f32 %v4017_v37, %v3894_v39  ;;  %v4576_v39 = vunpack.c.l.bf16 %v16440_v7 }
 0x862   : > { %v17478_v19 = vpop.f32.mrf.mxu1 }
 0x864   : > { %v17474_v36 = vpop.f32.mrf.mxu3 }
 0x86a   : > { %v4285_v15 = vpop.f32.mrf.mxu1 }
 0x86c   : > { %v4136_v54 = vpop.f32.mrf.mxu3 }
 0x86d   : > { %v4156_v44 = vadd.f32 %v4136_v54, %v4022_v24 }
 0x86f   : > { %v4290_v20 = vadd.f32 %v4270_v27, %v4156_v44 }
 0x872   : > { %v17484_v9 = vpop.f32.mrf.mxu1 }
 0x874   : > { %v4138_v56 = vpop.f32.mrf.mxu3 }
 0x87a   : > { %v4538_v26 = vpop.f32.mrf.mxu1 }
 0x87c   : > { %v4141_v51 = vpop.f32.mrf.mxu3 }
 0x87d   : > { %v4158_v14 = vadd.f32 %v4141_v51, %v4024_v58  ;;  %v3611_v58 = vadd.f32 %v17247_v35, %v17245_v5 }
 0x87f   : > { %v4292_v18 = vadd.f32 %v4275_v6, %v4158_v14  ;;  %v3755_v41 = vadd.f32 %v17333_v28, %v3611_v58  ;;  %v3616_v6 = vadd.f32 %v17280_v43, %v17278_v22 }
 0x881   : > { %v3889_v34 = vadd.f32 %v3870_v31, %v3755_v41  ;;  %v3757_v54 = vadd.f32 %v17358_v38, %v3616_v6 }
 0x882   : > { %v4540_v40 = vpop.f32.mrf.mxu1 }
 0x884   : > { %v4143_v33 = vpop.f32.mrf.mxu3 }
 0x88a   : > { %v4543_v28 = vpop.f32.mrf.mxu1 }
 0x88c   : > { %v4146_v29 = vpop.f32.mrf.mxu3 }
 0x88d   : > { %v4160_v47 = vadd.f32 %v4146_v29, %v4026_v0  ;;  %v4023_v0 = vadd.f32 %v17456_v48, %v3889_v34 }
 0x88f   : > { %v17480_v10 = vadd.f32 %v4280_v46, %v4160_v47  ;;  %v4157_v59 = vadd.f32 %v4138_v56, %v4023_v0  ;;  %v3891_v56 = vadd.f32 %v17466_v4, %v3757_v54  ;;  %v14922_v0 = vld [vmem:[%s19602_s7 + $0x4e0] sm:$0xff] }
 0x891   : > { %v4291_v35 = vadd.f32 %v4272_v53, %v4157_v59  ;;  %v14925_v53 = vld [vmem:[%s19602_s7 + $0x4f8] sm:$0xff]  ;;  %v4025_v22 = vadd.f32 %v17458_v42, %v3891_v56 }
 0x892   : > { %4778 = vmatpush.bf16.msra.mxu0 %v14925_v53  ;;  %v4545_v4 = vpop.f32.mrf.mxu1 }
 0x894   : > { %v17482_v11 = vpop.f32.mrf.mxu3 }
 0x89c   : > { %v4151_v24 = vpop.f32.mrf.mxu3 }
 0x89d   : > { %v4162_v37 = vadd.f32 %v4151_v24, %v4028_v8 }
 0x89f   : > { %v17486_v25 = vadd.f32 %v4285_v15, %v4162_v37  ;;  %v4159_v15 = vadd.f32 %v4143_v33, %v4025_v22  ;;  %v4578_v37 = vunpack.c.l.bf16 %v16469_v55  ;;  %v3621_v55 = vadd.f32 %v17313_v61, %v17311_v63  ;;  %v14921_v63 = vld [vmem:[%s19602_s7 + $0x4d8] sm:$0xff] }
 0x8a1   : > { %v4293_v33 = vadd.f32 %v17476_v45, %v4159_v15 }
 0x8a4   : > { %v17488_v62 = vpop.f32.mrf.mxu3 }
 0x8ac   : > { %v4404_v12 = vpop.f32.mrf.mxu3 }
 0x8ad   : > { %v4424_v27 = vadd.f32 %v4404_v12, %v4290_v20  ;;  %v4577_v20 = vunpack.c.l.bf16 %v16445_v21  ;;  %v14924_v21 = vld [vmem:[%s19602_s7 + $0x4f0] sm:$0xff] }
 0x8ae   : > { %4779 = vmatpush.bf16.msra.mxu0 %v14924_v21  ;;  %v4581_v21 = vunpack.c.l.bf16 %v16501_v1 }
 0x8af   : > { %v4558_v2 = vadd.f32 %v4538_v26, %v4424_v27  ;;  %v3759_v27 = vadd.f32 %v17391_v32, %v3621_v55 }
 0x8b1   : > { %v4568_v8 = vadd.f32 %v17497_v49, %v4558_v2  ;;  %v4548_v2 = vpop.f32.mrf.mxu1 }
 0x8b3   : > { %v4584_v5 = vadd.f32 %v4576_v39, %v4568_v8  ;;  %v4579_v39 = vunpack.c.l.bf16 %v16474_v50  ;;  %v3893_v8 = vadd.f32 %v17471_v52, %v3759_v27  ;;  %v14920_v50 = vld [vmem:[%s19602_s7 + $0x4d0] sm:$0xff] }
 0x8b4   : > { %v4406_v31 = vpop.f32.mrf.mxu3 }
 0x8b5   : > { %v4425_v48 = vadd.f32 %v4406_v31, %v4291_v35  ;;  %v4592_v46 = vmax.f32 %v4584_v5, 0.0 }
 0x8b7   : > { %v4559_v44 = vadd.f32 %v4540_v40, %v4425_v48  ;;  %v17511_v43 = vpack.c.bf16 %v4592_v46, %v4592_v46 }
 0x8b9   : > { %v4569_v7 = vadd.f32 %v17497_v49, %v4559_v44  ;;  %v4616_v26 = vunpack.c.l.b16 %v17511_v43  ;;  %v4580_v44 = vunpack.c.l.bf16 %v16498_v16  ;;  %v4550_v46 = vpop.f32.mrf.mxu1  ;;  %v14918_v16 = vld [vmem:[%s19602_s7 + $0x4c0] sm:$0xff] }
 0x8bb   : > { %v4585_v51 = vadd.f32 %v4577_v20, %v4569_v7 }
 0x8bc   : > { %v4409_v14 = vpop.f32.mrf.mxu3 }
 0x8bd   : > { %v4593_v38 = vmax.f32 %v4585_v51, 0.0  ;;  %v4426_v29 = vadd.f32 %v4409_v14, %v4292_v18  ;;  %v14923_v18 = vld [vmem:[%s19602_s7 + $0x4e8] sm:$0xff]  ;;  %v3626_v14 = vadd.f32 %v17460_v57, %v17324_v17 }
 0x8be   : > { %4780 = vmatpush.bf16.msra.mxu0 %v14923_v18 }
 0x8bf   : > { %v17516_v47 = vpack.c.bf16 %v4593_v38, %v4593_v38  ;;  %v4560_v24 = vadd.f32 %v4543_v28, %v4426_v29  ;;  %v4027_v28 = vadd.f32 %v17463_v13, %v3893_v8  ;;  %v3761_v38 = vadd.f32 %v17436_v23, %v3626_v14  ;;  %v15556_v14 = vld [vmem:[%s19597_s2 + $0x58] sm:$0xff] }
 0x8c1   : > { %v4617_v42 = vunpack.c.l.b16 %v17516_v47  ;;  %v4570_v58 = vadd.f32 %v17497_v49, %v4560_v24  ;;  %v4161_v52 = vadd.f32 %v17482_v11, %v4027_v28  ;;  %v15548_v28 = vld [vmem:[%s19597_s2 + $0x28] sm:$0xff] }
 0x8c2   : > { %4781 = vmatpush.bf16.msra.mxu0 %v14922_v0 }
 0x8c3   : > { %v17525_v41 = vpack.c.b16 %v4617_v42, %v4616_v26  ;;  %v4586_v34 = vadd.f32 %v4578_v37, %v4570_v58  ;;  %v4295_v53 = vadd.f32 %v17478_v19, %v4161_v52  ;;  %v4553_v37 = vpop.f32.mrf.mxu1  ;;  %v15552_v52 = vld [vmem:[%s19597_s2 + $0x38] sm:$0xff] }
 0x8c4   : > { %v4411_v40 = vpop.f32.mrf.mxu3 }
 0x8c5   : > { %v4427_v12 = vadd.f32 %v4411_v40, %v4293_v33  ;;  %v4594_v45 = vmax.f32 %v4586_v34, 0.0 }
 0x8c6   : > { %4782 = vmatpush.bf16.msra.mxu0 %v14921_v63 }
 0x8c7   : > { %v4561_v59 = vadd.f32 %v4545_v4, %v4427_v12  ;;  %v17541_v32 = vpack.c.bf16 %v4594_v45, %v4594_v45  ;;  %v3895_v4 = vadd.f32 %v17474_v36, %v3761_v38  ;;  %v4582_v36 = vunpack.c.l.bf16 %v16514_v60 }
 0x8c9   : > { %v4571_v5 = vadd.f32 %v17497_v49, %v4561_v59  ;;  %v4618_v20 = vunpack.c.l.b16 %v17541_v32  ;;  %v4029_v42 = vadd.f32 %v17468_v30, %v3895_v4  ;;  %v4583_v59 = vunpack.c.l.bf16 %v16516_v3  ;;  %v15545_v3 = vld [vmem:[%s19597_s2] sm:$0xff] }
 0x8ca   : > { %4783 = vmatpush.bf16.msra.mxu0 %v14920_v50  ;;  %v15551_v50 = vld [vmem:[%s19597_s2 + $0x18] sm:$0xff] }
 0x8cb   : > { %v4587_v61 = vadd.f32 %v4579_v39, %v4571_v5  ;;  %v4163_v23 = vadd.f32 %v17488_v62, %v4029_v42  ;;  %v4555_v27 = vpop.f32.mrf.mxu1 }
 0x8cc   : > { %v4414_v35 = vpop.f32.mrf.mxu3 }
 0x8cd   : > { %v4595_v31 = vmax.f32 %v4587_v61, 0.0  ;;  %v4428_v6 = vadd.f32 %v4414_v35, %v17480_v10  ;;  %v14919_v10 = vld [vmem:[%s19602_s7 + $0x4c8] sm:$0xff]  ;;  %v4297_v12 = vadd.f32 %v17484_v9, %v4163_v23 }
 0x8ce   : > { %4784 = vmatpush.bf16.msra.mxu0 %v14919_v10  ;;  %v15547_v35 = vld [vmem:[%s19597_s2 + $0x8] sm:$0xff]  ;;  %v14914_v10 = vld [vmem:[%s19602_s7 + $0x4a0] sm:$0xff] }
 0x8cf   : > { %v17548_v48 = vpack.c.bf16 %v4595_v31, %v4595_v31  ;;  %v4562_v54 = vadd.f32 %v4548_v2, %v4428_v6  ;;  %v15549_v31 = vld [vmem:[%s19597_s2 + $0x10] sm:$0xff] }
 0x8d0   : > { %v15550_v6 = vld [vmem:[%s19597_s2 + $0x30] sm:$0xff] }
 0x8d1   : > { %v4619_v13 = vunpack.c.l.b16 %v17548_v48  ;;  %v4572_v56 = vadd.f32 %v17497_v49, %v4562_v54  ;;  %v15553_v54 = vld [vmem:[%s19597_s2 + $0x40] sm:$0xff] }
 0x8d2   : > { %4785 = vmatpush.bf16.msra.mxu0 %v14918_v16  ;;  %v14911_v16 = vld [vmem:[%s19602_s7 + $0x488] sm:$0xff] }
 0x8d3   : > { %v17557_v7 = vpack.c.b16 %v4619_v13, %v4618_v20  ;;  %v4588_v11 = vadd.f32 %v4580_v44, %v4572_v56  ;;  %v14917_v44 = vld [vmem:[%s19602_s7 + $0x4b8] sm:$0xff]  ;;  %v15554_v20 = vld [vmem:[%s19597_s2 + $0x48] sm:$0xff]  ;;  %v14916_v13 = vld [vmem:[%s19602_s7 + $0x4b0] sm:$0xff] }
 0x8d4   : > { %v4416_v51 = vpop.f32.mrf.mxu3  ;;  %4855 = vmatpush.bf16.msrb.mxu1 %v14917_v44  ;;  %v14915_v56 = vld [vmem:[%s19602_s7 + $0x4a8] sm:$0xff] }
 0x8d5   : > { %v4429_v22 = vadd.f32 %v4416_v51, %v4295_v53  ;;  %v4596_v15 = vmax.f32 %v4588_v11, 0.0  ;;  %v15555_v11 = vld [vmem:[%s19597_s2 + $0x50] sm:$0xff]  ;;  %v14910_v51 = vld [vmem:[%s19602_s7 + $0x480] sm:$0xff]  ;;  %v15563_v44 = vld [vmem:[%s19597_s2 + $0xc8] sm:$0xff] }
 0x8d6   : > { %v14912_v53 = vld [vmem:[%s19602_s7 + $0x490] sm:$0xff] }
 0x8d7   : > { %v4563_v29 = vadd.f32 %v4550_v46, %v4429_v22  ;;  %v17570_v58 = vpack.c.bf16 %v4596_v15, %v4596_v15  ;;  %v14913_v46 = vld [vmem:[%s19602_s7 + $0x498] sm:$0xff]  ;;  %v15557_v22 = vld [vmem:[%s19597_s2 + $0x80] sm:$0xff] }
 0x8d8   : > { %4856 = vmatpush.bf16.msrb.mxu1 %v14916_v13 }
 0x8d9   : > { %v4573_v19 = vadd.f32 %v17497_v49, %v4563_v29  ;;  %v4620_v34 = vunpack.c.l.b16 %v17570_v58 }
 0x8db   : > { %v4589_v24 = vadd.f32 %v4581_v21, %v4573_v19 }
 0x8dc   : > { %v4419_v26 = vpop.f32.mrf.mxu3  ;;  %4857 = vmatpush.bf16.msrb.mxu1 %v14915_v56 }
 0x8dd   : > { %v4597_v17 = vmax.f32 %v4589_v24, 0.0  ;;  %v4430_v57 = vadd.f32 %v4419_v26, %v17486_v25  ;;  %v14933_v24 = vld [vmem:[%s19602_s7 + $0x538] sm:$0xff] }
 0x8df   : > { %v17574_v18 = vpack.c.bf16 %v4597_v17, %v4597_v17  ;;  %v4564_v1 = vadd.f32 %v4553_v37, %v4430_v57  ;;  %v15558_v37 = vld [vmem:[%s19597_s2 + $0x88] sm:$0xff]  ;;  %v14932_v17 = vld [vmem:[%s19602_s7 + $0x530] sm:$0xff] }
 0x8e0   : > { %4858 = vmatpush.bf16.msrb.mxu1 %v14914_v10  ;;  %v14931_v57 = vld [vmem:[%s19602_s7 + $0x528] sm:$0xff]  ;;  %v15565_v10 = vld [vmem:[%s19597_s2 + $0xd0] sm:$0xff] }
 0x8e1   : > { %v4621_v33 = vunpack.c.l.b16 %v17574_v18  ;;  %v4574_v40 = vadd.f32 %v17497_v49, %v4564_v1 }
 0x8e3   : > { %v17580_v55 = vpack.c.b16 %v4621_v33, %v4620_v34  ;;  %v4590_v30 = vadd.f32 %v4582_v36, %v4574_v40  ;;  %v14930_v33 = vld [vmem:[%s19602_s7 + $0x520] sm:$0xff]  ;;  %v14929_v40 = vld [vmem:[%s19602_s7 + $0x518] sm:$0xff] }
 0x8e4   : > { %v4421_v0 = vpop.f32.mrf.mxu3  ;;  %4859 = vmatpush.bf16.msrb.mxu1 %v14913_v46 }
 0x8e5   : > { %v4431_v25 = vadd.f32 %v4421_v0, %v4297_v12  ;;  %v4598_v2 = vmax.f32 %v4590_v30, 0.0  ;;  %v15559_v30 = vld [vmem:[%s19597_s2 + $0x90] sm:$0xff] }
 0x8e7   : > { %v4565_v62 = vadd.f32 %v4555_v27, %v4431_v25  ;;  %v17585_v8 = vpack.c.bf16 %v4598_v2, %v4598_v2  ;;  %v14928_v25 = vld [vmem:[%s19602_s7 + $0x510] sm:$0xff]  ;;  %v14927_v27 = vld [vmem:[%s19602_s7 + $0x508] sm:$0xff] }
 0x8e8   : > { %4860 = vmatpush.bf16.msrb.mxu1 %v14912_v53 }
 0x8e9   : > { %v4575_v60 = vadd.f32 %v17497_v49, %v4565_v62  ;;  %v4622_v63 = vunpack.c.l.b16 %v17585_v8  ;;  %v15546_v49 = vld [vmem:[%s19597_s2 + $0x20] sm:$0xff] }
 0x8eb   : > { %v4591_v39 = vadd.f32 %v4583_v59, %v4575_v60 }
 0x8ec   : > { %4861 = vmatpush.bf16.msrb.mxu1 %v14911_v16 }
 0x8ed   : > { %v4599_v45 = vmax.f32 %v4591_v39, 0.0  ;;  %v14926_v39 = vld [vmem:[%s19602_s7 + $0x500] sm:$0xff] }
 0x8ef   : > { %v17587_v5 = vpack.c.bf16 %v4599_v45, %v4599_v45  ;;  %v15560_v45 = vld [vmem:[%s19597_s2 + $0x98] sm:$0xff] }
 0x8f0   : > { %4862 = vmatpush.bf16.msrb.mxu1 %v14910_v51 }
 0x8f1   : > { %v4623_v61 = vunpack.c.l.b16 %v17587_v5 }
 0x8f3   : > { %v17591_v9 = vpack.c.b16 %v4623_v61, %v4622_v63 }
 0x8f5   : > { %4636 = vmatpush.bf16.msra.mxu2 %v17591_v9  ;;  %4685 = vmatpush.bf16.msrb.mxu3 %v17591_v9 }
 0x8f6   : > { %5022 = vmatpush.bf16.msrb.mxu0 %v17591_v9 }
 0x8f9   : > { %4637 = vmatpush.bf16.msra.mxu2 %v17580_v55  ;;  %4686 = vmatpush.bf16.msrb.mxu3 %v17580_v55 }
 0x8fa   : > { %5023 = vmatpush.bf16.msrb.mxu0 %v17580_v55 }
 0x8fd   : > { %4638 = vmatpush.bf16.msra.mxu2 %v17557_v7  ;;  %4687 = vmatpush.bf16.msrb.mxu3 %v17557_v7 }
 0x8fe   : > { %5024 = vmatpush.bf16.msrb.mxu0 %v17557_v7 }
 0x901   : > { %4639 = vmatpush.bf16.msra.mxu2 %v17525_v41  ;;  %4688 = vmatpush.bf16.msrb.mxu3 %v17525_v41 }
 0x902   : > { %5025 = vmatpush.bf16.msrb.mxu0 %v17525_v41 }
 0x904   : > { %12432 = vmatmul.msk.bf16.vlgmr.msra.gmra.mxu2 %vm1831_vm0, %v15545_v3  ;;  %12436 = vmatmul.msk.bf16.vlgmr.msrb.gmra.mxu3 %vm1831_vm0, %v15546_v49 }
 0x905   : > { %4888 = vmatpush.bf16.msrb.mxu2 %v17591_v9  ;;  %4981 = vmatpush.bf16.msra.mxu3 %v14933_v24  ;;  %v17791_v24 = vld [vmem:[%s19597_s2 + $0xa0] sm:$0xff] }
 0x909   : > { %4889 = vmatpush.bf16.msrb.mxu2 %v17580_v55  ;;  %4982 = vmatpush.bf16.msra.mxu3 %v14932_v17 }
 0x90d   : > { %4890 = vmatpush.bf16.msrb.mxu2 %v17557_v7  ;;  %4983 = vmatpush.bf16.msra.mxu3 %v14931_v57  ;;  %v14945_v57 = vld [vmem:[%s19602_s7 + $0x598] sm:$0xff] }
 0x911   : > { %4891 = vmatpush.bf16.msrb.mxu2 %v17525_v41  ;;  %4984 = vmatpush.bf16.msra.mxu3 %v14930_v33 }
 0x914   : > { %12433 = vmatmul.msk.bf16.gmra.mxu2 %vm1831_vm0, %v15547_v35  ;;  %12437 = vmatmul.msk.bf16.gmra.mxu3 %vm1831_vm0, %v15548_v28 }
 0x915   : > { %5156 = vmatpush.bf16.msra.mxu2 %v17591_v9  ;;  %4985 = vmatpush.bf16.msra.mxu3 %v14929_v40 }
 0x919   : > { %5157 = vmatpush.bf16.msra.mxu2 %v17580_v55  ;;  %4986 = vmatpush.bf16.msra.mxu3 %v14928_v25  ;;  %v14939_v25 = vld [vmem:[%s19602_s7 + $0x568] sm:$0xff] }
 0x91d   : > { %5158 = vmatpush.bf16.msra.mxu2 %v17557_v7  ;;  %4987 = vmatpush.bf16.msra.mxu3 %v14927_v27 }
 0x921   : > { %5159 = vmatpush.bf16.msra.mxu2 %v17525_v41  ;;  %4988 = vmatpush.bf16.msra.mxu3 %v14926_v39 }
 0x924   : > { %12434 = vmatmul.msk.bf16.gmra.mxu2 %vm1831_vm0, %v15549_v31  ;;  %12438 = vmatmul.msk.bf16.gmra.mxu3 %vm1831_vm0, %v15550_v6  ;;  %v15561_v31 = vld [vmem:[%s19597_s2 + $0xc0] sm:$0xff] }
 0x934   : > { %12435 = vmatmul.msk.bf16.gmra.mxu2 %vm1831_vm0, %v15551_v50  ;;  %12439 = vmatmul.msk.bf16.gmra.mxu3 %vm1831_vm0, %v15552_v52 }
 0x944   : > { %12504 = vmatmul.msk.bf16.vlgmr.msrb.gmra.mxu2 %vm1831_vm0, %v15553_v54  ;;  %v15562_v54 = vld [vmem:[%s19597_s2 + $0x60] sm:$0xff] }
 0x945   : > { %5424 = vmatpush.bf16.msrb.mxu2 %v17591_v9 }
 0x949   : > { %5425 = vmatpush.bf16.msrb.mxu2 %v17580_v55 }
 0x94d   : > { %5426 = vmatpush.bf16.msrb.mxu2 %v17557_v7 }
 0x951   : > { %5427 = vmatpush.bf16.msrb.mxu2 %v17525_v41 }
 0x954   : > { %12505 = vmatmul.msk.bf16.gmra.mxu2 %vm1831_vm0, %v15554_v20 }
 0x964   : > { %12506 = vmatmul.msk.bf16.gmra.mxu2 %vm1831_vm0, %v15555_v11  ;;  %v15567_v11 = vld [vmem:[%s19597_s2 + $0xd8] sm:$0xff] }
 0x974   : > { %12507 = vmatmul.msk.bf16.gmra.mxu2 %vm1831_vm0, %v15556_v14  ;;  %v15568_v14 = vld [vmem:[%s19597_s2 + $0x78] sm:$0xff] }
 0x984   : > { %12576 = vmatmul.msk.bf16.vlgmr.msra.gmra.mxu2 %vm1831_vm0, %v15557_v22  ;;  %v15569_v22 = vld [vmem:[%s19597_s2 + $0x100] sm:$0xff] }
 0x985   : > { %5692 = vmatpush.bf16.msra.mxu2 %v17591_v9 }
 0x987   : > { %v4641_v38 = vpop.f32.mrf.mxu2  ;;  %v4690_v29 = vpop.f32.mrf.mxu3 }
 0x989   : > { %5693 = vmatpush.bf16.msra.mxu2 %v17580_v55 }
 0x98d   : > { %5694 = vmatpush.bf16.msra.mxu2 %v17557_v7 }
 0x98f   : > { %v4643_v21 = vpop.f32.mrf.mxu2  ;;  %v4692_v4 = vpop.f32.mrf.mxu3 }
 0x990   : > { %v4661_v15 = vpack.c.bf16 %v4643_v21, %v4641_v38  ;;  %v4710_v19 = vpack.c.bf16 %v4692_v4, %v4690_v29  ;;  %v14949_v38 = vld [vmem:[%s19602_s7 + $0x5b8] sm:$0xff]  ;;  %v14948_v29 = vld [vmem:[%s19602_s7 + $0x5b0] sm:$0xff] }
 0x991   : > { %5695 = vmatpush.bf16.msra.mxu2 %v17525_v41  ;;  %5249 = vmatpush.bf16.msrb.mxu3 %v14949_v38  ;;  %v17902_v38 = vld [vmem:[%s19597_s2 + $0xe0] sm:$0xff] }
 0x992   : > { %4786 = vmatmul.bf16.vlgmr.msra.gmra.mxu0 %v4710_v19  ;;  %4863 = vmatmul.bf16.vlgmr.msrb.gmra.mxu1 %v4661_v15  ;;  %v14947_v19 = vld [vmem:[%s19602_s7 + $0x5a8] sm:$0xff] }
 0x993   : > { %5290 = vmatpush.bf16.msra.mxu0 %v17591_v9 }
 0x994   : > { %12577 = vmatmul.msk.bf16.gmra.mxu2 %vm1831_vm0, %v15558_v37  ;;  %v14946_v37 = vld [vmem:[%s19602_s7 + $0x5a0] sm:$0xff] }
 0x995   : > { %5250 = vmatpush.bf16.msrb.mxu3 %v14948_v29 }
 0x997   : > { %5291 = vmatpush.bf16.msra.mxu0 %v17580_v55  ;;  %v4646_v26 = vpop.f32.mrf.mxu2  ;;  %v4695_v42 = vpop.f32.mrf.mxu3 }
 0x999   : > { %5251 = vmatpush.bf16.msrb.mxu3 %v14947_v19 }
 0x99b   : > { %5292 = vmatpush.bf16.msra.mxu0 %v17557_v7 }
 0x99d   : > { %5252 = vmatpush.bf16.msrb.mxu3 %v14946_v37 }
 0x99f   : > { %5293 = vmatpush.bf16.msra.mxu0 %v17525_v41  ;;  %v4648_v23 = vpop.f32.mrf.mxu2  ;;  %v4697_v1 = vpop.f32.mrf.mxu3 }
 0x9a0   : > { %v4662_v36 = vpack.c.bf16 %v4648_v23, %v4646_v26  ;;  %v4711_v34 = vpack.c.bf16 %v4697_v1, %v4695_v42  ;;  %v15571_v26 = vld [vmem:[%s19597_s2 + $0x108] sm:$0xff]  ;;  %v14941_v23 = vld [vmem:[%s19602_s7 + $0x578] sm:$0xff] }
 0x9a1   : > { %5253 = vmatpush.bf16.msrb.mxu3 %v14945_v57  ;;  %5115 = vmatpush.bf16.msra.mxu1 %v14941_v23  ;;  %v14961_v23 = vld [vmem:[%s19602_s7 + $0x618] sm:$0xff] }
 0x9a2   : > { %4791 = vmatmul.bf16.gmra.mxu0 %v4711_v34  ;;  %4868 = vmatmul.bf16.gmra.mxu1 %v4662_v36  ;;  %v14944_v36 = vld [vmem:[%s19602_s7 + $0x590] sm:$0xff] }
 0x9a4   : > { %12578 = vmatmul.msk.bf16.gmra.mxu2 %vm1831_vm0, %v15559_v30  ;;  %v14940_v30 = vld [vmem:[%s19602_s7 + $0x570] sm:$0xff] }
 0x9a5   : > { %5254 = vmatpush.bf16.msrb.mxu3 %v14944_v36  ;;  %5116 = vmatpush.bf16.msra.mxu1 %v14940_v30  ;;  %v14956_v30 = vld [vmem:[%s19602_s7 + $0x5f0] sm:$0xff] }
 0x9a7   : > { %v4651_v12 = vpop.f32.mrf.mxu2  ;;  %v4700_v0 = vpop.f32.mrf.mxu3 }
 0x9a9   : > { %5117 = vmatpush.bf16.msra.mxu1 %v14939_v25  ;;  %v17932_v25 = vld [vmem:[%s19597_s2 + $0xe8] sm:$0xff] }
 0x9af   : > { %v4653_v62 = vpop.f32.mrf.mxu2  ;;  %v4702_v59 = vpop.f32.mrf.mxu3 }
 0x9b0   : > { %v4663_v2 = vpack.c.bf16 %v4653_v62, %v4651_v12  ;;  %v4712_v60 = vpack.c.bf16 %v4702_v59, %v4700_v0  ;;  %v14943_v12 = vld [vmem:[%s19602_s7 + $0x588] sm:$0xff]  ;;  %v14942_v62 = vld [vmem:[%s19602_s7 + $0x580] sm:$0xff]  ;;  %v17839_v59 = vld [vmem:[%s19597_s2 + $0x110] sm:$0xff] }
 0x9b1   : > { %v17826_v0 = vld [vmem:[%s19597_s2 + $0xa8] sm:$0xff]  ;;  %5255 = vmatpush.bf16.msrb.mxu3 %v14943_v12 }
 0x9b2   : > { %4796 = vmatmul.bf16.gmra.mxu0 %v4712_v60  ;;  %4873 = vmatmul.bf16.gmra.mxu1 %v4663_v2  ;;  %v14959_v12 = vld [vmem:[%s19602_s7 + $0x608] sm:$0xff] }
 0x9b4   : > { %12579 = vmatmul.msk.bf16.gmra.mxu2 %vm1831_vm0, %v15560_v45  ;;  %v14938_v45 = vld [vmem:[%s19602_s7 + $0x560] sm:$0xff] }
 0x9b5   : > { %5256 = vmatpush.bf16.msrb.mxu3 %v14942_v62  ;;  %5118 = vmatpush.bf16.msra.mxu1 %v14938_v45 }
 0x9b7   : > { %v4656_v63 = vpop.f32.mrf.mxu2  ;;  %v4705_v61 = vpop.f32.mrf.mxu3 }
 0x9bf   : > { %v4658_v3 = vpop.f32.mrf.mxu2  ;;  %v4707_v49 = vpop.f32.mrf.mxu3 }
 0x9c0   : > { %v4664_v35 = vpack.c.bf16 %v4658_v3, %v4656_v63  ;;  %v4713_v28 = vpack.c.bf16 %v4707_v49, %v4705_v61  ;;  %v14937_v63 = vld [vmem:[%s19602_s7 + $0x558] sm:$0xff] }
 0x9c1   : > { %5119 = vmatpush.bf16.msra.mxu1 %v14937_v63 }
 0x9c2   : > { %4801 = vmatmul.bf16.gmra.mxu0 %v4713_v28  ;;  %4878 = vmatmul.bf16.gmra.mxu1 %v4664_v35  ;;  %v14936_v35 = vld [vmem:[%s19602_s7 + $0x550] sm:$0xff] }
 0x9c4   : > { %12648 = vmatmul.msk.bf16.vlgmr.msrb.gmra.mxu2 %vm1831_vm0, %v15561_v31  ;;  %v17861_v31 = vld [vmem:[%s19597_s2 + $0xb0] sm:$0xff] }
 0x9c5   : > { %5120 = vmatpush.bf16.msra.mxu1 %v14936_v35  ;;  %v14954_v35 = vld [vmem:[%s19602_s7 + $0x5e0] sm:$0xff] }
 0x9c7   : > { %v4893_v6 = vpop.f32.mrf.mxu2 }
 0x9cf   : > { %v4895_v50 = vpop.f32.mrf.mxu2 }
 0x9d0   : > { %v4913_v52 = vpack.c.bf16 %v4895_v50, %v4893_v6  ;;  %v14935_v6 = vld [vmem:[%s19602_s7 + $0x548] sm:$0xff] }
 0x9d1   : > { %5121 = vmatpush.bf16.msra.mxu1 %v14935_v6 }
 0x9d2   : > { %4989 = vmatmul.bf16.vlgmr.msra.gmra.mxu3 %v4913_v52  ;;  %12540 = vmatmul.msk.bf16.vlgmr.msrb.gmra.mxu0 %vm1831_vm0, %v15562_v54  ;;  %v15575_v52 = vld [vmem:[%s19597_s2 + $0x118] sm:$0xff] }
 0x9d3   : > { %5558 = vmatpush.bf16.msrb.mxu0 %v17591_v9  ;;  %v15564_v9 = vld [vmem:[%s19597_s2 + $0x68] sm:$0xff] }
 0x9d4   : > { %12649 = vmatmul.msk.bf16.gmra.mxu2 %vm1831_vm0, %v15563_v44 }
 0x9d7   : > { %5559 = vmatpush.bf16.msrb.mxu0 %v17580_v55  ;;  %v4898_v20 = vpop.f32.mrf.mxu2 }
 0x9db   : > { %5560 = vmatpush.bf16.msrb.mxu0 %v17557_v7 }
 0x9df   : > { %5561 = vmatpush.bf16.msrb.mxu0 %v17525_v41  ;;  %v4900_v13 = vpop.f32.mrf.mxu2  ;;  %v15566_v41 = vld [vmem:[%s19597_s2 + $0x70] sm:$0xff] }
 0x9e0   : > { %v4914_v56 = vpack.c.bf16 %v4900_v13, %v4898_v20  ;;  %v14934_v13 = vld [vmem:[%s19602_s7 + $0x540] sm:$0xff] }
 0x9e1   : > { %5122 = vmatpush.bf16.msra.mxu1 %v14934_v13  ;;  %v17959_v13 = vld [vmem:[%s19597_s2 + $0xf0] sm:$0xff] }
 0x9e2   : > { %4994 = vmatmul.bf16.gmra.mxu3 %v4914_v56  ;;  %12541 = vmatmul.msk.bf16.gmra.mxu0 %vm1831_vm0, %v15564_v9 }
 0x9e4   : > { %12650 = vmatmul.msk.bf16.gmra.mxu2 %vm1831_vm0, %v15565_v10 }
 0x9e7   : > { %v4903_v55 = vpop.f32.mrf.mxu2 }
 0x9ef   : > { %v4905_v46 = vpop.f32.mrf.mxu2 }
 0x9f0   : > { %v4915_v7 = vpack.c.bf16 %v4905_v46, %v4903_v55  ;;  %v17884_v46 = vld [vmem:[%s19597_s2 + $0xb8] sm:$0xff] }
 0x9f2   : > { %4999 = vmatmul.bf16.gmra.mxu3 %v4915_v7  ;;  %12542 = vmatmul.msk.bf16.gmra.mxu0 %vm1831_vm0, %v15566_v41 }
 0x9f4   : > { %12651 = vmatmul.msk.bf16.gmra.mxu2 %vm1831_vm0, %v15567_v11 }
 0x9f7   : > { %v4908_v53 = vpop.f32.mrf.mxu2 }
 0x9ff   : > { %v4910_v16 = vpop.f32.mrf.mxu2 }
 0xa00   : > { %v4916_v51 = vpack.c.bf16 %v4910_v16, %v4908_v53  ;;  %v14965_v53 = vld [vmem:[%s19602_s7 + $0x638] sm:$0xff] }
 0xa01   : > { %5517 = vmatpush.bf16.msra.mxu3 %v14965_v53 }
 0xa02   : > { %5004 = vmatmul.bf16.gmra.mxu3 %v4916_v51  ;;  %12543 = vmatmul.msk.bf16.gmra.mxu0 %vm1831_vm0, %v15568_v14  ;;  %v14964_v51 = vld [vmem:[%s19602_s7 + $0x630] sm:$0xff] }
 0xa04   : > { %12720 = vmatmul.msk.bf16.vlgmr.msra.gmra.mxu2 %vm1831_vm0, %v15569_v22  ;;  %v14963_v22 = vld [vmem:[%s19602_s7 + $0x628] sm:$0xff] }
 0xa05   : > { %5518 = vmatpush.bf16.msra.mxu3 %v14964_v51  ;;  %v14950_v51 = vld [vmem:[%s19602_s7 + $0x5c0] sm:$0xff] }
 0xa07   : > { %v5161_v1 = vpop.f32.mrf.mxu2 }
 0xa09   : > { %5519 = vmatpush.bf16.msra.mxu3 %v14963_v22 }
 0xa0f   : > { %v4787_v21 = vpop.f32.mrf.mxu0  ;;  %v4864_v4 = vpop.f32.mrf.mxu1 }
 0xa10   : > { %v17783_v15 = vadd.f32 %v4864_v4, %v4787_v21  ;;  %v5163_v27 = vpop.f32.mrf.mxu2  ;;  %v14962_v21 = vld [vmem:[%s19602_s7 + $0x620] sm:$0xff] }
 0xa11   : > { %v5181_v2 = vpack.c.bf16 %v5163_v27, %v5161_v1  ;;  %5520 = vmatpush.bf16.msra.mxu3 %v14962_v21  ;;  %v14957_v1 = vld [vmem:[%s19602_s7 + $0x5f8] sm:$0xff]  ;;  %v14955_v27 = vld [vmem:[%s19602_s7 + $0x5e8] sm:$0xff] }
 0xa12   : > { %12612 = vmatmul.msk.bf16.vlgmr.msra.gmra.mxu0 %vm1831_vm0, %v17791_v24  ;;  %5383 = vmatpush.bf16.msrb.mxu1 %v14957_v1  ;;  %v14981_v1 = vld [vmem:[%s19602_s7 + $0x6b8] sm:$0xff] }
 0xa13   : > { %5257 = vmatmul.bf16.vlgmr.msrb.gmra.mxu3 %v5181_v2  ;;  %v14958_v2 = vld [vmem:[%s19602_s7 + $0x600] sm:$0xff] }
 0xa14   : > { %12721 = vmatmul.msk.bf16.gmra.mxu2 %vm1831_vm0, %v15571_v26 }
 0xa15   : > { %5521 = vmatpush.bf16.msra.mxu3 %v14961_v23 }
 0xa16   : > { %5384 = vmatpush.bf16.msrb.mxu1 %v14956_v30 }
 0xa17   : > { %v17802_v42 = vpop.f32.mrf.mxu0  ;;  %v17804_v17 = vpop.f32.mrf.mxu1 }
 0xa18   : > { %v5166_v61 = vpop.f32.mrf.mxu2 }
 0xa1a   : > { %5385 = vmatpush.bf16.msrb.mxu1 %v14955_v27 }
 0xa1e   : > { %5386 = vmatpush.bf16.msrb.mxu1 %v14954_v35 }
 0xa1f   : > { %v4792_v34 = vpop.f32.mrf.mxu0  ;;  %v4869_v33 = vpop.f32.mrf.mxu1 }
 0xa20   : > { %v17815_v40 = vadd.f32 %v4869_v33, %v4792_v34  ;;  %v5168_v50 = vpop.f32.mrf.mxu2 }
 0xa21   : > { %v5182_v54 = vpack.c.bf16 %v5168_v50, %v5166_v61  ;;  %v14953_v50 = vld [vmem:[%s19602_s7 + $0x5d8] sm:$0xff] }
 0xa22   : > { %12613 = vmatmul.msk.bf16.gmra.mxu0 %vm1831_vm0, %v17826_v0  ;;  %5387 = vmatpush.bf16.msrb.mxu1 %v14953_v50  ;;  %v14975_v50 = vld [vmem:[%s19602_s7 + $0x688] sm:$0xff] }
 0xa23   : > { %5262 = vmatmul.bf16.gmra.mxu3 %v5182_v54  ;;  %v14952_v54 = vld [vmem:[%s19602_s7 + $0x5d0] sm:$0xff] }
 0xa24   : > { %12722 = vmatmul.msk.bf16.gmra.mxu2 %vm1831_vm0, %v17839_v59 }
 0xa26   : > { %5388 = vmatpush.bf16.msrb.mxu1 %v14952_v54 }
 0xa27   : > { %v17843_v60 = vpop.f32.mrf.mxu0  ;;  %v17845_v39 = vpop.f32.mrf.mxu1 }
 0xa28   : > { %v5171_v56 = vpop.f32.mrf.mxu2 }
 0xa2f   : > { %v4797_v3 = vpop.f32.mrf.mxu0  ;;  %v4874_v49 = vpop.f32.mrf.mxu1 }
 0xa30   : > { %v17856_v28 = vadd.f32 %v4874_v49, %v4797_v3  ;;  %v5173_v7 = vpop.f32.mrf.mxu2 }
 0xa31   : > { %v5183_v41 = vpack.c.bf16 %v5173_v7, %v5171_v56 }
 0xa32   : > { %12614 = vmatmul.msk.bf16.gmra.mxu0 %vm1831_vm0, %v17861_v31 }
 0xa33   : > { %5267 = vmatmul.bf16.gmra.mxu3 %v5183_v41 }
 0xa34   : > { %12723 = vmatmul.msk.bf16.gmra.mxu2 %vm1831_vm0, %v15575_v52 }
 0xa37   : > { %v17872_v44 = vpop.f32.mrf.mxu0  ;;  %v17874_v20 = vpop.f32.mrf.mxu1 }
 0xa38   : > { %v5176_v16 = vpop.f32.mrf.mxu2 }
 0xa3f   : > { %v4802_v9 = vpop.f32.mrf.mxu0  ;;  %v4879_v10 = vpop.f32.mrf.mxu1 }
 0xa40   : > { %v17879_v55 = vadd.f32 %v4879_v10, %v4802_v9  ;;  %v5178_v29 = vpop.f32.mrf.mxu2  ;;  %v14951_v9 = vld [vmem:[%s19602_s7 + $0x5c8] sm:$0xff] }
 0xa41   : > { %v5184_v37 = vpack.c.bf16 %v5178_v29, %v5176_v16  ;;  %5389 = vmatpush.bf16.msrb.mxu1 %v14951_v9 }
 0xa42   : > { %12615 = vmatmul.msk.bf16.gmra.mxu0 %vm1831_vm0, %v17884_v46 }
 0xa43   : > { %5272 = vmatmul.bf16.gmra.mxu3 %v5184_v37 }
 0xa45   : > { %5390 = vmatpush.bf16.msrb.mxu1 %v14950_v51 }
 0xa47   : > { %v17888_v11 = vpop.f32.mrf.mxu0 }
 0xa48   : > { %v5429_v36 = vpop.f32.mrf.mxu2 }
 0xa4f   : > { %v5027_v14 = vpop.f32.mrf.mxu0 }
 0xa50   : > { %v5431_v62 = vpop.f32.mrf.mxu2 }
 0xa51   : > { %v5449_v61 = vpack.c.bf16 %v5431_v62, %v5429_v36 }
 0xa52   : > { %12684 = vmatmul.msk.bf16.vlgmr.msrb.gmra.mxu0 %vm1831_vm0, %v17902_v38 }
 0xa55   : > { %v4990_v4 = vpop.f32.mrf.mxu3 }
 0xa56   : > { %v17910_v19 = vadd.f32 %v4990_v4, %v17783_v15  ;;  %v14960_v15 = vld [vmem:[%s19602_s7 + $0x610] sm:$0xff] }
 0xa57   : > { %v5029_v26 = vpop.f32.mrf.mxu0  ;;  %5522 = vmatpush.bf16.msra.mxu3 %v14960_v15  ;;  %v14980_v15 = vld [vmem:[%s19602_s7 + $0x6b0] sm:$0xff] }
 0xa58   : > { %v5047_v57 = vpack.c.bf16 %v5029_v26, %v5027_v14  ;;  %v5434_v6 = vpop.f32.mrf.mxu2 }
 0xa5a   : > { %5123 = vmatmul.bf16.vlgmr.msra.gmra.mxu1 %v5047_v57 }
 0xa5b   : > { %5523 = vmatpush.bf16.msra.mxu3 %v14959_v12  ;;  %v14978_v12 = vld [vmem:[%s19602_s7 + $0x6a0] sm:$0xff] }
 0xa5d   : > { %v17921_v34 = vpop.f32.mrf.mxu3 }
 0xa5f   : > { %v5032_v33 = vpop.f32.mrf.mxu0  ;;  %5524 = vmatpush.bf16.msra.mxu3 %v14958_v2 }
 0xa60   : > { %v5436_v56 = vpop.f32.mrf.mxu2 }
 0xa61   : > { %v5450_v41 = vpack.c.bf16 %v5436_v56, %v5434_v6  ;;  %v14972_v6 = vld [vmem:[%s19602_s7 + $0x670] sm:$0xff]  ;;  %v14974_v56 = vld [vmem:[%s19602_s7 + $0x680] sm:$0xff] }
 0xa62   : > { %12685 = vmatmul.msk.bf16.gmra.mxu0 %vm1831_vm0, %v17932_v25  ;;  %5525 = vmatmul.bf16.vlgmr.msra.gmra.mxu3 %v5449_v61  ;;  %v14973_v61 = vld [vmem:[%s19602_s7 + $0x678] sm:$0xff] }
 0xa63   : > { %5785 = vmatpush.bf16.msrb.mxu3 %v14981_v1  ;;  %5651 = vmatpush.bf16.msra.mxu1 %v14973_v61 }
 0xa65   : > { %v4995_v45 = vpop.f32.mrf.mxu3 }
 0xa66   : > { %v17943_v63 = vadd.f32 %v4995_v45, %v17815_v40  ;;  %v14977_v45 = vld [vmem:[%s19602_s7 + $0x698] sm:$0xff] }
 0xa67   : > { %v5034_v3 = vpop.f32.mrf.mxu0  ;;  %5786 = vmatpush.bf16.msrb.mxu3 %v14980_v15  ;;  %5652 = vmatpush.bf16.msra.mxu1 %v14972_v6  ;;  %v14966_v15 = vld [vmem:[%s19602_s7 + $0x640] sm:$0xff] }
 0xa68   : > { %v5048_v49 = vpack.c.bf16 %v5034_v3, %v5032_v33  ;;  %v5439_v14 = vpop.f32.mrf.mxu2 }
 0xa6a   : > { %5128 = vmatmul.bf16.gmra.mxu1 %v5048_v49  ;;  %v14976_v49 = vld [vmem:[%s19602_s7 + $0x690] sm:$0xff] }
 0xa6d   : > { %v17951_v52 = vpop.f32.mrf.mxu3 }
 0xa6f   : > { %v5037_v40 = vpop.f32.mrf.mxu0 }
 0xa70   : > { %v5441_v21 = vpop.f32.mrf.mxu2 }
 0xa71   : > { %v5451_v26 = vpack.c.bf16 %v5441_v21, %v5439_v14  ;;  %v14969_v14 = vld [vmem:[%s19602_s7 + $0x658] sm:$0xff]  ;;  %v14968_v21 = vld [vmem:[%s19602_s7 + $0x650] sm:$0xff] }
 0xa72   : > { %12686 = vmatmul.msk.bf16.gmra.mxu0 %vm1831_vm0, %v17959_v13  ;;  %5530 = vmatmul.bf16.gmra.mxu3 %v5450_v41 }
 0xa75   : > { %v5000_v10 = vpop.f32.mrf.mxu3 }
 0xa76   : > { %v17967_v7 = vadd.f32 %v5000_v10, %v17856_v28  ;;  %v15580_v28 = vld [vmem:[%s19597_s2 + $0xf8] sm:$0xff] }
 0xa77   : > { %v5039_v53 = vpop.f32.mrf.mxu0 }
 0xa78   : > { %v5049_v16 = vpack.c.bf16 %v5039_v53, %v5037_v40  ;;  %v5444_v36 = vpop.f32.mrf.mxu2  ;;  %v14971_v40 = vld [vmem:[%s19602_s7 + $0x668] sm:$0xff] }
 0xa79   : > { %5653 = vmatpush.bf16.msra.mxu1 %v14971_v40 }
 0xa7a   : > { %5133 = vmatmul.bf16.gmra.mxu1 %v5049_v16  ;;  %v14970_v16 = vld [vmem:[%s19602_s7 + $0x660] sm:$0xff] }
 0xa7d   : > { %v17972_v22 = vpop.f32.mrf.mxu3  ;;  %5654 = vmatpush.bf16.msra.mxu1 %v14970_v16 }
 0xa7f   : > { %v5042_v29 = vpop.f32.mrf.mxu0 }
 0xa80   : > { %v5446_v30 = vpop.f32.mrf.mxu2 }
 0xa81   : > { %v5452_v27 = vpack.c.bf16 %v5446_v30, %v5444_v36  ;;  %5655 = vmatpush.bf16.msra.mxu1 %v14969_v14 }
 0xa82   : > { %12687 = vmatmul.msk.bf16.gmra.mxu0 %vm1831_vm0, %v15580_v28  ;;  %5535 = vmatmul.bf16.gmra.mxu3 %v5451_v26  ;;  %v14967_v26 = vld [vmem:[%s19602_s7 + $0x648] sm:$0xff] }
 0xa85   : > { %v5005_v4 = vpop.f32.mrf.mxu3  ;;  %5656 = vmatpush.bf16.msra.mxu1 %v14968_v21 }
 0xa86   : > { %v17979_v37 = vadd.f32 %v5005_v4, %v17879_v55  ;;  %v14979_v55 = vld [vmem:[%s19602_s7 + $0x6a8] sm:$0xff] }
 0xa87   : > { %v5044_v57 = vpop.f32.mrf.mxu0  ;;  %5787 = vmatpush.bf16.msrb.mxu3 %v14979_v55 }
 0xa88   : > { %v5050_v23 = vpack.c.bf16 %v5044_v57, %v5042_v29  ;;  %v5697_v3 = vpop.f32.mrf.mxu2 }
 0xa89   : > { %5657 = vmatpush.bf16.msra.mxu1 %v14967_v26 }
 0xa8a   : > { %5138 = vmatmul.bf16.gmra.mxu1 %v5050_v23 }
 0xa8b   : > { %5788 = vmatpush.bf16.msrb.mxu3 %v14978_v12 }
 0xa8d   : > { %v18014_v9 = vpop.f32.mrf.mxu3  ;;  %5658 = vmatpush.bf16.msra.mxu1 %v14966_v15 }
 0xa8f   : > { %v5295_v33 = vpop.f32.mrf.mxu0  ;;  %5789 = vmatpush.bf16.msrb.mxu3 %v14977_v45 }
 0xa90   : > { %v5699_v54 = vpop.f32.mrf.mxu2 }
 0xa91   : > { %v5717_v10 = vpack.c.bf16 %v5699_v54, %v5697_v3  ;;  %v18035_v3 = vpop.f32.mrf.mxu1 }
 0xa92   : > { %5540 = vmatmul.bf16.gmra.mxu3 %v5452_v27 }
 0xa93   : > { %5790 = vmatpush.bf16.msrb.mxu3 %v14976_v49 }
 0xa96   : > { %v5258_v29 = vpop.f32.mrf.mxu3 }
 0xa97   : > { %v5297_v62 = vpop.f32.mrf.mxu0  ;;  %5791 = vmatpush.bf16.msrb.mxu3 %v14975_v50 }
 0xa98   : > { %v5315_v2 = vpack.c.bf16 %v5297_v62, %v5295_v33  ;;  %v5702_v51 = vpop.f32.mrf.mxu2 }
 0xa9a   : > { %5391 = vmatmul.bf16.vlgmr.msrb.gmra.mxu1 %v5315_v2 }
 0xa9b   : > { %5792 = vmatpush.bf16.msrb.mxu3 %v14974_v56 }
 0xa9e   : > { %v18028_v57 = vpop.f32.mrf.mxu3 }
 0xa9f   : > { %v5300_v35 = vpop.f32.mrf.mxu0 }
 0xaa0   : > { %v5704_v4 = vpop.f32.mrf.mxu2 }
 0xaa1   : > { %v5718_v23 = vpack.c.bf16 %v5704_v4, %v5702_v51 }
 0xaa2   : > { %5793 = vmatmul.bf16.vlgmr.msrb.gmra.mxu3 %v5717_v10 }
 0xaa6   : > { %v5263_v55 = vpop.f32.mrf.mxu3 }
 0xaa7   : > { %v5302_v41 = vpop.f32.mrf.mxu0 }
 0xaa8   : > { %v5316_v53 = vpack.c.bf16 %v5302_v41, %v5300_v35  ;;  %v5707_v33 = vpop.f32.mrf.mxu2 }
 0xaaa   : > { %5396 = vmatmul.bf16.gmra.mxu1 %v5316_v53 }
 0xaae   : > { %v18033_v45 = vpop.f32.mrf.mxu3 }
 0xaaf   : > { %v5305_v28 = vpop.f32.mrf.mxu0 }
 0xab0   : > { %v5709_v12 = vpop.f32.mrf.mxu2 }
 0xab1   : > { %v5719_v27 = vpack.c.bf16 %v5709_v12, %v5707_v33 }
 0xab2   : > { %5798 = vmatmul.bf16.gmra.mxu3 %v5718_v23 }
 0xab6   : > { %v5268_v35 = vpop.f32.mrf.mxu3 }
 0xab7   : > { %v5307_v1 = vpop.f32.mrf.mxu0 }
 0xab8   : > { %v5317_v36 = vpack.c.bf16 %v5307_v1, %v5305_v28  ;;  %v5712_v61 = vpop.f32.mrf.mxu2 }
 0xaba   : > { %5401 = vmatmul.bf16.gmra.mxu1 %v5317_v36 }
 0xabe   : > { %v18038_v53 = vpop.f32.mrf.mxu3 }
 0xabf   : > { %v5310_v30 = vpop.f32.mrf.mxu0 }
 0xac0   : > { %v5714_v6 = vpop.f32.mrf.mxu2 }
 0xac1   : > { %v5720_v50 = vpack.c.bf16 %v5714_v6, %v5712_v61 }
 0xac2   : > { %5803 = vmatmul.bf16.gmra.mxu3 %v5719_v27 }
 0xac6   : > { %v5273_v14 = vpop.f32.mrf.mxu3 }
 0xac7   : > { %v5312_v62 = vpop.f32.mrf.mxu0 }
 0xac8   : > { %v5318_v2 = vpack.c.bf16 %v5312_v62, %v5310_v30 }
 0xaca   : > { %5406 = vmatmul.bf16.gmra.mxu1 %v5318_v2 }
 0xacf   : > { %v5563_v49 = vpop.f32.mrf.mxu0 }
 0xad2   : > { %5808 = vmatmul.bf16.gmra.mxu3 %v5720_v50 }
 0xad7   : > { %v5124_v40 = vpop.f32.mrf.mxu1  ;;  %v5565_v54 = vpop.f32.mrf.mxu0 }
 0xad8   : > { %v5144_v56 = vadd.f32 %v5124_v40, %v17910_v19  ;;  %v5583_v10 = vpack.c.bf16 %v5565_v54, %v5563_v49  ;;  %v18043_v19 = vpop.f32.mrf.mxu3 }
 0xada   : > { %5659 = vmatmul.bf16.vlgmr.msra.gmra.mxu1 %v5583_v10  ;;  %v5278_v41 = vadd.f32 %v5258_v29, %v5144_v56 }
 0xadf   : > { %v5126_v16 = vpop.f32.mrf.mxu1  ;;  %v5568_v51 = vpop.f32.mrf.mxu0 }
 0xae5   : > { %v5526_v27 = vpop.f32.mrf.mxu3 }
 0xae7   : > { %v5129_v28 = vpop.f32.mrf.mxu1  ;;  %v5570_v21 = vpop.f32.mrf.mxu0 }
 0xae8   : > { %v5146_v4 = vadd.f32 %v5129_v28, %v17943_v63  ;;  %v5584_v26 = vpack.c.bf16 %v5570_v21, %v5568_v51 }
 0xaea   : > { %5664 = vmatmul.bf16.gmra.mxu1 %v5584_v26  ;;  %v5280_v23 = vadd.f32 %v5263_v55, %v5146_v4 }
 0xaed   : > { %v5528_v63 = vpop.f32.mrf.mxu3 }
 0xaef   : > { %v18041_v1 = vpop.f32.mrf.mxu1  ;;  %v5573_v36 = vpop.f32.mrf.mxu0 }
 0xaf5   : > { %v5531_v54 = vpop.f32.mrf.mxu3 }
 0xaf7   : > { %v5134_v15 = vpop.f32.mrf.mxu1  ;;  %v5575_v33 = vpop.f32.mrf.mxu0 }
 0xaf8   : > { %v5148_v29 = vadd.f32 %v5134_v15, %v17967_v7  ;;  %v5585_v30 = vpack.c.bf16 %v5575_v33, %v5573_v36 }
 0xafa   : > { %5669 = vmatmul.bf16.gmra.mxu1 %v5585_v30  ;;  %v5282_v12 = vadd.f32 %v5268_v35, %v5148_v29 }
 0xafd   : > { %v5533_v10 = vpop.f32.mrf.mxu3 }
 0xaff   : > { %v18046_v62 = vpop.f32.mrf.mxu1  ;;  %v5578_v2 = vpop.f32.mrf.mxu0 }
 0xb05   : > { %v5536_v28 = vpop.f32.mrf.mxu3 }
 0xb07   : > { %v5139_v61 = vpop.f32.mrf.mxu1  ;;  %v5580_v49 = vpop.f32.mrf.mxu0 }
 0xb08   : > { %v5150_v55 = vadd.f32 %v5139_v61, %v17979_v37  ;;  %v5586_v6 = vpack.c.bf16 %v5580_v49, %v5578_v2 }
 0xb0a   : > { %5674 = vmatmul.bf16.gmra.mxu1 %v5586_v6  ;;  %v5284_v50 = vadd.f32 %v5273_v14, %v5150_v55 }
 0xb0d   : > { %v18051_v36 = vpop.f32.mrf.mxu3 }
 0xb0f   : > { %v18049_v40 = vpop.f32.mrf.mxu1 }
 0xb15   : > { %v5541_v37 = vpop.f32.mrf.mxu3 }
 0xb17   : > { %v5392_v56 = vpop.f32.mrf.mxu1 }
 0xb18   : > { %v5412_v7 = vadd.f32 %v5392_v56, %v5278_v41 }
 0xb1a   : > { %v5546_v51 = vadd.f32 %v5526_v27, %v5412_v7 }
 0xb1d   : > { %v18057_v2 = vpop.f32.mrf.mxu3 }
 0xb1f   : > { %v5394_v35 = vpop.f32.mrf.mxu1 }
 0xb25   : > { %v5794_v49 = vpop.f32.mrf.mxu3 }
 0xb27   : > { %v5397_v21 = vpop.f32.mrf.mxu1 }
 0xb28   : > { %v5414_v4 = vadd.f32 %v5397_v21, %v5280_v23  ;;  %v4867_v23 = vadd.f32 %v17804_v17, %v17802_v42  ;;  %v14997_v42 = vld [vmem:[%s19602_s7 + $0x738] sm:$0xff] }
 0xb29   : > { %5990 = vmatpush.bf16.msrb.mxu2 %v14997_v42  ;;  %v14992_v42 = vld [vmem:[%s19602_s7 + $0x710] sm:$0xff] }
 0xb2a   : > { %v5548_v26 = vadd.f32 %v5531_v54, %v5414_v4  ;;  %v5011_v6 = vadd.f32 %v17921_v34, %v4867_v23 }
 0xb2c   : > { %v5145_v54 = vadd.f32 %v5126_v16, %v5011_v6  ;;  %v4872_v16 = vadd.f32 %v17845_v39, %v17843_v60  ;;  %v14995_v60 = vld [vmem:[%s19602_s7 + $0x728] sm:$0xff] }
 0xb2e   : > { %v5279_v7 = vadd.f32 %v18028_v57, %v5145_v54  ;;  %v5013_v57 = vadd.f32 %v17951_v52, %v4872_v16 }
 0xb2f   : > { %v5399_v15 = vpop.f32.mrf.mxu1 }
 0xb30   : > { %v5413_v21 = vadd.f32 %v5394_v35, %v5279_v7 }
 0xb37   : > { %v5402_v33 = vpop.f32.mrf.mxu1 }
 0xb38   : > { %v5416_v29 = vadd.f32 %v5402_v33, %v5282_v12  ;;  %v5796_v12 = vpop.f32.mrf.mxu3  ;;  %v5547_v33 = vadd.f32 %v5528_v63, %v5413_v21  ;;  %v14996_v63 = vld [vmem:[%s19602_s7 + $0x730] sm:$0xff] }
 0xb39   : > { %5991 = vmatpush.bf16.msrb.mxu2 %v14996_v63 }
 0xb3a   : > { %v18053_v30 = vadd.f32 %v5536_v28, %v5416_v29  ;;  %v5147_v29 = vadd.f32 %v18041_v1, %v5013_v57  ;;  %v14994_v1 = vld [vmem:[%s19602_s7 + $0x720] sm:$0xff] }
 0xb3c   : > { %v5281_v52 = vadd.f32 %v18033_v45, %v5147_v29  ;;  %v4877_v45 = vadd.f32 %v17874_v20, %v17872_v44  ;;  %v14991_v44 = vld [vmem:[%s19602_s7 + $0x708] sm:$0xff] }
 0xb3d   : > { %5992 = vmatpush.bf16.msrb.mxu2 %v14995_v60 }
 0xb3e   : > { %v5415_v54 = vadd.f32 %v5399_v15, %v5281_v52  ;;  %v5015_v15 = vadd.f32 %v17972_v22, %v4877_v45 }
 0xb3f   : > { %v18055_v14 = vpop.f32.mrf.mxu1 }
 0xb40   : > { %v5799_v17 = vpop.f32.mrf.mxu3  ;;  %v5549_v7 = vadd.f32 %v5533_v10, %v5415_v54 }
 0xb41   : > { %5993 = vmatpush.bf16.msrb.mxu2 %v14994_v1 }
 0xb47   : > { %v5407_v41 = vpop.f32.mrf.mxu1 }
 0xb48   : > { %v5418_v61 = vadd.f32 %v5407_v41, %v5284_v50  ;;  %v18070_v50 = vld [vmem:[%s19603_s8 + $0x2] ss:$0 sm:$0xff]  ;;  %v5801_v6 = vpop.f32.mrf.mxu3 }
 0xb4a   : > { %v18059_v27 = vadd.f32 %v5541_v37, %v5418_v61 }
 0xb4f   : > { %v18061_v55 = vpop.f32.mrf.mxu1 }
 0xb50   : > { %v5804_v10 = vpop.f32.mrf.mxu3 }
 0xb57   : > { %v5660_v56 = vpop.f32.mrf.mxu1 }
 0xb58   : > { %v5680_v28 = vadd.f32 %v5660_v56, %v5546_v51  ;;  %v5806_v63 = vpop.f32.mrf.mxu3 }
 0xb5a   : > { %v5814_v4 = vadd.f32 %v5794_v49, %v5680_v28  ;;  %v14993_v28 = vld [vmem:[%s19602_s7 + $0x718] sm:$0xff] }
 0xb5b   : > { %5994 = vmatpush.bf16.msrb.mxu2 %v14993_v28 }
 0xb5c   : > { %v5824_v51 = vadd.f32 %v18070_v50, %v5814_v4 }
 0xb5e   : > { %v5832_v61 = vmax.f32 %v5824_v51, 0.0  ;;  %v14990_v51 = vld [vmem:[%s19602_s7 + $0x700] sm:$0xff] }
 0xb5f   : > { %v5662_v34 = vpop.f32.mrf.mxu1  ;;  %5995 = vmatpush.bf16.msrb.mxu2 %v14992_v42  ;;  %v15585_v42 = vld [vmem:[%s19597_s2 + $0x10] sm:$0xff] }
 0xb60   : > { %v5681_v37 = vadd.f32 %v5662_v34, %v5547_v33 }
 0xb62   : > { %v5815_v35 = vadd.f32 %v5796_v12, %v5681_v37 }
 0xb63   : > { %5996 = vmatpush.bf16.msrb.mxu2 %v14991_v44  ;;  %v14988_v44 = vld [vmem:[%s19602_s7 + $0x6f0] sm:$0xff] }
 0xb64   : > { %v5825_v41 = vadd.f32 %v18070_v50, %v5815_v35 }
 0xb66   : > { %v5833_v49 = vmax.f32 %v5825_v41, 0.0 }
 0xb67   : > { %v5665_v39 = vpop.f32.mrf.mxu1  ;;  %5997 = vmatpush.bf16.msrb.mxu2 %v14990_v51  ;;  %v14986_v51 = vld [vmem:[%s19602_s7 + $0x6e0] sm:$0xff] }
 0xb68   : > { %v18088_v23 = vpack.c.bf16 %v5833_v49, %v5832_v61  ;;  %v5682_v12 = vadd.f32 %v5665_v39, %v5548_v26 }
 0xb6a   : > { %v5816_v56 = vadd.f32 %v5799_v17, %v5682_v12  ;;  %v5149_v17 = vadd.f32 %v18046_v62, %v5015_v15  ;;  %v5809_v12 = vpop.f32.mrf.mxu3 }
 0xb6c   : > { %v5826_v26 = vadd.f32 %v18070_v50, %v5816_v56  ;;  %v5283_v22 = vadd.f32 %v18038_v53, %v5149_v17  ;;  %v4882_v53 = vadd.f32 %v18035_v3, %v17888_v11  ;;  %v15587_v17 = vld [vmem:[%s19597_s2 + $0x18] sm:$0xff] }
 0xb6e   : > { %v5834_v16 = vmax.f32 %v5826_v26, 0.0  ;;  %v5417_v62 = vadd.f32 %v18055_v14, %v5283_v22  ;;  %v5017_v60 = vadd.f32 %v18014_v9, %v4882_v53  ;;  %v14987_v22 = vld [vmem:[%s19602_s7 + $0x6e8] sm:$0xff] }
 0xb6f   : > { %v5667_v21 = vpop.f32.mrf.mxu1 }
 0xb70   : > { %v5683_v4 = vadd.f32 %v5667_v21, %v5549_v7  ;;  %v5551_v41 = vadd.f32 %v18051_v36, %v5417_v62  ;;  %v14985_v62 = vld [vmem:[%s19602_s7 + $0x6d8] sm:$0xff] }
 0xb72   : > { %v5817_v33 = vadd.f32 %v5801_v6, %v5683_v4  ;;  %v5151_v6 = vadd.f32 %v18049_v40, %v5017_v60  ;;  %v5811_v40 = vpop.f32.mrf.mxu3  ;;  %v15593_v60 = vld [vmem:[%s19597_s2 + $0x80] sm:$0xff] }
 0xb74   : > { %v5827_v34 = vadd.f32 %v18070_v50, %v5817_v33  ;;  %v5285_v36 = vadd.f32 %v18043_v19, %v5151_v6 }
 0xb76   : > { %v5835_v37 = vmax.f32 %v5827_v34, 0.0  ;;  %v5419_v11 = vadd.f32 %v18061_v55, %v5285_v36  ;;  %v15583_v55 = vld [vmem:[%s19597_s2 + $0x8] sm:$0xff]  ;;  %v15588_v34 = vld [vmem:[%s19597_s2 + $0x38] sm:$0xff] }
 0xb77   : > { %v5670_v20 = vpop.f32.mrf.mxu1  ;;  %v15003_v36 = vld [vmem:[%s19602_s7 + $0x768] sm:$0xff] }
 0xb78   : > { %v18109_v57 = vpack.c.bf16 %v5835_v37, %v5834_v16  ;;  %v5684_v35 = vadd.f32 %v5670_v20, %v18053_v30  ;;  %v5553_v7 = vadd.f32 %v18057_v2, %v5419_v11  ;;  %v15581_v2 = vld [vmem:[%s19597_s2] sm:$0xff]  ;;  %v14989_v37 = vld [vmem:[%s19602_s7 + $0x6f8] sm:$0xff]  ;;  %v15590_v20 = vld [vmem:[%s19597_s2 + $0x48] sm:$0xff] }
 0xb79   : > { %v15589_v16 = vld [vmem:[%s19597_s2 + $0x40] sm:$0xff]  ;;  %6067 = vmatpush.bf16.msra.mxu3 %v14989_v37  ;;  %v15594_v11 = vld [vmem:[%s19597_s2 + $0x88] sm:$0xff] }
 0xb7a   : > { %v5818_v29 = vadd.f32 %v5804_v10, %v5684_v35  ;;  %v15586_v10 = vld [vmem:[%s19597_s2 + $0x30] sm:$0xff] }
 0xb7b   : > { %v14984_v35 = vld [vmem:[%s19602_s7 + $0x6d0] sm:$0xff] }
 0xb7c   : > { %v5828_v39 = vadd.f32 %v18070_v50, %v5818_v29  ;;  %v14983_v29 = vld [vmem:[%s19602_s7 + $0x6c8] sm:$0xff] }
 0xb7d   : > { %6068 = vmatpush.bf16.msra.mxu3 %v14988_v44 }
 0xb7e   : > { %v5836_v30 = vmax.f32 %v5828_v39, 0.0 }
 0xb7f   : > { %v5672_v61 = vpop.f32.mrf.mxu1 }
 0xb80   : > { %v5685_v49 = vadd.f32 %v5672_v61, %v5551_v41  ;;  %v14982_v41 = vld [vmem:[%s19602_s7 + $0x6c0] sm:$0xff]  ;;  %v15592_v61 = vld [vmem:[%s19597_s2 + $0x58] sm:$0xff] }
 0xb81   : > { %6069 = vmatpush.bf16.msra.mxu3 %v14987_v22 }
 0xb82   : > { %v5819_v52 = vadd.f32 %v5806_v63, %v5685_v49  ;;  %v15591_v63 = vld [vmem:[%s19597_s2 + $0x50] sm:$0xff] }
 0xb84   : > { %v5829_v14 = vadd.f32 %v18070_v50, %v5819_v52 }
 0xb85   : > { %6070 = vmatpush.bf16.msra.mxu3 %v14986_v51  ;;  %v15597_v51 = vld [vmem:[%s19597_s2 + $0xc0] sm:$0xff] }
 0xb86   : > { %v5837_v54 = vmax.f32 %v5829_v14, 0.0 }
 0xb87   : > { %v5675_v1 = vpop.f32.mrf.mxu1 }
 0xb88   : > { %v18124_v56 = vpack.c.bf16 %v5837_v54, %v5836_v30  ;;  %v5686_v3 = vadd.f32 %v5675_v1, %v18059_v27  ;;  %v15582_v27 = vld [vmem:[%s19597_s2 + $0x20] sm:$0xff]  ;;  %v15005_v30 = vld [vmem:[%s19602_s7 + $0x778] sm:$0xff]  ;;  %v15004_v1 = vld [vmem:[%s19602_s7 + $0x770] sm:$0xff] }
 0xb89   : > { %6071 = vmatpush.bf16.msra.mxu3 %v14985_v62 }
 0xb8a   : > { %v5820_v9 = vadd.f32 %v5809_v12, %v5686_v3 }
 0xb8c   : > { %v5830_v45 = vadd.f32 %v18070_v50, %v5820_v9 }
 0xb8d   : > { %6072 = vmatpush.bf16.msra.mxu3 %v14984_v35 }
 0xb8e   : > { %v5838_v26 = vmax.f32 %v5830_v45, 0.0 }
 0xb8f   : > { %v5677_v28 = vpop.f32.mrf.mxu1 }
 0xb90   : > { %v5687_v21 = vadd.f32 %v5677_v28, %v5553_v7 }
 0xb91   : > { %6073 = vmatpush.bf16.msra.mxu3 %v14983_v29 }
 0xb92   : > { %v5821_v4 = vadd.f32 %v5811_v40, %v5687_v21  ;;  %v15002_v21 = vld [vmem:[%s19602_s7 + $0x760] sm:$0xff]  ;;  %v15001_v40 = vld [vmem:[%s19602_s7 + $0x758] sm:$0xff] }
 0xb94   : > { %v5831_v15 = vadd.f32 %v18070_v50, %v5821_v4  ;;  %v15584_v50 = vld [vmem:[%s19597_s2 + $0x28] sm:$0xff] }
 0xb95   : > { %6074 = vmatpush.bf16.msra.mxu3 %v14982_v41  ;;  %v15599_v41 = vld [vmem:[%s19597_s2 + $0xc8] sm:$0xff] }
 0xb96   : > { %v5839_v33 = vmax.f32 %v5831_v15, 0.0  ;;  %v15000_v15 = vld [vmem:[%s19602_s7 + $0x750] sm:$0xff] }
 0xb98   : > { %v18131_v19 = vpack.c.bf16 %v5839_v33, %v5838_v26  ;;  %v15595_v26 = vld [vmem:[%s19597_s2 + $0x90] sm:$0xff]  ;;  %v14999_v33 = vld [vmem:[%s19602_s7 + $0x748] sm:$0xff] }
 0xb9a   : > { %5848 = vmatpush.bf16.msra.mxu0 %v18131_v19  ;;  %5897 = vmatpush.bf16.msrb.mxu1 %v18131_v19 }
 0xb9b   : > { %6234 = vmatpush.bf16.msra.mxu2 %v18131_v19 }
 0xb9e   : > { %5849 = vmatpush.bf16.msra.mxu0 %v18124_v56  ;;  %5898 = vmatpush.bf16.msrb.mxu1 %v18124_v56 }
 0xb9f   : > { %6235 = vmatpush.bf16.msra.mxu2 %v18124_v56 }
 0xba2   : > { %5850 = vmatpush.bf16.msra.mxu0 %v18109_v57  ;;  %5899 = vmatpush.bf16.msrb.mxu1 %v18109_v57 }
 0xba3   : > { %6236 = vmatpush.bf16.msra.mxu2 %v18109_v57 }
 0xba6   : > { %5851 = vmatpush.bf16.msra.mxu0 %v18088_v23  ;;  %5900 = vmatpush.bf16.msrb.mxu1 %v18088_v23 }
 0xba7   : > { %6237 = vmatpush.bf16.msra.mxu2 %v18088_v23 }
 0xba9   : > { %12756 = vmatmul.msk.bf16.vlgmr.msra.gmra.mxu0 %vm1831_vm0, %v15581_v2  ;;  %12760 = vmatmul.msk.bf16.vlgmr.msrb.gmra.mxu1 %vm1831_vm0, %v15582_v27 }
 0xbaa   : > { %6100 = vmatpush.bf16.msrb.mxu0 %v18131_v19  ;;  %6193 = vmatpush.bf16.msra.mxu1 %v15005_v30  ;;  %v15604_v30 = vld [vmem:[%s19597_s2 + $0x78] sm:$0xff] }
 0xbae   : > { %6101 = vmatpush.bf16.msrb.mxu0 %v18124_v56  ;;  %6194 = vmatpush.bf16.msra.mxu1 %v15004_v1 }
 0xbb2   : > { %6102 = vmatpush.bf16.msrb.mxu0 %v18109_v57  ;;  %6195 = vmatpush.bf16.msra.mxu1 %v15003_v36 }
 0xbb6   : > { %6103 = vmatpush.bf16.msrb.mxu0 %v18088_v23  ;;  %6196 = vmatpush.bf16.msra.mxu1 %v15002_v21  ;;  %v15019_v21 = vld [vmem:[%s19602_s7 + $0x7e8] sm:$0xff] }
 0xbb9   : > { %12757 = vmatmul.msk.bf16.gmra.mxu0 %vm1831_vm0, %v15583_v55  ;;  %12761 = vmatmul.msk.bf16.gmra.mxu1 %vm1831_vm0, %v15584_v50 }
 0xbba   : > { %6368 = vmatpush.bf16.msra.mxu0 %v18131_v19  ;;  %6197 = vmatpush.bf16.msra.mxu1 %v15001_v40 }
 0xbbe   : > { %6369 = vmatpush.bf16.msra.mxu0 %v18124_v56  ;;  %6198 = vmatpush.bf16.msra.mxu1 %v15000_v15  ;;  %v15012_v15 = vld [vmem:[%s19602_s7 + $0x7b0] sm:$0xff] }
 0xbc2   : > { %6370 = vmatpush.bf16.msra.mxu0 %v18109_v57  ;;  %6199 = vmatpush.bf16.msra.mxu1 %v14999_v33  ;;  %v15011_v33 = vld [vmem:[%s19602_s7 + $0x7a8] sm:$0xff] }
 0xbc6   : > { %6371 = vmatpush.bf16.msra.mxu0 %v18088_v23 }
 0xbc9   : > { %12758 = vmatmul.msk.bf16.gmra.mxu0 %vm1831_vm0, %v15585_v42  ;;  %12762 = vmatmul.msk.bf16.gmra.mxu1 %vm1831_vm0, %v15586_v10  ;;  %v14998_v42 = vld [vmem:[%s19602_s7 + $0x740] sm:$0xff] }
 0xbca   : > { %6200 = vmatpush.bf16.msra.mxu1 %v14998_v42  ;;  %v15016_v42 = vld [vmem:[%s19602_s7 + $0x7d0] sm:$0xff] }
 0xbd9   : > { %12759 = vmatmul.msk.bf16.gmra.mxu0 %vm1831_vm0, %v15587_v17  ;;  %12763 = vmatmul.msk.bf16.gmra.mxu1 %vm1831_vm0, %v15588_v34  ;;  %v15596_v34 = vld [vmem:[%s19597_s2 + $0x98] sm:$0xff] }
 0xbe9   : > { %12828 = vmatmul.msk.bf16.vlgmr.msrb.gmra.mxu0 %vm1831_vm0, %v15589_v16 }
 0xbea   : > { %6636 = vmatpush.bf16.msrb.mxu0 %v18131_v19 }
 0xbee   : > { %6637 = vmatpush.bf16.msrb.mxu0 %v18124_v56 }
 0xbf2   : > { %6638 = vmatpush.bf16.msrb.mxu0 %v18109_v57 }
 0xbf6   : > { %6639 = vmatpush.bf16.msrb.mxu0 %v18088_v23 }
 0xbf9   : > { %12829 = vmatmul.msk.bf16.gmra.mxu0 %vm1831_vm0, %v15590_v20 }
 0xc09   : > { %12830 = vmatmul.msk.bf16.gmra.mxu0 %vm1831_vm0, %v15591_v63  ;;  %v15598_v63 = vld [vmem:[%s19597_s2 + $0x60] sm:$0xff] }
 0xc19   : > { %12831 = vmatmul.msk.bf16.gmra.mxu0 %vm1831_vm0, %v15592_v61 }
 0xc26   : > { %v5853_v53 = vpop.f32.mrf.mxu0  ;;  %v5902_v49 = vpop.f32.mrf.mxu1 }
 0xc29   : > { %12900 = vmatmul.msk.bf16.vlgmr.msra.gmra.mxu0 %vm1831_vm0, %v15593_v60 }
 0xc2a   : > { %6904 = vmatpush.bf16.msra.mxu0 %v18131_v19 }
 0xc2e   : > { %6905 = vmatpush.bf16.msra.mxu0 %v18124_v56  ;;  %v5855_v39 = vpop.f32.mrf.mxu0  ;;  %v5904_v52 = vpop.f32.mrf.mxu1 }
 0xc2f   : > { %v5873_v6 = vpack.c.bf16 %v5855_v39, %v5853_v53  ;;  %v5922_v14 = vpack.c.bf16 %v5904_v52, %v5902_v49  ;;  %v15601_v49 = vld [vmem:[%s19597_s2 + $0xd0] sm:$0xff]  ;;  %v15603_v52 = vld [vmem:[%s19597_s2 + $0xd8] sm:$0xff] }
 0xc31   : > { %5998 = vmatmul.bf16.vlgmr.msrb.gmra.mxu2 %v5922_v14  ;;  %6075 = vmatmul.bf16.vlgmr.msra.gmra.mxu3 %v5873_v6 }
 0xc32   : > { %6502 = vmatpush.bf16.msrb.mxu2 %v18131_v19  ;;  %6906 = vmatpush.bf16.msra.mxu0 %v18109_v57 }
 0xc36   : > { %6503 = vmatpush.bf16.msrb.mxu2 %v18124_v56  ;;  %6907 = vmatpush.bf16.msra.mxu0 %v18088_v23  ;;  %v5858_v54 = vpop.f32.mrf.mxu0  ;;  %v5907_v12 = vpop.f32.mrf.mxu1 }
 0xc39   : > { %12901 = vmatmul.msk.bf16.gmra.mxu0 %vm1831_vm0, %v15594_v11  ;;  %v15021_v11 = vld [vmem:[%s19602_s7 + $0x7f8] sm:$0xff] }
 0xc3a   : > { %6504 = vmatpush.bf16.msrb.mxu2 %v18109_v57  ;;  %6461 = vmatpush.bf16.msrb.mxu1 %v15021_v11  ;;  %v15029_v11 = vld [vmem:[%s19602_s7 + $0x838] sm:$0xff] }
 0xc3e   : > { %6505 = vmatpush.bf16.msrb.mxu2 %v18088_v23  ;;  %v5860_v3 = vpop.f32.mrf.mxu0  ;;  %v5909_v9 = vpop.f32.mrf.mxu1 }
 0xc3f   : > { %v5874_v7 = vpack.c.bf16 %v5860_v3, %v5858_v54  ;;  %v5923_v28 = vpack.c.bf16 %v5909_v9, %v5907_v12  ;;  %v15605_v54 = vld [vmem:[%s19597_s2 + $0x100] sm:$0xff]  ;;  %v15606_v3 = vld [vmem:[%s19597_s2 + $0x108] sm:$0xff] }
 0xc41   : > { %6003 = vmatmul.bf16.gmra.mxu2 %v5923_v28  ;;  %6080 = vmatmul.bf16.gmra.mxu3 %v5874_v7  ;;  %v15013_v28 = vld [vmem:[%s19602_s7 + $0x7b8] sm:$0xff] }
 0xc42   : > { %6327 = vmatpush.bf16.msrb.mxu3 %v15013_v28  ;;  %v15028_v28 = vld [vmem:[%s19602_s7 + $0x830] sm:$0xff] }
 0xc46   : > { %v5863_v45 = vpop.f32.mrf.mxu0  ;;  %v5912_v4 = vpop.f32.mrf.mxu1  ;;  %6328 = vmatpush.bf16.msrb.mxu3 %v15012_v15  ;;  %v15033_v15 = vld [vmem:[%s19602_s7 + $0x858] sm:$0xff] }
 0xc49   : > { %12902 = vmatmul.msk.bf16.gmra.mxu0 %vm1831_vm0, %v15595_v26  ;;  %v15018_v26 = vld [vmem:[%s19602_s7 + $0x7e0] sm:$0xff] }
 0xc4a   : > { %6329 = vmatpush.bf16.msrb.mxu3 %v15011_v33 }
 0xc4e   : > { %v5865_v2 = vpop.f32.mrf.mxu0  ;;  %v5914_v27 = vpop.f32.mrf.mxu1 }
 0xc4f   : > { %v5875_v55 = vpack.c.bf16 %v5865_v2, %v5863_v45  ;;  %v5924_v50 = vpack.c.bf16 %v5914_v27, %v5912_v4 }
 0xc51   : > { %6008 = vmatmul.bf16.gmra.mxu2 %v5924_v50  ;;  %6085 = vmatmul.bf16.gmra.mxu3 %v5875_v55  ;;  %v15010_v55 = vld [vmem:[%s19602_s7 + $0x7a0] sm:$0xff] }
 0xc52   : > { %6330 = vmatpush.bf16.msrb.mxu3 %v15010_v55 }
 0xc56   : > { %v5868_v10 = vpop.f32.mrf.mxu0  ;;  %v5917_v17 = vpop.f32.mrf.mxu1 }
 0xc59   : > { %12903 = vmatmul.msk.bf16.gmra.mxu0 %vm1831_vm0, %v15596_v34 }
 0xc5e   : > { %v5870_v16 = vpop.f32.mrf.mxu0  ;;  %v5919_v37 = vpop.f32.mrf.mxu1 }
 0xc5f   : > { %v5876_v44 = vpack.c.bf16 %v5870_v16, %v5868_v10  ;;  %v5925_v20 = vpack.c.bf16 %v5919_v37, %v5917_v17  ;;  %v15015_v10 = vld [vmem:[%s19602_s7 + $0x7c8] sm:$0xff]  ;;  %v15008_v16 = vld [vmem:[%s19602_s7 + $0x790] sm:$0xff]  ;;  %v15014_v37 = vld [vmem:[%s19602_s7 + $0x7c0] sm:$0xff] }
 0xc61   : > { %6013 = vmatmul.bf16.gmra.mxu2 %v5925_v20  ;;  %6090 = vmatmul.bf16.gmra.mxu3 %v5876_v44 }
 0xc66   : > { %v6105_v22 = vpop.f32.mrf.mxu0 }
 0xc69   : > { %12972 = vmatmul.msk.bf16.vlgmr.msrb.gmra.mxu0 %vm1831_vm0, %v15597_v51  ;;  %v15607_v51 = vld [vmem:[%s19597_s2 + $0x118] sm:$0xff] }
 0xc6e   : > { %v6107_v62 = vpop.f32.mrf.mxu0 }
 0xc6f   : > { %v6125_v35 = vpack.c.bf16 %v6107_v62, %v6105_v22 }
 0xc71   : > { %6201 = vmatmul.bf16.vlgmr.msra.gmra.mxu1 %v6125_v35  ;;  %12864 = vmatmul.msk.bf16.vlgmr.msra.gmra.mxu2 %vm1831_vm0, %v15598_v63  ;;  %v15006_v63 = vld [vmem:[%s19602_s7 + $0x780] sm:$0xff] }
 0xc72   : > { %6770 = vmatpush.bf16.msra.mxu2 %v18131_v19  ;;  %v15600_v19 = vld [vmem:[%s19597_s2 + $0x68] sm:$0xff] }
 0xc76   : > { %6771 = vmatpush.bf16.msra.mxu2 %v18124_v56  ;;  %v6110_v29 = vpop.f32.mrf.mxu0 }
 0xc79   : > { %12973 = vmatmul.msk.bf16.gmra.mxu0 %vm1831_vm0, %v15599_v41 }
 0xc7a   : > { %6772 = vmatpush.bf16.msra.mxu2 %v18109_v57 }
 0xc7e   : > { %6773 = vmatpush.bf16.msra.mxu2 %v18088_v23  ;;  %v6112_v61 = vpop.f32.mrf.mxu0  ;;  %v15602_v23 = vld [vmem:[%s19597_s2 + $0x70] sm:$0xff] }
 0xc7f   : > { %v6126_v53 = vpack.c.bf16 %v6112_v61, %v6110_v29 }
 0xc81   : > { %6206 = vmatmul.bf16.gmra.mxu1 %v6126_v53  ;;  %12865 = vmatmul.msk.bf16.gmra.mxu2 %vm1831_vm0, %v15600_v19 }
 0xc86   : > { %v6115_v56 = vpop.f32.mrf.mxu0 }
 0xc89   : > { %12974 = vmatmul.msk.bf16.gmra.mxu0 %vm1831_vm0, %v15601_v49 }
 0xc8e   : > { %v6117_v60 = vpop.f32.mrf.mxu0 }
 0xc8f   : > { %v6127_v57 = vpack.c.bf16 %v6117_v60, %v6115_v56 }
 0xc91   : > { %6211 = vmatmul.bf16.gmra.mxu1 %v6127_v57  ;;  %12866 = vmatmul.msk.bf16.gmra.mxu2 %vm1831_vm0, %v15602_v23 }
 0xc96   : > { %v6120_v39 = vpop.f32.mrf.mxu0 }
 0xc99   : > { %12975 = vmatmul.msk.bf16.gmra.mxu0 %vm1831_vm0, %v15603_v52 }
 0xc9e   : > { %v6122_v6 = vpop.f32.mrf.mxu0 }
 0xc9f   : > { %v6128_v14 = vpack.c.bf16 %v6122_v6, %v6120_v39 }
 0xca1   : > { %6216 = vmatmul.bf16.gmra.mxu1 %v6128_v14  ;;  %12867 = vmatmul.msk.bf16.gmra.mxu2 %vm1831_vm0, %v15604_v30  ;;  %v15037_v14 = vld [vmem:[%s19602_s7 + $0x878] sm:$0xff] }
 0xca6   : > { %v6373_v50 = vpop.f32.mrf.mxu0 }
 0xca9   : > { %13044 = vmatmul.msk.bf16.vlgmr.msra.gmra.mxu0 %vm1831_vm0, %v15605_v54 }
 0xcae   : > { %v6375_v20 = vpop.f32.mrf.mxu0 }
 0xcaf   : > { %v6393_v22 = vpack.c.bf16 %v6375_v20, %v6373_v50  ;;  %v15032_v50 = vld [vmem:[%s19602_s7 + $0x850] sm:$0xff] }
 0xcb1   : > { %12936 = vmatmul.msk.bf16.vlgmr.msrb.gmra.mxu2 %vm1831_vm0, %v17791_v24  ;;  %v15020_v24 = vld [vmem:[%s19602_s7 + $0x7f0] sm:$0xff] }
 0xcb2   : > { %6462 = vmatpush.bf16.msrb.mxu1 %v15020_v24 }
 0xcb4   : > { %v5999_v12 = vpop.f32.mrf.mxu2  ;;  %v6076_v1 = vpop.f32.mrf.mxu3 }
 0xcb5   : > { %v18319_v36 = vadd.f32 %v6076_v1, %v5999_v12  ;;  %v15036_v1 = vld [vmem:[%s19602_s7 + $0x870] sm:$0xff] }
 0xcb6   : > { %6463 = vmatpush.bf16.msrb.mxu1 %v15019_v21  ;;  %v6378_v29 = vpop.f32.mrf.mxu0  ;;  %v15034_v21 = vld [vmem:[%s19602_s7 + $0x860] sm:$0xff] }
 0xcb9   : > { %13045 = vmatmul.msk.bf16.gmra.mxu0 %vm1831_vm0, %v15606_v3  ;;  %v15035_v3 = vld [vmem:[%s19602_s7 + $0x868] sm:$0xff] }
 0xcba   : > { %6464 = vmatpush.bf16.msrb.mxu1 %v15018_v26 }
 0xcbc   : > { %v18328_v9 = vpop.f32.mrf.mxu2  ;;  %v18330_v7 = vpop.f32.mrf.mxu3 }
 0xcbe   : > { %v6380_v19 = vpop.f32.mrf.mxu0 }
 0xcbf   : > { %v6394_v56 = vpack.c.bf16 %v6380_v19, %v6378_v29  ;;  %v15608_v19 = vld [vmem:[%s19597_s2 + $0xf8] sm:$0xff] }
 0xcc1   : > { %12937 = vmatmul.msk.bf16.gmra.mxu2 %vm1831_vm0, %v17826_v0  ;;  %v15017_v0 = vld [vmem:[%s19602_s7 + $0x7d8] sm:$0xff] }
 0xcc2   : > { %6465 = vmatpush.bf16.msrb.mxu1 %v15017_v0  ;;  %v15026_v0 = vld [vmem:[%s19602_s7 + $0x820] sm:$0xff] }
 0xcc4   : > { %v6004_v40 = vpop.f32.mrf.mxu2  ;;  %v6081_v45 = vpop.f32.mrf.mxu3 }
 0xcc5   : > { %v18343_v4 = vadd.f32 %v6081_v45, %v6004_v40 }
 0xcc6   : > { %6466 = vmatpush.bf16.msrb.mxu1 %v15016_v42  ;;  %v6383_v60 = vpop.f32.mrf.mxu0 }
 0xcc9   : > { %13046 = vmatmul.msk.bf16.gmra.mxu0 %vm1831_vm0, %v17839_v59  ;;  %v15009_v59 = vld [vmem:[%s19602_s7 + $0x798] sm:$0xff] }
 0xcca   : > { %6331 = vmatpush.bf16.msrb.mxu3 %v15009_v59  ;;  %6467 = vmatpush.bf16.msrb.mxu1 %v15015_v10  ;;  %v15031_v10 = vld [vmem:[%s19602_s7 + $0x848] sm:$0xff] }
 0xccc   : > { %v18359_v2 = vpop.f32.mrf.mxu2  ;;  %v18361_v27 = vpop.f32.mrf.mxu3 }
 0xcce   : > { %6332 = vmatpush.bf16.msrb.mxu3 %v15008_v16  ;;  %6468 = vmatpush.bf16.msrb.mxu1 %v15014_v37  ;;  %v6385_v52 = vpop.f32.mrf.mxu0  ;;  %v15024_v16 = vld [vmem:[%s19602_s7 + $0x810] sm:$0xff]  ;;  %v15030_v37 = vld [vmem:[%s19602_s7 + $0x840] sm:$0xff] }
 0xccf   : > { %v6395_v6 = vpack.c.bf16 %v6385_v52, %v6383_v60 }
 0xcd1   : > { %12938 = vmatmul.msk.bf16.gmra.mxu2 %vm1831_vm0, %v17861_v31  ;;  %v15007_v31 = vld [vmem:[%s19602_s7 + $0x788] sm:$0xff]  ;;  %6469 = vmatmul.bf16.vlgmr.msrb.gmra.mxu1 %v6393_v22 }
 0xcd2   : > { %6333 = vmatpush.bf16.msrb.mxu3 %v15007_v31  ;;  %6729 = vmatpush.bf16.msra.mxu1 %v15037_v14 }
 0xcd4   : > { %v6009_v17 = vpop.f32.mrf.mxu2  ;;  %v6086_v34 = vpop.f32.mrf.mxu3 }
 0xcd5   : > { %v18383_v44 = vadd.f32 %v6086_v34, %v6009_v17  ;;  %v15025_v17 = vld [vmem:[%s19602_s7 + $0x818] sm:$0xff] }
 0xcd6   : > { %6334 = vmatpush.bf16.msrb.mxu3 %v15006_v63  ;;  %v6388_v12 = vpop.f32.mrf.mxu0  ;;  %6730 = vmatpush.bf16.msra.mxu1 %v15036_v1  ;;  %v15022_v63 = vld [vmem:[%s19602_s7 + $0x800] sm:$0xff] }
 0xcd9   : > { %13047 = vmatmul.msk.bf16.gmra.mxu0 %vm1831_vm0, %v15607_v51 }
 0xcda   : > { %6595 = vmatpush.bf16.msra.mxu3 %v15029_v11  ;;  %6731 = vmatpush.bf16.msra.mxu1 %v15035_v3  ;;  %v15052_v11 = vld [vmem:[%s19602_s7 + $0x8f0] sm:$0xff]  ;;  %v15045_v3 = vld [vmem:[%s19602_s7 + $0x8b8] sm:$0xff] }
 0xcdc   : > { %v18392_v62 = vpop.f32.mrf.mxu2  ;;  %v18394_v35 = vpop.f32.mrf.mxu3 }
 0xcde   : > { %v6390_v40 = vpop.f32.mrf.mxu0  ;;  %6596 = vmatpush.bf16.msra.mxu3 %v15028_v28  ;;  %6732 = vmatpush.bf16.msra.mxu1 %v15034_v21  ;;  %v15044_v21 = vld [vmem:[%s19602_s7 + $0x8b0] sm:$0xff] }
 0xce1   : > { %12939 = vmatmul.msk.bf16.gmra.mxu2 %vm1831_vm0, %v17884_v46  ;;  %6474 = vmatmul.bf16.gmra.mxu1 %v6394_v56 }
 0xce2   : > { %6733 = vmatpush.bf16.msra.mxu1 %v15033_v15  ;;  %v15043_v15 = vld [vmem:[%s19602_s7 + $0x8a8] sm:$0xff] }
 0xce4   : > { %v6014_v41 = vpop.f32.mrf.mxu2  ;;  %v6091_v61 = vpop.f32.mrf.mxu3 }
 0xce5   : > { %v18401_v53 = vadd.f32 %v6091_v61, %v6014_v41 }
 0xce6   : > { %v6641_v55 = vpop.f32.mrf.mxu0  ;;  %6734 = vmatpush.bf16.msra.mxu1 %v15032_v50 }
 0xcea   : > { %6735 = vmatpush.bf16.msra.mxu1 %v15031_v10 }
 0xcec   : > { %v18403_v49 = vpop.f32.mrf.mxu2 }
 0xcee   : > { %v6202_v57 = vpop.f32.mrf.mxu1  ;;  %6736 = vmatpush.bf16.msra.mxu1 %v15030_v37  ;;  %v15040_v37 = vld [vmem:[%s19602_s7 + $0x890] sm:$0xff] }
 0xcef   : > { %v18406_v23 = vadd.f32 %v6202_v57, %v18319_v36 }
 0xcf1   : > { %13008 = vmatmul.msk.bf16.vlgmr.msra.gmra.mxu2 %vm1831_vm0, %v17902_v38  ;;  %6479 = vmatmul.bf16.gmra.mxu1 %v6395_v6 }
 0xcf4   : > { %v6239_v39 = vpop.f32.mrf.mxu2 }
 0xcf6   : > { %v18410_v46 = vpop.f32.mrf.mxu1 }
 0xcfc   : > { %v6241_v30 = vpop.f32.mrf.mxu2 }
 0xcfd   : > { %v6259_v54 = vpack.c.bf16 %v6241_v30, %v6239_v39 }
 0xcfe   : > { %v6207_v36 = vpop.f32.mrf.mxu1 }
 0xcff   : > { %v18419_v38 = vadd.f32 %v6207_v36, %v18343_v4  ;;  %6335 = vmatmul.bf16.vlgmr.msrb.gmra.mxu3 %v6259_v54  ;;  %v6396_v4 = vpack.c.bf16 %v6390_v40, %v6388_v12  ;;  %v15050_v40 = vld [vmem:[%s19602_s7 + $0x8e0] sm:$0xff] }
 0xd01   : > { %13009 = vmatmul.msk.bf16.gmra.mxu2 %vm1831_vm0, %v17932_v25  ;;  %v15027_v25 = vld [vmem:[%s19602_s7 + $0x828] sm:$0xff]  ;;  %6484 = vmatmul.bf16.gmra.mxu1 %v6396_v4 }
 0xd02   : > { %6597 = vmatpush.bf16.msra.mxu3 %v15027_v25 }
 0xd04   : > { %v6244_v24 = vpop.f32.mrf.mxu2 }
 0xd06   : > { %v18435_v45 = vpop.f32.mrf.mxu1  ;;  %6598 = vmatpush.bf16.msra.mxu3 %v15026_v0 }
 0xd0a   : > { %6599 = vmatpush.bf16.msra.mxu3 %v15025_v17  ;;  %v15047_v17 = vld [vmem:[%s19602_s7 + $0x8c8] sm:$0xff] }
 0xd0c   : > { %v6246_v26 = vpop.f32.mrf.mxu2 }
 0xd0d   : > { %v6260_v33 = vpack.c.bf16 %v6246_v26, %v6244_v24  ;;  %v15051_v24 = vld [vmem:[%s19602_s7 + $0x8e8] sm:$0xff]  ;;  %v15049_v26 = vld [vmem:[%s19602_s7 + $0x8d8] sm:$0xff] }
 0xd0e   : > { %v6212_v42 = vpop.f32.mrf.mxu1  ;;  %6600 = vmatpush.bf16.msra.mxu3 %v15024_v16 }
 0xd0f   : > { %v18450_v59 = vadd.f32 %v6212_v42, %v18383_v44  ;;  %6340 = vmatmul.bf16.gmra.mxu3 %v6260_v33  ;;  %v6643_v44 = vpop.f32.mrf.mxu0  ;;  %v15048_v42 = vld [vmem:[%s19602_s7 + $0x8d0] sm:$0xff] }
 0xd10   : > { %v6661_v22 = vpack.c.bf16 %v6643_v44, %v6641_v55  ;;  %v15042_v55 = vld [vmem:[%s19602_s7 + $0x8a0] sm:$0xff] }
 0xd11   : > { %13010 = vmatmul.msk.bf16.gmra.mxu2 %vm1831_vm0, %v17959_v13  ;;  %v15023_v13 = vld [vmem:[%s19602_s7 + $0x808] sm:$0xff]  ;;  %v15046_v44 = vld [vmem:[%s19602_s7 + $0x8c0] sm:$0xff] }
 0xd12   : > { %6737 = vmatmul.bf16.vlgmr.msra.gmra.mxu1 %v6661_v22  ;;  %6601 = vmatpush.bf16.msra.mxu3 %v15023_v13 }
 0xd14   : > { %v6249_v34 = vpop.f32.mrf.mxu2 }
 0xd16   : > { %v18466_v20 = vpop.f32.mrf.mxu1  ;;  %6602 = vmatpush.bf16.msra.mxu3 %v15022_v63 }
 0xd17   : > { %v6646_v29 = vpop.f32.mrf.mxu0 }
 0xd1a   : > { %6863 = vmatpush.bf16.msrb.mxu3 %v15045_v3 }
 0xd1c   : > { %v6251_v31 = vpop.f32.mrf.mxu2 }
 0xd1d   : > { %v6261_v51 = vpack.c.bf16 %v6251_v31, %v6249_v34  ;;  %v15041_v34 = vld [vmem:[%s19602_s7 + $0x898] sm:$0xff] }
 0xd1e   : > { %v6217_v41 = vpop.f32.mrf.mxu1  ;;  %6864 = vmatpush.bf16.msrb.mxu3 %v15044_v21 }
 0xd1f   : > { %v18475_v61 = vadd.f32 %v6217_v41, %v18401_v53  ;;  %6345 = vmatmul.bf16.gmra.mxu3 %v6261_v51  ;;  %v6648_v60 = vpop.f32.mrf.mxu0  ;;  %v15053_v53 = vld [vmem:[%s19602_s7 + $0x8f8] sm:$0xff]  ;;  %v15039_v51 = vld [vmem:[%s19602_s7 + $0x888] sm:$0xff]  ;;  %v15038_v41 = vld [vmem:[%s19602_s7 + $0x880] sm:$0xff] }
 0xd20   : > { %v6662_v57 = vpack.c.bf16 %v6648_v60, %v6646_v29  ;;  %6997 = vmatpush.bf16.msrb.mxu1 %v15053_v53 }
 0xd21   : > { %13011 = vmatmul.msk.bf16.gmra.mxu2 %vm1831_vm0, %v15608_v19 }
 0xd22   : > { %6742 = vmatmul.bf16.gmra.mxu1 %v6662_v57  ;;  %6865 = vmatpush.bf16.msrb.mxu3 %v15043_v15 }
 0xd24   : > { %v6254_v56 = vpop.f32.mrf.mxu2  ;;  %6998 = vmatpush.bf16.msrb.mxu1 %v15052_v11 }
 0xd26   : > { %v18511_v10 = vpop.f32.mrf.mxu1  ;;  %6866 = vmatpush.bf16.msrb.mxu3 %v15042_v55 }
 0xd27   : > { %v6651_v6 = vpop.f32.mrf.mxu0 }
 0xd28   : > { %6999 = vmatpush.bf16.msrb.mxu1 %v15051_v24 }
 0xd2a   : > { %6867 = vmatpush.bf16.msrb.mxu3 %v15041_v34 }
 0xd2c   : > { %v6256_v39 = vpop.f32.mrf.mxu2  ;;  %7000 = vmatpush.bf16.msrb.mxu1 %v15050_v40 }
 0xd2d   : > { %v6262_v52 = vpack.c.bf16 %v6256_v39, %v6254_v56 }
 0xd2e   : > { %6868 = vmatpush.bf16.msrb.mxu3 %v15040_v37 }
 0xd2f   : > { %6350 = vmatmul.bf16.gmra.mxu3 %v6262_v52  ;;  %v6653_v30 = vpop.f32.mrf.mxu0 }
 0xd30   : > { %v6663_v54 = vpack.c.bf16 %v6653_v30, %v6651_v6  ;;  %7001 = vmatpush.bf16.msrb.mxu1 %v15049_v26 }
 0xd32   : > { %6747 = vmatmul.bf16.gmra.mxu1 %v6663_v54  ;;  %6869 = vmatpush.bf16.msrb.mxu3 %v15039_v51 }
 0xd34   : > { %v6507_v14 = vpop.f32.mrf.mxu2  ;;  %7002 = vmatpush.bf16.msrb.mxu1 %v15048_v42 }
 0xd36   : > { %6870 = vmatpush.bf16.msrb.mxu3 %v15038_v41 }
 0xd37   : > { %v6656_v36 = vpop.f32.mrf.mxu0 }
 0xd38   : > { %7003 = vmatpush.bf16.msrb.mxu1 %v15047_v17 }
 0xd3c   : > { %v6509_v12 = vpop.f32.mrf.mxu2  ;;  %7004 = vmatpush.bf16.msrb.mxu1 %v15046_v44 }
 0xd3d   : > { %v6527_v1 = vpack.c.bf16 %v6509_v12, %v6507_v14 }
 0xd3f   : > { %6603 = vmatmul.bf16.vlgmr.msra.gmra.mxu3 %v6527_v1  ;;  %v6658_v4 = vpop.f32.mrf.mxu0 }
 0xd40   : > { %v6664_v25 = vpack.c.bf16 %v6658_v4, %v6656_v36  ;;  %v18535_v36 = vpop.f32.mrf.mxu3 }
 0xd42   : > { %6752 = vmatmul.bf16.gmra.mxu1 %v6664_v25 }
 0xd44   : > { %v6512_v28 = vpop.f32.mrf.mxu2 }
 0xd47   : > { %v6909_v50 = vpop.f32.mrf.mxu0 }
 0xd4c   : > { %v6514_v33 = vpop.f32.mrf.mxu2 }
 0xd4d   : > { %v6528_v0 = vpack.c.bf16 %v6514_v33, %v6512_v28 }
 0xd4e   : > { %v6470_v31 = vpop.f32.mrf.mxu1 }
 0xd4f   : > { %6608 = vmatmul.bf16.gmra.mxu3 %v6528_v0  ;;  %v6911_v22 = vpop.f32.mrf.mxu0 }
 0xd50   : > { %v6929_v13 = vpack.c.bf16 %v6911_v22, %v6909_v50 }
 0xd52   : > { %7005 = vmatmul.bf16.vlgmr.msrb.gmra.mxu1 %v6929_v13 }
 0xd54   : > { %v6517_v16 = vpop.f32.mrf.mxu2 }
 0xd56   : > { %v18531_v56 = vpop.f32.mrf.mxu1 }
 0xd57   : > { %v6914_v19 = vpop.f32.mrf.mxu0 }
 0xd5c   : > { %v6519_v63 = vpop.f32.mrf.mxu2 }
 0xd5d   : > { %v6529_v29 = vpack.c.bf16 %v6519_v63, %v6517_v16 }
 0xd5e   : > { %v6475_v52 = vpop.f32.mrf.mxu1 }
 0xd5f   : > { %6613 = vmatmul.bf16.gmra.mxu3 %v6529_v29  ;;  %v6916_v57 = vpop.f32.mrf.mxu0 }
 0xd60   : > { %v6930_v39 = vpack.c.bf16 %v6916_v57, %v6914_v19 }
 0xd62   : > { %7010 = vmatmul.bf16.gmra.mxu1 %v6930_v39 }
 0xd64   : > { %v6522_v60 = vpop.f32.mrf.mxu2 }
 0xd66   : > { %v18533_v54 = vpop.f32.mrf.mxu1 }
 0xd67   : > { %v6919_v53 = vpop.f32.mrf.mxu0 }
 0xd6c   : > { %v6524_v6 = vpop.f32.mrf.mxu2 }
 0xd6d   : > { %v6530_v14 = vpack.c.bf16 %v6524_v6, %v6522_v60 }
 0xd6e   : > { %v6480_v28 = vpop.f32.mrf.mxu1 }
 0xd6f   : > { %6618 = vmatmul.bf16.gmra.mxu3 %v6530_v14  ;;  %v6921_v12 = vpop.f32.mrf.mxu0 }
 0xd70   : > { %v6931_v1 = vpack.c.bf16 %v6921_v12, %v6919_v53 }
 0xd72   : > { %7015 = vmatmul.bf16.gmra.mxu1 %v6931_v1 }
 0xd74   : > { %v6775_v30 = vpop.f32.mrf.mxu2 }
 0xd76   : > { %v18538_v33 = vpop.f32.mrf.mxu1 }
 0xd77   : > { %v6924_v24 = vpop.f32.mrf.mxu0 }
 0xd7c   : > { %v6777_v11 = vpop.f32.mrf.mxu2 }
 0xd7d   : > { %v6795_v3 = vpack.c.bf16 %v6777_v11, %v6775_v30 }
 0xd7e   : > { %v6485_v17 = vpop.f32.mrf.mxu1 }
 0xd7f   : > { %6871 = vmatmul.bf16.vlgmr.msrb.gmra.mxu3 %v6795_v3  ;;  %v6926_v25 = vpop.f32.mrf.mxu0 }
 0xd80   : > { %v6932_v26 = vpack.c.bf16 %v6926_v25, %v6924_v24 }
 0xd82   : > { %v6336_v21 = vpop.f32.mrf.mxu3  ;;  %7020 = vmatmul.bf16.gmra.mxu1 %v6932_v26 }
 0xd83   : > { %v6356_v40 = vadd.f32 %v6336_v21, %v18406_v23 }
 0xd84   : > { %v6780_v4 = vpop.f32.mrf.mxu2 }
 0xd85   : > { %v6490_v15 = vadd.f32 %v6470_v31, %v6356_v40 }
 0xd86   : > { %v18543_v22 = vpop.f32.mrf.mxu1 }
 0xd8a   : > { %v6338_v0 = vpop.f32.mrf.mxu3 }
 0xd8c   : > { %v6782_v55 = vpop.f32.mrf.mxu2 }
 0xd8d   : > { %v6796_v50 = vpack.c.bf16 %v6782_v55, %v6780_v4 }
 0xd8f   : > { %6876 = vmatmul.bf16.gmra.mxu3 %v6796_v50  ;;  %v6738_v41 = vpop.f32.mrf.mxu1 }
 0xd92   : > { %v6341_v42 = vpop.f32.mrf.mxu3 }
 0xd93   : > { %v6358_v34 = vadd.f32 %v6341_v42, %v18419_v38 }
 0xd94   : > { %v6785_v16 = vpop.f32.mrf.mxu2 }
 0xd95   : > { %v6492_v37 = vadd.f32 %v6475_v52, %v6358_v34 }
 0xd97   : > { %v6740_v38 = vpop.f32.mrf.mxu1 }
 0xd9a   : > { %v18541_v44 = vpop.f32.mrf.mxu3 }
 0xd9c   : > { %v6787_v23 = vpop.f32.mrf.mxu2 }
 0xd9d   : > { %v6797_v13 = vpack.c.bf16 %v6787_v23, %v6785_v16 }
 0xd9f   : > { %6881 = vmatmul.bf16.gmra.mxu3 %v6797_v13  ;;  %v6743_v53 = vpop.f32.mrf.mxu1 }
 0xda2   : > { %v6346_v31 = vpop.f32.mrf.mxu3 }
 0xda3   : > { %v6360_v51 = vadd.f32 %v6346_v31, %v18450_v59 }
 0xda4   : > { %v6790_v63 = vpop.f32.mrf.mxu2 }
 0xda5   : > { %v6494_v29 = vadd.f32 %v6480_v28, %v6360_v51 }
 0xda7   : > { %v18551_v1 = vpop.f32.mrf.mxu1 }
 0xdaa   : > { %v18546_v19 = vpop.f32.mrf.mxu3 }
 0xdac   : > { %v6792_v60 = vpop.f32.mrf.mxu2 }
 0xdad   : > { %v6798_v57 = vpack.c.bf16 %v6792_v60, %v6790_v63  ;;  %v18572_v60 = vld [vmem:[%s19603_s8 + $0x3] ss:$0 sm:$0xff] }
 0xdaf   : > { %6886 = vmatmul.bf16.gmra.mxu3 %v6798_v57  ;;  %v6748_v3 = vpop.f32.mrf.mxu1 }
 0xdb2   : > { %v6351_v39 = vpop.f32.mrf.mxu3 }
 0xdb3   : > { %v6362_v52 = vadd.f32 %v6351_v39, %v18475_v61 }
 0xdb5   : > { %v6496_v6 = vadd.f32 %v6485_v17, %v6362_v52 }
 0xdb7   : > { %v18553_v40 = vpop.f32.mrf.mxu1 }
 0xdba   : > { %v18549_v14 = vpop.f32.mrf.mxu3 }
 0xdbf   : > { %v6753_v26 = vpop.f32.mrf.mxu1 }
 0xdc2   : > { %v6604_v30 = vpop.f32.mrf.mxu3 }
 0xdc3   : > { %v6624_v12 = vadd.f32 %v6604_v30, %v6490_v15  ;;  %v15070_v30 = vld [vmem:[#allocation5 + $0x74] sm:$0xf0] }
 0xdc5   : > { %v6758_v59 = vadd.f32 %v6738_v41, %v6624_v12 }
 0xdc7   : > { %v18559_v42 = vpop.f32.mrf.mxu1 }
 0xdca   : > { %v6606_v11 = vpop.f32.mrf.mxu3 }
 0xdcf   : > { %v7006_v16 = vpop.f32.mrf.mxu1 }
 0xdd2   : > { %v6609_v24 = vpop.f32.mrf.mxu3 }
 0xdd3   : > { %v6626_v28 = vadd.f32 %v6609_v24, %v6492_v37  ;;  %v6079_v37 = vadd.f32 %v18330_v7, %v18328_v9 }
 0xdd5   : > { %v6760_v21 = vadd.f32 %v6743_v53, %v6626_v28  ;;  %v6223_v13 = vadd.f32 %v18410_v46, %v6079_v37  ;;  %v6084_v46 = vadd.f32 %v18361_v27, %v18359_v2  ;;  %v13204_v28 = vld [vmem:[#allocation5 + $0x60] sm:$0xf] }
 0xdd7   : > { %v6357_v31 = vadd.f32 %v6338_v0, %v6223_v13  ;;  %v7008_v51 = vpop.f32.mrf.mxu1 }
 0xdda   : > { %v6611_v4 = vpop.f32.mrf.mxu3 }
 0xddf   : > { %v7011_v0 = vpop.f32.mrf.mxu1 }
 0xde2   : > { %v6614_v25 = vpop.f32.mrf.mxu3 }
 0xde3   : > { %v6628_v61 = vadd.f32 %v6614_v25, %v6494_v29  ;;  %v6491_v29 = vadd.f32 %v18531_v56, %v6357_v31  ;;  %v13212_v56 = vld [vmem:[#allocation5 + $0x70] sm:$0xf]  ;;  %v15068_v25 = vld [vmem:[#allocation5 + $0x64] sm:$0xf0] }
 0xde5   : > { %v18555_v55 = vadd.f32 %v6748_v3, %v6628_v61  ;;  %v6625_v57 = vadd.f32 %v6606_v11, %v6491_v29  ;;  %v6225_v3 = vadd.f32 %v18435_v45, %v6084_v46  ;;  %v13188_v29 = vld [vmem:[#allocation5 + $0x40] sm:$0xf] }
 0xde7   : > { %v6759_v7 = vadd.f32 %v6740_v38, %v6625_v57  ;;  %v6359_v11 = vadd.f32 %v18541_v44, %v6225_v3  ;;  %v7045_v38 = vunpack.c.l.bf16 %v17516_v47  ;;  %v7013_v31 = vpop.f32.mrf.mxu1  ;;  %v15064_v47 = vld [vmem:[#allocation5 + $0x44] sm:$0xf0]  ;;  %v7046_v57 = vunpack.c.l.bf16 %v17541_v32 }
 0xde9   : > { %v6493_v27 = vadd.f32 %v18533_v54, %v6359_v11  ;;  %v13189_v54 = vor.u32 %v15064_v47, %v13188_v29  ;;  %v13164_v11 = vld [vmem:[#allocation5 + $0x10] sm:$0xf]  ;;  %v7049_v29 = vunpack.c.l.bf16 %v17574_v18 }
 0xdea   : > { %v18557_v50 = vpop.f32.mrf.mxu3 }
 0xdeb   : > { %v6627_v44 = vadd.f32 %v6611_v4, %v6493_v27  ;;  %v13180_v4 = vld [vmem:[#allocation5 + $0x30] sm:$0xf]  ;;  %v15056_v27 = vld [vmem:[#allocation5 + $0x4] sm:$0xf0] }
 0xdef   : > { %v7016_v32 = vpop.f32.mrf.mxu1 }
 0xdf2   : > { %v6619_v15 = vpop.f32.mrf.mxu3 }
 0xdf3   : > { %v6630_v17 = vadd.f32 %v6619_v15, %v6496_v6  ;;  %v7044_v6 = vunpack.c.l.bf16 %v17511_v43  ;;  %v13196_v15 = vld [vmem:[#allocation5 + $0x50] sm:$0xf] }
 0xdf5   : > { %v18561_v34 = vadd.f32 %v6753_v26, %v6630_v17  ;;  %v13205_v26 = vor.u32 %v15068_v25, %v13204_v28  ;;  %v15066_v17 = vld [vmem:[#allocation5 + $0x54] sm:$0xf0] }
 0xdf6   : > { %v13197_v13 = vor.u32 %v15066_v17, %v13196_v15  ;;  %v15058_v28 = vld [vmem:[#allocation5 + $0x14] sm:$0xf0] }
 0xdf7   : > { %v7018_v17 = vpop.f32.mrf.mxu1 }
 0xdfa   : > { %v18563_v23 = vpop.f32.mrf.mxu3 }
 0xdff   : > { %v7021_v47 = vpop.f32.mrf.mxu1 }
 0xe02   : > { %v6872_v63 = vpop.f32.mrf.mxu3 }
 0xe03   : > { %v6892_v41 = vadd.f32 %v6872_v63, %v6758_v59  ;;  %v13213_v59 = vor.u32 %v15070_v30, %v13212_v56  ;;  %v13172_v30 = vld [vmem:[#allocation5 + $0x20] sm:$0xf] }
 0xe05   : > { %v7026_v39 = vadd.f32 %v7006_v16, %v6892_v41  ;;  %7342 = vmatpush.bf16.msrb.mxu0 %v13213_v59  ;;  %v7047_v59 = vunpack.c.l.bf16 %v17548_v48  ;;  %v13156_v48 = vld [vmem:[#allocation5] sm:$0xf] }
 0xe07   : > { %v7036_v52 = vadd.f32 %v18572_v60, %v7026_v39 }
 0xe09   : > { %v7052_v9 = vadd.f32 %v7044_v6, %v7036_v52  ;;  %7343 = vmatpush.bf16.msrb.mxu0 %v13205_v26  ;;  %v6761_v52 = vadd.f32 %v18551_v1, %v6627_v44 }
 0xe0a   : > { %v6874_v53 = vpop.f32.mrf.mxu3 }
 0xe0b   : > { %v6893_v12 = vadd.f32 %v6874_v53, %v6759_v7  ;;  %v7060_v16 = vmax.f32 %v7052_v9, 0.0  ;;  %v15062_v9 = vld [vmem:[#allocation5 + $0x34] sm:$0xf0] }
 0xe0c   : > { %v13181_v46 = vor.u32 %v15062_v9, %v13180_v4  ;;  %v7023_v9 = vpop.f32.mrf.mxu1 }
 0xe0d   : > { %v7027_v24 = vadd.f32 %v7008_v51, %v6893_v12  ;;  %7344 = vmatpush.bf16.msrb.mxu0 %v13197_v13  ;;  %v15060_v12 = vld [vmem:[#allocation5 + $0x24] sm:$0xf0] }
 0xe0e   : > { %v13173_v3 = vor.u32 %v15060_v12, %v13172_v30  ;;  %v15071_v30 = vld [vmem:[%s19598_s3 + $0x8] sm:$0xff] }
 0xe0f   : > { %v7037_v43 = vadd.f32 %v18572_v60, %v7027_v24 }
 0xe11   : > { %v7053_v2 = vadd.f32 %v7045_v38, %v7037_v43  ;;  %7345 = vmatpush.bf16.msrb.mxu0 %v13189_v54 }
 0xe12   : > { %v6877_v61 = vpop.f32.mrf.mxu3 }
 0xe13   : > { %v7061_v45 = vmax.f32 %v7053_v2, 0.0  ;;  %v6894_v37 = vadd.f32 %v6877_v61, %v6760_v21  ;;  %v6089_v21 = vadd.f32 %v18394_v35, %v18392_v62  ;;  %v13157_v61 = vor.u32 %v15056_v27, %v13156_v48  ;;  %v13108_v48 = vld [vmem:[#allocation5 + $0xa0] sm:$0xf] }
 0xe15   : > { %v18583_v51 = vpack.c.bf16 %v7061_v45, %v7060_v16  ;;  %v7028_v63 = vadd.f32 %v7011_v0, %v6894_v37  ;;  %v6227_v0 = vadd.f32 %v18466_v20, %v6089_v21  ;;  %7346 = vmatpush.bf16.msrb.mxu0 %v13181_v46 }
 0xe17   : > { %v7038_v41 = vadd.f32 %v18572_v60, %v7028_v63  ;;  %v6361_v56 = vadd.f32 %v18546_v19, %v6227_v0  ;;  %v13165_v19 = vor.u32 %v15058_v28, %v13164_v11  ;;  %v13116_v11 = vld [vmem:[#allocation5 + $0xb0] sm:$0xf]  ;;  %v15079_v28 = vld [vmem:[#allocation5 + $0xb4] sm:$0xf0] }
 0xe19   : > { %v7054_v39 = vadd.f32 %v7046_v57, %v7038_v41  ;;  %7347 = vmatpush.bf16.msrb.mxu0 %v13173_v3  ;;  %v6495_v35 = vadd.f32 %v18538_v33, %v6361_v56  ;;  %v7048_v33 = vunpack.c.l.bf16 %v17570_v58  ;;  %v15085_v56 = vld [vmem:[#allocation5 + $0xe4] sm:$0xf0] }
 0xe1a   : > { %v6879_v6 = vpop.f32.mrf.mxu3 }
 0xe1b   : > { %v6895_v7 = vadd.f32 %v6879_v6, %v6761_v52  ;;  %v7062_v20 = vmax.f32 %v7054_v39, 0.0  ;;  %v6629_v38 = vadd.f32 %v18557_v50, %v6495_v35  ;;  %v6094_v50 = vadd.f32 %v18535_v36, %v18403_v49  ;;  %v15081_v35 = vld [vmem:[#allocation5 + $0xc4] sm:$0xf0] }
 0xe1c   : > { %v7050_v52 = vunpack.c.l.bf16 %v17585_v8  ;;  %v13148_v8 = vld [vmem:[#allocation5 + $0xf0] sm:$0xf] }
 0xe1d   : > { %v7029_v53 = vadd.f32 %v7013_v31, %v6895_v7  ;;  %7348 = vmatpush.bf16.msrb.mxu0 %v13165_v19  ;;  %v6763_v45 = vadd.f32 %v18553_v40, %v6629_v38  ;;  %v6229_v13 = vadd.f32 %v18511_v10, %v6094_v50  ;;  %v13206_v38 = vld [vmem:[#allocation5 + $0x68] sm:$0xf0]  ;;  %v15063_v50 = vld [vmem:[#allocation5 + $0x44] sm:$0xf] }
 0xe1f   : > { %v7039_v1 = vadd.f32 %v18572_v60, %v7029_v53  ;;  %v6363_v44 = vadd.f32 %v18549_v14, %v6229_v13 }
 0xe21   : > { %v7055_v62 = vadd.f32 %v7047_v59, %v7039_v1  ;;  %7349 = vmatpush.bf16.msrb.mxu0 %v13157_v61  ;;  %v6497_v40 = vadd.f32 %v18543_v22, %v6363_v44  ;;  %v13132_v1 = vld [vmem:[#allocation5 + $0xd0] sm:$0xf]  ;;  %v15083_v59 = vld [vmem:[#allocation5 + $0xd4] sm:$0xf0]  ;;  %v15077_v61 = vld [vmem:[#allocation5 + $0xa4] sm:$0xf0] }
 0xe22   : > { %v6882_v24 = vpop.f32.mrf.mxu3  ;;  %v13133_v3 = vor.u32 %v15083_v59, %v13132_v1  ;;  %v15084_v1 = vld [vmem:[#allocation5 + $0xe4] sm:$0xf]  ;;  %v13142_v59 = vld [vmem:[#allocation5 + $0xe8] sm:$0xf0] }
 0xe23   : > { %v7063_v25 = vmax.f32 %v7055_v62, 0.0  ;;  %v6896_v43 = vadd.f32 %v6882_v24, %v18555_v55  ;;  %v6631_v49 = vadd.f32 %v18563_v23, %v6497_v40  ;;  %v13124_v62 = vld [vmem:[#allocation5 + $0xc0] sm:$0xf]  ;;  %v15059_v40 = vld [vmem:[#allocation5 + $0x24] sm:$0xf] }
 0xe24   : > { %v13125_v24 = vor.u32 %v15081_v35, %v13124_v62  ;;  %v15082_v62 = vld [vmem:[#allocation5 + $0xd4] sm:$0xf]  ;;  %v13134_v35 = vld [vmem:[#allocation5 + $0xd8] sm:$0xf0] }
 0xe25   : > { %v18597_v26 = vpack.c.bf16 %v7063_v25, %v7062_v20  ;;  %v7030_v2 = vadd.f32 %v7016_v32, %v6896_v43  ;;  %v6765_v18 = vadd.f32 %v18559_v42, %v6631_v49  ;;  %v15087_v42 = vld [vmem:[#allocation5 + $0xf4] sm:$0xf0]  ;;  %v15054_v32 = vld [vmem:[%s19598_s3] sm:$0xff]  ;;  %v15069_v20 = vld [vmem:[#allocation5 + $0x74] sm:$0xf] }
 0xe26   : > { %v13214_v25 = vld [vmem:[#allocation5 + $0x78] sm:$0xf0]  ;;  %v15067_v43 = vld [vmem:[#allocation5 + $0x64] sm:$0xf] }
 0xe27   : > { %v7040_v15 = vadd.f32 %v18572_v60, %v7030_v2  ;;  %v13217_v19 = vor.u32 %v15069_v20, %v13214_v25  ;;  %v13117_v2 = vor.u32 %v15079_v28, %v13116_v11  ;;  %v13209_v27 = vor.u32 %v15067_v43, %v13206_v38  ;;  %v13166_v49 = vld [vmem:[#allocation5 + $0x18] sm:$0xf0]  ;;  %v15080_v11 = vld [vmem:[#allocation5 + $0xc4] sm:$0xf]  ;;  %v13126_v28 = vld [vmem:[#allocation5 + $0xc8] sm:$0xf0] }
 0xe28   : > { %v13129_v20 = vor.u32 %v15080_v11, %v13126_v28  ;;  %v15078_v25 = vld [vmem:[#allocation5 + $0xb4] sm:$0xf]  ;;  %v13118_v43 = vld [vmem:[#allocation5 + $0xb8] sm:$0xf0]  ;;  %v13310_v38 = vld [vmem:[#allocation5 + $0x1a0] sm:$0xf] }
 0xe29   : > { %v7056_v16 = vadd.f32 %v7048_v33, %v7040_v15  ;;  %7356 = vmatpush.bf16.msra.mxu1 %v13217_v19  ;;  %v15065_v15 = vld [vmem:[#allocation5 + $0x54] sm:$0xf]  ;;  %v13198_v33 = vld [vmem:[#allocation5 + $0x58] sm:$0xf0]  ;;  %v13121_v19 = vor.u32 %v15078_v25, %v13118_v43  ;;  %v15135_v28 = vld [vmem:[#allocation5 + $0x264] sm:$0xf] }
 0xe2a   : > { %v6884_v55 = vpop.f32.mrf.mxu3  ;;  %v15095_v25 = vld [vmem:[#allocation5 + $0x134] sm:$0xf]  ;;  %v13251_v43 = vld [vmem:[#allocation5 + $0x138] sm:$0xf0] }
 0xe2b   : > { %v6897_v37 = vadd.f32 %v6884_v55, %v6763_v45  ;;  %v7064_v57 = vmax.f32 %v7056_v16, 0.0  ;;  %v13100_v16 = vld [vmem:[#allocation5 + $0x90] sm:$0xf]  ;;  %v13201_v45 = vor.u32 %v15065_v15, %v13198_v33  ;;  %v15075_v55 = vld [vmem:[#allocation5 + $0x94] sm:$0xf0] }
 0xe2c   : > { %v13101_v13 = vor.u32 %v15075_v55, %v13100_v16  ;;  %v15076_v15 = vld [vmem:[#allocation5 + $0xa4] sm:$0xf]  ;;  %v13110_v33 = vld [vmem:[#allocation5 + $0xa8] sm:$0xf0]  ;;  %v13102_v55 = vld [vmem:[#allocation5 + $0x98] sm:$0xf0] }
 0xe2d   : > { %v7031_v31 = vadd.f32 %v7018_v17, %v6897_v37  ;;  %v13109_v17 = vor.u32 %v15077_v61, %v13108_v48  ;;  %7357 = vmatpush.bf16.msra.mxu1 %v13209_v27  ;;  %v13190_v37 = vld [vmem:[#allocation5 + $0x48] sm:$0xf0]  ;;  %v13302_v48 = vld [vmem:[#allocation5 + $0x190] sm:$0xf]  ;;  %v15109_v61 = vld [vmem:[#allocation5 + $0x194] sm:$0xf0] }
 0xe2e   : > { %v13193_v44 = vor.u32 %v15063_v50, %v13190_v37  ;;  %v13303_v16 = vor.u32 %v15109_v61, %v13302_v48  ;;  %v15072_v37 = vld [vmem:[#allocation5 + $0x84] sm:$0xf]  ;;  %v15133_v61 = vld [vmem:[#allocation5 + $0x254] sm:$0xf] }
 0xe2f   : > { %v7041_v63 = vadd.f32 %v18572_v60, %v7031_v31  ;;  %v13092_v31 = vld [vmem:[#allocation5 + $0x80] sm:$0xf] }
 0xe31   : > { %v7057_v58 = vadd.f32 %v7049_v29, %v7041_v63  ;;  %7358 = vmatpush.bf16.msra.mxu1 %v13201_v45  ;;  %v15073_v63 = vld [vmem:[#allocation5 + $0x84] sm:$0xf0]  ;;  %v15061_v29 = vld [vmem:[#allocation5 + $0x34] sm:$0xf] }
 0xe32   : > { %v6887_v41 = vpop.f32.mrf.mxu3  ;;  %v15074_v45 = vld [vmem:[#allocation5 + $0x94] sm:$0xf] }
 0xe33   : > { %v7065_v54 = vmax.f32 %v7057_v58, 0.0  ;;  %v6898_v39 = vadd.f32 %v6887_v41, %v18561_v34  ;;  %v7051_v34 = vunpack.c.l.bf16 %v17587_v5  ;;  %v13149_v5 = vor.u32 %v15087_v42, %v13148_v8  ;;  %v13182_v58 = vld [vmem:[#allocation5 + $0x38] sm:$0xf0]  ;;  %v15115_v8 = vld [vmem:[#allocation5 + $0x1c4] sm:$0xf0] }
 0xe34   : > { %v13185_v41 = vor.u32 %v15061_v29, %v13182_v58  ;;  %v13105_v50 = vor.u32 %v15074_v45, %v13102_v55  ;;  %v13233_v45 = vld [vmem:[#allocation5 + $0x110] sm:$0xf]  ;;  %v15092_v55 = vld [vmem:[#allocation5 + $0x114] sm:$0xf0] }
 0xe35   : > { %v18611_v36 = vpack.c.bf16 %v7065_v54, %v7064_v57  ;;  %v7032_v10 = vadd.f32 %v7021_v47, %v6898_v39  ;;  %v13093_v47 = vor.u32 %v15073_v63, %v13092_v31  ;;  %7359 = vmatpush.bf16.msra.mxu1 %v13193_v44  ;;  %v13174_v57 = vld [vmem:[#allocation5 + $0x28] sm:$0xf0]  ;;  %v15057_v39 = vld [vmem:[#allocation5 + $0x14] sm:$0xf]  ;;  %v13294_v31 = vld [vmem:[#allocation5 + $0x180] sm:$0xf] }
 0xe36   : > { %v13177_v54 = vor.u32 %v15059_v40, %v13174_v57  ;;  %v15107_v44 = vld [vmem:[#allocation5 + $0x184] sm:$0xf0] }
 0xe37   : > { %v7042_v14 = vadd.f32 %v18572_v60, %v7032_v10  ;;  %v13169_v10 = vor.u32 %v15057_v39, %v13166_v49  ;;  %v13295_v29 = vor.u32 %v15107_v44, %v13294_v31  ;;  %v13281_v39 = vld [vmem:[#allocation5 + $0x170] sm:$0xf]  ;;  %v15104_v49 = vld [vmem:[#allocation5 + $0x174] sm:$0xf0]  ;;  %v13397_v31 = vld [vmem:[#allocation5 + $0x248] sm:$0xf0] }
 0xe38   : > { %v15091_v44 = vld [vmem:[#allocation5 + $0x114] sm:$0xf] }
 0xe39   : > { %v7058_v21 = vadd.f32 %v7050_v52, %v7042_v14  ;;  %7360 = vmatpush.bf16.msra.mxu1 %v13185_v41  ;;  %v15055_v14 = vld [vmem:[#allocation5 + $0x4] sm:$0xf]  ;;  %v13158_v52 = vld [vmem:[#allocation5 + $0x8] sm:$0xf0] }
 0xe3a   : > { %v6889_v6 = vpop.f32.mrf.mxu3 }
 0xe3b   : > { %v6899_v4 = vadd.f32 %v6889_v6, %v6765_v18  ;;  %v7066_v23 = vmax.f32 %v7058_v21, 0.0  ;;  %v13350_v21 = vld [vmem:[#allocation5 + $0x1f0] sm:$0xf]  ;;  %v15121_v18 = vld [vmem:[#allocation5 + $0x1f4] sm:$0xf0]  ;;  %v13161_v6 = vor.u32 %v15055_v14, %v13158_v52  ;;  %v13282_v14 = vor.u32 %v15104_v49, %v13281_v39 }
 0xe3c   : > { %v13283_v52 = vld [vmem:[#allocation5 + $0x178] sm:$0xf0]  ;;  %v15090_v49 = vld [vmem:[#allocation5 + $0x104] sm:$0xf0] }
 0xe3d   : > { %v7033_v22 = vadd.f32 %v7023_v9, %v6899_v4  ;;  %7361 = vmatpush.bf16.msra.mxu1 %v13177_v54  ;;  %v13351_v4 = vor.u32 %v15121_v18, %v13350_v21  ;;  %v13342_v9 = vld [vmem:[#allocation5 + $0x1e0] sm:$0xf]  ;;  %v15102_v18 = vld [vmem:[#allocation5 + $0x164] sm:$0xf0] }
 0xe3e   : > { %v13273_v21 = vld [vmem:[#allocation5 + $0x160] sm:$0xf] }
 0xe3f   : > { %v7043_v7 = vadd.f32 %v18572_v60, %v7033_v22  ;;  %v13140_v60 = vld [vmem:[#allocation5 + $0xe0] sm:$0xf]  ;;  %v15119_v22 = vld [vmem:[#allocation5 + $0x1e4] sm:$0xf0] }
 0xe40   : > { %v13141_v12 = vor.u32 %v15085_v56, %v13140_v60  ;;  %v15113_v60 = vld [vmem:[#allocation5 + $0x1b4] sm:$0xf0] }
 0xe41   : > { %v7059_v46 = vadd.f32 %v7051_v34, %v7043_v7  ;;  %7362 = vmatpush.bf16.msra.mxu1 %v13169_v10  ;;  %v13343_v7 = vor.u32 %v15119_v22, %v13342_v9  ;;  %v13334_v34 = vld [vmem:[#allocation5 + $0x1d0] sm:$0xf]  ;;  %v15103_v10 = vld [vmem:[#allocation5 + $0x174] sm:$0xf]  ;;  %v13275_v9 = vld [vmem:[#allocation5 + $0x168] sm:$0xf0]  ;;  %v13274_v22 = vor.u32 %v15102_v18, %v13273_v21 }
 0xe42   : > { %v15120_v18 = vld [vmem:[#allocation5 + $0x1f4] sm:$0xf] }
 0xe43   : > { %v7067_v0 = vmax.f32 %v7059_v46, 0.0  ;;  %v15117_v46 = vld [vmem:[#allocation5 + $0x1d4] sm:$0xf0] }
 0xe45   : > { %v18618_v53 = vpack.c.bf16 %v7067_v0, %v7066_v23  ;;  %7363 = vmatpush.bf16.msra.mxu1 %v13161_v6  ;;  %v13335_v23 = vor.u32 %v15117_v46, %v13334_v34  ;;  %v13326_v0 = vld [vmem:[#allocation5 + $0x1c0] sm:$0xf]  ;;  %v13286_v6 = vor.u32 %v15103_v10, %v13283_v52  ;;  %v13265_v34 = vld [vmem:[#allocation5 + $0x150] sm:$0xf]  ;;  %v15100_v46 = vld [vmem:[#allocation5 + $0x154] sm:$0xf0] }
 0xe46   : > { %v13327_v42 = vor.u32 %v15115_v8, %v13326_v0  ;;  %v13267_v0 = vld [vmem:[#allocation5 + $0x158] sm:$0xf0]  ;;  %v13266_v8 = vor.u32 %v15100_v46, %v13265_v34  ;;  %v15089_v10 = vld [vmem:[#allocation5 + $0x104] sm:$0xf]  ;;  %v13381_v34 = vld [vmem:[#allocation5 + $0x228] sm:$0xf0] }
 0xe47   : > { %7086 = vmatpush.bf16.msrb.mxu2 %v18618_v53  ;;  %7127 = vmatpush.bf16.msra.mxu3 %v18618_v53 }
 0xe48   : > { %7537 = vmatpush.bf16.msra.mxu0 %v18618_v53 }
 0xe49   : > { %7644 = vmatpush.bf16.msrb.mxu1 %v13351_v4  ;;  %v15101_v4 = vld [vmem:[#allocation5 + $0x164] sm:$0xf] }
 0xe4b   : > { %7087 = vmatpush.bf16.msrb.mxu2 %v18611_v36  ;;  %7128 = vmatpush.bf16.msra.mxu3 %v18611_v36 }
 0xe4c   : > { %7538 = vmatpush.bf16.msra.mxu0 %v18611_v36 }
 0xe4d   : > { %7645 = vmatpush.bf16.msrb.mxu1 %v13343_v7  ;;  %v13278_v7 = vor.u32 %v15101_v4, %v13275_v9  ;;  %v13419_v4 = vld [vmem:[#allocation5 + $0x270] sm:$0xf] }
 0xe4f   : > { %7088 = vmatpush.bf16.msrb.mxu2 %v18597_v26  ;;  %7129 = vmatpush.bf16.msra.mxu3 %v18597_v26 }
 0xe50   : > { %7539 = vmatpush.bf16.msra.mxu0 %v18597_v26 }
 0xe51   : > { %7646 = vmatpush.bf16.msrb.mxu1 %v13335_v23  ;;  %v15099_v23 = vld [vmem:[#allocation5 + $0x154] sm:$0xf] }
 0xe53   : > { %7089 = vmatpush.bf16.msrb.mxu2 %v18583_v51  ;;  %7130 = vmatpush.bf16.msra.mxu3 %v18583_v51 }
 0xe54   : > { %7540 = vmatpush.bf16.msra.mxu0 %v18583_v51 }
 0xe55   : > { %7647 = vmatpush.bf16.msrb.mxu1 %v13327_v42  ;;  %v13270_v42 = vor.u32 %v15099_v23, %v13267_v0  ;;  %v15118_v0 = vld [vmem:[#allocation5 + $0x1e4] sm:$0xf] }
 0xe56   : > { %13084 = vmatmul.msk.bf16.vlgmr.msrb.gmra.mxu2 %vm1831_vm0, %v15054_v32  ;;  %13089 = vmatmul.msk.bf16.vlgmr.msra.gmra.mxu3 %vm1831_vm0, %v15071_v30  ;;  %v15086_v32 = vld [vmem:[#allocation5 + $0xf4] sm:$0xf]  ;;  %v13150_v30 = vld [vmem:[#allocation5 + $0xf8] sm:$0xf0] }
 0xe57   : > { %7234 = vmatpush.bf16.msra.mxu2 %v13149_v5  ;;  %v13318_v5 = vld [vmem:[#allocation5 + $0x1b0] sm:$0xf] }
 0xe58   : > { %v13319_v56 = vor.u32 %v15113_v60, %v13318_v5  ;;  %v13257_v5 = vld [vmem:[#allocation5 + $0x140] sm:$0xf]  ;;  %v15098_v60 = vld [vmem:[#allocation5 + $0x144] sm:$0xf0] }
 0xe5a   : > { %7648 = vmatpush.bf16.msrb.mxu1 %v13319_v56  ;;  %v15137_v56 = vld [vmem:[#allocation5 + $0x274] sm:$0xf] }
 0xe5b   : > { %7235 = vmatpush.bf16.msra.mxu2 %v13141_v12  ;;  %v13153_v12 = vor.u32 %v15086_v32, %v13150_v30  ;;  %v13421_v32 = vld [vmem:[#allocation5 + $0x278] sm:$0xf0]  ;;  %v15097_v30 = vld [vmem:[#allocation5 + $0x144] sm:$0xf] }
 0xe5d   : > { %7248 = vmatpush.bf16.msrb.mxu3 %v13153_v12  ;;  %v13259_v12 = vld [vmem:[#allocation5 + $0x148] sm:$0xf0] }
 0xe5e   : > { %v13262_v11 = vor.u32 %v15097_v30, %v13259_v12 }
 0xe5f   : > { %7236 = vmatpush.bf16.msra.mxu2 %v13133_v3  ;;  %v13145_v3 = vor.u32 %v15084_v1, %v13142_v59  ;;  %v15088_v1 = vld [vmem:[%s19598_s3 + $0x10] sm:$0xff]  ;;  %v13258_v59 = vor.u32 %v15098_v60, %v13257_v5  ;;  %v15136_v60 = vld [vmem:[#allocation5 + $0x264] sm:$0xf0] }
 0xe61   : > { %7249 = vmatpush.bf16.msrb.mxu3 %v13145_v3  ;;  %v15105_v3 = vld [vmem:[%s19598_s3 + $0x18] sm:$0xff] }
 0xe63   : > { %7237 = vmatpush.bf16.msra.mxu2 %v13125_v24  ;;  %v13137_v24 = vor.u32 %v15082_v62, %v13134_v35  ;;  %v13249_v62 = vld [vmem:[#allocation5 + $0x130] sm:$0xf]  ;;  %v15096_v35 = vld [vmem:[#allocation5 + $0x134] sm:$0xf0] }
 0xe65   : > { %7250 = vmatpush.bf16.msrb.mxu3 %v13137_v24  ;;  %v13424_v24 = vor.u32 %v15137_v56, %v13421_v32  ;;  %v15125_v56 = vld [vmem:[#allocation5 + $0x214] sm:$0xf]  ;;  %v13373_v32 = vld [vmem:[#allocation5 + $0x218] sm:$0xf0] }
 0xe66   : > { %v13376_v12 = vor.u32 %v15125_v56, %v13373_v32  ;;  %v15162_v56 = vld [vmem:[#allocation5 + $0x324] sm:$0xf0] }
 0xe67   : > { %7238 = vmatpush.bf16.msra.mxu2 %v13117_v2  ;;  %v15111_v2 = vld [vmem:[#allocation5 + $0x1a4] sm:$0xf0] }
 0xe68   : > { %v13311_v27 = vor.u32 %v15111_v2, %v13310_v38  ;;  %v13241_v38 = vld [vmem:[#allocation5 + $0x120] sm:$0xf]  ;;  %v15094_v2 = vld [vmem:[#allocation5 + $0x124] sm:$0xf0] }
 0xe69   : > { %7251 = vmatpush.bf16.msrb.mxu3 %v13129_v20  ;;  %v13413_v20 = vld [vmem:[#allocation5 + $0x268] sm:$0xf0] }
 0xe6a   : > { %7649 = vmatpush.bf16.msrb.mxu1 %v13311_v27  ;;  %v13416_v48 = vor.u32 %v15135_v28, %v13413_v20  ;;  %v13254_v27 = vor.u32 %v15095_v25, %v13251_v43  ;;  %v13557_v25 = vld [vmem:[#allocation5 + $0x370] sm:$0xf]  ;;  %v15172_v43 = vld [vmem:[#allocation5 + $0x374] sm:$0xf0] }
 0xe6b   : > { %7239 = vmatpush.bf16.msra.mxu2 %v13109_v17  ;;  %v13113_v17 = vor.u32 %v15076_v15, %v13110_v33  ;;  %v13405_v15 = vld [vmem:[#allocation5 + $0x258] sm:$0xf0]  ;;  %v15093_v33 = vld [vmem:[#allocation5 + $0x124] sm:$0xf] }
 0xe6d   : > { %7252 = vmatpush.bf16.msrb.mxu3 %v13121_v19  ;;  %v13250_v19 = vor.u32 %v15096_v35, %v13249_v62  ;;  %v15134_v35 = vld [vmem:[#allocation5 + $0x254] sm:$0xf0] }
 0xe6e   : > { %7650 = vmatpush.bf16.msrb.mxu1 %v13303_v16  ;;  %v13242_v16 = vor.u32 %v15094_v2, %v13241_v38  ;;  %v15114_v38 = vld [vmem:[#allocation5 + $0x1c4] sm:$0xf]  ;;  %v13328_v2 = vld [vmem:[#allocation5 + $0x1c8] sm:$0xf0] }
 0xe6f   : > { %7240 = vmatpush.bf16.msra.mxu2 %v13101_v13  ;;  %v13094_v13 = vld [vmem:[#allocation5 + $0x88] sm:$0xf0] }
 0xe70   : > { %v13097_v63 = vor.u32 %v15072_v37, %v13094_v13  ;;  %v15131_v13 = vld [vmem:[#allocation5 + $0x244] sm:$0xf] }
 0xe71   : > { %7253 = vmatpush.bf16.msrb.mxu3 %v13113_v17  ;;  %v13243_v17 = vld [vmem:[#allocation5 + $0x128] sm:$0xf0] }
 0xe72   : > { %7651 = vmatpush.bf16.msrb.mxu1 %v13295_v29  ;;  %v13246_v37 = vor.u32 %v15093_v33, %v13243_v17  ;;  %v13234_v29 = vor.u32 %v15092_v55, %v13233_v45  ;;  %v15170_v33 = vld [vmem:[#allocation5 + $0x364] sm:$0xf0]  ;;  %v15112_v45 = vld [vmem:[#allocation5 + $0x1b4] sm:$0xf]  ;;  %v13320_v55 = vld [vmem:[#allocation5 + $0x1b8] sm:$0xf0] }
 0xe73   : > { %7241 = vmatpush.bf16.msra.mxu2 %v13093_v47 }
 0xe75   : > { %7254 = vmatpush.bf16.msrb.mxu3 %v13105_v50  ;;  %v13408_v50 = vor.u32 %v15133_v61, %v13405_v15  ;;  %v15132_v61 = vld [vmem:[#allocation5 + $0x244] sm:$0xf0]  ;;  %v13549_v15 = vld [vmem:[#allocation5 + $0x360] sm:$0xf] }
 0xe77   : > { %7384 = vmatpush.bf16.msrb.mxu2 %v18618_v53 }
 0xe79   : > { %7255 = vmatpush.bf16.msrb.mxu3 %v13097_v63  ;;  %v13235_v63 = vld [vmem:[#allocation5 + $0x118] sm:$0xf0] }
 0xe7b   : > { %7385 = vmatpush.bf16.msrb.mxu2 %v18611_v36 }
 0xe7d   : > { %7491 = vmatpush.bf16.msra.mxu3 %v13282_v14  ;;  %v13227_v14 = vld [vmem:[#allocation5 + $0x108] sm:$0xf0] }
 0xe7e   : > { %v13230_v21 = vor.u32 %v15089_v10, %v13227_v14  ;;  %v15108_v14 = vld [vmem:[#allocation5 + $0x194] sm:$0xf] }
 0xe7f   : > { %7386 = vmatpush.bf16.msrb.mxu2 %v18597_v26 }
 0xe81   : > { %7492 = vmatpush.bf16.msra.mxu3 %v13274_v22  ;;  %v15138_v22 = vld [vmem:[#allocation5 + $0x274] sm:$0xf0] }
 0xe82   : > { %v13420_v46 = vor.u32 %v15138_v22, %v13419_v4  ;;  %v15164_v22 = vld [vmem:[#allocation5 + $0x334] sm:$0xf0] }
 0xe83   : > { %7387 = vmatpush.bf16.msrb.mxu2 %v18583_v51 }
 0xe85   : > { %7493 = vmatpush.bf16.msra.mxu3 %v13266_v8  ;;  %v13344_v8 = vld [vmem:[#allocation5 + $0x1e8] sm:$0xf0] }
 0xe86   : > { %v13347_v5 = vor.u32 %v15118_v0, %v13344_v8  ;;  %v13363_v8 = vld [vmem:[#allocation5 + $0x200] sm:$0xf] }
 0xe89   : > { %7494 = vmatpush.bf16.msra.mxu3 %v13258_v59  ;;  %v13336_v59 = vld [vmem:[#allocation5 + $0x1d8] sm:$0xf0] }
 0xe8d   : > { %7495 = vmatpush.bf16.msra.mxu3 %v13250_v19  ;;  %v13558_v19 = vor.u32 %v15172_v43, %v13557_v25 }
 0xe91   : > { %7496 = vmatpush.bf16.msra.mxu3 %v13242_v16  ;;  %v13550_v16 = vor.u32 %v15170_v33, %v13549_v15 }
 0xe95   : > { %7497 = vmatpush.bf16.msra.mxu3 %v13234_v29 }
 0xed9   : > { %v7091_v58 = vpop.f32.mrf.mxu2  ;;  %v7132_v47 = vpop.f32.mrf.mxu3 }
 0xee1   : > { %v7093_v41 = vpop.f32.mrf.mxu2  ;;  %v7134_v40 = vpop.f32.mrf.mxu3 }
 0xee2   : > { %v7096_v57 = vpack.c.bf16 %v7093_v41, %v7091_v58  ;;  %v7137_v54 = vpack.c.bf16 %v7134_v40, %v7132_v47  ;;  %v13400_v58 = vor.u32 %v15131_v13, %v13397_v31  ;;  %v13238_v47 = vor.u32 %v15091_v44, %v13235_v63  ;;  %v15122_v41 = vld [vmem:[%s19598_s3 + $0x20] sm:$0xff]  ;;  %v15129_v40 = vld [vmem:[#allocation5 + $0x234] sm:$0xf]  ;;  %v15130_v13 = vld [vmem:[#allocation5 + $0x234] sm:$0xf0] }
 0xee3   : > { %v13541_v44 = vld [vmem:[#allocation5 + $0x350] sm:$0xf]  ;;  %v15168_v63 = vld [vmem:[#allocation5 + $0x354] sm:$0xf0] }
 0xee4   : > { %7242 = vmatmul.bf16.vlgmr.msra.gmra.mxu2 %v7137_v54  ;;  %7350 = vmatmul.bf16.vlgmr.msrb.gmra.mxu0 %v7096_v57  ;;  %v13542_v29 = vor.u32 %v15168_v63, %v13541_v44  ;;  %v15139_v44 = vld [vmem:[%s19598_s3 + $0x28] sm:$0xff]  ;;  %v13464_v63 = vld [vmem:[#allocation5 + $0x2c0] sm:$0xf] }
 0xee5   : > { %7364 = vmatmul.bf16.vlgmr.msra.gmra.mxu1 %v7096_v57  ;;  %7690 = vmatpush.bf16.msrb.mxu0 %v18618_v53  ;;  %v13389_v57 = vld [vmem:[#allocation5 + $0x238] sm:$0xf0] }
 0xee6   : > { %7843 = vmatpush.bf16.msra.mxu1 %v18618_v53  ;;  %7256 = vmatmul.bf16.vlgmr.msrb.gmra.mxu3 %v7137_v54  ;;  %v13225_v54 = vld [vmem:[#allocation5 + $0x100] sm:$0xf]  ;;  %v13392_v39 = vor.u32 %v15129_v40, %v13389_v57  ;;  %v15128_v57 = vld [vmem:[#allocation5 + $0x224] sm:$0xf0] }
 0xee7   : > { %7505 = vmatpush.bf16.msra.mxu2 %v13286_v6  ;;  %v13226_v52 = vor.u32 %v15090_v49, %v13225_v54  ;;  %v13352_v6 = vld [vmem:[#allocation5 + $0x1f8] sm:$0xf0]  ;;  %v13533_v54 = vld [vmem:[#allocation5 + $0x340] sm:$0xf] }
 0xee8   : > { %v13355_v9 = vor.u32 %v15120_v18, %v13352_v6  ;;  %v15126_v6 = vld [vmem:[#allocation5 + $0x214] sm:$0xf0] }
 0xee9   : > { %7691 = vmatpush.bf16.msrb.mxu0 %v18611_v36  ;;  %7498 = vmatpush.bf16.msra.mxu3 %v13226_v52  ;;  %v13304_v52 = vld [vmem:[#allocation5 + $0x198] sm:$0xf0] }
 0xeea   : > { %7844 = vmatpush.bf16.msra.mxu1 %v18611_v36  ;;  %v13307_v18 = vor.u32 %v15108_v14, %v13304_v52  ;;  %v13448_v14 = vld [vmem:[#allocation5 + $0x2a0] sm:$0xf]  ;;  %v15145_v52 = vld [vmem:[#allocation5 + $0x2a4] sm:$0xf0] }
 0xeeb   : > { %7506 = vmatpush.bf16.msra.mxu2 %v13278_v7  ;;  %v15127_v7 = vld [vmem:[#allocation5 + $0x224] sm:$0xf] }
 0xeec   : > { %v13384_v23 = vor.u32 %v15127_v7, %v13381_v34  ;;  %v15106_v34 = vld [vmem:[#allocation5 + $0x184] sm:$0xf] }
 0xeed   : > { %7692 = vmatpush.bf16.msrb.mxu0 %v18597_v26  ;;  %7658 = vmatpush.bf16.msrb.mxu3 %v13355_v9  ;;  %v13525_v9 = vld [vmem:[#allocation5 + $0x330] sm:$0xf] }
 0xeee   : > { %7845 = vmatpush.bf16.msra.mxu1 %v18597_v26  ;;  %v13526_v7 = vor.u32 %v15164_v22, %v13525_v9  ;;  %v13432_v9 = vld [vmem:[#allocation5 + $0x280] sm:$0xf]  ;;  %v15141_v22 = vld [vmem:[#allocation5 + $0x284] sm:$0xf0] }
 0xeef   : > { %7507 = vmatpush.bf16.msra.mxu2 %v13270_v42  ;;  %v13411_v42 = vld [vmem:[#allocation5 + $0x260] sm:$0xf] }
 0xef0   : > { %v13412_v30 = vor.u32 %v15136_v60, %v13411_v42  ;;  %v15124_v42 = vld [vmem:[#allocation5 + $0x204] sm:$0xf0]  ;;  %v13517_v60 = vld [vmem:[#allocation5 + $0x320] sm:$0xf] }
 0xef1   : > { %7693 = vmatpush.bf16.msrb.mxu0 %v18583_v51  ;;  %7659 = vmatpush.bf16.msrb.mxu3 %v13347_v5  ;;  %v13364_v5 = vor.u32 %v15124_v42, %v13363_v8  ;;  %v13518_v32 = vor.u32 %v15162_v56, %v13517_v60  ;;  %v13474_v42 = vld [vmem:[#allocation5 + $0x2d8] sm:$0xf0]  ;;  %v15148_v60 = vld [vmem:[#allocation5 + $0x2c4] sm:$0xf]  ;;  %v13466_v56 = vld [vmem:[#allocation5 + $0x2c8] sm:$0xf0] }
 0xef2   : > { %7846 = vmatpush.bf16.msra.mxu1 %v18583_v51 }
 0xef3   : > { %7508 = vmatpush.bf16.msra.mxu2 %v13262_v11  ;;  %v13365_v11 = vld [vmem:[#allocation5 + $0x208] sm:$0xf0] }
 0xef4   : > { %13222 = vmatmul.msk.bf16.vlgmr.msrb.gmra.mxu2 %vm1831_vm0, %v15088_v1  ;;  %13291 = vmatmul.msk.bf16.vlgmr.msra.gmra.mxu0 %vm1831_vm0, %v15105_v3  ;;  %v15116_v1 = vld [vmem:[#allocation5 + $0x1d4] sm:$0xf]  ;;  %v13403_v3 = vld [vmem:[#allocation5 + $0x250] sm:$0xf] }
 0xef5   : > { %7811 = vmatpush.bf16.msra.mxu0 %v13424_v24  ;;  %v13339_v62 = vor.u32 %v15116_v1, %v13336_v59  ;;  %v15123_v24 = vld [vmem:[#allocation5 + $0x204] sm:$0xf]  ;;  %v13404_v28 = vor.u32 %v15134_v35, %v13403_v3  ;;  %v15160_v1 = vld [vmem:[#allocation5 + $0x314] sm:$0xf0] }
 0xef6   : > { %v13368_v20 = vor.u32 %v15123_v24, %v13365_v11 }
 0xef7   : > { %7509 = vmatpush.bf16.msra.mxu2 %v13254_v27  ;;  %7660 = vmatpush.bf16.msrb.mxu3 %v13339_v62  ;;  %v13331_v27 = vor.u32 %v15114_v38, %v13328_v2 }
 0xef9   : > { %7812 = vmatpush.bf16.msra.mxu0 %v13416_v48  ;;  %v13395_v48 = vld [vmem:[#allocation5 + $0x240] sm:$0xf] }
 0xefa   : > { %v13396_v17 = vor.u32 %v15132_v61, %v13395_v48  ;;  %v15155_v61 = vld [vmem:[#allocation5 + $0x2f4] sm:$0xf0] }
 0xefb   : > { %7510 = vmatpush.bf16.msra.mxu2 %v13246_v37  ;;  %7661 = vmatpush.bf16.msrb.mxu3 %v13331_v27  ;;  %v13323_v37 = vor.u32 %v15112_v45, %v13320_v55  ;;  %v13488_v27 = vld [vmem:[#allocation5 + $0x2f0] sm:$0xf]  ;;  %v15153_v45 = vld [vmem:[#allocation5 + $0x2e4] sm:$0xf0] }
 0xefc   : > { %v13489_v33 = vor.u32 %v15155_v61, %v13488_v27  ;;  %v13551_v27 = vld [vmem:[#allocation5 + $0x368] sm:$0xf0] }
 0xefd   : > { %7813 = vmatpush.bf16.msra.mxu0 %v13408_v50  ;;  %v13387_v50 = vld [vmem:[#allocation5 + $0x230] sm:$0xf] }
 0xefe   : > { %v13388_v31 = vor.u32 %v15130_v13, %v13387_v50  ;;  %v15151_v13 = vld [vmem:[#allocation5 + $0x2d4] sm:$0xf0] }
 0xeff   : > { %7511 = vmatpush.bf16.msra.mxu2 %v13238_v47  ;;  %7662 = vmatpush.bf16.msrb.mxu3 %v13323_v37  ;;  %v13312_v47 = vld [vmem:[#allocation5 + $0x1a8] sm:$0xf0]  ;;  %v13472_v37 = vld [vmem:[#allocation5 + $0x2d0] sm:$0xf] }
 0xf01   : > { %7814 = vmatpush.bf16.msra.mxu0 %v13400_v58  ;;  %v15110_v58 = vld [vmem:[#allocation5 + $0x1a4] sm:$0xf] }
 0xf02   : > { %v13315_v40 = vor.u32 %v15110_v58, %v13312_v47 }
 0xf03   : > { %7512 = vmatpush.bf16.msra.mxu2 %v13230_v21  ;;  %v13371_v21 = vld [vmem:[#allocation5 + $0x210] sm:$0xf] }
 0xf04   : > { %13360 = vmatmul.msk.bf16.vlgmr.msrb.gmra.mxu0 %vm1831_vm0, %v15122_v41  ;;  %v13379_v41 = vld [vmem:[#allocation5 + $0x220] sm:$0xf]  ;;  %7663 = vmatpush.bf16.msrb.mxu3 %v13315_v40  ;;  %v13372_v4 = vor.u32 %v15126_v6, %v13371_v21  ;;  %v13456_v40 = vld [vmem:[#allocation5 + $0x2b0] sm:$0xf]  ;;  %v13449_v21 = vor.u32 %v15145_v52, %v13448_v14  ;;  %v15143_v6 = vld [vmem:[#allocation5 + $0x294] sm:$0xf0] }
 0xf05   : > { %7815 = vmatpush.bf16.msra.mxu0 %v13392_v39  ;;  %v15166_v39 = vld [vmem:[#allocation5 + $0x344] sm:$0xf0]  ;;  %v13380_v49 = vor.u32 %v15128_v57, %v13379_v41  ;;  %v15147_v57 = vld [vmem:[#allocation5 + $0x2b4] sm:$0xf0] }
 0xf06   : > { %v13534_v10 = vor.u32 %v15166_v39, %v13533_v54  ;;  %v15154_v54 = vld [vmem:[#allocation5 + $0x2f4] sm:$0xf]  ;;  %v13490_v39 = vld [vmem:[#allocation5 + $0x2f8] sm:$0xf0] }
 0xf07   : > { %7797 = vmatpush.bf16.msrb.mxu2 %v13420_v46  ;;  %v13296_v46 = vld [vmem:[#allocation5 + $0x188] sm:$0xf0] }
 0xf08   : > { %7664 = vmatpush.bf16.msrb.mxu3 %v13307_v18  ;;  %v13299_v0 = vor.u32 %v15106_v34, %v13296_v46  ;;  %v13440_v18 = vld [vmem:[#allocation5 + $0x290] sm:$0xf]  ;;  %v15152_v46 = vld [vmem:[#allocation5 + $0x2e4] sm:$0xf] }
 0xf09   : > { %7816 = vmatpush.bf16.msra.mxu0 %v13384_v23  ;;  %v15156_v34 = vld [vmem:[%s19598_s3 + $0x30] sm:$0xff] }
 0xf0b   : > { %7798 = vmatpush.bf16.msrb.mxu2 %v13412_v30 }
 0xf0c   : > { %7665 = vmatpush.bf16.msrb.mxu3 %v13299_v0  ;;  %v15150_v0 = vld [vmem:[#allocation5 + $0x2d4] sm:$0xf] }
 0xf0d   : > { %7817 = vmatpush.bf16.msra.mxu0 %v13376_v12  ;;  %v13509_v12 = vld [vmem:[#allocation5 + $0x310] sm:$0xf] }
 0xf0e   : > { %v13510_v62 = vor.u32 %v15160_v1, %v13509_v12 }
 0xf0f   : > { %7799 = vmatpush.bf16.msrb.mxu2 %v13404_v28  ;;  %v13501_v28 = vld [vmem:[#allocation5 + $0x300] sm:$0xf] }
 0xf11   : > { %7818 = vmatpush.bf16.msra.mxu0 %v13368_v20  ;;  %v15158_v20 = vld [vmem:[#allocation5 + $0x304] sm:$0xf0] }
 0xf12   : > { %v13502_v25 = vor.u32 %v15158_v20, %v13501_v28  ;;  %v15140_v28 = vld [vmem:[#allocation5 + $0x284] sm:$0xf]  ;;  %v13434_v20 = vld [vmem:[#allocation5 + $0x288] sm:$0xf0] }
 0xf13   : > { %7800 = vmatpush.bf16.msrb.mxu2 %v13396_v17 }
 0xf15   : > { %8103 = vmatpush.bf16.msrb.mxu0 %v13558_v19 }
 0xf17   : > { %7801 = vmatpush.bf16.msrb.mxu2 %v13388_v31  ;;  %v13473_v31 = vor.u32 %v15151_v13, %v13472_v37  ;;  %v15163_v13 = vld [vmem:[#allocation5 + $0x334] sm:$0xf] }
 0xf19   : > { %8104 = vmatpush.bf16.msrb.mxu0 %v13550_v16  ;;  %v13480_v16 = vld [vmem:[#allocation5 + $0x2e0] sm:$0xf] }
 0xf1a   : > { %v13481_v50 = vor.u32 %v15153_v45, %v13480_v16 }
 0xf1b   : > { %7802 = vmatpush.bf16.msrb.mxu2 %v13380_v49  ;;  %v13493_v49 = vor.u32 %v15154_v54, %v13490_v39  ;;  %v15159_v39 = vld [vmem:[#allocation5 + $0x314] sm:$0xf] }
 0xf1d   : > { %8105 = vmatpush.bf16.msrb.mxu0 %v13542_v29  ;;  %v15149_v29 = vld [vmem:[#allocation5 + $0x2c4] sm:$0xf0] }
 0xf1e   : > { %v13465_v41 = vor.u32 %v15149_v29, %v13464_v63 }
 0xf1f   : > { %7803 = vmatpush.bf16.msrb.mxu2 %v13372_v4  ;;  %v13441_v4 = vor.u32 %v15143_v6, %v13440_v18  ;;  %v15157_v6 = vld [vmem:[#allocation5 + $0x304] sm:$0xf] }
 0xf21   : > { %8106 = vmatpush.bf16.msrb.mxu0 %v13534_v10  ;;  %v13457_v10 = vor.u32 %v15147_v57, %v13456_v40 }
 0xf23   : > { %7804 = vmatpush.bf16.msrb.mxu2 %v13364_v5  ;;  %v13477_v5 = vor.u32 %v15150_v0, %v13474_v42  ;;  %v15173_v42 = vld [vmem:[%s19598_s3 + $0x38] sm:$0xff] }
 0xf25   : > { %8107 = vmatpush.bf16.msrb.mxu0 %v13526_v7  ;;  %v13433_v7 = vor.u32 %v15141_v22, %v13432_v9 }
 0xf29   : > { %8108 = vmatpush.bf16.msrb.mxu0 %v13518_v32  ;;  %v13469_v32 = vor.u32 %v15148_v60, %v13466_v56 }
 0xf2d   : > { %8109 = vmatpush.bf16.msrb.mxu0 %v13510_v62 }
 0xf31   : > { %8110 = vmatpush.bf16.msrb.mxu0 %v13502_v25  ;;  %v15171_v25 = vld [vmem:[#allocation5 + $0x374] sm:$0xf] }
 0xf61   : > { %v7351_v23 = vpop.f32.mrf.mxu0 }
 0xf62   : > { %v7365_v3 = vpop.f32.mrf.mxu1 }
 0xf67   : > { %v7243_v30 = vpop.f32.mrf.mxu2 }
 0xf68   : > { %v18664_v59 = vadd.f32 %v7351_v23, %v7243_v30  ;;  %v13482_v23 = vld [vmem:[#allocation5 + $0x2e8] sm:$0xf0]  ;;  %v13458_v30 = vld [vmem:[#allocation5 + $0x2b8] sm:$0xf0] }
 0xf69   : > { %v18666_v35 = vpop.f32.mrf.mxu0  ;;  %v7257_v24 = vpop.f32.mrf.mxu3  ;;  %v13485_v8 = vor.u32 %v15152_v46, %v13482_v23 }
 0xf6a   : > { %v18668_v11 = vadd.f32 %v7365_v3, %v7257_v24  ;;  %v13442_v3 = vld [vmem:[#allocation5 + $0x298] sm:$0xf0]  ;;  %v18692_v24 = vpop.f32.mrf.mxu1 }
 0xf6f   : > { %v18670_v43 = vpop.f32.mrf.mxu2 }
 0xf71   : > { %v7542_v19 = vpop.f32.mrf.mxu0  ;;  %v18694_v45 = vpop.f32.mrf.mxu3 }
 0xf77   : > { %v7389_v38 = vpop.f32.mrf.mxu2 }
 0xf79   : > { %v7544_v2 = vpop.f32.mrf.mxu0 }
 0xf7a   : > { %v7547_v48 = vpack.c.bf16 %v7544_v2, %v7542_v19  ;;  %v13437_v19 = vor.u32 %v15140_v28, %v13434_v20  ;;  %v13620_v20 = vld [vmem:[#allocation5 + $0x3e8] sm:$0xf0] }
 0xf7c   : > { %7652 = vmatmul.bf16.vlgmr.msrb.gmra.mxu1 %v7547_v48 }
 0xf7d   : > { %7964 = vmatpush.bf16.msrb.mxu1 %v13493_v49  ;;  %v13511_v49 = vld [vmem:[#allocation5 + $0x318] sm:$0xf0] }
 0xf7e   : > { %v13514_v52 = vor.u32 %v15159_v39, %v13511_v49  ;;  %v13695_v39 = vld [vmem:[#allocation5 + $0x470] sm:$0xf]  ;;  %v15206_v49 = vld [vmem:[#allocation5 + $0x474] sm:$0xf0] }
 0xf7f   : > { %v7391_v15 = vpop.f32.mrf.mxu2 }
 0xf80   : > { %v7394_v17 = vpack.c.bf16 %v7391_v15, %v7389_v38  ;;  %v13559_v38 = vld [vmem:[#allocation5 + $0x378] sm:$0xf0]  ;;  %v15167_v15 = vld [vmem:[#allocation5 + $0x354] sm:$0xf] }
 0xf81   : > { %v7695_v55 = vpop.f32.mrf.mxu0  ;;  %7965 = vmatpush.bf16.msrb.mxu1 %v13485_v8  ;;  %v13562_v2 = vor.u32 %v15171_v25, %v13559_v38  ;;  %v15185_v38 = vld [vmem:[#allocation5 + $0x3d4] sm:$0xf0] }
 0xf82   : > { %7499 = vmatmul.bf16.vlgmr.msra.gmra.mxu3 %v7394_v17  ;;  %7513 = vmatmul.bf16.vlgmr.msra.gmra.mxu2 %v7394_v17 }
 0xf83   : > { %7950 = vmatpush.bf16.msra.mxu3 %v13489_v33  ;;  %7996 = vmatpush.bf16.msra.mxu2 %v18618_v53  ;;  %v13543_v33 = vld [vmem:[#allocation5 + $0x358] sm:$0xf0] }
 0xf84   : > { %v13546_v16 = vor.u32 %v15167_v15, %v13543_v33  ;;  %v13602_v15 = vld [vmem:[#allocation5 + $0x3c0] sm:$0xf]  ;;  %v15183_v33 = vld [vmem:[#allocation5 + $0x3c4] sm:$0xf0] }
 0xf85   : > { %7966 = vmatpush.bf16.msrb.mxu1 %v13477_v5 }
 0xf87   : > { %7951 = vmatpush.bf16.msra.mxu3 %v13481_v50  ;;  %7997 = vmatpush.bf16.msra.mxu2 %v18611_v36  ;;  %v13535_v50 = vld [vmem:[#allocation5 + $0x348] sm:$0xf0] }
 0xf89   : > { %v7697_v58 = vpop.f32.mrf.mxu0  ;;  %7967 = vmatpush.bf16.msrb.mxu1 %v13469_v32  ;;  %v15190_v32 = vld [vmem:[%s19598_s3 + $0x40] sm:$0xff] }
 0xf8a   : > { %v7700_v47 = vpack.c.bf16 %v7697_v58, %v7695_v55  ;;  %v15165_v55 = vld [vmem:[#allocation5 + $0x344] sm:$0xf] }
 0xf8b   : > { %7952 = vmatpush.bf16.msra.mxu3 %v13473_v31  ;;  %7998 = vmatpush.bf16.msra.mxu2 %v18597_v26  ;;  %v13538_v37 = vor.u32 %v15165_v55, %v13535_v50  ;;  %v13527_v31 = vld [vmem:[#allocation5 + $0x338] sm:$0xf0]  ;;  %v13604_v55 = vld [vmem:[#allocation5 + $0x3c8] sm:$0xf0]  ;;  %v13594_v50 = vld [vmem:[#allocation5 + $0x3b0] sm:$0xf] }
 0xf8c   : > { %7819 = vmatmul.bf16.vlgmr.msra.gmra.mxu0 %v7700_v47  ;;  %13429 = vmatmul.msk.bf16.vlgmr.msra.gmra.mxu1 %vm1831_vm0, %v15139_v44  ;;  %v13530_v63 = vor.u32 %v15163_v13, %v13527_v31  ;;  %v15180_v31 = vld [vmem:[#allocation5 + $0x3b4] sm:$0xf] }
 0xf8d   : > { %8302 = vmatpush.bf16.msra.mxu0 %v18618_v53 }
 0xf8f   : > { %7953 = vmatpush.bf16.msra.mxu3 %v13465_v41  ;;  %7999 = vmatpush.bf16.msra.mxu2 %v18583_v51  ;;  %v13519_v41 = vld [vmem:[#allocation5 + $0x328] sm:$0xf0] }
 0xf91   : > { %8303 = vmatpush.bf16.msra.mxu0 %v18611_v36 }
 0xf92   : > { %7666 = vmatmul.bf16.vlgmr.msrb.gmra.mxu3 %v7547_v48  ;;  %7805 = vmatmul.bf16.vlgmr.msrb.gmra.mxu2 %v7700_v47  ;;  %v15169_v48 = vld [vmem:[#allocation5 + $0x364] sm:$0xf] }
 0xf93   : > { %7954 = vmatpush.bf16.msra.mxu3 %v13457_v10  ;;  %8117 = vmatpush.bf16.msrb.mxu2 %v13562_v2  ;;  %v13554_v61 = vor.u32 %v15169_v48, %v13551_v27  ;;  %v15161_v47 = vld [vmem:[#allocation5 + $0x324] sm:$0xf]  ;;  %v15184_v2 = vld [vmem:[#allocation5 + $0x3d4] sm:$0xf]  ;;  %v13612_v27 = vld [vmem:[#allocation5 + $0x3d8] sm:$0xf0] }
 0xf94   : > { %v13522_v54 = vor.u32 %v15161_v47, %v13519_v41  ;;  %v13586_v47 = vld [vmem:[#allocation5 + $0x3a0] sm:$0xf]  ;;  %v15179_v41 = vld [vmem:[#allocation5 + $0x3a4] sm:$0xf0] }
 0xf95   : > { %8304 = vmatpush.bf16.msra.mxu0 %v18597_v26 }
 0xf97   : > { %7955 = vmatpush.bf16.msra.mxu3 %v13449_v21  ;;  %8118 = vmatpush.bf16.msrb.mxu2 %v13554_v61  ;;  %v13615_v61 = vor.u32 %v15184_v2, %v13612_v27  ;;  %v15200_v27 = vld [vmem:[#allocation5 + $0x444] sm:$0xf0] }
 0xf99   : > { %8305 = vmatpush.bf16.msra.mxu0 %v18583_v51 }
 0xf9b   : > { %7956 = vmatpush.bf16.msra.mxu3 %v13441_v4  ;;  %8119 = vmatpush.bf16.msrb.mxu2 %v13546_v16  ;;  %v13503_v4 = vld [vmem:[#allocation5 + $0x308] sm:$0xf0]  ;;  %v13603_v16 = vor.u32 %v15183_v33, %v13602_v15 }
 0xf9c   : > { %v13506_v9 = vor.u32 %v15157_v6, %v13503_v4  ;;  %v13697_v6 = vld [vmem:[#allocation5 + $0x478] sm:$0xf0]  ;;  %v13578_v4 = vld [vmem:[#allocation5 + $0x390] sm:$0xf]  ;;  %v13673_v33 = vld [vmem:[#allocation5 + $0x448] sm:$0xf0] }
 0xf9f   : > { %7957 = vmatpush.bf16.msra.mxu3 %v13433_v7  ;;  %8120 = vmatpush.bf16.msrb.mxu2 %v13538_v37  ;;  %v15181_v37 = vld [vmem:[#allocation5 + $0x3b4] sm:$0xf0] }
 0xfa2   : > { %13498 = vmatmul.msk.bf16.vlgmr.msra.gmra.mxu2 %vm1831_vm0, %v15156_v34 }
 0xfa3   : > { %8149 = vmatpush.bf16.msrb.mxu3 %v18618_v53  ;;  %v15146_v53 = vld [vmem:[#allocation5 + $0x2b4] sm:$0xf]  ;;  %8121 = vmatpush.bf16.msrb.mxu2 %v13530_v63  ;;  %v13596_v63 = vld [vmem:[#allocation5 + $0x3b8] sm:$0xf0] }
 0xfa4   : > { %v13461_v12 = vor.u32 %v15146_v53, %v13458_v30  ;;  %v13626_v53 = vld [vmem:[#allocation5 + $0x3f0] sm:$0xf]  ;;  %v15189_v30 = vld [vmem:[#allocation5 + $0x3f4] sm:$0xf0] }
 0xfa6   : > { %7968 = vmatpush.bf16.msrb.mxu1 %v13461_v12  ;;  %v15188_v12 = vld [vmem:[#allocation5 + $0x3f4] sm:$0xf] }
 0xfa7   : > { %8150 = vmatpush.bf16.msrb.mxu3 %v18611_v36  ;;  %v15144_v36 = vld [vmem:[#allocation5 + $0x2a4] sm:$0xf]  ;;  %8122 = vmatpush.bf16.msrb.mxu2 %v13522_v54  ;;  %v13588_v54 = vld [vmem:[#allocation5 + $0x3a8] sm:$0xf0] }
 0xfab   : > { %8151 = vmatpush.bf16.msrb.mxu3 %v18597_v26  ;;  %v13450_v26 = vld [vmem:[#allocation5 + $0x2a8] sm:$0xf0]  ;;  %8123 = vmatpush.bf16.msrb.mxu2 %v13514_v52  ;;  %v15205_v52 = vld [vmem:[#allocation5 + $0x474] sm:$0xf] }
 0xfac   : > { %v13453_v1 = vor.u32 %v15144_v36, %v13450_v26  ;;  %v13627_v36 = vor.u32 %v15189_v30, %v13626_v53  ;;  %v13628_v26 = vld [vmem:[#allocation5 + $0x3f8] sm:$0xf0]  ;;  %v13570_v30 = vld [vmem:[#allocation5 + $0x380] sm:$0xf] }
 0xfae   : > { %7969 = vmatpush.bf16.msrb.mxu1 %v13453_v1  ;;  %v13631_v1 = vor.u32 %v15188_v12, %v13628_v26  ;;  %v15175_v12 = vld [vmem:[#allocation5 + $0x384] sm:$0xf0] }
 0xfaf   : > { %8152 = vmatpush.bf16.msrb.mxu3 %v18583_v51  ;;  %v15142_v51 = vld [vmem:[#allocation5 + $0x294] sm:$0xf]  ;;  %8124 = vmatpush.bf16.msrb.mxu2 %v13506_v9  ;;  %v13700_v9 = vor.u32 %v15205_v52, %v13697_v6  ;;  %v13571_v26 = vor.u32 %v15175_v12, %v13570_v30 }
 0xfb0   : > { %v13445_v62 = vor.u32 %v15142_v51, %v13442_v3  ;;  %v13618_v51 = vld [vmem:[#allocation5 + $0x3e0] sm:$0xf]  ;;  %v15187_v3 = vld [vmem:[#allocation5 + $0x3e4] sm:$0xf0] }
 0xfb1   : > { %v13619_v28 = vor.u32 %v15187_v3, %v13618_v51  ;;  %v13679_v51 = vld [vmem:[#allocation5 + $0x450] sm:$0xf]  ;;  %v15202_v3 = vld [vmem:[#allocation5 + $0x454] sm:$0xf0] }
 0xfb2   : > { %7970 = vmatpush.bf16.msrb.mxu1 %v13445_v62  ;;  %v15186_v62 = vld [vmem:[#allocation5 + $0x3e4] sm:$0xf] }
 0xfb3   : > { %v13623_v25 = vor.u32 %v15186_v62, %v13620_v20  ;;  %v13680_v20 = vor.u32 %v15202_v3, %v13679_v51  ;;  %v15233_v51 = vld [vmem:[%s19602_s7 + $0x9b8] sm:$0xff]  ;;  %v15214_v3 = vld [vmem:[%s19602_s7 + $0x930] sm:$0xff] }
 0xfb6   : > { %7971 = vmatpush.bf16.msrb.mxu1 %v13437_v19  ;;  %v13610_v19 = vld [vmem:[#allocation5 + $0x3d0] sm:$0xf] }
 0xfb7   : > { %v13611_v48 = vor.u32 %v15185_v38, %v13610_v19  ;;  %v13681_v19 = vld [vmem:[#allocation5 + $0x458] sm:$0xf0] }
 0xfba   : > { %8256 = vmatpush.bf16.msra.mxu1 %v13627_v36  ;;  %v15174_v36 = vld [vmem:[#allocation5 + $0x384] sm:$0xf] }
 0xfbe   : > { %8257 = vmatpush.bf16.msra.mxu1 %v13619_v28 }
 0xfc2   : > { %8258 = vmatpush.bf16.msra.mxu1 %v13611_v48  ;;  %v13671_v48 = vld [vmem:[#allocation5 + $0x440] sm:$0xf] }
 0xfc3   : > { %v13672_v15 = vor.u32 %v15200_v27, %v13671_v48  ;;  %v15210_v48 = vld [vmem:[%s19602_s7 + $0x910] sm:$0xff] }
 0xfc4   : > { %v15228_v27 = vld [vmem:[%s19602_s7 + $0x990] sm:$0xff] }
 0xfc6   : > { %8259 = vmatpush.bf16.msra.mxu1 %v13603_v16  ;;  %v15198_v16 = vld [vmem:[#allocation5 + $0x434] sm:$0xf0] }
 0xff9   : > { %v7653_v17 = vpop.f32.mrf.mxu1 }
0x1001   : > { %v18696_v44 = vpop.f32.mrf.mxu1 }
0x1005   : > { %v7500_v29 = vpop.f32.mrf.mxu3  ;;  %v7514_v58 = vpop.f32.mrf.mxu2 }
0x1006   : > { %v7519_v40 = vadd.f32 %v7500_v29, %v18664_v59  ;;  %v7520_v57 = vadd.f32 %v7514_v58, %v18668_v11  ;;  %v13595_v29 = vor.u32 %v15181_v37, %v13594_v50  ;;  %v13599_v58 = vor.u32 %v15180_v31, %v13596_v63  ;;  %v15197_v37 = vld [vmem:[#allocation5 + $0x434] sm:$0xf] }
0x1008   : > { %v7672_v10 = vadd.f32 %v7653_v17, %v7519_v40  ;;  %v15182_v17 = vld [vmem:[#allocation5 + $0x3c4] sm:$0xf]  ;;  %8260 = vmatpush.bf16.msra.mxu1 %v13595_v29  ;;  %v13655_v29 = vld [vmem:[#allocation5 + $0x420] sm:$0xf] }
0x1009   : > { %v7848_v14 = vpop.f32.mrf.mxu1  ;;  %v7820_v23 = vpop.f32.mrf.mxu0  ;;  %v13607_v13 = vor.u32 %v15182_v17, %v13604_v55  ;;  %v15178_v40 = vld [vmem:[#allocation5 + $0x3a4] sm:$0xf]  ;;  %v13663_v17 = vld [vmem:[#allocation5 + $0x430] sm:$0xf] }
0x100d   : > { %v18700_v21 = vpop.f32.mrf.mxu3  ;;  %v18702_v18 = vpop.f32.mrf.mxu2 }
0x1011   : > { %v7850_v22 = vpop.f32.mrf.mxu1  ;;  %v18724_v6 = vpop.f32.mrf.mxu0 }
0x1012   : > { %v7853_v59 = vpack.c.bf16 %v7850_v22, %v7848_v14  ;;  %v13696_v14 = vor.u32 %v15206_v49, %v13695_v39  ;;  %v15177_v22 = vld [vmem:[#allocation5 + $0x394] sm:$0xf0] }
0x1014   : > { %7958 = vmatmul.bf16.vlgmr.msra.gmra.mxu3 %v7853_v59  ;;  %7972 = vmatmul.bf16.vlgmr.msrb.gmra.mxu1 %v7853_v59  ;;  %v15176_v59 = vld [vmem:[#allocation5 + $0x394] sm:$0xf] }
0x1015   : > { %v7667_v11 = vpop.f32.mrf.mxu3  ;;  %v7806_v7 = vpop.f32.mrf.mxu2  ;;  %8270 = vmatpush.bf16.msra.mxu3 %v13631_v1  ;;  %8409 = vmatpush.bf16.msra.mxu2 %v13696_v14  ;;  %v13572_v1 = vld [vmem:[#allocation5 + $0x388] sm:$0xf0]  ;;  %v13649_v14 = vld [vmem:[#allocation5 + $0x418] sm:$0xf0] }
0x1016   : > { %v7673_v34 = vadd.f32 %v7667_v11, %v7520_v57  ;;  %v18704_v46 = vadd.f32 %v7806_v7, %v7672_v10  ;;  %v13587_v57 = vor.u32 %v15179_v41, %v13586_v47  ;;  %v13591_v10 = vor.u32 %v15178_v40, %v13588_v54  ;;  %v13580_v11 = vld [vmem:[#allocation5 + $0x398] sm:$0xf0]  ;;  %v15195_v47 = vld [vmem:[#allocation5 + $0x424] sm:$0xf]  ;;  %v13657_v40 = vld [vmem:[#allocation5 + $0x428] sm:$0xf0] }
0x1017   : > { %v13579_v7 = vor.u32 %v15177_v22, %v13578_v4  ;;  %v13575_v28 = vor.u32 %v15174_v36, %v13572_v1  ;;  %v15194_v54 = vld [vmem:[#allocation5 + $0x414] sm:$0xf0]  ;;  %v13660_v49 = vor.u32 %v15195_v47, %v13657_v40  ;;  %v13639_v4 = vld [vmem:[#allocation5 + $0x400] sm:$0xf]  ;;  %v15191_v22 = vld [vmem:[#allocation5 + $0x404] sm:$0xf] }
0x1018   : > { %v18706_v0 = vadd.f32 %v7820_v23, %v7673_v34  ;;  %8261 = vmatpush.bf16.msra.mxu1 %v13587_v57  ;;  %v13583_v34 = vor.u32 %v15176_v59, %v13580_v11  ;;  %v13687_v23 = vld [vmem:[#allocation5 + $0x460] sm:$0xf]  ;;  %v13647_v57 = vld [vmem:[#allocation5 + $0x410] sm:$0xf]  ;;  %v13641_v11 = vld [vmem:[#allocation5 + $0x408] sm:$0xf0] }
0x1019   : > { %8271 = vmatpush.bf16.msra.mxu3 %v13623_v25  ;;  %v15201_v25 = vld [vmem:[#allocation5 + $0x454] sm:$0xf]  ;;  %v15215_v1 = vld [vmem:[%s19602_s7 + $0x938] sm:$0xff] }
0x101a   : > { %v13684_v2 = vor.u32 %v15201_v25, %v13681_v19  ;;  %v15212_v25 = vld [vmem:[%s19602_s7 + $0x920] sm:$0xff] }
0x101b   : > { %v15230_v19 = vld [vmem:[%s19602_s7 + $0x9a0] sm:$0xff] }
0x101c   : > { %8262 = vmatpush.bf16.msra.mxu1 %v13579_v7 }
0x101d   : > { %v18708_v8 = vpop.f32.mrf.mxu2  ;;  %8272 = vmatpush.bf16.msra.mxu3 %v13615_v61  ;;  %v15199_v61 = vld [vmem:[#allocation5 + $0x444] sm:$0xf] }
0x101e   : > { %v13676_v50 = vor.u32 %v15199_v61, %v13673_v33  ;;  %v15209_v33 = vld [vmem:[%s19602_s7 + $0x908] sm:$0xff] }
0x1020   : > { %8263 = vmatpush.bf16.msra.mxu1 %v13571_v26 }
0x1021   : > { %8273 = vmatpush.bf16.msra.mxu3 %v13607_v13  ;;  %v13665_v13 = vld [vmem:[#allocation5 + $0x438] sm:$0xf0] }
0x1022   : > { %v13668_v63 = vor.u32 %v15197_v37, %v13665_v13  ;;  %v8441_v37 = vld [vmem:[%s19605_s10] sm:$0x3]  ;;  %v7368_v13 = vadd.f32 %v18692_v24, %v18694_v45 }
0x1024   : > { %13567 = vmatmul.msk.bf16.vlgmr.msrb.gmra.mxu3 %vm1831_vm0, %v15173_v42  ;;  %v15204_v42 = vld [vmem:[#allocation5 + $0x464] sm:$0xf0] }
0x1025   : > { %v8001_v5 = vpop.f32.mrf.mxu2  ;;  %8274 = vmatpush.bf16.msra.mxu3 %v13599_v58  ;;  %v15196_v58 = vld [vmem:[#allocation5 + $0x424] sm:$0xf0] }
0x1026   : > { %v13656_v41 = vor.u32 %v15196_v58, %v13655_v29  ;;  %v8444_v29 = vperm.slane %v8441_v37, 1 }
0x1029   : > { %8275 = vmatpush.bf16.msra.mxu3 %v13591_v10  ;;  %v15193_v10 = vld [vmem:[#allocation5 + $0x414] sm:$0xf] }
0x102a   : > { %v13652_v52 = vor.u32 %v15193_v10, %v13649_v14  ;;  %v8443_v10 = vperm.slane %v8441_v37, 0  ;;  %v15238_v37 = vld [vmem:[%s19602_s7 + $0x9d8] sm:$0xff] }
0x102d   : > { %v8003_v60 = vpop.f32.mrf.mxu2  ;;  %8276 = vmatpush.bf16.msra.mxu3 %v13583_v34  ;;  %v13644_v34 = vor.u32 %v15191_v22, %v13641_v11 }
0x102e   : > { %v8006_v56 = vpack.c.bf16 %v8003_v60, %v8001_v5  ;;  %v15203_v5 = vld [vmem:[#allocation5 + $0x464] sm:$0xf]  ;;  %v13688_v60 = vor.u32 %v15204_v42, %v13687_v23 }
0x1030   : > { %8111 = vmatmul.bf16.vlgmr.msrb.gmra.mxu0 %v8006_v56  ;;  %8125 = vmatmul.bf16.vlgmr.msrb.gmra.mxu2 %v8006_v56  ;;  %v13689_v56 = vld [vmem:[#allocation5 + $0x468] sm:$0xf0] }
0x1031   : > { %8423 = vmatpush.bf16.msrb.mxu0 %v13700_v9  ;;  %v13692_v53 = vor.u32 %v15203_v5, %v13689_v56  ;;  %8410 = vmatpush.bf16.msra.mxu2 %v13688_v60  ;;  %v15192_v9 = vld [vmem:[#allocation5 + $0x404] sm:$0xf0] }
0x1032   : > { %8277 = vmatpush.bf16.msra.mxu3 %v13575_v28  ;;  %v13640_v59 = vor.u32 %v15192_v9, %v13639_v4  ;;  %v15213_v28 = vld [vmem:[%s19602_s7 + $0x928] sm:$0xff] }
0x1035   : > { %8424 = vmatpush.bf16.msrb.mxu0 %v13692_v53  ;;  %8411 = vmatpush.bf16.msra.mxu2 %v13680_v20  ;;  %v15231_v20 = vld [vmem:[%s19602_s7 + $0x9a8] sm:$0xff] }
0x1039   : > { %8425 = vmatpush.bf16.msrb.mxu0 %v13684_v2  ;;  %8412 = vmatpush.bf16.msra.mxu2 %v13672_v15  ;;  %v15229_v2 = vld [vmem:[%s19602_s7 + $0x998] sm:$0xff] }
0x103d   : > { %8426 = vmatpush.bf16.msrb.mxu0 %v13676_v50 }
0x1040   : > { %13636 = vmatmul.msk.bf16.vlgmr.msra.gmra.mxu0 %vm1831_vm0, %v15190_v32  ;;  %v18718_v32 = vpop.f32.mrf.mxu3 }
0x1041   : > { %8427 = vmatpush.bf16.msrb.mxu0 %v13668_v63  ;;  %v7522_v63 = vadd.f32 %v18702_v18, %v7368_v13 }
0x1043   : > { %v7675_v40 = vadd.f32 %v18718_v32, %v7522_v63  ;;  %v15260_v63 = vld [vmem:[%s19602_s7 + $0xa78] sm:$0xff] }
0x1045   : > { %8428 = vmatpush.bf16.msrb.mxu0 %v13660_v49  ;;  %v7828_v24 = vadd.f32 %v18724_v6, %v7675_v40 }
0x1049   : > { %8429 = vmatpush.bf16.msrb.mxu0 %v13652_v52 }
0x104d   : > { %8430 = vmatpush.bf16.msrb.mxu0 %v13644_v34 }
0x1051   : > { %8754 = vmatpush.bf16.msra.mxu0 %v15233_v51  ;;  %v15222_v51 = vld [vmem:[%s19602_s7 + $0x968] sm:$0xff] }
0x1091   : > { %v7973_v62 = vpop.f32.mrf.mxu1 }
0x1092   : > { %v7979_v38 = vadd.f32 %v7973_v62, %v18706_v0  ;;  %v13664_v0 = vor.u32 %v15198_v16, %v13663_v17  ;;  %v15232_v62 = vld [vmem:[%s19602_s7 + $0x9b0] sm:$0xff]  ;;  %v15227_v17 = vld [vmem:[%s19602_s7 + $0x988] sm:$0xff]  ;;  %v15208_v16 = vld [vmem:[%s19602_s7 + $0x900] sm:$0xff] }
0x1093   : > { %8755 = vmatpush.bf16.msra.mxu0 %v15232_v62  ;;  %v15248_v62 = vld [vmem:[%s19602_s7 + $0xa20] sm:$0xff] }
0x1094   : > { %8413 = vmatpush.bf16.msra.mxu2 %v13664_v0  ;;  %v7354_v0 = vadd.f32 %v18666_v35, %v18670_v43 }
0x1097   : > { %v7959_v55 = vpop.f32.mrf.mxu3  ;;  %8756 = vmatpush.bf16.msra.mxu0 %v15231_v20  ;;  %v15247_v20 = vld [vmem:[%s19602_s7 + $0xa18] sm:$0xff] }
0x1098   : > { %v7978_v31 = vadd.f32 %v7959_v55, %v18704_v46  ;;  %8414 = vmatpush.bf16.msra.mxu2 %v13656_v41  ;;  %v13648_v46 = vor.u32 %v15194_v54, %v13647_v57  ;;  %v15226_v55 = vld [vmem:[%s19602_s7 + $0x980] sm:$0xff]  ;;  %v7521_v41 = vadd.f32 %v18700_v21, %v7354_v0 }
0x1099   : > { %v7975_v50 = vpop.f32.mrf.mxu1 }
0x109a   : > { %v7674_v49 = vadd.f32 %v18696_v44, %v7521_v41  ;;  %v7981_v43 = vadd.f32 %v7975_v50, %v7828_v24  ;;  %v15257_v24 = vld [vmem:[%s19602_s7 + $0xa60] sm:$0xff] }
0x109b   : > { %8757 = vmatpush.bf16.msra.mxu0 %v15230_v19  ;;  %v15245_v19 = vld [vmem:[%s19602_s7 + $0xa08] sm:$0xff] }
0x109c   : > { %8415 = vmatpush.bf16.msra.mxu2 %v13648_v46  ;;  %v7827_v35 = vadd.f32 %v18708_v8, %v7674_v49  ;;  %v15258_v49 = vld [vmem:[%s19602_s7 + $0xa68] sm:$0xff] }
0x109f   : > { %v18722_v39 = vpop.f32.mrf.mxu3  ;;  %8758 = vmatpush.bf16.msra.mxu0 %v15229_v2  ;;  %v15221_v2 = vld [vmem:[%s19602_s7 + $0x960] sm:$0xff] }
0x10a0   : > { %8416 = vmatpush.bf16.msra.mxu2 %v13640_v59  ;;  %v7980_v52 = vadd.f32 %v18722_v39, %v7827_v35  ;;  %v15255_v35 = vld [vmem:[%s19602_s7 + $0xa50] sm:$0xff] }
0x10a3   : > { %8759 = vmatpush.bf16.msra.mxu0 %v15228_v27  ;;  %v15219_v27 = vld [vmem:[%s19602_s7 + $0x950] sm:$0xff] }
0x10a4   : > { %8651 = vmatpush.bf16.msrb.mxu2 %v15215_v1  ;;  %v15250_v1 = vld [vmem:[%s19602_s7 + $0xa30] sm:$0xff] }
0x10a7   : > { %v8154_v7 = vpop.f32.mrf.mxu3  ;;  %8760 = vmatpush.bf16.msra.mxu0 %v15227_v17  ;;  %v15241_v17 = vld [vmem:[%s19602_s7 + $0x9f0] sm:$0xff] }
0x10a8   : > { %8652 = vmatpush.bf16.msrb.mxu2 %v15214_v3  ;;  %v15249_v3 = vld [vmem:[%s19602_s7 + $0xa28] sm:$0xff] }
0x10ab   : > { %8761 = vmatpush.bf16.msra.mxu0 %v15226_v55  ;;  %v15239_v55 = vld [vmem:[%s19602_s7 + $0x9e0] sm:$0xff] }
0x10ac   : > { %8653 = vmatpush.bf16.msrb.mxu2 %v15213_v28  ;;  %v18858_v28 = vld [vmem:[%s19599_s4 + $0x18] sm:$0xff] }
0x10ad   : > { %v8112_v23 = vpop.f32.mrf.mxu0 }
0x10ae   : > { %v8131_v42 = vadd.f32 %v8112_v23, %v7978_v31 }
0x10af   : > { %v8156_v5 = vpop.f32.mrf.mxu3 }
0x10b0   : > { %v8159_v60 = vpack.c.bf16 %v8156_v5, %v8154_v7  ;;  %8654 = vmatpush.bf16.msrb.mxu2 %v15212_v25  ;;  %v15246_v25 = vld [vmem:[%s19602_s7 + $0xa10] sm:$0xff] }
0x10b2   : > { %8264 = vmatmul.bf16.vlgmr.msra.gmra.mxu1 %v8159_v60  ;;  %8278 = vmatmul.bf16.vlgmr.msra.gmra.mxu3 %v8159_v60 }
0x10b3   : > { %v8126_v56 = vpop.f32.mrf.mxu2 }
0x10b4   : > { %v8132_v53 = vadd.f32 %v8126_v56, %v7979_v38  ;;  %v15211_v38 = vld [vmem:[%s19602_s7 + $0x918] sm:$0xff]  ;;  %v18810_v56 = vld [vmem:[%s19599_s4] sm:$0xff] }
0x10b5   : > { %v18726_v30 = vpop.f32.mrf.mxu0  ;;  %8655 = vmatpush.bf16.msrb.mxu2 %v15211_v38  ;;  %v15244_v38 = vld [vmem:[%s19602_s7 + $0xa00] sm:$0xff] }
0x10b6   : > { %v8133_v22 = vadd.f32 %v18726_v30, %v7980_v52  ;;  %v18830_v30 = vld [vmem:[%s19599_s4 + $0x10] sm:$0xff]  ;;  %v15253_v52 = vld [vmem:[%s19602_s7 + $0xa40] sm:$0xff] }
0x10b9   : > { %8656 = vmatpush.bf16.msrb.mxu2 %v15210_v48  ;;  %v15220_v48 = vld [vmem:[%s19602_s7 + $0x958] sm:$0xff] }
0x10bb   : > { %v8128_v31 = vpop.f32.mrf.mxu2 }
0x10bc   : > { %v8134_v21 = vadd.f32 %v8128_v31, %v7981_v43  ;;  %v15237_v31 = vld [vmem:[%s19602_s7 + $0x9d0] sm:$0xff] }
0x10bd   : > { %v8307_v12 = vpop.f32.mrf.mxu0  ;;  %8657 = vmatpush.bf16.msrb.mxu2 %v15209_v33  ;;  %v15242_v33 = vld [vmem:[%s19602_s7 + $0x9f8] sm:$0xff] }
0x10c1   : > { %8658 = vmatpush.bf16.msrb.mxu2 %v15208_v16  ;;  %v15240_v16 = vld [vmem:[%s19602_s7 + $0x9e8] sm:$0xff] }
0x10c5   : > { %v8309_v36 = vpop.f32.mrf.mxu0 }
0x10c6   : > { %v8312_v26 = vpack.c.bf16 %v8309_v36, %v8307_v12  ;;  %v15251_v12 = vld [vmem:[%s19602_s7 + $0xa38] sm:$0xff] }
0x10c7   : > { %v15224_v36 = vld [vmem:[%s19602_s7 + $0x978] sm:$0xff] }
0x10c8   : > { %8417 = vmatmul.bf16.vlgmr.msra.gmra.mxu2 %v8312_v26  ;;  %8431 = vmatmul.bf16.vlgmr.msrb.gmra.mxu0 %v8312_v26  ;;  %v15223_v26 = vld [vmem:[%s19602_s7 + $0x970] sm:$0xff] }
0x112f   : > { %v8265_v58 = vpop.f32.mrf.mxu1 }
0x1130   : > { %v8284_v45 = vadd.f32 %v8265_v58, %v8131_v42  ;;  %v15236_v58 = vld [vmem:[%s19602_s7 + $0x9c8] sm:$0xff] }
0x1135   : > { %v8279_v61 = vpop.f32.mrf.mxu3 }
0x1136   : > { %v8285_v15 = vadd.f32 %v8279_v61, %v8132_v53  ;;  %v18815_v53 = vld [vmem:[%s19599_s4 + $0x8] sm:$0xff] }
0x1137   : > { %v8267_v32 = vpop.f32.mrf.mxu1  ;;  %v15218_v61 = vld [vmem:[%s19602_s7 + $0x948] sm:$0xff] }
0x1138   : > { %v8286_v59 = vadd.f32 %v8267_v32, %v8133_v22  ;;  %v18950_v32 = vld [vmem:[%s19599_s4 + $0x28] sm:$0xff] }
0x113d   : > { %v8281_v46 = vpop.f32.mrf.mxu3 }
0x113e   : > { %v8287_v44 = vadd.f32 %v8281_v46, %v8134_v21  ;;  %v15254_v46 = vld [vmem:[%s19602_s7 + $0xa48] sm:$0xff] }
0x1145   : > { %v8432_v47 = vpop.f32.mrf.mxu0 }
0x1146   : > { %v8438_v57 = vadd.f32 %v8432_v47, %v8285_v15  ;;  %v15217_v15 = vld [vmem:[%s19602_s7 + $0x940] sm:$0xff]  ;;  %v15259_v47 = vld [vmem:[%s19602_s7 + $0xa70] sm:$0xff] }
0x1148   : > { %v18786_v54 = vadd.f32 %v8444_v29, %v8438_v57  ;;  %v15235_v57 = vld [vmem:[%s19602_s7 + $0x9c0] sm:$0xff] }
0x114b   : > { %v8418_v14 = vpop.f32.mrf.mxu2 }
0x114c   : > { %v8437_v18 = vadd.f32 %v8418_v14, %v8284_v45  ;;  %v15256_v14 = vld [vmem:[%s19602_s7 + $0xa58] sm:$0xff] }
0x114d   : > { %v8434_v9 = vpop.f32.mrf.mxu0 }
0x114e   : > { %v18792_v4 = vadd.f32 %v8443_v10, %v8437_v18  ;;  %v8440_v11 = vadd.f32 %v8434_v9, %v8287_v44  ;;  %v18957_v44 = vld [vmem:[%s19599_s4 + $0x30] sm:$0xff] }
0x1150   : > { %v8451_v6 = vpack.c.bf16 %v18786_v54, %v18792_v4  ;;  %v18797_v34 = vadd.f32 %v8444_v29, %v8440_v11  ;;  %v8455_v39 = vmax.f32 %v18792_v4, 0.0 }
0x1153   : > { %v8420_v7 = vpop.f32.mrf.mxu2 }
0x1154   : > { %v8439_v8 = vadd.f32 %v8420_v7, %v8286_v59  ;;  %v15269_v59 = vld [vmem:[%s19602_s7 + $0xab8] sm:$0xff]  ;;  %v15268_v7 = vld [vmem:[%s19602_s7 + $0xab0] sm:$0xff] }
0x1156   : > { %v18799_v23 = vadd.f32 %v8443_v10, %v8439_v8  ;;  %v18929_v10 = vld [vmem:[%s19599_s4 + $0x20] sm:$0xff]  ;;  %v15267_v8 = vld [vmem:[%s19602_s7 + $0xaa8] sm:$0xff] }
0x1158   : > { %v8452_v42 = vpack.c.bf16 %v18797_v34, %v18799_v23  ;;  %v8456_v5 = vmax.f32 %v18799_v23, 0.0  ;;  %v15295_v34 = vld [vmem:[%s19602_s7 + $0xb78] sm:$0xff] }
0x115a   : > { %v18805_v60 = vpack.c.bf16 %v8456_v5, %v8455_v39  ;;  %v15266_v5 = vld [vmem:[%s19602_s7 + $0xaa0] sm:$0xff] }
0x115c   : > { %8476 = vmatpush.bf16.msrb.mxu1 %v18805_v60  ;;  %8517 = vmatpush.bf16.msrb.mxu3 %v18805_v60 }
0x115d   : > { %8892 = vmatpush.bf16.msra.mxu2 %v18805_v60  ;;  %8997 = vmatpush.bf16.msrb.mxu0 %v18805_v60 }
0x115f   : > { %13705 = vmatmul.msk.bf16.vlgmr.msrb.gmra.mxu1 %vm8465_vm1, %v18810_v56  ;;  %13710 = vmatmul.msk.bf16.vlgmr.msrb.gmra.mxu3 %vm8465_vm1, %v18815_v53 }
0x1160   : > { %8682 = vmatpush.bf16.msra.mxu3 %v18805_v60  ;;  %8589 = vmatpush.bf16.msra.mxu1 %v15224_v36 }
0x1164   : > { %8787 = vmatpush.bf16.msrb.mxu3 %v18805_v60  ;;  %8590 = vmatpush.bf16.msra.mxu1 %v15223_v26 }
0x1168   : > { %8591 = vmatpush.bf16.msra.mxu1 %v15222_v51  ;;  %v15264_v51 = vld [vmem:[%s19602_s7 + $0xa90] sm:$0xff] }
0x116c   : > { %8592 = vmatpush.bf16.msra.mxu1 %v15221_v2  ;;  %v15278_v2 = vld [vmem:[%s19602_s7 + $0xaf8] sm:$0xff] }
0x116f   : > { %13779 = vmatmul.msk.bf16.vlgmr.msra.gmra.mxu3 %vm8465_vm1, %v18830_v30 }
0x1170   : > { %8964 = vmatpush.bf16.msra.mxu3 %v15251_v12  ;;  %8593 = vmatpush.bf16.msra.mxu1 %v15220_v48 }
0x1174   : > { %8965 = vmatpush.bf16.msra.mxu3 %v15250_v1  ;;  %8594 = vmatpush.bf16.msra.mxu1 %v15219_v27  ;;  %v18993_v27 = vld [vmem:[%s19599_s4 + $0x38] sm:$0xff] }
0x1178   : > { %8966 = vmatpush.bf16.msra.mxu3 %v15249_v3  ;;  %8595 = vmatpush.bf16.msra.mxu1 %v15218_v61 }
0x117c   : > { %8967 = vmatpush.bf16.msra.mxu3 %v15248_v62  ;;  %8596 = vmatpush.bf16.msra.mxu1 %v15217_v15  ;;  %v15263_v62 = vld [vmem:[%s19602_s7 + $0xa88] sm:$0xff] }
0x117f   : > { %13816 = vmatmul.msk.bf16.vlgmr.msrb.gmra.mxu3 %vm8465_vm1, %v18858_v28 }
0x1180   : > { %8968 = vmatpush.bf16.msra.mxu3 %v15247_v20  ;;  %8859 = vmatpush.bf16.msrb.mxu1 %v15242_v33 }
0x1184   : > { %8969 = vmatpush.bf16.msra.mxu3 %v15246_v25  ;;  %8860 = vmatpush.bf16.msrb.mxu1 %v15241_v17  ;;  %v19000_v17 = vld [vmem:[%s19599_s4 + $0x40] sm:$0xff] }
0x1188   : > { %8970 = vmatpush.bf16.msra.mxu3 %v15245_v19  ;;  %8861 = vmatpush.bf16.msrb.mxu1 %v15240_v16 }
0x118c   : > { %8971 = vmatpush.bf16.msra.mxu3 %v15244_v38  ;;  %8862 = vmatpush.bf16.msrb.mxu1 %v15239_v55  ;;  %v15262_v38 = vld [vmem:[%s19602_s7 + $0xa80] sm:$0xff] }
0x1190   : > { %9207 = vmatpush.bf16.msrb.mxu3 %v18805_v60  ;;  %8863 = vmatpush.bf16.msrb.mxu1 %v15238_v37  ;;  %v15276_v37 = vld [vmem:[%s19602_s7 + $0xae8] sm:$0xff] }
0x1194   : > { %8864 = vmatpush.bf16.msrb.mxu1 %v15237_v31  ;;  %v15287_v31 = vld [vmem:[%s19602_s7 + $0xb38] sm:$0xff] }
0x1198   : > { %8865 = vmatpush.bf16.msrb.mxu1 %v15236_v58 }
0x119c   : > { %8866 = vmatpush.bf16.msrb.mxu1 %v15235_v57  ;;  %v15284_v57 = vld [vmem:[%s19602_s7 + $0xb20] sm:$0xff] }
0x11dc   : > { %v8478_v50 = vpop.f32.mrf.mxu1 }
0x11e2   : > { %v8519_v13 = vpop.f32.mrf.mxu3 }
0x11e4   : > { %v8480_v0 = vpop.f32.mrf.mxu1 }
0x11e5   : > { %v8483_v29 = vpack.c.bf16 %v8480_v0, %v8478_v50  ;;  %v15277_v50 = vld [vmem:[%s19602_s7 + $0xaf0] sm:$0xff]  ;;  %v15274_v0 = vld [vmem:[%s19602_s7 + $0xad8] sm:$0xff] }
0x11e7   : > { %8659 = vmatmul.bf16.vlgmr.msrb.gmra.mxu2 %v8483_v29  ;;  %v15286_v29 = vld [vmem:[%s19602_s7 + $0xb30] sm:$0xff] }
0x11e8   : > { %9069 = vmatpush.bf16.msrb.mxu2 %v15260_v63  ;;  %v15273_v63 = vld [vmem:[%s19602_s7 + $0xad0] sm:$0xff] }
0x11ea   : > { %v8521_v41 = vpop.f32.mrf.mxu3 }
0x11eb   : > { %v8524_v40 = vpack.c.bf16 %v8521_v41, %v8519_v13  ;;  %v15275_v13 = vld [vmem:[%s19602_s7 + $0xae0] sm:$0xff]  ;;  %v15285_v41 = vld [vmem:[%s19602_s7 + $0xb28] sm:$0xff] }
0x11ec   : > { %9070 = vmatpush.bf16.msrb.mxu2 %v15259_v47  ;;  %v15272_v47 = vld [vmem:[%s19602_s7 + $0xac8] sm:$0xff] }
0x11ed   : > { %8597 = vmatmul.bf16.vlgmr.msra.gmra.mxu1 %v8524_v40  ;;  %v15271_v40 = vld [vmem:[%s19602_s7 + $0xac0] sm:$0xff] }
0x11ee   : > { %9174 = vmatpush.bf16.msra.mxu1 %v15269_v59 }
0x11f0   : > { %9071 = vmatpush.bf16.msrb.mxu2 %v15258_v49 }
0x11f2   : > { %v8684_v45 = vpop.f32.mrf.mxu3  ;;  %9175 = vmatpush.bf16.msra.mxu1 %v15268_v7 }
0x11f4   : > { %9072 = vmatpush.bf16.msrb.mxu2 %v15257_v24  ;;  %v15283_v24 = vld [vmem:[%s19602_s7 + $0xb18] sm:$0xff] }
0x11f6   : > { %9176 = vmatpush.bf16.msra.mxu1 %v15267_v8 }
0x11f7   : > { %13853 = vmatmul.msk.bf16.vlgmr.msra.gmra.mxu2 %vm8465_vm1, %v18929_v10 }
0x11f8   : > { %9073 = vmatpush.bf16.msrb.mxu2 %v15256_v14 }
0x11fa   : > { %v8686_v43 = vpop.f32.mrf.mxu3  ;;  %9177 = vmatpush.bf16.msra.mxu1 %v15266_v5 }
0x11fb   : > { %v8689_v18 = vpack.c.bf16 %v8686_v43, %v8684_v45 }
0x11fc   : > { %9074 = vmatpush.bf16.msrb.mxu2 %v15255_v35  ;;  %v15282_v35 = vld [vmem:[%s19602_s7 + $0xb10] sm:$0xff] }
0x11fd   : > { %8762 = vmatmul.bf16.vlgmr.msra.gmra.mxu0 %v8689_v18 }
0x11fe   : > { %9102 = vmatpush.bf16.msra.mxu0 %v18805_v60 }
0x1200   : > { %9075 = vmatpush.bf16.msrb.mxu2 %v15254_v46  ;;  %v15281_v46 = vld [vmem:[%s19602_s7 + $0xb08] sm:$0xff] }
0x1202   : > { %v8789_v21 = vpop.f32.mrf.mxu3 }
0x1204   : > { %9076 = vmatpush.bf16.msrb.mxu2 %v15253_v52 }
0x1208   : > { %9312 = vmatpush.bf16.msra.mxu2 %v18805_v60  ;;  %v15265_v60 = vld [vmem:[%s19602_s7 + $0xa98] sm:$0xff] }
0x1209   : > { %9178 = vmatpush.bf16.msra.mxu1 %v15265_v60 }
0x120a   : > { %v8791_v9 = vpop.f32.mrf.mxu3 }
0x120b   : > { %v8794_v22 = vpack.c.bf16 %v8791_v9, %v8789_v21 }
0x120d   : > { %8867 = vmatmul.bf16.vlgmr.msrb.gmra.mxu1 %v8794_v22  ;;  %13890 = vmatmul.msk.bf16.vlgmr.msrb.gmra.mxu0 %vm8465_vm1, %v18950_v32 }
0x120e   : > { %9179 = vmatpush.bf16.msra.mxu1 %v15264_v51  ;;  %9279 = vmatpush.bf16.msrb.mxu0 %v15278_v2  ;;  %v15305_v2 = vld [vmem:[%s19602_s7 + $0xbc8] sm:$0xff] }
0x1212   : > { %9180 = vmatpush.bf16.msra.mxu1 %v15263_v62  ;;  %9280 = vmatpush.bf16.msrb.mxu0 %v15277_v50  ;;  %v15310_v62 = vld [vmem:[%s19602_s7 + $0xbf0] sm:$0xff]  ;;  %v15510_v50 = vld [vmem:[%s19603_s8 + $0x4] ss:$0 sm:$0xff] }
0x1216   : > { %9181 = vmatpush.bf16.msra.mxu1 %v15262_v38  ;;  %9281 = vmatpush.bf16.msrb.mxu0 %v15276_v37  ;;  %v15306_v38 = vld [vmem:[%s19602_s7 + $0xbd0] sm:$0xff] }
0x121a   : > { %9282 = vmatpush.bf16.msrb.mxu0 %v15275_v13 }
0x121d   : > { %13927 = vmatmul.msk.bf16.vlgmr.msra.gmra.mxu0 %vm8465_vm1, %v18957_v44 }
0x121e   : > { %9283 = vmatpush.bf16.msrb.mxu0 %v15274_v0 }
0x1222   : > { %9284 = vmatpush.bf16.msrb.mxu0 %v15273_v63 }
0x1226   : > { %9285 = vmatpush.bf16.msrb.mxu0 %v15272_v47 }
0x122a   : > { %9286 = vmatpush.bf16.msrb.mxu0 %v15271_v40 }
0x126a   : > { %v8660_v11 = vpop.f32.mrf.mxu2  ;;  %v8598_v12 = vpop.f32.mrf.mxu1 }
0x126b   : > { %v8661_v36 = vadd.f32 %v8660_v11, %v8598_v12  ;;  %v15280_v11 = vld [vmem:[%s19602_s7 + $0xb00] sm:$0xff] }
0x1272   : > { %v18970_v39 = vpop.f32.mrf.mxu2  ;;  %v8600_v58 = vpop.f32.mrf.mxu1 }
0x1273   : > { %v8663_v18 = vadd.f32 %v18970_v39, %v8600_v58 }
0x127a   : > { %v8763_v26 = vpop.f32.mrf.mxu0  ;;  %v8894_v1 = vpop.f32.mrf.mxu2 }
0x127b   : > { %v8768_v3 = vadd.f32 %v8763_v26, %v8661_v36 }
0x1282   : > { %v8765_v20 = vpop.f32.mrf.mxu0  ;;  %v8896_v25 = vpop.f32.mrf.mxu2 }
0x1283   : > { %v8899_v19 = vpack.c.bf16 %v8896_v25, %v8894_v1  ;;  %v8769_v21 = vadd.f32 %v8765_v20, %v8663_v18  ;;  %v15309_v20 = vld [vmem:[%s19602_s7 + $0xbe8] sm:$0xff]  ;;  %v15308_v25 = vld [vmem:[%s19602_s7 + $0xbe0] sm:$0xff] }
0x1285   : > { %8972 = vmatmul.bf16.vlgmr.msra.gmra.mxu3 %v8899_v19  ;;  %v15307_v19 = vld [vmem:[%s19602_s7 + $0xbd8] sm:$0xff] }
0x1286   : > { %9384 = vmatpush.bf16.msra.mxu3 %v15287_v31 }
0x128a   : > { %v8999_v48 = vpop.f32.mrf.mxu0  ;;  %9385 = vmatpush.bf16.msra.mxu3 %v15286_v29  ;;  %v8868_v49 = vpop.f32.mrf.mxu1 }
0x128b   : > { %v8873_v45 = vadd.f32 %v8868_v49, %v8768_v3  ;;  %v15311_v3 = vld [vmem:[%s19602_s7 + $0xbf8] sm:$0xff] }
0x128e   : > { %9386 = vmatpush.bf16.msra.mxu3 %v15285_v41  ;;  %v9407_v41 = vrot.slane %v8452_v42, 4  ;;  %v15294_v42 = vld [vmem:[%s19602_s7 + $0xb70] sm:$0xff] }
0x1290   : > { %v9411_v49 = vunpack.c.l.bf16 %v9407_v41  ;;  %v15332_v41 = vld [vmem:[%s19602_s7 + $0xca0] sm:$0xff] }
0x1292   : > { %v9001_v61 = vpop.f32.mrf.mxu0  ;;  %9387 = vmatpush.bf16.msra.mxu3 %v15284_v57  ;;  %v8870_v52 = vpop.f32.mrf.mxu1 }
0x1293   : > { %v9004_v15 = vpack.c.bf16 %v9001_v61, %v8999_v48  ;;  %v8874_v9 = vadd.f32 %v8870_v52, %v8769_v21  ;;  %v15304_v48 = vld [vmem:[%s19602_s7 + $0xbc0] sm:$0xff]  ;;  %v15291_v21 = vld [vmem:[%s19602_s7 + $0xb58] sm:$0xff] }
0x1294   : > { %v15292_v52 = vld [vmem:[%s19602_s7 + $0xb60] sm:$0xff] }
0x1295   : > { %9077 = vmatmul.bf16.vlgmr.msrb.gmra.mxu2 %v9004_v15  ;;  %13964 = vmatmul.msk.bf16.vlgmr.msrb.gmra.mxu3 %vm8465_vm1, %v18993_v27 }
0x1296   : > { %9388 = vmatpush.bf16.msra.mxu3 %v15283_v24 }
0x129a   : > { %v9104_v33 = vpop.f32.mrf.mxu0  ;;  %9389 = vmatpush.bf16.msra.mxu3 %v15282_v35 }
0x129e   : > { %9390 = vmatpush.bf16.msra.mxu3 %v15281_v46  ;;  %v15293_v46 = vld [vmem:[%s19602_s7 + $0xb68] sm:$0xff] }
0x12a2   : > { %v9106_v16 = vpop.f32.mrf.mxu0  ;;  %9391 = vmatpush.bf16.msra.mxu3 %v15280_v11  ;;  %v15302_v11 = vld [vmem:[%s19602_s7 + $0xbb0] sm:$0xff] }
0x12a3   : > { %v9109_v55 = vpack.c.bf16 %v9106_v16, %v9104_v33  ;;  %v9406_v16 = vrot.slane %v8451_v6, 4 }
0x12a5   : > { %9182 = vmatmul.bf16.vlgmr.msra.gmra.mxu1 %v9109_v55  ;;  %14001 = vmatmul.msk.bf16.vlgmr.msra.gmra.mxu2 %vm8465_vm1, %v19000_v17  ;;  %v9410_v0 = vunpack.c.l.bf16 %v9406_v16 }
0x12a6   : > { %9689 = vmatpush.bf16.msrb.mxu3 %v15311_v3  ;;  %v15300_v3 = vld [vmem:[%s19602_s7 + $0xba0] sm:$0xff] }
0x12aa   : > { %9690 = vmatpush.bf16.msrb.mxu3 %v15310_v62  ;;  %v15299_v62 = vld [vmem:[%s19602_s7 + $0xb98] sm:$0xff] }
0x12ae   : > { %9691 = vmatpush.bf16.msrb.mxu3 %v15309_v20  ;;  %v15298_v20 = vld [vmem:[%s19602_s7 + $0xb90] sm:$0xff] }
0x12b2   : > { %9692 = vmatpush.bf16.msrb.mxu3 %v15308_v25  ;;  %v15297_v25 = vld [vmem:[%s19602_s7 + $0xb88] sm:$0xff] }
0x12b6   : > { %9693 = vmatpush.bf16.msrb.mxu3 %v15307_v19  ;;  %v15296_v19 = vld [vmem:[%s19602_s7 + $0xb80] sm:$0xff] }
0x12ba   : > { %9694 = vmatpush.bf16.msrb.mxu3 %v15306_v38  ;;  %v15319_v38 = vld [vmem:[%s19602_s7 + $0xc38] sm:$0xff] }
0x12be   : > { %9695 = vmatpush.bf16.msrb.mxu3 %v15305_v2  ;;  %v15318_v2 = vld [vmem:[%s19602_s7 + $0xc30] sm:$0xff] }
0x12c2   : > { %9696 = vmatpush.bf16.msrb.mxu3 %v15304_v48  ;;  %v15317_v48 = vld [vmem:[%s19602_s7 + $0xc28] sm:$0xff] }
0x1308   : > { %v8973_v14 = vpop.f32.mrf.mxu3 }
0x1309   : > { %v8978_v43 = vadd.f32 %v8973_v14, %v8873_v45 }
0x1310   : > { %v8975_v22 = vpop.f32.mrf.mxu3 }
0x1311   : > { %v8979_v59 = vadd.f32 %v8975_v22, %v8874_v9  ;;  %v15327_v9 = vld [vmem:[%s19602_s7 + $0xc78] sm:$0xff]  ;;  %v15290_v22 = vld [vmem:[%s19602_s7 + $0xb50] sm:$0xff] }
0x1318   : > { %v9078_v7 = vpop.f32.mrf.mxu2  ;;  %v9209_v8 = vpop.f32.mrf.mxu3 }
0x1319   : > { %v9083_v5 = vadd.f32 %v9078_v7, %v8978_v43  ;;  %v15326_v7 = vld [vmem:[%s19602_s7 + $0xc70] sm:$0xff] }
0x1320   : > { %v9080_v39 = vpop.f32.mrf.mxu2  ;;  %v9211_v60 = vpop.f32.mrf.mxu3 }
0x1321   : > { %v9084_v12 = vadd.f32 %v9080_v39, %v8979_v59  ;;  %v9214_v36 = vpack.c.bf16 %v9211_v60, %v9209_v8  ;;  %v15303_v59 = vld [vmem:[%s19602_s7 + $0xbb8] sm:$0xff]  ;;  %v15289_v8 = vld [vmem:[%s19602_s7 + $0xb48] sm:$0xff]  ;;  %v15288_v60 = vld [vmem:[%s19602_s7 + $0xb40] sm:$0xff] }
0x1322   : > { %v9183_v61 = vpop.f32.mrf.mxu1  ;;  %9534 = vmatpush.bf16.msra.mxu0 %v15303_v59  ;;  %v15325_v39 = vld [vmem:[%s19602_s7 + $0xc68] sm:$0xff]  ;;  %v15339_v59 = vld [vmem:[%s19602_s7 + $0xcd8] sm:$0xff] }
0x1323   : > { %9287 = vmatmul.bf16.vlgmr.msrb.gmra.mxu0 %v9214_v36  ;;  %v9188_v33 = vadd.f32 %v9183_v61, %v9083_v5  ;;  %v15301_v5 = vld [vmem:[%s19602_s7 + $0xba8] sm:$0xff]  ;;  %v15323_v36 = vld [vmem:[%s19602_s7 + $0xc58] sm:$0xff]  ;;  %v15316_v61 = vld [vmem:[%s19602_s7 + $0xc20] sm:$0xff] }
0x1326   : > { %9535 = vmatpush.bf16.msra.mxu0 %v15302_v11 }
0x1328   : > { %v9314_v26 = vpop.f32.mrf.mxu2 }
0x132a   : > { %v9185_v31 = vpop.f32.mrf.mxu1  ;;  %9536 = vmatpush.bf16.msra.mxu0 %v15301_v5 }
0x132b   : > { %v9189_v58 = vadd.f32 %v9185_v31, %v9084_v12  ;;  %v15324_v12 = vld [vmem:[%s19602_s7 + $0xc60] sm:$0xff]  ;;  %v15313_v31 = vld [vmem:[%s19602_s7 + $0xc08] sm:$0xff] }
0x132e   : > { %9537 = vmatpush.bf16.msra.mxu0 %v15300_v3  ;;  %v15336_v3 = vld [vmem:[%s19602_s7 + $0xcc0] sm:$0xff] }
0x1330   : > { %v9316_v1 = vpop.f32.mrf.mxu2 }
0x1331   : > { %v9319_v51 = vpack.c.bf16 %v9316_v1, %v9314_v26  ;;  %v15322_v26 = vld [vmem:[%s19602_s7 + $0xc50] sm:$0xff]  ;;  %v15321_v1 = vld [vmem:[%s19602_s7 + $0xc48] sm:$0xff] }
0x1332   : > { %9538 = vmatpush.bf16.msra.mxu0 %v15299_v62  ;;  %v15351_v62 = vld [vmem:[%s19602_s7 + $0xd38] sm:$0xff] }
0x1333   : > { %9392 = vmatmul.bf16.vlgmr.msra.gmra.mxu3 %v9319_v51  ;;  %v15320_v51 = vld [vmem:[%s19602_s7 + $0xc40] sm:$0xff] }
0x1336   : > { %9539 = vmatpush.bf16.msra.mxu0 %v15298_v20 }
0x133a   : > { %9540 = vmatpush.bf16.msra.mxu0 %v15297_v25 }
0x133e   : > { %9541 = vmatpush.bf16.msra.mxu0 %v15296_v19 }
0x1342   : > { %9784 = vmatpush.bf16.msrb.mxu0 %v15319_v38 }
0x1346   : > { %9785 = vmatpush.bf16.msrb.mxu0 %v15318_v2 }
0x134a   : > { %9786 = vmatpush.bf16.msrb.mxu0 %v15317_v48 }
0x134e   : > { %9787 = vmatpush.bf16.msrb.mxu0 %v15316_v61  ;;  %v15350_v61 = vld [vmem:[%s19602_s7 + $0xd30] sm:$0xff] }
0x13a0   : > { %v9288_v15 = vpop.f32.mrf.mxu0 }
0x13a1   : > { %v9293_v55 = vadd.f32 %v9288_v15, %v9188_v33  ;;  %v15315_v33 = vld [vmem:[%s19602_s7 + $0xc18] sm:$0xff] }
0x13a2   : > { %9788 = vmatpush.bf16.msrb.mxu0 %v15315_v33  ;;  %v15348_v33 = vld [vmem:[%s19602_s7 + $0xd20] sm:$0xff] }
0x13a8   : > { %v9290_v29 = vpop.f32.mrf.mxu0 }
0x13a9   : > { %v9294_v40 = vadd.f32 %v9290_v29, %v9189_v58  ;;  %v15312_v58 = vld [vmem:[%s19602_s7 + $0xc00] sm:$0xff] }
0x13b6   : > { %v9393_v37 = vpop.f32.mrf.mxu3 }
0x13b7   : > { %v9398_v13 = vadd.f32 %v9393_v37, %v9293_v55  ;;  %v15314_v55 = vld [vmem:[%s19602_s7 + $0xc10] sm:$0xff]  ;;  %v15335_v37 = vld [vmem:[%s19602_s7 + $0xcb8] sm:$0xff] }
0x13b8   : > { %9789 = vmatpush.bf16.msrb.mxu0 %v15314_v55  ;;  %v15346_v55 = vld [vmem:[%s19602_s7 + $0xd10] sm:$0xff] }
0x13b9   : > { %v9402_v63 = vadd.f32 %v15510_v50, %v9398_v13 }
0x13bb   : > { %v9412_v47 = vadd.f32 %v9410_v0, %v9402_v63  ;;  %v15334_v0 = vld [vmem:[%s19602_s7 + $0xcb0] sm:$0xff] }
0x13bc   : > { %9790 = vmatpush.bf16.msrb.mxu0 %v15313_v31  ;;  %v15344_v31 = vld [vmem:[%s19602_s7 + $0xd00] sm:$0xff] }
0x13bd   : > { %v9414_v6 = vmax.f32 %v9412_v47, 0.0  ;;  %v15333_v47 = vld [vmem:[%s19602_s7 + $0xca8] sm:$0xff] }
0x13be   : > { %v9395_v54 = vpop.f32.mrf.mxu3 }
0x13bf   : > { %v9399_v4 = vadd.f32 %v9395_v54, %v9294_v40  ;;  %v19083_v45 = vpack.c.bf16 %v9414_v6, %v9414_v6  ;;  %v15331_v54 = vld [vmem:[%s19602_s7 + $0xc98] sm:$0xff] }
0x13c0   : > { %9791 = vmatpush.bf16.msrb.mxu0 %v15312_v58  ;;  %v15356_v58 = vld [vmem:[%s19602_s7 + $0xd60] sm:$0xff] }
0x13c1   : > { %v9403_v57 = vadd.f32 %v15510_v50, %v9399_v4  ;;  %v9420_v43 = vunpack.c.l.b16 %v19083_v45  ;;  %v15330_v4 = vld [vmem:[%s19602_s7 + $0xc90] sm:$0xff] }
0x13c3   : > { %v9413_v24 = vadd.f32 %v9411_v49, %v9403_v57  ;;  %v15329_v49 = vld [vmem:[%s19602_s7 + $0xc88] sm:$0xff] }
0x13c5   : > { %v9415_v14 = vmax.f32 %v9413_v24, 0.0  ;;  %v15328_v24 = vld [vmem:[%s19602_s7 + $0xc80] sm:$0xff] }
0x13c7   : > { %v19085_v35 = vpack.c.bf16 %v9415_v14, %v9415_v14 }
0x13c9   : > { %v9421_v18 = vunpack.c.l.b16 %v19085_v35 }
0x13cb   : > { %v19092_v23 = vpack.c.b16 %v9421_v18, %v9420_v43 }
0x13cd   : > { %9431 = vmatpush.bf16.msrb.mxu1 %v19092_v23  ;;  %9462 = vmatpush.bf16.msrb.mxu2 %v19092_v23 }
0x13ce   : > { %9902 = vmatpush.bf16.msra.mxu3 %v19092_v23 }
0x13d0   : > { %14034 = vmatmul.msk.bf16.vlgmr.msrb.gmra.mxu1 %vm8465_vm1, %v18810_v56  ;;  %14035 = vmatmul.msk.bf16.vlgmr.msrb.gmra.mxu2 %vm8465_vm1, %v18815_v53 }
0x13d1   : > { %9596 = vmatpush.bf16.msra.mxu1 %v15295_v34  ;;  %9617 = vmatpush.bf16.msra.mxu2 %v19092_v23 }
0x13d5   : > { %9712 = vmatpush.bf16.msrb.mxu2 %v19092_v23  ;;  %9597 = vmatpush.bf16.msra.mxu1 %v15294_v42  ;;  %v15343_v42 = vld [vmem:[%s19602_s7 + $0xcf8] sm:$0xff] }
0x13d9   : > { %9598 = vmatpush.bf16.msra.mxu1 %v15293_v46 }
0x13dd   : > { %9599 = vmatpush.bf16.msra.mxu1 %v15292_v52  ;;  %v15341_v52 = vld [vmem:[%s19602_s7 + $0xce8] sm:$0xff] }
0x13e0   : > { %14100 = vmatmul.msk.bf16.vlgmr.msra.gmra.mxu2 %vm8465_vm1, %v18830_v30 }
0x13e1   : > { %9600 = vmatpush.bf16.msra.mxu1 %v15291_v21  ;;  %9879 = vmatpush.bf16.msra.mxu2 %v15327_v9  ;;  %v15340_v9 = vld [vmem:[%s19602_s7 + $0xce0] sm:$0xff] }
0x13e5   : > { %9601 = vmatpush.bf16.msra.mxu1 %v15290_v22  ;;  %9880 = vmatpush.bf16.msra.mxu2 %v15326_v7 }
0x13e9   : > { %9602 = vmatpush.bf16.msra.mxu1 %v15289_v8  ;;  %9881 = vmatpush.bf16.msra.mxu2 %v15325_v39  ;;  %v15338_v39 = vld [vmem:[%s19602_s7 + $0xcd0] sm:$0xff] }
0x13ed   : > { %9603 = vmatpush.bf16.msra.mxu1 %v15288_v60  ;;  %9882 = vmatpush.bf16.msra.mxu2 %v15324_v12  ;;  %v15337_v12 = vld [vmem:[%s19602_s7 + $0xcc8] sm:$0xff] }
0x13f0   : > { %14133 = vmatmul.msk.bf16.vlgmr.msrb.gmra.mxu2 %vm8465_vm1, %v18858_v28 }
0x13f1   : > { %9807 = vmatpush.bf16.msrb.mxu1 %v19092_v23  ;;  %9883 = vmatpush.bf16.msra.mxu2 %v15323_v36 }
0x13f5   : > { %9884 = vmatpush.bf16.msra.mxu2 %v15322_v26 }
0x13f9   : > { %9885 = vmatpush.bf16.msra.mxu2 %v15321_v1 }
0x13fd   : > { %9886 = vmatpush.bf16.msra.mxu2 %v15320_v51 }
0x1401   : > { %10092 = vmatpush.bf16.msrb.mxu2 %v19092_v23 }
0x144d   : > { %v9433_v15 = vpop.f32.mrf.mxu1 }
0x1453   : > { %v9464_v16 = vpop.f32.mrf.mxu2 }
0x1455   : > { %v9435_v50 = vpop.f32.mrf.mxu1 }
0x1456   : > { %v9438_v13 = vpack.c.bf16 %v9435_v50, %v9433_v15  ;;  %v15349_v15 = vld [vmem:[%s19602_s7 + $0xd28] sm:$0xff]  ;;  %v15359_v50 = vld [vmem:[%s19602_s7 + $0xd78] sm:$0xff] }
0x1458   : > { %9604 = vmatmul.bf16.vlgmr.msra.gmra.mxu1 %v9438_v13  ;;  %v15358_v13 = vld [vmem:[%s19602_s7 + $0xd70] sm:$0xff] }
0x1459   : > { %9974 = vmatpush.bf16.msra.mxu1 %v15335_v37  ;;  %v15345_v37 = vld [vmem:[%s19602_s7 + $0xd08] sm:$0xff] }
0x145b   : > { %v9466_v63 = vpop.f32.mrf.mxu2 }
0x145c   : > { %v9469_v29 = vpack.c.bf16 %v9466_v63, %v9464_v16  ;;  %v15347_v16 = vld [vmem:[%s19602_s7 + $0xd18] sm:$0xff] }
0x145d   : > { %9975 = vmatpush.bf16.msra.mxu1 %v15334_v0  ;;  %v15357_v0 = vld [vmem:[%s19602_s7 + $0xd68] sm:$0xff] }
0x145e   : > { %9542 = vmatmul.bf16.vlgmr.msra.gmra.mxu0 %v9469_v29 }
0x145f   : > { %10069 = vmatpush.bf16.msra.mxu0 %v15343_v42 }
0x1461   : > { %9976 = vmatpush.bf16.msra.mxu1 %v15333_v47 }
0x1463   : > { %v9619_v40 = vpop.f32.mrf.mxu2 }
0x1465   : > { %9977 = vmatpush.bf16.msra.mxu1 %v15332_v41 }
0x1468   : > { %14166 = vmatmul.msk.bf16.vlgmr.msrb.gmra.mxu1 %vm8465_vm1, %v18929_v10 }
0x1469   : > { %9978 = vmatpush.bf16.msra.mxu1 %v15331_v54 }
0x146b   : > { %v9621_v6 = vpop.f32.mrf.mxu2 }
0x146c   : > { %v9624_v57 = vpack.c.bf16 %v9621_v6, %v9619_v40  ;;  %v15355_v40 = vld [vmem:[%s19602_s7 + $0xd58] sm:$0xff]  ;;  %v15354_v6 = vld [vmem:[%s19602_s7 + $0xd50] sm:$0xff] }
0x146d   : > { %9979 = vmatpush.bf16.msra.mxu1 %v15330_v4 }
0x146e   : > { %9697 = vmatmul.bf16.vlgmr.msrb.gmra.mxu3 %v9624_v57 }
0x146f   : > { %9997 = vmatpush.bf16.msrb.mxu3 %v19092_v23 }
0x1471   : > { %9980 = vmatpush.bf16.msra.mxu1 %v15329_v49 }
0x1473   : > { %v9714_v14 = vpop.f32.mrf.mxu2 }
0x1475   : > { %9981 = vmatpush.bf16.msra.mxu1 %v15328_v24  ;;  %v15353_v24 = vld [vmem:[%s19602_s7 + $0xd48] sm:$0xff] }
0x1479   : > { %10187 = vmatpush.bf16.msrb.mxu1 %v19092_v23  ;;  %v15342_v23 = vld [vmem:[%s19602_s7 + $0xcf0] sm:$0xff] }
0x147a   : > { %10070 = vmatpush.bf16.msra.mxu0 %v15342_v23 }
0x147b   : > { %v9716_v43 = vpop.f32.mrf.mxu2 }
0x147c   : > { %v9719_v18 = vpack.c.bf16 %v9716_v43, %v9714_v14  ;;  %v15352_v14 = vld [vmem:[%s19602_s7 + $0xd40] sm:$0xff] }
0x147e   : > { %9792 = vmatmul.bf16.vlgmr.msrb.gmra.mxu0 %v9719_v18  ;;  %14199 = vmatmul.msk.bf16.vlgmr.msra.gmra.mxu3 %vm8465_vm1, %v18950_v32 }
0x147f   : > { %10071 = vmatpush.bf16.msra.mxu0 %v15341_v52  ;;  %10164 = vmatpush.bf16.msra.mxu3 %v15351_v62 }
0x1483   : > { %10072 = vmatpush.bf16.msra.mxu0 %v15340_v9  ;;  %10165 = vmatpush.bf16.msra.mxu3 %v15350_v61 }
0x1487   : > { %10073 = vmatpush.bf16.msra.mxu0 %v15339_v59  ;;  %10166 = vmatpush.bf16.msra.mxu3 %v15349_v15  ;;  %v15383_v59 = vld [vmem:[%s19602_s7 + $0xe38] sm:$0xff] }
0x148b   : > { %10074 = vmatpush.bf16.msra.mxu0 %v15338_v39  ;;  %10167 = vmatpush.bf16.msra.mxu3 %v15348_v33  ;;  %v15378_v39 = vld [vmem:[%s19602_s7 + $0xe10] sm:$0xff] }
0x148e   : > { %14232 = vmatmul.msk.bf16.vlgmr.msrb.gmra.mxu3 %vm8465_vm1, %v18957_v44 }
0x148f   : > { %10075 = vmatpush.bf16.msra.mxu0 %v15337_v12  ;;  %10168 = vmatpush.bf16.msra.mxu3 %v15347_v16  ;;  %v15376_v12 = vld [vmem:[%s19602_s7 + $0xe00] sm:$0xff] }
0x1493   : > { %10076 = vmatpush.bf16.msra.mxu0 %v15336_v3  ;;  %10169 = vmatpush.bf16.msra.mxu3 %v15346_v55 }
0x1497   : > { %10170 = vmatpush.bf16.msra.mxu3 %v15345_v37 }
0x149b   : > { %10171 = vmatpush.bf16.msra.mxu3 %v15344_v31  ;;  %v15365_v31 = vld [vmem:[%s19602_s7 + $0xda8] sm:$0xff] }
0x14d5   : > { %v9605_v34 = vpop.f32.mrf.mxu1 }
0x14db   : > { %v9543_v22 = vpop.f32.mrf.mxu0 }
0x14dc   : > { %v9606_v8 = vadd.f32 %v9605_v34, %v9543_v22 }
0x14dd   : > { %v9607_v46 = vpop.f32.mrf.mxu1 }
0x14e3   : > { %v9545_v36 = vpop.f32.mrf.mxu0 }
0x14e4   : > { %v9608_v26 = vadd.f32 %v9607_v46, %v9545_v36 }
0x14e5   : > { %v9809_v21 = vpop.f32.mrf.mxu1 }
0x14ed   : > { %v9811_v11 = vpop.f32.mrf.mxu1 }
0x14ee   : > { %v9814_v7 = vpack.c.bf16 %v9811_v11, %v9809_v21  ;;  %v15382_v11 = vld [vmem:[%s19602_s7 + $0xe30] sm:$0xff] }
0x14f0   : > { %9887 = vmatmul.bf16.vlgmr.msra.gmra.mxu2 %v9814_v7  ;;  %v15381_v7 = vld [vmem:[%s19602_s7 + $0xe28] sm:$0xff] }
0x14f1   : > { %v9698_v5 = vpop.f32.mrf.mxu3  ;;  %10259 = vmatpush.bf16.msra.mxu2 %v15359_v50  ;;  %v15367_v50 = vld [vmem:[%s19602_s7 + $0xdb8] sm:$0xff] }
0x14f2   : > { %v9703_v60 = vadd.f32 %v9698_v5, %v9606_v8  ;;  %v15380_v8 = vld [vmem:[%s19602_s7 + $0xe20] sm:$0xff]  ;;  %v15379_v5 = vld [vmem:[%s19602_s7 + $0xe18] sm:$0xff] }
0x14f5   : > { %10260 = vmatpush.bf16.msra.mxu2 %v15358_v13  ;;  %v15366_v13 = vld [vmem:[%s19602_s7 + $0xdb0] sm:$0xff] }
0x14f9   : > { %v9700_v1 = vpop.f32.mrf.mxu3  ;;  %10261 = vmatpush.bf16.msra.mxu2 %v15357_v0  ;;  %v15364_v0 = vld [vmem:[%s19602_s7 + $0xda0] sm:$0xff] }
0x14fa   : > { %v9704_v51 = vadd.f32 %v9700_v1, %v9608_v26 }
0x14fb   : > { %v9793_v63 = vpop.f32.mrf.mxu0 }
0x14fc   : > { %v9798_v29 = vadd.f32 %v9793_v63, %v9703_v60  ;;  %v15377_v60 = vld [vmem:[%s19602_s7 + $0xe08] sm:$0xff]  ;;  %v15362_v63 = vld [vmem:[%s19602_s7 + $0xd90] sm:$0xff] }
0x14fd   : > { %10262 = vmatpush.bf16.msra.mxu2 %v15356_v58  ;;  %v15374_v58 = vld [vmem:[%s19602_s7 + $0xdf0] sm:$0xff] }
0x1500   : > { %14265 = vmatmul.msk.bf16.vlgmr.msrb.gmra.mxu2 %vm8465_vm1, %v18993_v27 }
0x1501   : > { %v9904_v20 = vpop.f32.mrf.mxu3  ;;  %10263 = vmatpush.bf16.msra.mxu2 %v15355_v40  ;;  %v15397_v40 = vld [vmem:[%s19602_s7 + $0xea8] sm:$0xff] }
0x1503   : > { %v9795_v54 = vpop.f32.mrf.mxu0 }
0x1504   : > { %v9799_v4 = vadd.f32 %v9795_v54, %v9704_v51  ;;  %v15360_v54 = vld [vmem:[%s19602_s7 + $0xd80] sm:$0xff] }
0x1505   : > { %10264 = vmatpush.bf16.msra.mxu2 %v15354_v6  ;;  %v15395_v6 = vld [vmem:[%s19602_s7 + $0xe98] sm:$0xff] }
0x1509   : > { %v9906_v25 = vpop.f32.mrf.mxu3  ;;  %10265 = vmatpush.bf16.msra.mxu2 %v15353_v24  ;;  %v15392_v24 = vld [vmem:[%s19602_s7 + $0xe80] sm:$0xff] }
0x150a   : > { %v9909_v19 = vpack.c.bf16 %v9906_v25, %v9904_v20 }
0x150c   : > { %9982 = vmatmul.bf16.vlgmr.msra.gmra.mxu1 %v9909_v19 }
0x150d   : > { %10266 = vmatpush.bf16.msra.mxu2 %v15352_v14  ;;  %v15371_v14 = vld [vmem:[%s19602_s7 + $0xdd8] sm:$0xff] }
0x1511   : > { %v9999_v38 = vpop.f32.mrf.mxu3  ;;  %10547 = vmatpush.bf16.msrb.mxu2 %v15383_v59  ;;  %v15386_v59 = vld [vmem:[%s19602_s7 + $0xe50] sm:$0xff] }
0x1515   : > { %10548 = vmatpush.bf16.msrb.mxu2 %v15382_v11  ;;  %v15385_v11 = vld [vmem:[%s19602_s7 + $0xe48] sm:$0xff] }
0x1519   : > { %v10001_v2 = vpop.f32.mrf.mxu3  ;;  %10549 = vmatpush.bf16.msrb.mxu2 %v15381_v7 }
0x151a   : > { %v10004_v48 = vpack.c.bf16 %v10001_v2, %v9999_v38  ;;  %v15511_v38 = vld [vmem:[%s19603_s8 + $0x5] ss:$0 sm:$0xff] }
0x151c   : > { %10077 = vmatmul.bf16.vlgmr.msra.gmra.mxu0 %v10004_v48  ;;  %14298 = vmatmul.msk.bf16.vlgmr.msrb.gmra.mxu1 %vm8465_vm1, %v19000_v17 }
0x151d   : > { %10550 = vmatpush.bf16.msrb.mxu2 %v15380_v8 }
0x1521   : > { %10551 = vmatpush.bf16.msrb.mxu2 %v15379_v5  ;;  %v15407_v5 = vld [vmem:[%s19602_s7 + $0xef8] sm:$0xff] }
0x1525   : > { %10552 = vmatpush.bf16.msrb.mxu2 %v15378_v39 }
0x1529   : > { %10553 = vmatpush.bf16.msrb.mxu2 %v15377_v60 }
0x152d   : > { %10554 = vmatpush.bf16.msrb.mxu2 %v15376_v12  ;;  %v15384_v12 = vld [vmem:[%s19602_s7 + $0xe40] sm:$0xff] }
0x1573   : > { %v9888_v47 = vpop.f32.mrf.mxu2 }
0x1574   : > { %v9893_v41 = vadd.f32 %v9888_v47, %v9798_v29  ;;  %v15375_v29 = vld [vmem:[%s19602_s7 + $0xdf8] sm:$0xff]  ;;  %v15398_v47 = vld [vmem:[%s19602_s7 + $0xeb0] sm:$0xff] }
0x1575   : > { %10392 = vmatpush.bf16.msrb.mxu3 %v15375_v29  ;;  %v15409_v29 = vld [vmem:[%s19602_s7 + $0xf08] sm:$0xff] }
0x1579   : > { %10393 = vmatpush.bf16.msrb.mxu3 %v15374_v58 }
0x157b   : > { %v9890_v57 = vpop.f32.mrf.mxu2 }
0x157c   : > { %v9894_v49 = vadd.f32 %v9890_v57, %v9799_v4  ;;  %v15396_v4 = vld [vmem:[%s19602_s7 + $0xea0] sm:$0xff]  ;;  %v15394_v57 = vld [vmem:[%s19602_s7 + $0xe90] sm:$0xff] }
0x1583   : > { %v10094_v43 = vpop.f32.mrf.mxu2 }
0x1589   : > { %v9983_v18 = vpop.f32.mrf.mxu1 }
0x158a   : > { %v9988_v34 = vadd.f32 %v9983_v18, %v9893_v41  ;;  %v15361_v41 = vld [vmem:[%s19602_s7 + $0xd88] sm:$0xff] }
0x158b   : > { %v10096_v42 = vpop.f32.mrf.mxu2  ;;  %v15369_v18 = vld [vmem:[%s19602_s7 + $0xdc8] sm:$0xff] }
0x158c   : > { %v10099_v46 = vpack.c.bf16 %v10096_v42, %v10094_v43  ;;  %v15370_v43 = vld [vmem:[%s19602_s7 + $0xdd0] sm:$0xff]  ;;  %v15391_v42 = vld [vmem:[%s19602_s7 + $0xe78] sm:$0xff] }
0x158e   : > { %10172 = vmatmul.bf16.vlgmr.msra.gmra.mxu3 %v10099_v46  ;;  %v15390_v46 = vld [vmem:[%s19602_s7 + $0xe70] sm:$0xff] }
0x1591   : > { %v9985_v23 = vpop.f32.mrf.mxu1 }
0x1592   : > { %v9989_v52 = vadd.f32 %v9985_v23, %v9894_v49  ;;  %v15393_v49 = vld [vmem:[%s19602_s7 + $0xe88] sm:$0xff] }
0x1593   : > { %v15389_v23 = vld [vmem:[%s19602_s7 + $0xe68] sm:$0xff] }
0x1599   : > { %v10189_v21 = vpop.f32.mrf.mxu1  ;;  %v10078_v36 = vpop.f32.mrf.mxu0 }
0x159a   : > { %v10083_v51 = vadd.f32 %v10078_v36, %v9988_v34  ;;  %v15368_v34 = vld [vmem:[%s19602_s7 + $0xdc0] sm:$0xff]  ;;  %v15406_v36 = vld [vmem:[%s19602_s7 + $0xef0] sm:$0xff] }
0x15a1   : > { %v10191_v9 = vpop.f32.mrf.mxu1  ;;  %v10080_v3 = vpop.f32.mrf.mxu0 }
0x15a2   : > { %v10194_v22 = vpack.c.bf16 %v10191_v9, %v10189_v21  ;;  %v10084_v25 = vadd.f32 %v10080_v3, %v9989_v52  ;;  %v15388_v52 = vld [vmem:[%s19602_s7 + $0xe60] sm:$0xff]  ;;  %v15387_v21 = vld [vmem:[%s19602_s7 + $0xe58] sm:$0xff] }
0x15a4   : > { %10267 = vmatmul.bf16.vlgmr.msra.gmra.mxu2 %v10194_v22 }
0x1611   : > { %v10173_v26 = vpop.f32.mrf.mxu3 }
0x1612   : > { %v10178_v62 = vadd.f32 %v10173_v26, %v10083_v51  ;;  %v15404_v51 = vld [vmem:[%s19602_s7 + $0xee0] sm:$0xff] }
0x1619   : > { %v10175_v20 = vpop.f32.mrf.mxu3 }
0x161a   : > { %v10179_v2 = vadd.f32 %v10175_v20, %v10084_v25  ;;  %v15402_v25 = vld [vmem:[%s19602_s7 + $0xed0] sm:$0xff] }
0x1627   : > { %v10268_v1 = vpop.f32.mrf.mxu2 }
0x1628   : > { %v10273_v19 = vadd.f32 %v10268_v1, %v10178_v62  ;;  %v15405_v1 = vld [vmem:[%s19602_s7 + $0xee8] sm:$0xff]  ;;  %v15403_v62 = vld [vmem:[%s19602_s7 + $0xed8] sm:$0xff] }
0x162a   : > { %v10277_v61 = vadd.f32 %v15511_v38, %v10273_v19  ;;  %v15401_v19 = vld [vmem:[%s19602_s7 + $0xec8] sm:$0xff] }
0x162c   : > { %v10279_v16 = vmax.f32 %v10277_v61, 0.0  ;;  %v15415_v61 = vld [vmem:[%s19602_s7 + $0xf38] sm:$0xff] }
0x162f   : > { %v10270_v48 = vpop.f32.mrf.mxu2 }
0x1630   : > { %v10274_v15 = vadd.f32 %v10270_v48, %v10179_v2  ;;  %v15400_v2 = vld [vmem:[%s19602_s7 + $0xec0] sm:$0xff] }
0x1632   : > { %v10278_v33 = vadd.f32 %v15511_v38, %v10274_v15 }
0x1634   : > { %v10280_v55 = vmax.f32 %v10278_v33, 0.0  ;;  %v15414_v33 = vld [vmem:[%s19602_s7 + $0xf30] sm:$0xff] }
0x1636   : > { %v19340_v37 = vpack.c.bf16 %v10280_v55, %v10279_v16 }
0x1638   : > { %10289 = vmatpush.bf16.msrb.mxu0 %v19340_v37  ;;  %10320 = vmatpush.bf16.msra.mxu1 %v19340_v37 }
0x1639   : > { %10760 = vmatpush.bf16.msra.mxu2 %v19340_v37 }
0x163b   : > { %14331 = vmatmul.msk.bf16.vlgmr.msrb.gmra.mxu0 %vm8465_vm1, %v18810_v56  ;;  %14332 = vmatmul.msk.bf16.vlgmr.msra.gmra.mxu1 %vm8465_vm1, %v18815_v53  ;;  %v15363_v56 = vld [vmem:[%s19602_s7 + $0xd98] sm:$0xff] }
0x163c   : > { %10454 = vmatpush.bf16.msra.mxu0 %v15367_v50  ;;  %10475 = vmatpush.bf16.msrb.mxu1 %v19340_v37  ;;  %v15399_v53 = vld [vmem:[%s19602_s7 + $0xeb8] sm:$0xff] }
0x1640   : > { %10570 = vmatpush.bf16.msra.mxu1 %v19340_v37  ;;  %10455 = vmatpush.bf16.msra.mxu0 %v15366_v13 }
0x1644   : > { %10456 = vmatpush.bf16.msra.mxu0 %v15365_v31 }
0x1648   : > { %10457 = vmatpush.bf16.msra.mxu0 %v15364_v0  ;;  %v15410_v0 = vld [vmem:[%s19602_s7 + $0xf10] sm:$0xff] }
0x164b   : > { %14397 = vmatmul.msk.bf16.vlgmr.msrb.gmra.mxu1 %vm8465_vm1, %v18830_v30  ;;  %v15373_v30 = vld [vmem:[%s19602_s7 + $0xde8] sm:$0xff] }
0x164c   : > { %10458 = vmatpush.bf16.msra.mxu0 %v15363_v56  ;;  %10737 = vmatpush.bf16.msrb.mxu1 %v15399_v53 }
0x164d   : > { %10394 = vmatpush.bf16.msrb.mxu3 %v15373_v30 }
0x1650   : > { %10459 = vmatpush.bf16.msra.mxu0 %v15362_v63  ;;  %10738 = vmatpush.bf16.msrb.mxu1 %v15398_v47 }
0x1654   : > { %10460 = vmatpush.bf16.msra.mxu0 %v15361_v41  ;;  %10739 = vmatpush.bf16.msrb.mxu1 %v15397_v40  ;;  %v15408_v40 = vld [vmem:[%s19602_s7 + $0xf00] sm:$0xff] }
0x1658   : > { %10461 = vmatpush.bf16.msra.mxu0 %v15360_v54  ;;  %10740 = vmatpush.bf16.msrb.mxu1 %v15396_v4  ;;  %v15423_v54 = vld [vmem:[%s19602_s7 + $0xf78] sm:$0xff] }
0x165b   : > { %14430 = vmatmul.msk.bf16.vlgmr.msra.gmra.mxu1 %vm8465_vm1, %v18858_v28  ;;  %v15372_v28 = vld [vmem:[%s19602_s7 + $0xde0] sm:$0xff] }
0x165c   : > { %10665 = vmatpush.bf16.msrb.mxu0 %v19340_v37  ;;  %10741 = vmatpush.bf16.msrb.mxu1 %v15395_v6 }
0x165d   : > { %10395 = vmatpush.bf16.msrb.mxu3 %v15372_v28 }
0x1660   : > { %10742 = vmatpush.bf16.msrb.mxu1 %v15394_v57 }
0x1661   : > { %10396 = vmatpush.bf16.msrb.mxu3 %v15371_v14  ;;  %v15422_v14 = vld [vmem:[%s19602_s7 + $0xf70] sm:$0xff] }
0x1664   : > { %10743 = vmatpush.bf16.msrb.mxu1 %v15393_v49 }
0x1665   : > { %10397 = vmatpush.bf16.msrb.mxu3 %v15370_v43  ;;  %v15421_v43 = vld [vmem:[%s19602_s7 + $0xf68] sm:$0xff] }
0x1668   : > { %10744 = vmatpush.bf16.msrb.mxu1 %v15392_v24 }
0x1669   : > { %10398 = vmatpush.bf16.msrb.mxu3 %v15369_v18  ;;  %v15419_v18 = vld [vmem:[%s19602_s7 + $0xf58] sm:$0xff] }
0x166c   : > { %10950 = vmatpush.bf16.msra.mxu1 %v19340_v37 }
0x166d   : > { %10399 = vmatpush.bf16.msrb.mxu3 %v15368_v34  ;;  %v15431_v34 = vld [vmem:[%s19602_s7 + $0xfb8] sm:$0xff] }
0x1671   : > { %10642 = vmatpush.bf16.msra.mxu3 %v15391_v42  ;;  %v15417_v42 = vld [vmem:[%s19602_s7 + $0xf48] sm:$0xff] }
0x1675   : > { %10643 = vmatpush.bf16.msra.mxu3 %v15390_v46  ;;  %v15430_v46 = vld [vmem:[%s19602_s7 + $0xfb0] sm:$0xff] }
0x1679   : > { %10644 = vmatpush.bf16.msra.mxu3 %v15389_v23  ;;  %v15416_v23 = vld [vmem:[%s19602_s7 + $0xf40] sm:$0xff] }
0x167d   : > { %10645 = vmatpush.bf16.msra.mxu3 %v15388_v52  ;;  %v15429_v52 = vld [vmem:[%s19602_s7 + $0xfa8] sm:$0xff] }
0x1681   : > { %10646 = vmatpush.bf16.msra.mxu3 %v15387_v21 }
0x1685   : > { %10647 = vmatpush.bf16.msra.mxu3 %v15386_v59 }
0x1689   : > { %10648 = vmatpush.bf16.msra.mxu3 %v15385_v11 }
0x168d   : > { %10649 = vmatpush.bf16.msra.mxu3 %v15384_v12 }
0x16b8   : > { %v10291_v9 = vpop.f32.mrf.mxu0  ;;  %v10322_v22 = vpop.f32.mrf.mxu1 }
0x16c0   : > { %v10293_v7 = vpop.f32.mrf.mxu0  ;;  %v10324_v8 = vpop.f32.mrf.mxu1 }
0x16c1   : > { %v10296_v39 = vpack.c.bf16 %v10293_v7, %v10291_v9  ;;  %v10327_v60 = vpack.c.bf16 %v10324_v8, %v10322_v22  ;;  %v15428_v22 = vld [vmem:[%s19602_s7 + $0xfa0] sm:$0xff]  ;;  %v15427_v7 = vld [vmem:[%s19602_s7 + $0xf98] sm:$0xff] }
0x16c3   : > { %10462 = vmatmul.bf16.vlgmr.msra.gmra.mxu0 %v10296_v39  ;;  %10400 = vmatmul.bf16.vlgmr.msrb.gmra.mxu3 %v10327_v60 }
0x16c4   : > { %10832 = vmatpush.bf16.msra.mxu0 %v15407_v5  ;;  %10927 = vmatpush.bf16.msrb.mxu3 %v15415_v61  ;;  %v15426_v5 = vld [vmem:[%s19602_s7 + $0xf90] sm:$0xff] }
0x16c8   : > { %10833 = vmatpush.bf16.msra.mxu0 %v15406_v36  ;;  %v10477_v26 = vpop.f32.mrf.mxu1  ;;  %10928 = vmatpush.bf16.msrb.mxu3 %v15414_v33  ;;  %v15425_v36 = vld [vmem:[%s19602_s7 + $0xf88] sm:$0xff] }
0x16cc   : > { %10834 = vmatpush.bf16.msra.mxu0 %v15405_v1 }
0x16d0   : > { %10835 = vmatpush.bf16.msra.mxu0 %v15404_v51  ;;  %v10479_v3 = vpop.f32.mrf.mxu1 }
0x16d1   : > { %v10482_v20 = vpack.c.bf16 %v10479_v3, %v10477_v26  ;;  %v15424_v26 = vld [vmem:[%s19602_s7 + $0xf80] sm:$0xff] }
0x16d3   : > { %10555 = vmatmul.bf16.vlgmr.msrb.gmra.mxu2 %v10482_v20  ;;  %14463 = vmatmul.msk.bf16.vlgmr.msrb.gmra.mxu0 %vm8465_vm1, %v18929_v10 }
0x16d4   : > { %10836 = vmatpush.bf16.msra.mxu0 %v15403_v62  ;;  %10855 = vmatpush.bf16.msrb.mxu2 %v19340_v37 }
0x16d8   : > { %10837 = vmatpush.bf16.msra.mxu0 %v15402_v25  ;;  %v10572_v38 = vpop.f32.mrf.mxu1 }
0x16dc   : > { %10838 = vmatpush.bf16.msra.mxu0 %v15401_v19 }
0x16e0   : > { %10839 = vmatpush.bf16.msra.mxu0 %v15400_v2  ;;  %v10574_v10 = vpop.f32.mrf.mxu1 }
0x16e1   : > { %v10577_v48 = vpack.c.bf16 %v10574_v10, %v10572_v38 }
0x16e3   : > { %14496 = vmatmul.msk.bf16.vlgmr.msra.gmra.mxu2 %vm8465_vm1, %v18950_v32  ;;  %10650 = vmatmul.bf16.vlgmr.msra.gmra.mxu3 %v10577_v48  ;;  %v15413_v32 = vld [vmem:[%s19602_s7 + $0xf28] sm:$0xff] }
0x16e4   : > { %11045 = vmatpush.bf16.msrb.mxu0 %v19340_v37  ;;  %10929 = vmatpush.bf16.msrb.mxu3 %v15413_v32  ;;  %v15411_v37 = vld [vmem:[%s19602_s7 + $0xf18] sm:$0xff] }
0x16e5   : > { %11022 = vmatpush.bf16.msra.mxu2 %v15423_v54 }
0x16e9   : > { %11023 = vmatpush.bf16.msra.mxu2 %v15422_v14 }
0x16ed   : > { %11024 = vmatpush.bf16.msra.mxu2 %v15421_v43 }
0x16f3   : > { %14529 = vmatmul.msk.bf16.vlgmr.msrb.gmra.mxu2 %vm8465_vm1, %v18957_v44  ;;  %v15412_v44 = vld [vmem:[%s19602_s7 + $0xf20] sm:$0xff] }
0x16f4   : > { %10930 = vmatpush.bf16.msrb.mxu3 %v15412_v44 }
0x16f8   : > { %10931 = vmatpush.bf16.msrb.mxu3 %v15411_v37  ;;  %v11137_v37 = vunpack.c.l.bf16 %v19083_v45 }
0x16fc   : > { %10932 = vmatpush.bf16.msrb.mxu3 %v15410_v0 }
0x1700   : > { %10933 = vmatpush.bf16.msrb.mxu3 %v15409_v29 }
0x1704   : > { %10934 = vmatpush.bf16.msrb.mxu3 %v15408_v40 }
0x1740   : > { %v10463_v15 = vpop.f32.mrf.mxu0 }
0x1746   : > { %v10401_v50 = vpop.f32.mrf.mxu3 }
0x1747   : > { %v10464_v13 = vadd.f32 %v10463_v15, %v10401_v50 }
0x1748   : > { %v10465_v16 = vpop.f32.mrf.mxu0 }
0x174e   : > { %v10403_v58 = vpop.f32.mrf.mxu3 }
0x174f   : > { %v10466_v47 = vadd.f32 %v10465_v16, %v10403_v58  ;;  %v15512_v16 = vld [vmem:[%s19603_s8 + $0x6] ss:$0 sm:$0xff] }
0x1750   : > { %v10667_v55 = vpop.f32.mrf.mxu0 }
0x1756   : > { %v10556_v31 = vpop.f32.mrf.mxu2 }
0x1757   : > { %v10561_v56 = vadd.f32 %v10556_v31, %v10464_v13 }
0x1758   : > { %v10669_v53 = vpop.f32.mrf.mxu0 }
0x1759   : > { %v10672_v63 = vpack.c.bf16 %v10669_v53, %v10667_v55 }
0x175b   : > { %10745 = vmatmul.bf16.vlgmr.msrb.gmra.mxu1 %v10672_v63 }
0x175c   : > { %11117 = vmatpush.bf16.msrb.mxu1 %v15431_v34 }
0x175e   : > { %v10558_v41 = vpop.f32.mrf.mxu2 }
0x175f   : > { %v10562_v30 = vadd.f32 %v10558_v41, %v10466_v47  ;;  %v11138_v47 = vunpack.c.l.bf16 %v19085_v35 }
0x1760   : > { %11118 = vmatpush.bf16.msrb.mxu1 %v15430_v46 }
0x1764   : > { %11119 = vmatpush.bf16.msrb.mxu1 %v15429_v52 }
0x1766   : > { %v10762_v4 = vpop.f32.mrf.mxu2  ;;  %v10651_v21 = vpop.f32.mrf.mxu3 }
0x1767   : > { %v10656_v9 = vadd.f32 %v10651_v21, %v10561_v56 }
0x1768   : > { %11120 = vmatpush.bf16.msrb.mxu1 %v15428_v22 }
0x176b   : > { %14562 = vmatmul.msk.bf16.vlgmr.msra.gmra.mxu1 %vm8465_vm1, %v18993_v27  ;;  %v15420_v27 = vld [vmem:[%s19602_s7 + $0xf60] sm:$0xff] }
0x176c   : > { %11025 = vmatpush.bf16.msra.mxu2 %v15420_v27  ;;  %11121 = vmatpush.bf16.msrb.mxu1 %v15427_v7 }
0x176e   : > { %v10764_v6 = vpop.f32.mrf.mxu2  ;;  %v10653_v8 = vpop.f32.mrf.mxu3 }
0x176f   : > { %v10767_v57 = vpack.c.bf16 %v10764_v6, %v10762_v4  ;;  %v10657_v39 = vadd.f32 %v10653_v8, %v10562_v30 }
0x1770   : > { %11026 = vmatpush.bf16.msra.mxu2 %v15419_v18  ;;  %11122 = vmatpush.bf16.msrb.mxu1 %v15426_v5 }
0x1771   : > { %10840 = vmatmul.bf16.vlgmr.msra.gmra.mxu0 %v10767_v57 }
0x1774   : > { %11123 = vmatpush.bf16.msrb.mxu1 %v15425_v36 }
0x1776   : > { %v10857_v49 = vpop.f32.mrf.mxu2 }
0x1778   : > { %11124 = vmatpush.bf16.msrb.mxu1 %v15424_v26 }
0x177e   : > { %v10859_v24 = vpop.f32.mrf.mxu2 }
0x177f   : > { %v10862_v28 = vpack.c.bf16 %v10859_v24, %v10857_v49 }
0x1781   : > { %10935 = vmatmul.bf16.vlgmr.msrb.gmra.mxu3 %v10862_v28  ;;  %14595 = vmatmul.msk.bf16.vlgmr.msrb.gmra.mxu0 %vm8465_vm1, %v19000_v17  ;;  %v15418_v17 = vld [vmem:[%s19602_s7 + $0xf50] sm:$0xff] }
0x1782   : > { %11027 = vmatpush.bf16.msra.mxu2 %v15418_v17 }
0x1786   : > { %11028 = vmatpush.bf16.msra.mxu2 %v15417_v42 }
0x178a   : > { %11029 = vmatpush.bf16.msra.mxu2 %v15416_v23 }
0x17d8   : > { %v10746_v59 = vpop.f32.mrf.mxu1 }
0x17d9   : > { %v10751_v11 = vadd.f32 %v10746_v59, %v10656_v9 }
0x17e0   : > { %v10748_v60 = vpop.f32.mrf.mxu1 }
0x17e1   : > { %v10752_v12 = vadd.f32 %v10748_v60, %v10657_v39 }
0x17e8   : > { %v10952_v1 = vpop.f32.mrf.mxu1 }
0x17ee   : > { %v10841_v51 = vpop.f32.mrf.mxu0 }
0x17ef   : > { %v10846_v3 = vadd.f32 %v10841_v51, %v10751_v11 }
0x17f0   : > { %v10954_v62 = vpop.f32.mrf.mxu1 }
0x17f1   : > { %v10957_v20 = vpack.c.bf16 %v10954_v62, %v10952_v1 }
0x17f3   : > { %11030 = vmatmul.bf16.vlgmr.msra.gmra.mxu2 %v10957_v20 }
0x17f6   : > { %v10843_v25 = vpop.f32.mrf.mxu0 }
0x17f7   : > { %v10847_v19 = vadd.f32 %v10843_v25, %v10752_v12 }
0x17fe   : > { %v11047_v38 = vpop.f32.mrf.mxu0 }
0x1804   : > { %v10936_v48 = vpop.f32.mrf.mxu3 }
0x1805   : > { %v10941_v15 = vadd.f32 %v10936_v48, %v10846_v3 }
0x1806   : > { %v11049_v2 = vpop.f32.mrf.mxu0 }
0x1807   : > { %v11052_v10 = vpack.c.bf16 %v11049_v2, %v11047_v38 }
0x1809   : > { %11125 = vmatmul.bf16.vlgmr.msrb.gmra.mxu1 %v11052_v10 }
0x180c   : > { %v10938_v55 = vpop.f32.mrf.mxu3 }
0x180d   : > { %v10942_v31 = vadd.f32 %v10938_v55, %v10847_v19 }
0x1876   : > { %v11031_v61 = vpop.f32.mrf.mxu2 }
0x1877   : > { %v11036_v33 = vadd.f32 %v11031_v61, %v10941_v15 }
0x187e   : > { %v11033_v13 = vpop.f32.mrf.mxu2 }
0x187f   : > { %v11037_v56 = vadd.f32 %v11033_v13, %v10942_v31 }
0x1886   : > { %v11126_v32 = vpop.f32.mrf.mxu1 }
0x1887   : > { %v11131_v44 = vadd.f32 %v11126_v32, %v11036_v33 }
0x1889   : > { %v11135_v50 = vadd.f32 %v15512_v16, %v11131_v44 }
0x188b   : > { %v11139_v0 = vadd.f32 %v11137_v37, %v11135_v50 }
0x188d   : > { %v11141_v53 = vmax.f32 %v11139_v0, 0.0 }
0x188e   : > { %v11128_v63 = vpop.f32.mrf.mxu1 }
0x188f   : > { %11143 = vst [vmem:[%s413_s15] sm:$0xff] %v11141_v53  ;;  %v11132_v29 = vadd.f32 %v11128_v63, %v11037_v56 }
0x1891   : > { %v11136_v58 = vadd.f32 %v15512_v16, %v11132_v29 }
0x1893   : > { %v11140_v45 = vadd.f32 %v11138_v47, %v11136_v58 }
0x1895   : > { %v11142_v41 = vmax.f32 %v11140_v45, 0.0 }
0x1897   : > { %11144 = vst [vmem:[%s413_s15 + $0x8] sm:$0xff] %v11142_v41 }
0x1898   : > { %15696 = shalt.err (!%p15693_p8)
}
0x1899   : > { %s15745_s26 = smov 128   ;;  %s15746_s15 = smov 8  }
0x189a   : > { %15449 = dma.vmem_to_hbm [thread:$0]  (%p15845_p5), %s11159_s25, 256, %s11161_s30, %s11146_s21, %s15745_s26, %s15745_s26, %s15746_s15  }
0x189b PF: > { %p15466_p9 = scmp.ge.s32.totalorder %s15739_s20, 2  ;;  %s11175_s24 = sand.u32 1, %s15727_s17  }
0x189c   : > { %s11176_s19 = scalar_lea.sflag [#allocation4], %s11175_s24 }
0x189d   : > { %p15459_p10 = pnand %p15466_p9, %p15849_p6 }
0x189f   : > { %p15460_p11 = pneg %p15459_p10 }
0x18a1   : > { %15722 = dma.done.wait (%p15460_p11), %s11176_s19, 256  }
0x18a2   : > { %15724 = vsyncadd (%p15460_p11), %s11176_s19, 4294967040  ;;  %s19613_s12 = sld [smem:[#allocation11_spill]]  ;;  %p23_p12 = scmp.ge.s32.totalorder %s15832_s23, 4  }
0x18a3   : > { %s19614_s19 = sld [smem:[#allocation12_spill]]  ;;  %s19615_s17 = smov %s15731_s18 }
0x18a4   : > { %s19617_s20 = smov %s15832_s23  ;;  %25 = sbr.rel (!%p23_p12) target bundleno = 5 (0x5), region = 108 }
0x18a8   : > { %s19616_s18 = smov %s19613_s12 }
0x18a9   :  { %11182 = vsyncpa [#allocation3], 1 }
0x18aa   :  { %11184 = vsyncpa [#allocation3 + $0x1], 1 }
0x18ab   :  { %11185 = vsyncpa [#allocation6], 1 }
0x18ac   :  { %11186 = vsyncpa [#allocation4], 1 }
0x18ad   :  { %11188 = vsyncpa [#allocation4 + $0x1], 1 }

</bundles_post_ra>
